<compile_context>
chip_gen: v7x
topology: tpu7x:2x2x1
jax: 0.10.0
libtpu: 0.0.40
codegen_flags: <defaults>
</compile_context>

<pallas_src>
import math

import jax
import jax.numpy as jnp
import numpy as np
from jax import lax
from jax.experimental import pallas as pl
from jax.experimental.pallas import tpu as pltpu


def _tree_sum(xs):
    """Balanced pairwise sum (shorter dependency chain than a linear fold)."""
    xs = list(xs)
    while len(xs) > 1:
        nxt = [xs[i] + xs[i + 1] for i in range(0, len(xs) - 1, 2)]
        if len(xs) % 2:
            nxt.append(xs[-1])
        xs = nxt
    return xs[0]


def _pick_row_tile(H, W, B, C, K2, interm_budget_bytes, min_steps=4):
    """Output rows per grid step.

    Chosen so that (a) the ~6 live (K2, TH*W, C) f32 intermediates stay inside
    a conservative VMEM byte budget (so the same tile also fits v7x's 64 MiB
    physical VMEM, not only v5e/v6e's 128 MiB), and (b) the grid has at least
    `min_steps` steps so v7x's two TensorCores both get work and the
    input/output DMA pipeline has something to overlap.
    """
    c_pad = ((C + 127) // 128) * 128          # lane padding of the channel axis
    per_row = 6 * K2 * W * c_pad * 4
    th_cap = max(1, interm_budget_bytes // per_row)
    divisors = [d for d in range(1, H + 1) if H % d == 0]
    cands = [d for d in divisors if d <= th_cap and B * (H // d) >= min_steps]
    if not cands:
        cands = [d for d in divisors if d <= th_cap] or [1]
    return max(cands)


def _rfaconv_kernel(xp_ref, wpk_ref, wc_ref, bias2_ref, out_ref):
    # xp_ref   : (1, Hp, Wp, C)   zero-padded NHWC image of one batch element
    #                             (same block index for every row tile, so the
    #                             pipeline fetches it once per batch element)
    # wpk_ref  : (K2, K2+2, C)    packed per-output-tap params:
    #                               [:, :K2]   depthwise KxK weights (BN1 scale folded)
    #                               [:, K2]    grouped 1x1 attn weights (1/K2 folded)
    #                               [:, K2+1]  BN1 shift
    # wc_ref   : (K2, C, OC)      final conv weights (BN2 scale folded), bf16
    # bias2_ref: (1, OC)          conv bias * bn2_s + bn2_b
    # out_ref  : (1, TH, W, OC)   NHWC output row tile
    _, TH, W, OC = out_ref.shape
    K2, _, C = wpk_ref.shape
    K = int(round(math.sqrt(K2)))
    N = TH * W

    t = pl.program_id(1)
    row0 = pl.multiple_of(t * TH, TH)      # first padded input row of this tile

    # ---- in-kernel im2col: K*K shifted (TH, W, C) views of the padded image.
    # Channels sit on the lane axis, so the shifts only touch leading/sublane
    # dims (no cross-lane moves) and no K2x patches array ever hits HBM.
    taps = []
    for i in range(K):
        rows_i = xp_ref[0, pl.ds(row0 + i, TH), :, :]            # (TH, Wp, C)
        for j in range(K):
            taps.append(rows_i[:, j:j + W, :].reshape(N, C))     # (N, C)

    wpk = wpk_ref[...]                                           # (K2, K2+2, C)

    # ---- receptive-field attention: avg-pool + grouped 1x1 + softmax over K2.
    # (The 1/K2 of the avg-pool is folded into the 1x1 weights.)
    pooled = _tree_sum(taps)                                     # (N, C)
    logits = pooled[None, :, :] * wpk[:, K2:K2 + 1, :]           # (K2, N, C)
    m = jnp.max(logits, axis=0, keepdims=True)
    e = jnp.exp(logits - m)
    denom = jnp.sum(e, axis=0, keepdims=True)
    sm = e * pl.reciprocal(denom, approx=True)                   # EUP reciprocal

    # ---- depthwise KxK conv (BN1 scale folded into the weights) + shift + ReLU.
    # TODO(synk): if VALU-bound at production C, move these K2*K2 FMAs onto the
    # otherwise-idle MXU as a block-diagonal matmul built once in the wrapper.
    feat = _tree_sum(
        [taps[j][None, :, :] * wpk[:, j:j + 1, :] for j in range(K2)])
    feat = jnp.maximum(feat + wpk[:, K2 + 1:K2 + 2, :], 0.0)     # (K2, N, C)

    # bf16 operands for the MXU (f32 accumulation); VPU/EUP math above stays f32.
    weighted = (feat * sm).astype(wc_ref.dtype)                  # (K2, N, C)

    # ---- final KxK / stride-K conv: contract over the channel (lane) axis per
    # tap; accumulate the K2 MXU matmuls in f32.  No staging scratch needed.
    wc = wc_ref[...]
    acc = jnp.dot(weighted[0], wc[0], preferred_element_type=jnp.float32)
    for k in range(1, K2):
        acc = acc + jnp.dot(weighted[k], wc[k],
                            preferred_element_type=jnp.float32)  # (N, OC)
    out = jnp.maximum(acc + bias2_ref[...], 0.0)
    out_ref[0] = out.reshape(TH, W, OC)


def rfaconv_pallas(x, params, kernel_size, stride=1, interm_budget_bytes=8 << 20):
    # TODO(synk): only stride=1 (the default) is implemented; stride>1 would
    # change the output spatial grid and the tap row/col strides.
    assert stride == 1
    w1, w2, bn1_s, bn1_b, wc, cb, bn2_s, bn2_b = params
    B, C, H, W = x.shape
    K = kernel_size
    K2 = K * K
    OC = wc.shape[0]
    pad = K // 2
    Hp, Wp = H + 2 * pad, W + 2 * pad

    # ---- glue: NHWC + zero padding.  The input is passed ONCE; the K2 im2col
    # taps are built in-kernel (no K2x HBM blow-up).
    xp = jnp.pad(jnp.transpose(x.astype(jnp.float32), (0, 2, 3, 1)),
                 ((0, 0), (pad, pad), (pad, pad), (0, 0)))        # (B, Hp, Wp, C)

    # ---- glue: fold BN / bias / 1/K2 constants and pack the tiny per-tap
    # parameters into a single (K2, K2+2, C) array (channels on the lane axis).
    w1r = w1.reshape(C, K2).astype(jnp.float32)                    # grouped 1x1
    w2r = w2.reshape(C, K2, K2).astype(jnp.float32)                # depthwise
    s1 = bn1_s.reshape(C, K2).astype(jnp.float32)
    b1 = bn1_b.reshape(C, K2).astype(jnp.float32)
    wdw = w2r * s1[:, :, None]                                     # BN1 scale folded
    wpk = jnp.concatenate(
        [jnp.transpose(wdw, (1, 2, 0)),                            # (K2, K2, C)
         jnp.transpose(w1r / K2, (1, 0))[:, None, :],              # (K2, 1, C)
         jnp.transpose(b1, (1, 0))[:, None, :]], axis=1)           # (K2, K2+2, C)

    wcf = wc.astype(jnp.float32) * bn2_s[:, None, None, None].astype(jnp.float32)
    wcr = jnp.transpose(wcf.reshape(OC, C, K2), (2, 1, 0)).astype(jnp.bfloat16)
    bias2 = (cb * bn2_s + bn2_b).reshape(1, OC).astype(jnp.float32)

    TH = _pick_row_tile(H, W, B, C, K2, interm_budget_bytes)
    grid = (B, H // TH)

    # TODO(synk): for H*W*C large enough that one padded image block no longer
    # fits VMEM, switch xp to memory_space=pl.ANY and DMA (TH + 2*pad)-row
    # halos per grid step (optionally pl.Buffered(3)-deep on v5e).
    out = pl.pallas_call(
        _rfaconv_kernel,
        out_shape=jax.ShapeDtypeStruct((B, H, W, OC), jnp.float32),
        grid_spec=pltpu.PrefetchScalarGridSpec(
            num_scalar_prefetch=0,
            grid=grid,
            in_specs=[
                pl.BlockSpec((1, Hp, Wp, C), lambda b, t: (b, 0, 0, 0)),
                pl.BlockSpec((K2, K2 + 2, C), lambda b, t: (0, 0, 0)),
                pl.BlockSpec((K2, C, OC), lambda b, t: (0, 0, 0)),
                pl.BlockSpec((1, OC), lambda b, t: (0, 0)),
            ],
            out_specs=pl.BlockSpec((1, TH, W, OC), lambda b, t: (b, t, 0, 0)),
        ),
        compiler_params=pltpu.CompilerParams(
            dimension_semantics=("parallel", "arbitrary"),
            vmem_limit_bytes=32 * 1024 * 1024),
    )(xp, wpk, wcr, bias2)

    # back to NCHW
    return jnp.transpose(out, (0, 3, 1, 2))


def rfaconv_reference(x, params, kernel_size, stride=1):
    """Pure-JAX reference mirroring the PyTorch forward (inference-mode BN)."""
    w1, w2, bn1_s, bn1_b, wc, cb, bn2_s, bn2_b = params
    B, C = x.shape[:2]
    K = kernel_size
    K2 = K * K
    pad = K // 2
    dn = ('NCHW', 'OIHW', 'NCHW')

    pooled = lax.reduce_window(
        x, 0.0, lax.add, (1, 1, K, K), (1, 1, stride, stride),
        [(0, 0), (0, 0), (pad, pad), (pad, pad)]) / K2
    weight = lax.conv_general_dilated(
        pooled, w1, (1, 1), 'VALID', dimension_numbers=dn,
        feature_group_count=C)
    h, w = weight.shape[2:]
    weighted = jax.nn.softmax(weight.reshape(B, C, K2, h, w), axis=2)

    feat = lax.conv_general_dilated(
        x, w2, (stride, stride), [(pad, pad), (pad, pad)],
        dimension_numbers=dn, feature_group_count=C)
    feat = feat * bn1_s[None, :, None, None] + bn1_b[None, :, None, None]
    feat = jnp.maximum(feat, 0.0).reshape(B, C, K2, h, w)

    wd = feat * weighted                                   # (B, C, K2, h, w)
    conv_data = wd.reshape(B, C, K, K, h, w).transpose(0, 1, 4, 2, 5, 3)
    conv_data = conv_data.reshape(B, C, h * K, w * K)

    out = lax.conv_general_dilated(
        conv_data, wc, (K, K), 'VALID', dimension_numbers=dn)
    out = out + cb[None, :, None, None]
    out = jnp.maximum(
        out * bn2_s[None, :, None, None] + bn2_b[None, :, None, None], 0.0)
    return out


if __name__ == "__main__":
    B, C, OC, H, W, K = 2, 4, 8, 16, 16, 3
    K2 = K * K

    key = jax.random.PRNGKey(0)
    ks = jax.random.split(key, 9)
    x = jax.random.normal(ks[0], (B, C, H, W), jnp.float32)
    # Parameter shapes follow the PyTorch module's __init__ (deterministic init).
    w1 = 0.5 * jax.random.normal(ks[1], (C * K2, 1, 1, 1), jnp.float32)          # get_weight 1x1 grouped conv
    w2 = (1.0 / math.sqrt(K2)) * jax.random.normal(ks[2], (C * K2, 1, K, K), jnp.float32)  # generate_feature dw conv
    bn1_s = 1.0 + 0.1 * jax.random.normal(ks[3], (C * K2,), jnp.float32)          # folded BN scale
    bn1_b = 0.1 * jax.random.normal(ks[4], (C * K2,), jnp.float32)                # folded BN bias
    wc = (1.0 / math.sqrt(C * K2)) * jax.random.normal(ks[5], (OC, C, K, K), jnp.float32)  # final conv
    cb = 0.1 * jax.random.normal(ks[6], (OC,), jnp.float32)                       # final conv bias
    bn2_s = 1.0 + 0.1 * jax.random.normal(ks[7], (OC,), jnp.float32)
    bn2_b = 0.1 * jax.random.normal(ks[8], (OC,), jnp.float32)
    params = (w1, w2, bn1_s, bn1_b, wc, cb, bn2_s, bn2_b)

    out = jax.block_until_ready(rfaconv_pallas(x, params, K))
    ref = jax.block_until_ready(rfaconv_reference(x, params, K))

    assert out.shape == (B, OC, H, W)
    # Tolerance accommodates the bf16 MXU operands of the final conv (f32
    # accumulation) and the EUP approximate reciprocal in the softmax.
    np.testing.assert_allclose(np.asarray(out), np.asarray(ref),
                               rtol=1e-2, atol=1e-2)
    print("KERNEL_OK")
</pallas_src>

<mosaic_0001>
module attributes {stable_mosaic.version = 11 : i64} {
  func.func @_rfaconv_kernel(%arg0: i32, %arg1: i32, %arg2: memref<1x18x18x4xf32, #tpu.memory_space<vmem>>, %arg3: memref<9x11x4xf32, #tpu.memory_space<vmem>>, %arg4: memref<9x4x8xbf16, #tpu.memory_space<vmem>>, %arg5: memref<1x8xf32, #tpu.memory_space<vmem>>, %arg6: memref<1x8x16x8xf32, #tpu.memory_space<vmem>>) attributes {dimension_semantics = [#tpu.dimension_semantics<parallel>, #tpu.dimension_semantics<arbitrary>], iteration_bounds = array<i64: 2, 2>, scalar_prefetch = 0 : i64, scratch_operands = 0 : i64, tpu.core_type = #tpu.core_type<tc>, window_params = [{transform_indices = @transform_0, window_bounds = array<i64: 1, 18, 18, 4>}, {pipeline_mode = #tpu.pipeline_mode<synchronous>, transform_indices = @transform_1, window_bounds = array<i64: 9, 11, 4>}, {pipeline_mode = #tpu.pipeline_mode<synchronous>, transform_indices = @transform_2, window_bounds = array<i64: 9, 4, 8>}, {pipeline_mode = #tpu.pipeline_mode<synchronous>, transform_indices = @transform_3, window_bounds = array<i64: 1, 8>}, {transform_indices = @transform_4, window_bounds = array<i64: 1, 8, 16, 8>}]} {
    %c8_i32 = arith.constant 8 : i32
    %0 = arith.muli %arg1, %c8_i32 : i32
    %1 = tpu.assume_multiple %0, 8 : i32
    %c0_i32 = arith.constant 0 : i32
    %2 = arith.addi %1, %c0_i32 : i32
    %c0 = arith.constant 0 : index
    %3 = arith.index_cast %2 : i32 to index
    %c0_0 = arith.constant 0 : index
    %c0_1 = arith.constant 0 : index
    %4 = vector.load %arg2[%c0, %3, %c0_0, %c0_1] : memref<1x18x18x4xf32, #tpu.memory_space<vmem>>, vector<1x8x18x4xf32>
    %5 = vector.shape_cast %4 : vector<1x8x18x4xf32> to vector<8x18x4xf32>
    %6 = vector.extract_strided_slice %5 {offsets = [0, 0, 0], sizes = [8, 16, 4], strides = [1, 1, 1]} : vector<8x18x4xf32> to vector<8x16x4xf32>
    %7 = vector.shape_cast %6 : vector<8x16x4xf32> to vector<128x4xf32>
    %8 = vector.extract_strided_slice %5 {offsets = [0, 1, 0], sizes = [8, 16, 4], strides = [1, 1, 1]} : vector<8x18x4xf32> to vector<8x16x4xf32>
    %9 = vector.shape_cast %8 : vector<8x16x4xf32> to vector<128x4xf32>
    %10 = vector.extract_strided_slice %5 {offsets = [0, 2, 0], sizes = [8, 16, 4], strides = [1, 1, 1]} : vector<8x18x4xf32> to vector<8x16x4xf32>
    %11 = vector.shape_cast %10 : vector<8x16x4xf32> to vector<128x4xf32>
    %c1_i32 = arith.constant 1 : i32
    %12 = arith.addi %1, %c1_i32 : i32
    %c0_2 = arith.constant 0 : index
    %13 = arith.index_cast %12 : i32 to index
    %c0_3 = arith.constant 0 : index
    %c0_4 = arith.constant 0 : index
    %14 = vector.load %arg2[%c0_2, %13, %c0_3, %c0_4] : memref<1x18x18x4xf32, #tpu.memory_space<vmem>>, vector<1x8x18x4xf32>
    %15 = vector.shape_cast %14 : vector<1x8x18x4xf32> to vector<8x18x4xf32>
    %16 = vector.extract_strided_slice %15 {offsets = [0, 0, 0], sizes = [8, 16, 4], strides = [1, 1, 1]} : vector<8x18x4xf32> to vector<8x16x4xf32>
    %17 = vector.shape_cast %16 : vector<8x16x4xf32> to vector<128x4xf32>
    %18 = vector.extract_strided_slice %15 {offsets = [0, 1, 0], sizes = [8, 16, 4], strides = [1, 1, 1]} : vector<8x18x4xf32> to vector<8x16x4xf32>
    %19 = vector.shape_cast %18 : vector<8x16x4xf32> to vector<128x4xf32>
    %20 = vector.extract_strided_slice %15 {offsets = [0, 2, 0], sizes = [8, 16, 4], strides = [1, 1, 1]} : vector<8x18x4xf32> to vector<8x16x4xf32>
    %21 = vector.shape_cast %20 : vector<8x16x4xf32> to vector<128x4xf32>
    %c2_i32 = arith.constant 2 : i32
    %22 = arith.addi %1, %c2_i32 : i32
    %c0_5 = arith.constant 0 : index
    %23 = arith.index_cast %22 : i32 to index
    %c0_6 = arith.constant 0 : index
    %c0_7 = arith.constant 0 : index
    %24 = vector.load %arg2[%c0_5, %23, %c0_6, %c0_7] : memref<1x18x18x4xf32, #tpu.memory_space<vmem>>, vector<1x8x18x4xf32>
    %25 = vector.shape_cast %24 : vector<1x8x18x4xf32> to vector<8x18x4xf32>
    %26 = vector.extract_strided_slice %25 {offsets = [0, 0, 0], sizes = [8, 16, 4], strides = [1, 1, 1]} : vector<8x18x4xf32> to vector<8x16x4xf32>
    %27 = vector.shape_cast %26 : vector<8x16x4xf32> to vector<128x4xf32>
    %28 = vector.extract_strided_slice %25 {offsets = [0, 1, 0], sizes = [8, 16, 4], strides = [1, 1, 1]} : vector<8x18x4xf32> to vector<8x16x4xf32>
    %29 = vector.shape_cast %28 : vector<8x16x4xf32> to vector<128x4xf32>
    %30 = vector.extract_strided_slice %25 {offsets = [0, 2, 0], sizes = [8, 16, 4], strides = [1, 1, 1]} : vector<8x18x4xf32> to vector<8x16x4xf32>
    %31 = vector.shape_cast %30 : vector<8x16x4xf32> to vector<128x4xf32>
    %c0_8 = arith.constant 0 : index
    %c0_9 = arith.constant 0 : index
    %c0_10 = arith.constant 0 : index
    %32 = vector.load %arg3[%c0_8, %c0_9, %c0_10] : memref<9x11x4xf32, #tpu.memory_space<vmem>>, vector<9x11x4xf32>
    %33 = arith.addf %7, %9 : vector<128x4xf32>
    %34 = arith.addf %11, %17 : vector<128x4xf32>
    %35 = arith.addf %19, %21 : vector<128x4xf32>
    %36 = arith.addf %27, %29 : vector<128x4xf32>
    %37 = arith.addf %33, %34 : vector<128x4xf32>
    %38 = arith.addf %35, %36 : vector<128x4xf32>
    %39 = arith.addf %37, %38 : vector<128x4xf32>
    %40 = arith.addf %39, %31 : vector<128x4xf32>
    %41 = vector.shape_cast %40 : vector<128x4xf32> to vector<1x128x4xf32>
    %42 = vector.extract_strided_slice %32 {offsets = [0, 9, 0], sizes = [9, 1, 4], strides = [1, 1, 1]} : vector<9x11x4xf32> to vector<9x1x4xf32>
    %43 = vector.broadcast %41 : vector<1x128x4xf32> to vector<9x128x4xf32>
    %44 = vector.broadcast %42 : vector<9x1x4xf32> to vector<9x128x4xf32>
    %45 = arith.mulf %43, %44 : vector<9x128x4xf32>
    %cst = arith.constant dense<0xFF800000> : vector<128x4xf32>
    %46 = vector.multi_reduction <maximumf>, %45, %cst [0] : vector<9x128x4xf32> to vector<128x4xf32>
    %47 = vector.shape_cast %46 : vector<128x4xf32> to vector<1x128x4xf32>
    %48 = vector.broadcast %47 : vector<1x128x4xf32> to vector<9x128x4xf32>
    %49 = arith.subf %45, %48 : vector<9x128x4xf32>
    %50 = math.exp %49 : vector<9x128x4xf32>
    %cst_11 = arith.constant dense<0.000000e+00> : vector<128x4xf32>
    %51 = vector.multi_reduction <add>, %50, %cst_11 [0] : vector<9x128x4xf32> to vector<128x4xf32>
    %52 = vector.shape_cast %51 : vector<128x4xf32> to vector<1x128x4xf32>
    %53 = tpu.reciprocal %52 {approx = true} : vector<1x128x4xf32> -> vector<1x128x4xf32>
    %54 = vector.broadcast %53 : vector<1x128x4xf32> to vector<9x128x4xf32>
    %55 = arith.mulf %50, %54 : vector<9x128x4xf32>
    %56 = vector.shape_cast %7 : vector<128x4xf32> to vector<1x128x4xf32>
    %57 = vector.extract_strided_slice %32 {offsets = [0, 0, 0], sizes = [9, 1, 4], strides = [1, 1, 1]} : vector<9x11x4xf32> to vector<9x1x4xf32>
    %58 = vector.broadcast %56 : vector<1x128x4xf32> to vector<9x128x4xf32>
    %59 = vector.broadcast %57 : vector<9x1x4xf32> to vector<9x128x4xf32>
    %60 = arith.mulf %58, %59 : vector<9x128x4xf32>
    %61 = vector.shape_cast %9 : vector<128x4xf32> to vector<1x128x4xf32>
    %62 = vector.extract_strided_slice %32 {offsets = [0, 1, 0], sizes = [9, 1, 4], strides = [1, 1, 1]} : vector<9x11x4xf32> to vector<9x1x4xf32>
    %63 = vector.broadcast %61 : vector<1x128x4xf32> to vector<9x128x4xf32>
    %64 = vector.broadcast %62 : vector<9x1x4xf32> to vector<9x128x4xf32>
    %65 = arith.mulf %63, %64 : vector<9x128x4xf32>
    %66 = vector.shape_cast %11 : vector<128x4xf32> to vector<1x128x4xf32>
    %67 = vector.extract_strided_slice %32 {offsets = [0, 2, 0], sizes = [9, 1, 4], strides = [1, 1, 1]} : vector<9x11x4xf32> to vector<9x1x4xf32>
    %68 = vector.broadcast %66 : vector<1x128x4xf32> to vector<9x128x4xf32>
    %69 = vector.broadcast %67 : vector<9x1x4xf32> to vector<9x128x4xf32>
    %70 = arith.mulf %68, %69 : vector<9x128x4xf32>
    %71 = vector.shape_cast %17 : vector<128x4xf32> to vector<1x128x4xf32>
    %72 = vector.extract_strided_slice %32 {offsets = [0, 3, 0], sizes = [9, 1, 4], strides = [1, 1, 1]} : vector<9x11x4xf32> to vector<9x1x4xf32>
    %73 = vector.broadcast %71 : vector<1x128x4xf32> to vector<9x128x4xf32>
    %74 = vector.broadcast %72 : vector<9x1x4xf32> to vector<9x128x4xf32>
    %75 = arith.mulf %73, %74 : vector<9x128x4xf32>
    %76 = vector.shape_cast %19 : vector<128x4xf32> to vector<1x128x4xf32>
    %77 = vector.extract_strided_slice %32 {offsets = [0, 4, 0], sizes = [9, 1, 4], strides = [1, 1, 1]} : vector<9x11x4xf32> to vector<9x1x4xf32>
    %78 = vector.broadcast %76 : vector<1x128x4xf32> to vector<9x128x4xf32>
    %79 = vector.broadcast %77 : vector<9x1x4xf32> to vector<9x128x4xf32>
    %80 = arith.mulf %78, %79 : vector<9x128x4xf32>
    %81 = vector.shape_cast %21 : vector<128x4xf32> to vector<1x128x4xf32>
    %82 = vector.extract_strided_slice %32 {offsets = [0, 5, 0], sizes = [9, 1, 4], strides = [1, 1, 1]} : vector<9x11x4xf32> to vector<9x1x4xf32>
    %83 = vector.broadcast %81 : vector<1x128x4xf32> to vector<9x128x4xf32>
    %84 = vector.broadcast %82 : vector<9x1x4xf32> to vector<9x128x4xf32>
    %85 = arith.mulf %83, %84 : vector<9x128x4xf32>
    %86 = vector.shape_cast %27 : vector<128x4xf32> to vector<1x128x4xf32>
    %87 = vector.extract_strided_slice %32 {offsets = [0, 6, 0], sizes = [9, 1, 4], strides = [1, 1, 1]} : vector<9x11x4xf32> to vector<9x1x4xf32>
    %88 = vector.broadcast %86 : vector<1x128x4xf32> to vector<9x128x4xf32>
    %89 = vector.broadcast %87 : vector<9x1x4xf32> to vector<9x128x4xf32>
    %90 = arith.mulf %88, %89 : vector<9x128x4xf32>
    %91 = vector.shape_cast %29 : vector<128x4xf32> to vector<1x128x4xf32>
    %92 = vector.extract_strided_slice %32 {offsets = [0, 7, 0], sizes = [9, 1, 4], strides = [1, 1, 1]} : vector<9x11x4xf32> to vector<9x1x4xf32>
    %93 = vector.broadcast %91 : vector<1x128x4xf32> to vector<9x128x4xf32>
    %94 = vector.broadcast %92 : vector<9x1x4xf32> to vector<9x128x4xf32>
    %95 = arith.mulf %93, %94 : vector<9x128x4xf32>
    %96 = vector.shape_cast %31 : vector<128x4xf32> to vector<1x128x4xf32>
    %97 = vector.extract_strided_slice %32 {offsets = [0, 8, 0], sizes = [9, 1, 4], strides = [1, 1, 1]} : vector<9x11x4xf32> to vector<9x1x4xf32>
    %98 = vector.broadcast %96 : vector<1x128x4xf32> to vector<9x128x4xf32>
    %99 = vector.broadcast %97 : vector<9x1x4xf32> to vector<9x128x4xf32>
    %100 = arith.mulf %98, %99 : vector<9x128x4xf32>
    %101 = arith.addf %60, %65 : vector<9x128x4xf32>
    %102 = arith.addf %70, %75 : vector<9x128x4xf32>
    %103 = arith.addf %80, %85 : vector<9x128x4xf32>
    %104 = arith.addf %90, %95 : vector<9x128x4xf32>
    %105 = arith.addf %101, %102 : vector<9x128x4xf32>
    %106 = arith.addf %103, %104 : vector<9x128x4xf32>
    %107 = arith.addf %105, %106 : vector<9x128x4xf32>
    %108 = arith.addf %107, %100 : vector<9x128x4xf32>
    %109 = vector.extract_strided_slice %32 {offsets = [0, 10, 0], sizes = [9, 1, 4], strides = [1, 1, 1]} : vector<9x11x4xf32> to vector<9x1x4xf32>
    %110 = vector.broadcast %109 : vector<9x1x4xf32> to vector<9x128x4xf32>
    %111 = arith.addf %108, %110 : vector<9x128x4xf32>
    %cst_12 = arith.constant 0.000000e+00 : f32
    %112 = vector.broadcast %cst_12 : f32 to vector<9x128x4xf32>
    %113 = arith.maximumf %111, %112 : vector<9x128x4xf32>
    %114 = arith.mulf %113, %55 : vector<9x128x4xf32>
    %115 = arith.truncf %114 : vector<9x128x4xf32> to vector<9x128x4xbf16>
    %c0_13 = arith.constant 0 : index
    %c0_14 = arith.constant 0 : index
    %c0_15 = arith.constant 0 : index
    %116 = vector.load %arg4[%c0_13, %c0_14, %c0_15] : memref<9x4x8xbf16, #tpu.memory_space<vmem>>, vector<9x4x8xbf16>
    %117 = vector.extract_strided_slice %115 {offsets = [0, 0, 0], sizes = [1, 128, 4], strides = [1, 1, 1]} : vector<9x128x4xbf16> to vector<1x128x4xbf16>
    %118 = vector.shape_cast %117 : vector<1x128x4xbf16> to vector<128x4xbf16>
    %119 = vector.extract_strided_slice %116 {offsets = [0, 0, 0], sizes = [1, 4, 8], strides = [1, 1, 1]} : vector<9x4x8xbf16> to vector<1x4x8xbf16>
    %120 = vector.shape_cast %119 : vector<1x4x8xbf16> to vector<4x8xbf16>
    %cst_16 = arith.constant dense<0.000000e+00> : vector<128x8xf32>
    %121 = tpu.matmul %118, %120, %cst_16 {dimension_numbers = #tpu.dot_dimension_numbers<[1], [0], [0], [1], [0, 0, 1, 1], [], []>} : vector<128x4xbf16>, vector<4x8xbf16>, vector<128x8xf32> -> vector<128x8xf32>
    %122 = vector.extract_strided_slice %115 {offsets = [1, 0, 0], sizes = [1, 128, 4], strides = [1, 1, 1]} : vector<9x128x4xbf16> to vector<1x128x4xbf16>
    %123 = vector.shape_cast %122 : vector<1x128x4xbf16> to vector<128x4xbf16>
    %124 = vector.extract_strided_slice %116 {offsets = [1, 0, 0], sizes = [1, 4, 8], strides = [1, 1, 1]} : vector<9x4x8xbf16> to vector<1x4x8xbf16>
    %125 = vector.shape_cast %124 : vector<1x4x8xbf16> to vector<4x8xbf16>
    %cst_17 = arith.constant dense<0.000000e+00> : vector<128x8xf32>
    %126 = tpu.matmul %123, %125, %cst_17 {dimension_numbers = #tpu.dot_dimension_numbers<[1], [0], [0], [1], [0, 0, 1, 1], [], []>} : vector<128x4xbf16>, vector<4x8xbf16>, vector<128x8xf32> -> vector<128x8xf32>
    %127 = arith.addf %121, %126 : vector<128x8xf32>
    %128 = vector.extract_strided_slice %115 {offsets = [2, 0, 0], sizes = [1, 128, 4], strides = [1, 1, 1]} : vector<9x128x4xbf16> to vector<1x128x4xbf16>
    %129 = vector.shape_cast %128 : vector<1x128x4xbf16> to vector<128x4xbf16>
    %130 = vector.extract_strided_slice %116 {offsets = [2, 0, 0], sizes = [1, 4, 8], strides = [1, 1, 1]} : vector<9x4x8xbf16> to vector<1x4x8xbf16>
    %131 = vector.shape_cast %130 : vector<1x4x8xbf16> to vector<4x8xbf16>
    %cst_18 = arith.constant dense<0.000000e+00> : vector<128x8xf32>
    %132 = tpu.matmul %129, %131, %cst_18 {dimension_numbers = #tpu.dot_dimension_numbers<[1], [0], [0], [1], [0, 0, 1, 1], [], []>} : vector<128x4xbf16>, vector<4x8xbf16>, vector<128x8xf32> -> vector<128x8xf32>
    %133 = arith.addf %127, %132 : vector<128x8xf32>
    %134 = vector.extract_strided_slice %115 {offsets = [3, 0, 0], sizes = [1, 128, 4], strides = [1, 1, 1]} : vector<9x128x4xbf16> to vector<1x128x4xbf16>
    %135 = vector.shape_cast %134 : vector<1x128x4xbf16> to vector<128x4xbf16>
    %136 = vector.extract_strided_slice %116 {offsets = [3, 0, 0], sizes = [1, 4, 8], strides = [1, 1, 1]} : vector<9x4x8xbf16> to vector<1x4x8xbf16>
    %137 = vector.shape_cast %136 : vector<1x4x8xbf16> to vector<4x8xbf16>
    %cst_19 = arith.constant dense<0.000000e+00> : vector<128x8xf32>
    %138 = tpu.matmul %135, %137, %cst_19 {dimension_numbers = #tpu.dot_dimension_numbers<[1], [0], [0], [1], [0, 0, 1, 1], [], []>} : vector<128x4xbf16>, vector<4x8xbf16>, vector<128x8xf32> -> vector<128x8xf32>
    %139 = arith.addf %133, %138 : vector<128x8xf32>
    %140 = vector.extract_strided_slice %115 {offsets = [4, 0, 0], sizes = [1, 128, 4], strides = [1, 1, 1]} : vector<9x128x4xbf16> to vector<1x128x4xbf16>
    %141 = vector.shape_cast %140 : vector<1x128x4xbf16> to vector<128x4xbf16>
    %142 = vector.extract_strided_slice %116 {offsets = [4, 0, 0], sizes = [1, 4, 8], strides = [1, 1, 1]} : vector<9x4x8xbf16> to vector<1x4x8xbf16>
    %143 = vector.shape_cast %142 : vector<1x4x8xbf16> to vector<4x8xbf16>
    %cst_20 = arith.constant dense<0.000000e+00> : vector<128x8xf32>
    %144 = tpu.matmul %141, %143, %cst_20 {dimension_numbers = #tpu.dot_dimension_numbers<[1], [0], [0], [1], [0, 0, 1, 1], [], []>} : vector<128x4xbf16>, vector<4x8xbf16>, vector<128x8xf32> -> vector<128x8xf32>
    %145 = arith.addf %139, %144 : vector<128x8xf32>
    %146 = vector.extract_strided_slice %115 {offsets = [5, 0, 0], sizes = [1, 128, 4], strides = [1, 1, 1]} : vector<9x128x4xbf16> to vector<1x128x4xbf16>
    %147 = vector.shape_cast %146 : vector<1x128x4xbf16> to vector<128x4xbf16>
    %148 = vector.extract_strided_slice %116 {offsets = [5, 0, 0], sizes = [1, 4, 8], strides = [1, 1, 1]} : vector<9x4x8xbf16> to vector<1x4x8xbf16>
    %149 = vector.shape_cast %148 : vector<1x4x8xbf16> to vector<4x8xbf16>
    %cst_21 = arith.constant dense<0.000000e+00> : vector<128x8xf32>
    %150 = tpu.matmul %147, %149, %cst_21 {dimension_numbers = #tpu.dot_dimension_numbers<[1], [0], [0], [1], [0, 0, 1, 1], [], []>} : vector<128x4xbf16>, vector<4x8xbf16>, vector<128x8xf32> -> vector<128x8xf32>
    %151 = arith.addf %145, %150 : vector<128x8xf32>
    %152 = vector.extract_strided_slice %115 {offsets = [6, 0, 0], sizes = [1, 128, 4], strides = [1, 1, 1]} : vector<9x128x4xbf16> to vector<1x128x4xbf16>
    %153 = vector.shape_cast %152 : vector<1x128x4xbf16> to vector<128x4xbf16>
    %154 = vector.extract_strided_slice %116 {offsets = [6, 0, 0], sizes = [1, 4, 8], strides = [1, 1, 1]} : vector<9x4x8xbf16> to vector<1x4x8xbf16>
    %155 = vector.shape_cast %154 : vector<1x4x8xbf16> to vector<4x8xbf16>
    %cst_22 = arith.constant dense<0.000000e+00> : vector<128x8xf32>
    %156 = tpu.matmul %153, %155, %cst_22 {dimension_numbers = #tpu.dot_dimension_numbers<[1], [0], [0], [1], [0, 0, 1, 1], [], []>} : vector<128x4xbf16>, vector<4x8xbf16>, vector<128x8xf32> -> vector<128x8xf32>
    %157 = arith.addf %151, %156 : vector<128x8xf32>
    %158 = vector.extract_strided_slice %115 {offsets = [7, 0, 0], sizes = [1, 128, 4], strides = [1, 1, 1]} : vector<9x128x4xbf16> to vector<1x128x4xbf16>
    %159 = vector.shape_cast %158 : vector<1x128x4xbf16> to vector<128x4xbf16>
    %160 = vector.extract_strided_slice %116 {offsets = [7, 0, 0], sizes = [1, 4, 8], strides = [1, 1, 1]} : vector<9x4x8xbf16> to vector<1x4x8xbf16>
    %161 = vector.shape_cast %160 : vector<1x4x8xbf16> to vector<4x8xbf16>
    %cst_23 = arith.constant dense<0.000000e+00> : vector<128x8xf32>
    %162 = tpu.matmul %159, %161, %cst_23 {dimension_numbers = #tpu.dot_dimension_numbers<[1], [0], [0], [1], [0, 0, 1, 1], [], []>} : vector<128x4xbf16>, vector<4x8xbf16>, vector<128x8xf32> -> vector<128x8xf32>
    %163 = arith.addf %157, %162 : vector<128x8xf32>
    %164 = vector.extract_strided_slice %115 {offsets = [8, 0, 0], sizes = [1, 128, 4], strides = [1, 1, 1]} : vector<9x128x4xbf16> to vector<1x128x4xbf16>
    %165 = vector.shape_cast %164 : vector<1x128x4xbf16> to vector<128x4xbf16>
    %166 = vector.extract_strided_slice %116 {offsets = [8, 0, 0], sizes = [1, 4, 8], strides = [1, 1, 1]} : vector<9x4x8xbf16> to vector<1x4x8xbf16>
    %167 = vector.shape_cast %166 : vector<1x4x8xbf16> to vector<4x8xbf16>
    %cst_24 = arith.constant dense<0.000000e+00> : vector<128x8xf32>
    %168 = tpu.matmul %165, %167, %cst_24 {dimension_numbers = #tpu.dot_dimension_numbers<[1], [0], [0], [1], [0, 0, 1, 1], [], []>} : vector<128x4xbf16>, vector<4x8xbf16>, vector<128x8xf32> -> vector<128x8xf32>
    %169 = arith.addf %163, %168 : vector<128x8xf32>
    %c0_25 = arith.constant 0 : index
    %c0_26 = arith.constant 0 : index
    %170 = vector.load %arg5[%c0_25, %c0_26] : memref<1x8xf32, #tpu.memory_space<vmem>>, vector<1x8xf32>
    %171 = vector.broadcast %170 : vector<1x8xf32> to vector<128x8xf32>
    %172 = arith.addf %169, %171 : vector<128x8xf32>
    %cst_27 = arith.constant 0.000000e+00 : f32
    %173 = vector.broadcast %cst_27 : f32 to vector<128x8xf32>
    %174 = arith.maximumf %172, %173 : vector<128x8xf32>
    %175 = vector.shape_cast %174 : vector<128x8xf32> to vector<8x16x8xf32>
    %c0_28 = arith.constant 0 : index
    %c0_29 = arith.constant 0 : index
    %c0_30 = arith.constant 0 : index
    %c0_31 = arith.constant 0 : index
    %176 = vector.load %arg6[%c0_28, %c0_29, %c0_30, %c0_31] : memref<1x8x16x8xf32, #tpu.memory_space<vmem>>, vector<1x8x16x8xf32>
    %177 = vector.shape_cast %176 : vector<1x8x16x8xf32> to vector<8x16x8xf32>
    %178 = vector.shape_cast %175 : vector<8x16x8xf32> to vector<1x8x16x8xf32>
    tpu.vector_store %arg6[%c0_28, %c0_29, %c0_30, %c0_31], %178 {strides = array<i32>} : memref<1x8x16x8xf32, #tpu.memory_space<vmem>>, vector<1x8x16x8xf32>,
    return
  }
  func.func @transform_0(%arg0: i32, %arg1: i32) -> (i32, i32, i32, i32) {
    %c0_i32 = arith.constant 0 : i32
    %c0_i32_0 = arith.constant 0 : i32
    %c0_i32_1 = arith.constant 0 : i32
    %c0_i32_2 = arith.constant 0 : i32
    return %arg0, %c0_i32, %c0_i32_0, %c0_i32_1 : i32, i32, i32, i32
  }
  func.func @transform_1(%arg0: i32, %arg1: i32) -> (i32, i32, i32) {
    %c0_i32 = arith.constant 0 : i32
    %c0_i32_0 = arith.constant 0 : i32
    %c0_i32_1 = arith.constant 0 : i32
    %c0_i32_2 = arith.constant 0 : i32
    return %c0_i32, %c0_i32_0, %c0_i32_1 : i32, i32, i32
  }
  func.func @transform_2(%arg0: i32, %arg1: i32) -> (i32, i32, i32) {
    %c0_i32 = arith.constant 0 : i32
    %c0_i32_0 = arith.constant 0 : i32
    %c0_i32_1 = arith.constant 0 : i32
    %c0_i32_2 = arith.constant 0 : i32
    return %c0_i32, %c0_i32_0, %c0_i32_1 : i32, i32, i32
  }
  func.func @transform_3(%arg0: i32, %arg1: i32) -> (i32, i32) {
    %c0_i32 = arith.constant 0 : i32
    %c0_i32_0 = arith.constant 0 : i32
    %c0_i32_1 = arith.constant 0 : i32
    return %c0_i32, %c0_i32_0 : i32, i32
  }
  func.func @transform_4(%arg0: i32, %arg1: i32) -> (i32, i32, i32, i32) {
    %c0_i32 = arith.constant 0 : i32
    %c0_i32_0 = arith.constant 0 : i32
    %c0_i32_1 = arith.constant 0 : i32
    return %arg0, %arg1, %c0_i32, %c0_i32_0 : i32, i32, i32, i32
  }
}

</mosaic_0001>

<bundles_post_ra>
// kernel: tpu_custom_call.1
= control target key start
LH: loop header
LB: loop body
LE: loop exit
PB: predicated region body
PF: predicated region fallthrough
CT: control target
= control target key end

     0   :  { %s7976_s15 = smov 0   ;;  %s7978_s16 = smov 0   ;;  %s14912_s0 = inlined_call_operand.vmem [shape: f32[2,18,18,4], index: 0, kind: input, shape index: {}]   ;;  %s14913_s1 = inlined_call_operand.vmem [shape: f32[9,11,4], index: 1, kind: input, shape index: {}]   ;;  %s14914_s2 = inlined_call_operand.vmem [shape: bf16[9,4,8], index: 2, kind: input, shape index: {}]   ;;  %s14915_s3 = inlined_call_operand.vmem [shape: f32[1,8], index: 3, kind: input, shape index: {}]   ;;  %s14916_s4 = inlined_call_operand.vmem [shape: f32[2,16,16,8], index: 4, kind: output, shape index: {}]  }
   0x1   :  { %s7980_s17 = smov 0   ;;  %s7982_s18 = smov 0  }
   0x2   :  { %s7984_s19 = smov 0  }
   0x3 LB: > { %s23_s20 = sadd.s32 1, %s7941_s17  ;;  %s26_s21 = sadd.s32 1, %s7945_s18  ;;  %s7949_s19 = sphi %s7984_s19, %s14_s19   ;;  %s7945_s18 = sphi %s7982_s18, %s17742_s18   ;;  %s7941_s17 = sphi %s7980_s17, %s17741_s17   ;;  %s7937_s16 = sphi %s7978_s16, %s17740_s16   ;;  %s7933_s15 = sphi %s7976_s15, %s17739_s15  }
   0x4   : > { %p24_p0 = scmp.ge.s32.totalorder %s23_s20, 2  ;;  %p6888_p1 = scmp.ge.s32.totalorder %s7949_s19, 1 }
   0x5   : > { %p176_p2 = scmp.lt.s32.totalorder %s7949_s19, 5 }
   0x6   : > { %s17744_s20 = smov (%p24_p0, %s23_s20), 0  ;;  %s17746_s21 = smov (!%p24_p0, %s26_s21), %s7945_s18 }
   0x7   : > { %p177_p3 = pnand %p6888_p1, %p176_p2  ;;  %p28_p4 = scmp.ge.s32.totalorder %s17746_s21, 2 }
   0x9   : > { %s17748_s21 = smov (%p28_p4, %s17746_s21), 0  ;;  %180 = sbr.rel (%p177_p3) target bundleno = 1425 (0x591), region = 36 }
  0x10   : > { %v5491_v0 = vld [vmem:[%s14914_s2 + $0x2] sm:$0x3]  ;;  %vm5523_vm0 = vcmask 1041408   ;;  %v5494_v1 = vld [vmem:[%s14914_s2 + $0x8] sm:$0x3]  ;;  %p207_p5 = scmp.lt.s32.totalorder %s7937_s16, 1  ;;  %v861_v2 = vlaneseq }
  0x11   : > { %7396 = vmatprep.subr.msk.bf16.mxu1 %vm5523_vm0, %v5491_v0  ;;  %7400 = vmatprep.subr.msk.bf16.mxu0 %vm5523_vm0, %v5494_v1  ;;  %v5525_v3 = vsel %vm5523_vm0, %v5491_v0, 0  ;;  %v8018_v4 = vsel %vm5523_vm0, %v5494_v1, 0  ;;  %s6895_s26 = smul.u32 192, %s7933_s15  ;;  %v716_v5 = vld [vmem:[%s14913_s1 + $0x8] sm:$0x7]  ;;  %v8058_v14 = vld [vmem:[%s14913_s1 + $0x10] sm:$0xff] }
  0x12   : > { %15926 = vst [vmem:[#allocation2_spill] sm:$0xff] %v8018_v4  ;;  %7105 = vmatpush3.bf16.msra.mxu1 %v5525_v3  ;;  %7177 = vmatpush3.bf16.msra.mxu0 %v8018_v4  ;;  %s17750_s16 = smov (!%p207_p5, %s7937_s16), 1  ;;  %v8030_v6 = vld [vmem:[%s14913_s1 + $0x18] sm:$0x7]  ;;  %v8032_v7 = vshrl.u32 %v861_v2, 7  ;;  %vm275_vm1 = vcmask 1046528  }
  0x13   : > { %v720_v8 = vld [vmem:[%s14913_s1 + $0x28] sm:$0x7]  ;;  %v722_v9 = vld [vmem:[%s14913_s1 + $0x38] sm:$0x7]  ;;  %s7406_s11 = smul.u32 432, %s17750_s16  ;;  %vm332_vm2 = vcmask 1045504  }
  0x14   : > { %v8043_v10 = vld [vmem:[%s14913_s1 + $0x48] sm:$0x7]  ;;  %v726_v11 = vld [vmem:[%s14913_s1 + $0x58] sm:$0x7]  ;;  %v8053_v13 = vsub.s32 1, %v8032_v7  ;;  %v8067_v17 = vsub.s32 0, %v8032_v7 }
  0x15   : > { %15927 = vst [vmem:[#allocation3_spill] sm:$0xff] %v8043_v10  ;;  %v728_v12 = vld [vmem:[%s14913_s1 + $0x68] sm:$0x7]  ;;  %v730_v15 = vld [vmem:[%s14913_s1 + $0x78] sm:$0x7]  ;;  %s211_s6 = scalar_lea.vmem %s14912_s0, %s7406_s11  ;;  %vm1041_vm3 = vcmask 31744  }
  0x16   : > { %15928 = vst [vmem:[#allocation4_spill] sm:$0xff] %v8053_v13  ;;  %v732_v16 = vld [vmem:[%s14913_s1 + $0x88] sm:$0x7]  ;;  %15929 = vst [vmem:[#allocation5_spill] sm:$0xff] %v8067_v17  ;;  %v8073_v18 = vrot.slane %v716_v5, %v8053_v13  ;;  %v8077_v19 = vrot.slane %v8030_v6, %v8053_v13  ;;  %v8082_v20 = vld [vmem:[%s14914_s2] sm:$0x3]  ;;  %s8087_s12 = scalar_lea.vmem %s211_s6, %s6895_s26  ;;  %v8090_v22 = vrot.slane %v720_v8, %v8053_v13 }
  0x17   : > { %15932 = vst [vmem:[#allocation8_spill] sm:$0xff] %v8082_v20  ;;  %v5495_v21 = vld [vmem:[%s14914_s2 + $0xa] sm:$0x3]  ;;  %v8093_v23 = vrot.slane %v722_v9, %v8053_v13  ;;  %v8097_v24 = vrot.slane %v8043_v10, %v8053_v13  ;;  %v8100_v25 = vrot.slane %v726_v11, %v8053_v13  ;;  %7397 = vmatprep.subr.msk.bf16.mxu1 %vm5523_vm0, %v8082_v20  ;;  %v8105_v26 = vld [vmem:[%s8087_s12] sm:$0xff]  ;;  %v229_v28 = vld [vmem:[%s8087_s12 + $0x10] sm:$0x3] }
  0x18   : > { %15930 = vst [vmem:[#allocation6_spill] sm:$0xff] %v8073_v18  ;;  %15931 = vst [vmem:[#allocation7_spill] sm:$0xff] %v8077_v19  ;;  %v8108_v27 = vld [vmem:[%s8087_s12 + $0x8] sm:$0xff]  ;;  %v8112_v29 = vrot.slane %v728_v12, %v8053_v13  ;;  %v8115_v30 = vrot.slane %v730_v15, %v8053_v13  ;;  %v8118_v31 = vrot.slane %v732_v16, %v8053_v13  ;;  %7402 = vmatprep.subr.msk.bf16.mxu0 %vm5523_vm0, %v5495_v21  ;;  %v8129_v37 = vld [vmem:[%s8087_s12 + $0x18] sm:$0xff]  ;;  %s6892_s11 = sshll.u32 %s17750_s16, 5  ;;  %vm6767_vm4 = vcmask 64512  }
  0x19   : > { %15933 = vst [vmem:[#allocation9_spill] sm:$0xff] %v8090_v22  ;;  %15934 = vst [vmem:[#allocation10_spill] sm:$0xff] %v8093_v23  ;;  %v8122_v32 = vrot.slane %v8058_v14, %v8067_v17  ;;  %v276_v33 = vrot.slane %v8105_v26, 1  ;;  %v277_v34 = vrot.slane %v8108_v27, 1  ;;  %v279_v35 = vrot.slane %v229_v28, 1  ;;  %v8132_v38 = vld [vmem:[%s8087_s12 + $0x20] sm:$0xff] }
  0x1a   : > { %15935 = vst [vmem:[#allocation11_spill] sm:$0xff] %v8097_v24  ;;  %15936 = vst [vmem:[#allocation12_spill] sm:$0xff] %v8100_v25  ;;  %v333_v36 = vrot.slane %v8105_v26, 2  ;;  %v334_v39 = vrot.slane %v8108_v27, 2  ;;  %v336_v40 = vrot.slane %v229_v28, 2  ;;  %v440_v42 = vrot.slane %v8129_v37, 1 }
  0x1b   : > { %15937 = vst [vmem:[#allocation13_spill] sm:$0xff] %v8112_v29  ;;  %15938 = vst [vmem:[#allocation14_spill] sm:$0xff] %v8115_v30  ;;  %v6900_v41 = vld [vmem:[%s8087_s12 + $0x28] sm:$0x3]  ;;  %v8138_v43 = vrot.slane %v8132_v38, 1  ;;  %v8141_v44 = vsel %vm275_vm1, %v276_v33, %v277_v34  ;;  %v8144_v45 = vsel %vm275_vm1, %v277_v34, %v279_v35  ;;  %v496_v47 = vrot.slane %v8129_v37, 2 }
  0x1c   : > { %15939 = vst [vmem:[#allocation15_spill] sm:$0xff] %v8118_v31  ;;  %15940 = vst [vmem:[#allocation16_spill] sm:$0xff] %v8122_v32  ;;  %v443_v46 = vrot.slane %v6900_v41, 1  ;;  %v8148_v48 = vld [vmem:[%s8087_s12 + $0x30] sm:$0xff]  ;;  %v8151_v49 = vld [vmem:[%s8087_s12 + $0x38] sm:$0xff]  ;;  %v8155_v51 = vsel %vm332_vm2, %v333_v36, %v334_v39  ;;  %v8158_v52 = vsel %vm332_vm2, %v334_v39, %v336_v40  ;;  %v8165_v54 = vrot.slane %v8132_v38, 2 }
  0x1d   : > { %15941 = vst [vmem:[#allocation17_spill] sm:$0xff] %v8129_v37  ;;  %15942 = vst [vmem:[#allocation18_spill] sm:$0xff] %v8132_v38  ;;  %v6926_v50 = vld [vmem:[%s8087_s12 + $0x40] sm:$0x3]  ;;  %v8162_v53 = vsel %vm275_vm1, %v440_v42, %v8138_v43  ;;  %v499_v56 = vrot.slane %v6900_v41, 2  ;;  %v603_v57 = vrot.slane %v8148_v48, 1  ;;  %v733_v2 = vadd.f32 %v8141_v44, %v8105_v26 }
  0x1e   : > { %15943 = vst [vmem:[#allocation19_spill] sm:$0xff] %v8138_v43  ;;  %15944 = vst [vmem:[#allocation20_spill] sm:$0xff] %v8141_v44  ;;  %v8169_v55 = vsel %vm275_vm1, %v8138_v43, %v443_v46  ;;  %v8173_v58 = vrot.slane %v8151_v49, 1  ;;  %v8177_v59 = vsel %vm332_vm2, %v496_v47, %v8165_v54  ;;  %v606_v60 = vrot.slane %v6926_v50, 1 }
  0x1f   : > { %15945 = vst [vmem:[#allocation21_spill] sm:$0xff] %v8144_v45  ;;  %15946 = vst [vmem:[#allocation22_spill] sm:$0xff] %v8148_v48  ;;  %v659_v61 = vrot.slane %v8148_v48, 2  ;;  %v8181_v62 = vrot.slane %v8151_v49, 2  ;;  %v8185_v63 = vsel %vm332_vm2, %v8165_v54, %v499_v56  ;;  %v662_v1 = vrot.slane %v6926_v50, 2 }
  0x20   : > { %15947 = vst [vmem:[#allocation23_spill] sm:$0xff] %v8151_v49  ;;  %15948 = vst [vmem:[#allocation24_spill] sm:$0xff] %v8155_v51  ;;  %v8189_v0 = vsel %vm275_vm1, %v603_v57, %v8173_v58  ;;  %v8195_v3 = vsel %vm275_vm1, %v8173_v58, %v606_v60  ;;  %v734_v5 = vadd.f32 %v8144_v45, %v8108_v27  ;;  %v8202_v9 = vsub.s32 2, %v8032_v7 }
  0x21   : > { %15949 = vst [vmem:[#allocation25_spill] sm:$0xff] %v8158_v52  ;;  %15950 = vst [vmem:[#allocation26_spill] sm:$0xff] %v8162_v53  ;;  %v749_v8 = vadd.f32 %v8129_v37, %v8155_v51  ;;  %v750_v11 = vadd.f32 %v8132_v38, %v8158_v52  ;;  %v765_v12 = vadd.f32 %v8177_v59, %v8162_v53  ;;  %v8239_v47 = vsub.s32 3, %v8032_v7 }
  0x22   : > { %15951 = vst [vmem:[#allocation27_spill] sm:$0xff] %v8165_v54  ;;  %15952 = vst [vmem:[#allocation28_spill] sm:$0xff] %v8169_v55  ;;  %v766_v15 = vadd.f32 %v8185_v63, %v8169_v55  ;;  %v8212_v16 = vrot.slane %v8058_v14, %v8053_v13  ;;  %v8216_v21 = vsel %vm332_vm2, %v659_v61, %v8181_v62  ;;  %v8242_v50 = vsub.s32 4, %v8032_v7 }
  0x23   : > { %15953 = vst [vmem:[#allocation29_spill] sm:$0xff] %v8173_v58  ;;  %15954 = vst [vmem:[#allocation30_spill] sm:$0xff] %v8177_v59  ;;  %v781_v28 = vadd.f32 %v8148_v48, %v8189_v0  ;;  %v782_v33 = vadd.f32 %v8151_v49, %v8195_v3  ;;  %v797_v34 = vadd.f32 %v749_v8, %v733_v2  ;;  %v8245_v56 = vsub.s32 5, %v8032_v7 }
  0x24   : > { %15955 = vst [vmem:[#allocation31_spill] sm:$0xff] %v8181_v62  ;;  %15956 = vst [vmem:[#allocation32_spill] sm:$0xff] %v8185_v63  ;;  %v8224_v35 = vsel %vm332_vm2, %v8181_v62, %v662_v1  ;;  %v798_v36 = vadd.f32 %v750_v11, %v734_v5  ;;  %v8228_v39 = vmul.f32 %v8122_v32, %v8105_v26  ;;  %v8248_v57 = vsub.s32 6, %v8032_v7 }
  0x25   : > { %15957 = vst [vmem:[#allocation33_spill] sm:$0xff] %v8189_v0  ;;  %15958 = vst [vmem:[#allocation34_spill] sm:$0xff] %v8195_v3  ;;  %v8232_v40 = vmul.f32 %v8122_v32, %v8108_v27  ;;  %v813_v41 = vadd.f32 %v781_v28, %v765_v12  ;;  %v814_v42 = vadd.f32 %v782_v33, %v766_v15  ;;  %v8251_v60 = vsub.s32 7, %v8032_v7 }
  0x26   : > { %15959 = vst [vmem:[#allocation35_spill] sm:$0xff] %v8202_v9  ;;  %15960 = vst [vmem:[#allocation36_spill] sm:$0xff] %v8212_v16  ;;  %v8236_v46 = vrot.slane %v8058_v14, %v8202_v9  ;;  %v8255_v2 = vmul.f32 %v8212_v16, %v8141_v44  ;;  %v8259_v5 = vmul.f32 %v8212_v16, %v8144_v45 }
  0x27   : > { %15961 = vst [vmem:[#allocation37_spill] sm:$0xff] %v8216_v21  ;;  %15962 = vst [vmem:[#allocation38_spill] sm:$0xff] %v8224_v35  ;;  %v829_v61 = vadd.f32 %v813_v41, %v797_v34  ;;  %v830_v1 = vadd.f32 %v814_v42, %v798_v36  ;;  %v8271_v7 = vrot.slane %v8058_v14, %v8239_v47 }
  0x28   : > { %15963 = vst [vmem:[#allocation39_spill] sm:$0xff] %v8236_v46  ;;  %15964 = vst [vmem:[#allocation40_spill] sm:$0xff] %v8239_v47  ;;  %v8263_v8 = vmul.f32 %v8236_v46, %v8155_v51  ;;  %v8267_v11 = vmul.f32 %v8236_v46, %v8158_v52  ;;  %v8275_v12 = vrot.slane %v8058_v14, %v8242_v50 }
  0x29   : > { %15965 = vst [vmem:[#allocation41_spill] sm:$0xff] %v8242_v50  ;;  %15966 = vst [vmem:[#allocation42_spill] sm:$0xff] %v8245_v56  ;;  %v845_v15 = vadd.f32 %v829_v61, %v8216_v21  ;;  %v846_v28 = vadd.f32 %v830_v1, %v8224_v35  ;;  %v8281_v33 = vrot.slane %v8058_v14, %v8245_v56 }
  0x2a   : > { %15967 = vst [vmem:[#allocation43_spill] sm:$0xff] %v8248_v57  ;;  %15968 = vst [vmem:[#allocation44_spill] sm:$0xff] %v8251_v60  ;;  %v8285_v34 = vrot.slane %v8058_v14, %v8248_v57  ;;  %v2770_v36 = vmul.f32 %v8129_v37, %v8271_v7  ;;  %v2771_v41 = vmul.f32 %v8132_v38, %v8271_v7 }
  0x2b   : > { %15969 = vst [vmem:[#allocation45_spill] sm:$0xff] %v8271_v7  ;;  %15970 = vst [vmem:[#allocation46_spill] sm:$0xff] %v8275_v12  ;;  %v8293_v42 = vrot.slane %v8058_v14, %v8251_v60  ;;  %v8297_v61 = vrot.slane %v8030_v6, %v8067_v17  ;;  %v8300_v1 = vmul.f32 %v8073_v18, %v845_v15 }
  0x2c   : > { %15971 = vst [vmem:[#allocation47_spill] sm:$0xff] %v8281_v33  ;;  %15972 = vst [vmem:[#allocation48_spill] sm:$0xff] %v8285_v34  ;;  %v8303_v4 = vmul.f32 %v8077_v19, %v845_v15  ;;  %v2950_v20 = vmul.f32 %v8275_v12, %v8162_v53  ;;  %v2951_v7 = vmul.f32 %v8275_v12, %v8169_v55 }
  0x2d   : > { %15973 = vst [vmem:[#allocation49_spill] sm:$0xff] %v8293_v42  ;;  %15974 = vst [vmem:[#allocation50_spill] sm:$0xff] %v8297_v61  ;;  %v8310_v46 = vmul.f32 %v8073_v18, %v846_v28  ;;  %v8313_v14 = vmul.f32 %v8077_v19, %v846_v28  ;;  %v8316_v16 = vmul.f32 %v8090_v22, %v845_v15  ;;  %v1042_v60 = vsel %vm1041_vm3, %v8300_v1, -inf }
  0x2e   : > { %v8319_v32 = vmul.f32 %v8090_v22, %v846_v28  ;;  %v8322_v62 = vmul.f32 %v8093_v23, %v845_v15  ;;  %v8325_v58 = vmul.f32 %v8093_v23, %v846_v28  ;;  %v8328_v12 = vmul.f32 %v8097_v24, %v845_v15 }
  0x2f   : > { %15975 = vst [vmem:[#allocation51_spill] sm:$0xff] %v8310_v46  ;;  %15976 = vst [vmem:[#allocation52_spill] sm:$0xff] %v8313_v14  ;;  %v8331_v18 = vmul.f32 %v8100_v25, %v845_v15  ;;  %v8334_v19 = vmul.f32 %v8097_v24, %v846_v28  ;;  %v8337_v54 = vmul.f32 %v8100_v25, %v846_v28  ;;  %v1043_v24 = vsel %vm1041_vm3, %v8303_v4, -inf }
  0x30   : > { %15977 = vst [vmem:[#allocation53_spill] sm:$0xff] %v8319_v32  ;;  %v8340_v22 = vmul.f32 %v8112_v29, %v845_v15  ;;  %v8343_v43 = vmul.f32 %v8112_v29, %v846_v28  ;;  %v8346_v23 = vmul.f32 %v8115_v30, %v845_v15  ;;  %v8349_v10 = vmul.f32 %v8118_v31, %v845_v15 }
  0x31   : > { %v8356_v25 = vmul.f32 %v8115_v30, %v846_v28  ;;  %v8359_v55 = vmul.f32 %v8118_v31, %v846_v28  ;;  %v1044_v29 = vmax.f32 %v1042_v60, %v1043_v24  ;;  %v1045_v53 = vsel %vm1041_vm3, %v8316_v16, -inf }
  0x32   : > { %15978 = vst [vmem:[#allocation54_spill] sm:$0xff] %v8343_v43  ;;  %15979 = vst [vmem:[#allocation55_spill] sm:$0xff] %v8346_v23  ;;  %v1047_v15 = vsel %vm1041_vm3, %v8322_v62, -inf  ;;  %v1049_v38 = vsel %vm1041_vm3, %v8328_v12, -inf  ;;  %v1051_v37 = vsel %vm1041_vm3, %v8331_v18, -inf  ;;  %v1053_v30 = vsel %vm1041_vm3, %v8340_v22, -inf }
  0x33   : > { %15980 = vst [vmem:[#allocation56_spill] sm:$0xff] %v8349_v10  ;;  %v1046_v57 = vmax.f32 %v1044_v29, %v1045_v53  ;;  %v1059_v28 = vsel %vm1041_vm3, %v8310_v46, -inf  ;;  %v1060_v24 = vsel %vm1041_vm3, %v8313_v14, -inf  ;;  %v1062_v60 = vsel %vm1041_vm3, %v8319_v32, -inf }
  0x34   : > { %v1055_v31 = vsel %vm1041_vm3, %v8346_v23, -inf  ;;  %v1057_v56 = vsel %vm1041_vm3, %v8349_v10, -inf  ;;  %v1061_v50 = vmax.f32 %v1059_v28, %v1060_v24  ;;  %v1064_v47 = vsel %vm1041_vm3, %v8325_v58, -inf }
  0x35   : > { %v1048_v29 = vmax.f32 %v1046_v57, %v1047_v15  ;;  %v1066_v53 = vsel %vm1041_vm3, %v8334_v19, -inf  ;;  %v1068_v14 = vsel %vm1041_vm3, %v8337_v54, -inf  ;;  %v1070_v32 = vsel %vm1041_vm3, %v8343_v43, -inf }
  0x36   : > { %v1063_v46 = vmax.f32 %v1061_v50, %v1062_v60  ;;  %v3130_v23 = vmul.f32 %v8281_v33, %v8177_v59  ;;  %v3131_v28 = vmul.f32 %v8281_v33, %v8185_v63  ;;  %v3310_v24 = vmul.f32 %v8148_v48, %v8285_v34 }
  0x37   : > { %v1050_v57 = vmax.f32 %v1048_v29, %v1049_v38  ;;  %v3311_v15 = vmul.f32 %v8151_v49, %v8285_v34  ;;  %v3490_v10 = vmul.f32 %v8293_v42, %v8189_v0  ;;  %v3491_v43 = vmul.f32 %v8293_v42, %v8195_v3 }
  0x38   : > { %v1065_v50 = vmax.f32 %v1063_v46, %v1064_v47  ;;  %v1072_v60 = vsel %vm1041_vm3, %v8356_v25, -inf  ;;  %v1074_v33 = vsel %vm1041_vm3, %v8359_v55, -inf  ;;  %v3814_v48 = vadd.f32 %v8255_v2, %v8228_v39  ;;  %v8414_v46 = vld [vmem:[%s14913_s1 + $0x40] sm:$0xff] }
  0x39   : > { %v1052_v38 = vmax.f32 %v1050_v57, %v1051_v37  ;;  %v3815_v29 = vadd.f32 %v8259_v5, %v8232_v40  ;;  %v3958_v34 = vadd.f32 %v2770_v36, %v8263_v8  ;;  %v3959_v0 = vadd.f32 %v2771_v41, %v8267_v11 }
  0x3a   : > { %v1067_v47 = vmax.f32 %v1065_v50, %v1066_v53  ;;  %v4102_v42 = vadd.f32 %v3130_v23, %v2950_v20  ;;  %v4103_v3 = vadd.f32 %v3131_v28, %v2951_v7  ;;  %v4246_v49 = vadd.f32 %v3490_v10, %v3310_v24  ;;  %v15985_v24 = vld [vmem:[#allocation51_spill] sm:$0xff] }
  0x3b   : > { %v1054_v63 = vmax.f32 %v1052_v38, %v1053_v30  ;;  %v4247_v59 = vadd.f32 %v3491_v43, %v3311_v15  ;;  %v4390_v39 = vadd.f32 %v3958_v34, %v3814_v48  ;;  %v4391_v37 = vadd.f32 %v3959_v0, %v3815_v29  ;;  %v15986_v15 = vld [vmem:[#allocation52_spill] sm:$0xff]  ;;  %v15988_v29 = vld [vmem:[#allocation55_spill] sm:$0xff] }
  0x3c   : > { %v1069_v2 = vmax.f32 %v1067_v47, %v1068_v14  ;;  %v3670_v40 = vmul.f32 %v8297_v61, %v8216_v21  ;;  %v4534_v5 = vadd.f32 %v4246_v49, %v4102_v42  ;;  %v8420_v8 = vrot.slane %v8414_v46, %v8067_v17  ;;  %v15989_v47 = vld [vmem:[#allocation56_spill] sm:$0xff] }
  0x3d   : > { %v1056_v11 = vmax.f32 %v1054_v63, %v1055_v31  ;;  %v4535_v36 = vadd.f32 %v4247_v59, %v4103_v3  ;;  %v8424_v20 = vrot.slane %v8414_v46, %v8053_v13  ;;  %v8428_v10 = vrot.slane %v8414_v46, %v8202_v9 }
  0x3e   : > { %15981 = vst [vmem:[#allocation57_spill] sm:$0xff] %v8420_v8  ;;  %v1071_v23 = vmax.f32 %v1069_v2, %v1070_v32  ;;  %v3671_v30 = vmul.f32 %v8297_v61, %v8224_v35  ;;  %v4678_v43 = vadd.f32 %v4534_v5, %v4390_v39  ;;  %v8434_v48 = vrot.slane %v8030_v6, %v8202_v9  ;;  %v15990_v39 = vld [vmem:[#allocation54_spill] sm:$0xff] }
  0x3f   : > { %15982 = vst [vmem:[#allocation58_spill] sm:$0xff] %v8424_v20  ;;  %15983 = vst [vmem:[#allocation59_spill] sm:$0xff] %v8428_v10  ;;  %v1058_v49 = vmax.f32 %v1056_v11, %v1057_v56  ;;  %v4679_v31 = vadd.f32 %v4535_v36, %v4391_v37  ;;  %v8438_v59 = vmul.f32 %v8420_v8, %v8105_v26 }
  0x40   : > { %15984 = vst [vmem:[#allocation60_spill] sm:$0xff] %v8434_v48  ;;  %v8442_v63 = vmul.f32 %v8420_v8, %v8108_v27  ;;  %v1073_v0 = vmax.f32 %v1071_v23, %v1072_v60  ;;  %v4822_v32 = vadd.f32 %v4678_v43, %v3670_v40  ;;  %v8446_v3 = vmul.f32 %v8424_v20, %v8141_v44  ;;  %v15987_v60 = vld [vmem:[#allocation53_spill] sm:$0xff] }
  0x41   : > { %v8450_v6 = vmul.f32 %v8424_v20, %v8144_v45  ;;  %v1314_v56 = vsub.f32 %v8300_v1, %v1058_v49  ;;  %v1330_v7 = vsub.f32 %v8303_v4, %v1058_v49  ;;  %v8456_v26 = vmul.f32 %v8428_v10, %v8155_v51  ;;  %v16045_v45 = vld [vmem:[#allocation36_spill] sm:$0xff] }
  0x42   : > { %v8460_v27 = vmul.f32 %v8428_v10, %v8158_v52  ;;  %v1075_v34 = vmax.f32 %v1073_v0, %v1074_v33  ;;  %v1346_v41 = vsub.f32 %v8316_v16, %v1058_v49  ;;  %v1362_v42 = vsub.f32 %v8322_v62, %v1058_v49 }
  0x43   : > { %v1378_v14 = vsub.f32 %v8328_v12, %v1058_v49  ;;  %v1394_v53 = vsub.f32 %v8331_v18, %v1058_v49  ;;  %v1410_v1 = vsub.f32 %v8340_v22, %v1058_v49  ;;  %v1458_v4 = vmul.f32 1.442695, %v1314_v56 }
  0x44   : > { %v1490_v28 = vmul.f32 1.442695, %v1330_v7  ;;  %v1315_v57 = vsub.f32 %v15985_v24, %v1075_v34  ;;  %v1331_v50 = vsub.f32 %v15986_v15, %v1075_v34  ;;  %v1347_v38 = vsub.f32 %v15987_v60, %v1075_v34  ;;  %v15997_v24 = vld [vmem:[#allocation43_spill] sm:$0xff]  ;;  %v15999_v15 = vld [vmem:[#allocation17_spill] sm:$0xff]  ;;  %v16000_v60 = vld [vmem:[#allocation18_spill] sm:$0xff] }
  0x45   : > { %v1363_v33 = vsub.f32 %v8325_v58, %v1075_v34  ;;  %v1379_v16 = vsub.f32 %v8334_v19, %v1075_v34  ;;  %v1395_v62 = vsub.f32 %v8337_v54, %v1075_v34  ;;  %v1426_v12 = vsub.f32 %v15988_v29, %v1058_v49  ;;  %v16003_v29 = vld [vmem:[#allocation28_spill] sm:$0xff] }
  0x46   : > { %v1442_v18 = vsub.f32 %v15989_v47, %v1058_v49  ;;  %v1411_v22 = vsub.f32 %v15990_v39, %v1075_v34  ;;  %7447 = vpow2.f32 %v1458_v4  ;;  %v1460_v37 = vmul.f32 1.442695, %v1315_v57  ;;  %v16004_v47 = vld [vmem:[#allocation30_spill] sm:$0xff]  ;;  %v16005_v39 = vld [vmem:[#allocation32_spill] sm:$0xff] }
  0x47   : > { %v1492_v2 = vmul.f32 1.442695, %v1331_v50  ;;  %v1427_v40 = vsub.f32 %v8356_v25, %v1075_v34  ;;  %7449 = vpow2.f32 %v1490_v28  ;;  %v1522_v5 = vmul.f32 1.442695, %v1346_v41 }
  0x48   : > { %v1524_v11 = vmul.f32 1.442695, %v1347_v38  ;;  %v1443_v58 = vsub.f32 %v8359_v55, %v1075_v34  ;;  %7451 = vpow2.f32 %v1460_v37  ;;  %v1554_v19 = vmul.f32 1.442695, %v1362_v42  ;;  %v15991_v55 = vld [vmem:[#allocation40_spill] sm:$0xff]  ;;  %v15993_v42 = vld [vmem:[#allocation41_spill] sm:$0xff] }
  0x49   : > { %v1556_v36 = vmul.f32 1.442695, %v1363_v33  ;;  %7453 = vpow2.f32 %v1492_v2  ;;  %v1586_v54 = vmul.f32 1.442695, %v1378_v14  ;;  %v1588_v23 = vmul.f32 1.442695, %v1379_v16 }
  0x4a   : > { %v1618_v43 = vmul.f32 1.442695, %v1394_v53  ;;  %7455 = vpow2.f32 %v1522_v5  ;;  %v1620_v49 = vmul.f32 1.442695, %v1395_v62  ;;  %v1650_v0 = vmul.f32 1.442695, %v1410_v1 }
  0x4b   : > { %v1652_v56 = vmul.f32 1.442695, %v1411_v22  ;;  %7457 = vpow2.f32 %v1524_v11  ;;  %v1682_v7 = vmul.f32 1.442695, %v1426_v12  ;;  %v1684_v4 = vmul.f32 1.442695, %v1427_v40 }
  0x4c   : > { %v4823_v25 = vadd.f32 %v4679_v31, %v3671_v30  ;;  %7459 = vpow2.f32 %v1554_v19  ;;  %v8479_v41 = vadd.f32 %v8434_v48, %v4822_v32  ;;  %v8483_v34 = vrot.slane %v8414_v46, %v15991_v55  ;;  %v15995_v1 = vld [vmem:[#allocation42_spill] sm:$0xff]  ;;  %v16007_v11 = vld [vmem:[#allocation44_spill] sm:$0xff] }
  0x4d   : > { %v8487_v14 = vrot.slane %v8414_v46, %v15993_v42  ;;  %7461 = vpow2.f32 %v1556_v36  ;;  %v1714_v53 = vmul.f32 1.442695, %v1442_v18  ;;  %v8491_v28 = vrot.slane %v8414_v46, %v15995_v1  ;;  %v16001_v33 = vld [vmem:[#allocation26_spill] sm:$0xff] }
  0x4e   : > { %15992 = vst [vmem:[#allocation51_spill] sm:$0xff] %v8483_v34  ;;  %v8495_v30 = vrot.slane %v8414_v46, %v15997_v24  ;;  %7463 = vpow2.f32 %v1586_v54  ;;  %v1716_v31 = vmul.f32 1.442695, %v1443_v58  ;;  %v8498_v32 = vadd.f32 %v8434_v48, %v4823_v25  ;;  %v16006_v40 = vld [vmem:[#allocation22_spill] sm:$0xff]  ;;  %v16010_v54 = vld [vmem:[#allocation23_spill] sm:$0xff] }
  0x4f   : > { %15994 = vst [vmem:[#allocation52_spill] sm:$0xff] %v8487_v14  ;;  %15996 = vst [vmem:[#allocation53_spill] sm:$0xff] %v8491_v28  ;;  %7465 = vpow2.f32 %v1588_v23  ;;  %v2818_v50 = vmul.f32 %v15999_v15, %v8483_v34  ;;  %v2819_v38 = vmul.f32 %v16000_v60, %v8483_v34  ;;  %v2998_v16 = vmul.f32 %v8487_v14, %v16001_v33  ;;  %v16015_v24 = vld [vmem:[#allocation34_spill] sm:$0xff] }
  0x50   : > { %15998 = vst [vmem:[#allocation55_spill] sm:$0xff] %v8495_v30  ;;  %v8507_v62 = vpop.eup %7447  ;;  %7467 = vpow2.f32 %v1618_v43  ;;  %v2999_v12 = vmul.f32 %v8487_v14, %v16003_v29  ;;  %v3178_v18 = vmul.f32 %v8491_v28, %v16004_v47  ;;  %v3179_v22 = vmul.f32 %v8491_v28, %v16005_v39  ;;  %v16011_v43 = vld [vmem:[#allocation3_spill] sm:$0xff]  ;;  %v16014_v29 = vld [vmem:[#allocation33_spill] sm:$0xff]  ;;  %v16048_v55 = vld [vmem:[#allocation46_spill] sm:$0xff] }
  0x51   : > { %16002 = vst [vmem:[#allocation56_spill] sm:$0xff] %v8507_v62  ;;  %v8515_v37 = vpop.eup %7449  ;;  %7469 = vpow2.f32 %v1620_v49  ;;  %v1746_v2 = vsel %vm1041_vm3, %v8507_v62, 0.0  ;;  %v3358_v5 = vmul.f32 %v16006_v40, %v8495_v30  ;;  %v8523_v58 = vrot.slane %v8414_v46, %v16007_v11 }
  0x52   : > { %v8525_v19 = vpop.eup %7451  ;;  %7471 = vpow2.f32 %v1650_v0  ;;  %v1747_v36 = vsel %vm1041_vm3, %v8515_v37, 0.0  ;;  %v3359_v23 = vmul.f32 %v16010_v54, %v8495_v30  ;;  %v8533_v49 = vrot.slane %v16011_v43, %v8067_v17 }
  0x53   : > { %16008 = vst [vmem:[#allocation54_spill] sm:$0xff] %v8523_v58  ;;  %16009 = vst [vmem:[#allocation17_spill] sm:$0xff] %v8525_v19  ;;  %v8535_v25 = vpop.eup %7453  ;;  %7473 = vpow2.f32 %v1652_v56  ;;  %v1748_v57 = vadd.f32 %v1747_v36, %v1746_v2  ;;  %v1763_v46 = vsel %vm1041_vm3, %v8525_v19, 0.0  ;;  %v3862_v0 = vadd.f32 %v8446_v3, %v8438_v59 }
  0x54   : > { %16012 = vst [vmem:[#allocation18_spill] sm:$0xff] %v8533_v49  ;;  %v8541_v62 = vpop.eup %7455  ;;  %7475 = vpow2.f32 %v1682_v7  ;;  %v1764_v39 = vsel %vm1041_vm3, %v8535_v25, 0.0  ;;  %v3538_v11 = vmul.f32 %v8523_v58, %v16014_v29  ;;  %v3539_v1 = vmul.f32 %v8523_v58, %v16015_v24  ;;  %v16057_v58 = vld [vmem:[#allocation7_spill] sm:$0xff] }
  0x55   : > { %16013 = vst [vmem:[#allocation22_spill] sm:$0xff] %v8541_v62  ;;  %v8549_v56 = vpop.eup %7457  ;;  %7477 = vpow2.f32 %v1684_v4  ;;  %v1749_v2 = vsel %vm1041_vm3, %v8541_v62, 0.0  ;;  %v1765_v36 = vadd.f32 %v1764_v39, %v1763_v46  ;;  %v3718_v59 = vmul.f32 %v8533_v49, %v8216_v21 }
  0x56   : > { %16016 = vst [vmem:[#allocation23_spill] sm:$0xff] %v8549_v56  ;;  %v8555_v3 = vpop.eup %7459  ;;  %7479 = vpow2.f32 %v1714_v53  ;;  %v1750_v7 = vadd.f32 %v1749_v2, %v1748_v57  ;;  %v1766_v19 = vsel %vm1041_vm3, %v8549_v56, 0.0  ;;  %v3863_v24 = vadd.f32 %v8450_v6, %v8442_v63 }
  0x57   : > { %16017 = vst [vmem:[#allocation3_spill] sm:$0xff] %v8555_v3  ;;  %v8561_v42 = vpop.eup %7461  ;;  %7481 = vpow2.f32 %v1716_v31  ;;  %v1751_v4 = vsel %vm1041_vm3, %v8555_v3, 0.0  ;;  %v1767_v39 = vadd.f32 %v1766_v19, %v1765_v36  ;;  %v4006_v46 = vadd.f32 %v2818_v50, %v8456_v26 }
  0x58   : > { %16018 = vst [vmem:[#allocation61_spill] sm:$0xff] %v8561_v42  ;;  %v8566_v62 = vpop.eup %7463  ;;  %v1752_v53 = vadd.f32 %v1751_v4, %v1750_v7  ;;  %v1768_v57 = vsel %vm1041_vm3, %v8561_v42, 0.0  ;;  %v4007_v2 = vadd.f32 %v2819_v38, %v8460_v27  ;;  %v4150_v56 = vadd.f32 %v3178_v18, %v2998_v16  ;;  %v232_v42 = vld [vmem:[%s8087_s12 + $0x28] sm:$0x3] }
  0x59   : > { %v8571_v63 = vpop.eup %7465  ;;  %v1753_v6 = vsel %vm1041_vm3, %v8566_v62, 0.0  ;;  %v1769_v31 = vadd.f32 %v1768_v57, %v1767_v39  ;;  %v4151_v3 = vadd.f32 %v3179_v22, %v2999_v12  ;;  %v4294_v19 = vadd.f32 %v3538_v11, %v3358_v5 }
  0x5a   : > { %v8575_v36 = vpop.eup %7467  ;;  %v1754_v26 = vadd.f32 %v1753_v6, %v1752_v53  ;;  %v1770_v50 = vsel %vm1041_vm3, %v8571_v63, 0.0  ;;  %v4295_v7 = vadd.f32 %v3539_v1, %v3359_v23  ;;  %v4438_v4 = vadd.f32 %v4006_v46, %v3862_v0 }
  0x5b   : > { %16019 = vst [vmem:[#allocation62_spill] sm:$0xff] %v8575_v36  ;;  %v8580_v52 = vpop.eup %7469  ;;  %v1755_v27 = vsel %vm1041_vm3, %v8575_v36, 0.0  ;;  %v1771_v38 = vadd.f32 %v1770_v50, %v1769_v31  ;;  %v4439_v16 = vadd.f32 %v4007_v2, %v3863_v24  ;;  %v4582_v18 = vadd.f32 %v4294_v19, %v4150_v56  ;;  %v6903_v31 = vld [vmem:[%s8087_s12 + $0x40] sm:$0x3] }
  0x5c   : > { %16020 = vst [vmem:[#allocation63_spill] sm:$0xff] %v8580_v52  ;;  %v8584_v12 = vpop.eup %7471  ;;  %v1756_v22 = vadd.f32 %v1755_v27, %v1754_v26  ;;  %v1772_v5 = vsel %vm1041_vm3, %v8580_v52, 0.0  ;;  %v3719_v1 = vmul.f32 %v8533_v49, %v8224_v35  ;;  %v4583_v11 = vadd.f32 %v4295_v7, %v4151_v3 }
  0x5d   : > { %16021 = vst [vmem:[#allocation64_spill] sm:$0xff] %v8584_v12  ;;  %v8590_v23 = vpop.eup %7473  ;;  %v1757_v0 = vsel %vm1041_vm3, %v8584_v12, 0.0  ;;  %v1773_v39 = vadd.f32 %v1772_v5, %v1771_v38  ;;  %v4726_v46 = vadd.f32 %v4582_v18, %v4438_v4  ;;  %v284_v24 = vrot.slane %v232_v42, 1  ;;  %v8613_v18 = vld [vmem:[%s8087_s12 + $0x48] sm:$0xff]  ;;  %v16044_v12 = vld [vmem:[#allocation16_spill] sm:$0xff] }
  0x5e   : > { %16022 = vst [vmem:[#allocation65_spill] sm:$0xff] %v8590_v23  ;;  %v8594_v56 = vpop.eup %7475  ;;  %v1758_v53 = vadd.f32 %v1757_v0, %v1756_v22  ;;  %v1774_v57 = vsel %vm1041_vm3, %v8590_v23, 0.0  ;;  %v4727_v2 = vadd.f32 %v4583_v11, %v4439_v16  ;;  %v341_v6 = vrot.slane %v232_v42, 2  ;;  %16027 = vst [vmem:[#allocation70_spill] sm:$0xff] %v8613_v18 }
  0x5f   : > { %16023 = vst [vmem:[#allocation66_spill] sm:$0xff] %v8594_v56  ;;  %v8599_v19 = vpop.eup %7477  ;;  %v1759_v3 = vsel %vm1041_vm3, %v8594_v56, 0.0  ;;  %v1775_v26 = vadd.f32 %v1774_v57, %v1773_v39  ;;  %v4870_v50 = vadd.f32 %v4726_v46, %v3718_v59  ;;  %v8605_v7 = vrot.slane %v16011_v43, %v8202_v9  ;;  %v16029_v43 = vld [vmem:[#allocation19_spill] sm:$0xff]  ;;  %v8624_v39 = vld [vmem:[%s8087_s12 + $0x50] sm:$0xff] }
  0x60   : > { %16024 = vst [vmem:[#allocation67_spill] sm:$0xff] %v8599_v19  ;;  %v8607_v4 = vpop.eup %7479  ;;  %v1760_v27 = vadd.f32 %v1759_v3, %v1758_v53  ;;  %v1776_v42 = vsel %vm1041_vm3, %v8599_v19, 0.0  ;;  %v4871_v16 = vadd.f32 %v4727_v2, %v3719_v1  ;;  %v8621_v11 = vsel %vm275_vm1, %v16029_v43, %v284_v24  ;;  %16031 = vst [vmem:[#allocation72_spill] sm:$0xff] %v8624_v39  ;;  %v16032_v1 = vld [vmem:[#allocation27_spill] sm:$0xff]  ;;  %v6929_v3 = vld [vmem:[%s8087_s12 + $0x58] sm:$0x3] }
  0x61   : > { %16025 = vst [vmem:[#allocation68_spill] sm:$0xff] %v8605_v7  ;;  %16026 = vst [vmem:[#allocation69_spill] sm:$0xff] %v8607_v4  ;;  %v8615_v22 = vpop.eup %7481  ;;  %v1761_v59 = vsel %vm1041_vm3, %v8607_v4, 0.0  ;;  %v1777_v5 = vadd.f32 %v1776_v42, %v1775_v26  ;;  %v448_v0 = vrot.slane %v6903_v31, 1  ;;  %v8630_v57 = vsel %vm332_vm2, %v16032_v1, %v341_v6  ;;  %v16034_v43 = vld [vmem:[#allocation29_spill] sm:$0xff] }
  0x62   : > { %16028 = vst [vmem:[#allocation71_spill] sm:$0xff] %v8615_v22  ;;  %16030 = vst [vmem:[#allocation19_spill] sm:$0xff] %v8621_v11  ;;  %v1762_v46 = vadd.f32 %v1761_v59, %v1760_v27  ;;  %v1778_v53 = vsel %vm1041_vm3, %v8615_v22, 0.0  ;;  %v504_v2 = vrot.slane %v6903_v31, 2  ;;  %v5050_v26 = vadd.f32 %v8605_v7, %v4870_v50  ;;  %v16036_v59 = vld [vmem:[#allocation31_spill] sm:$0xff] }
  0x63   : > { %16033 = vst [vmem:[#allocation27_spill] sm:$0xff] %v8630_v57  ;;  %v1779_v38 = vadd.f32 %v1778_v53, %v1777_v5  ;;  %v5051_v42 = vadd.f32 %v8605_v7, %v4871_v16  ;;  %v608_v24 = vrot.slane %v8613_v18, 1  ;;  %v8638_v27 = vsel %vm275_vm1, %v16034_v43, %v448_v0  ;;  %v16055_v7 = vld [vmem:[#allocation6_spill] sm:$0xff] }
  0x64   : > { %7483 = vrcp.f32 %v1762_v46  ;;  %16035 = vst [vmem:[#allocation29_spill] sm:$0xff] %v8638_v27  ;;  %v8642_v22 = vsel %vm332_vm2, %v16036_v59, %v504_v2  ;;  %v8645_v6 = vrot.slane %v8624_v39, 1  ;;  %v611_v31 = vrot.slane %v6929_v3, 1 }
  0x65   : > { %16037 = vst [vmem:[#allocation31_spill] sm:$0xff] %v8642_v22  ;;  %7485 = vrcp.f32 %v1779_v38  ;;  %v664_v50 = vrot.slane %v8613_v18, 2  ;;  %v8649_v16 = vrot.slane %v8624_v39, 2  ;;  %v667_v0 = vrot.slane %v6929_v3, 2 }
  0x66   : > { %16038 = vst [vmem:[#allocation73_spill] sm:$0xff] %v8645_v6  ;;  %v8653_v5 = vsel %vm275_vm1, %v608_v24, %v8645_v6  ;;  %v735_v46 = vadd.f32 %v15999_v15, %v16001_v33  ;;  %v736_v53 = vadd.f32 %v16000_v60, %v8621_v11  ;;  %v5194_v1 = vmax.f32 %v5050_v26, 0.0 }
  0x67   : > { %16039 = vst [vmem:[#allocation74_spill] sm:$0xff] %v8649_v16  ;;  %16040 = vst [vmem:[#allocation75_spill] sm:$0xff] %v8653_v5  ;;  %v8661_v38 = vsel %vm275_vm1, %v8645_v6, %v611_v31  ;;  %v751_v2 = vadd.f32 %v16006_v40, %v16004_v47  ;;  %v752_v43 = vadd.f32 %v16010_v54, %v8630_v57  ;;  %v5195_v24 = vmax.f32 %v5051_v42, 0.0 }
  0x68   : > { %16041 = vst [vmem:[#allocation76_spill] sm:$0xff] %v8661_v38  ;;  %v767_v3 = vadd.f32 %v8216_v21, %v16014_v29  ;;  %v768_v59 = vadd.f32 %v8642_v22, %v8638_v27  ;;  %v783_v26 = vadd.f32 %v8613_v18, %v8653_v5  ;;  %v8675_v31 = vsel %vm332_vm2, %v664_v50, %v8649_v16 }
  0x69   : > { %16042 = vst [vmem:[#allocation77_spill] sm:$0xff] %v8675_v31  ;;  %v784_v4 = vadd.f32 %v8624_v39, %v8661_v38  ;;  %v799_v19 = vadd.f32 %v751_v2, %v735_v46  ;;  %v800_v56 = vadd.f32 %v752_v43, %v736_v53  ;;  %v8681_v42 = vsel %vm332_vm2, %v8649_v16, %v667_v0  ;;  %v16046_v0 = vld [vmem:[#allocation39_spill] sm:$0xff] }
  0x6a   : > { %16043 = vst [vmem:[#allocation78_spill] sm:$0xff] %v8681_v42  ;;  %v815_v23 = vadd.f32 %v783_v26, %v767_v3  ;;  %v8685_v35 = vmul.f32 %v15999_v15, %v16044_v12  ;;  %v8689_v51 = vmul.f32 %v16000_v60, %v16044_v12  ;;  %v8693_v44 = vmul.f32 %v16045_v45, %v16001_v33  ;;  %v16047_v3 = vld [vmem:[#allocation45_spill] sm:$0xff] }
  0x6b   : > { %v816_v50 = vadd.f32 %v784_v4, %v768_v59  ;;  %v8697_v46 = vmul.f32 %v16045_v45, %v8621_v11  ;;  %v8701_v53 = vmul.f32 %v16046_v0, %v16004_v47  ;;  %v8705_v43 = vmul.f32 %v16046_v0, %v8630_v57 }
  0x6c   : > { %v831_v2 = vadd.f32 %v815_v23, %v799_v19  ;;  %v8709_v4 = vmul.f32 %v16006_v40, %v16047_v3  ;;  %v8713_v59 = vmul.f32 %v16010_v54, %v16047_v3  ;;  %v8717_v52 = vmul.f32 %v16048_v55, %v16014_v29  ;;  %v16049_v19 = vld [vmem:[#allocation47_spill] sm:$0xff] }
  0x6d   : > { %v832_v26 = vadd.f32 %v816_v50, %v800_v56  ;;  %v8721_v23 = vmul.f32 %v16048_v55, %v8638_v27  ;;  %v8725_v9 = vmul.f32 %v16049_v19, %v8216_v21  ;;  %v8732_v17 = vmul.f32 %v16049_v19, %v8642_v22  ;;  %v16051_v56 = vld [vmem:[#allocation48_spill] sm:$0xff]  ;;  %v16053_v19 = vld [vmem:[#allocation49_spill] sm:$0xff] }
  0x6e   : > { %v8727_v36 = vpop.eup %7483  ;;  %v847_v13 = vadd.f32 %v831_v2, %v8675_v31  ;;  %v8736_v50 = vmul.f32 %v8613_v18, %v16051_v56  ;;  %v8740_v55 = vmul.f32 %v8624_v39, %v16051_v56  ;;  %v3492_v12 = vmul.f32 %v16053_v19, %v8653_v5  ;;  %v16069_v39 = vld [vmem:[#allocation13_spill] sm:$0xff] }
  0x6f   : > { %16050 = vst [vmem:[#allocation79_spill] sm:$0xff] %v8727_v36  ;;  %v8742_v3 = vpop.eup %7485  ;;  %v2050_v0 = vmul.f32 %v8727_v36, %v8515_v37  ;;  %v2098_v2 = vmul.f32 %v8727_v36, %v8566_v62  ;;  %v848_v45 = vadd.f32 %v832_v26, %v8681_v42  ;;  %v3493_v6 = vmul.f32 %v16053_v19, %v8661_v38  ;;  %v16062_v38 = vld [vmem:[#allocation9_spill] sm:$0xff] }
  0x70   : > { %16052 = vst [vmem:[#allocation80_spill] sm:$0xff] %v8742_v3  ;;  %v2051_v16 = vmul.f32 %v8742_v3, %v8535_v25  ;;  %v2099_v56 = vmul.f32 %v8742_v3, %v8571_v63  ;;  %v8759_v37 = vmul.f32 %v8297_v61, %v8675_v31  ;;  %v16054_v62 = vmax.f32 %v8479_v41, 0.0 }
  0x71   : > { %v5338_v26 = vmul.f32 %v5194_v1, %v2098_v2  ;;  %v8764_v49 = vmul.f32 %v16055_v7, %v847_v13  ;;  %v8767_v5 = vmul.f32 %v16057_v58, %v847_v13  ;;  %v16059_v25 = vmax.f32 %v8498_v32, 0.0 }
  0x72   : > { %v5290_v36 = vmul.f32 %v16054_v62, %v2050_v0  ;;  %v5339_v3 = vmul.f32 %v5195_v24, %v2099_v56  ;;  %v8772_v19 = vmul.f32 %v16055_v7, %v848_v45  ;;  %v8775_v31 = vmul.f32 %v16057_v58, %v848_v45  ;;  %v16064_v0 = vld [vmem:[#allocation10_spill] sm:$0xff]  ;;  %v16065_v24 = vld [vmem:[#allocation11_spill] sm:$0xff] }
  0x73   : > { %16056 = vst [vmem:[#allocation81_spill] sm:$0xff] %v8764_v49  ;;  %16058 = vst [vmem:[#allocation82_spill] sm:$0xff] %v8767_v5  ;;  %v5291_v63 = vmul.f32 %v16059_v25, %v2051_v16  ;;  %v8778_v41 = vmul.f32 %v16062_v38, %v847_v13  ;;  %v8781_v1 = vmul.f32 %v16062_v38, %v848_v45  ;;  %v16067_v25 = vld [vmem:[#allocation12_spill] sm:$0xff] }
  0x74   : > { %16060 = vst [vmem:[#allocation83_spill] sm:$0xff] %v8772_v19  ;;  %16061 = vst [vmem:[#allocation84_spill] sm:$0xff] %v8775_v31  ;;  %v8784_v2 = vmul.f32 %v16064_v0, %v847_v13  ;;  %v8787_v62 = vmul.f32 %v16064_v0, %v848_v45  ;;  %v5450_v16 = vpack.c.bf16 %v5339_v3, %v5338_v26  ;;  %v16074_v26 = vld [vmem:[#allocation15_spill] sm:$0xff] }
  0x75   : > { %16063 = vst [vmem:[#allocation85_spill] sm:$0xff] %v8781_v1  ;;  %v5426_v32 = vpack.c.bf16 %v5291_v63, %v5290_v36  ;;  %v8790_v56 = vmul.f32 %v16065_v24, %v847_v13  ;;  %v8793_v58 = vmul.f32 %v16067_v25, %v847_v13  ;;  %v8796_v7 = vmul.f32 %v16065_v24, %v848_v45  ;;  %v16072_v36 = vld [vmem:[#allocation14_spill] sm:$0xff] }
  0x76   : > { %v8799_v38 = vmul.f32 %v16067_v25, %v848_v45  ;;  %v8802_v18 = vmul.f32 %v16069_v39, %v847_v13  ;;  %v8805_v0 = vmul.f32 %v16069_v39, %v848_v45  ;;  %7178 = vmatprep.mubr.msk.bf16.mxu0 %vm1041_vm3, %v5450_v16  ;;  %v8810_v3 = vmul.f32 %v16072_v36, %v847_v13 }
  0x77   : > { %16066 = vst [vmem:[#allocation86_spill] sm:$0xff] %v8790_v56  ;;  %16068 = vst [vmem:[#allocation87_spill] sm:$0xff] %v8793_v58  ;;  %7106 = vmatprep.mubr.msk.bf16.mxu1 %vm1041_vm3, %v5426_v32  ;;  %v8813_v63 = vmul.f32 %v16074_v26, %v847_v13  ;;  %v1076_v25 = vsel %vm1041_vm3, %v8764_v49, -inf  ;;  %v1077_v24 = vsel %vm1041_vm3, %v8767_v5, -inf  ;;  %v8820_v30 = vmul.f32 %v16072_v36, %v848_v45 }
  0x78   : > { %16070 = vst [vmem:[#allocation88_spill] sm:$0xff] %v8802_v18  ;;  %16071 = vst [vmem:[#allocation89_spill] sm:$0xff] %v8805_v0  ;;  %v8823_v39 = vmul.f32 %v16074_v26, %v848_v45  ;;  %v1078_v32 = vmax.f32 %v1076_v25, %v1077_v24  ;;  %v1079_v16 = vsel %vm1041_vm3, %v8778_v41, -inf  ;;  %v1081_v13 = vsel %vm1041_vm3, %v8784_v2, -inf }
  0x79   : > { %16073 = vst [vmem:[#allocation90_spill] sm:$0xff] %v8810_v3  ;;  %16075 = vst [vmem:[#allocation91_spill] sm:$0xff] %v8813_v63  ;;  %v1083_v22 = vsel %vm1041_vm3, %v8790_v56, -inf  ;;  %v1085_v49 = vsel %vm1041_vm3, %v8793_v58, -inf  ;;  %v1087_v36 = vsel %vm1041_vm3, %v8802_v18, -inf  ;;  %v1093_v45 = vsel %vm1041_vm3, %v8772_v19, -inf }
  0x7a   : > { %16076 = vst [vmem:[#allocation92_spill] sm:$0xff] %v8820_v30  ;;  %v1080_v5 = vmax.f32 %v1078_v32, %v1079_v16  ;;  %v1094_v24 = vsel %vm1041_vm3, %v8775_v31, -inf  ;;  %v1096_v25 = vsel %vm1041_vm3, %v8781_v1, -inf  ;;  %v1089_v26 = vsel %vm1041_vm3, %v8810_v3, -inf }
  0x7b   : > { %v1091_v56 = vsel %vm1041_vm3, %v8813_v63, -inf  ;;  %v1095_v58 = vmax.f32 %v1093_v45, %v1094_v24  ;;  %v1098_v18 = vsel %vm1041_vm3, %v8787_v62, -inf  ;;  %v1100_v16 = vsel %vm1041_vm3, %v8796_v7, -inf }
  0x7c   : > { %v1082_v32 = vmax.f32 %v1080_v5, %v1081_v13  ;;  %v1102_v31 = vsel %vm1041_vm3, %v8799_v38, -inf  ;;  %v1104_v1 = vsel %vm1041_vm3, %v8805_v0, -inf  ;;  %v1106_v3 = vsel %vm1041_vm3, %v8820_v30, -inf }
  0x7d   : > { %v1097_v19 = vmax.f32 %v1095_v58, %v1096_v25  ;;  %v3816_v45 = vadd.f32 %v8693_v44, %v8685_v35  ;;  %v3817_v24 = vadd.f32 %v8697_v46, %v8689_v51  ;;  %v3960_v13 = vadd.f32 %v8709_v4, %v8701_v53 }
  0x7e   : > { %v1084_v5 = vmax.f32 %v1082_v32, %v1083_v22  ;;  %v3961_v63 = vadd.f32 %v8713_v59, %v8705_v43  ;;  %v4104_v0 = vadd.f32 %v8725_v9, %v8717_v52  ;;  %v4105_v25 = vadd.f32 %v8732_v17, %v8721_v23 }
  0x7f   : > { %v1099_v58 = vmax.f32 %v1097_v19, %v1098_v18  ;;  %v4248_v30 = vadd.f32 %v3492_v12, %v8736_v50  ;;  %v4249_v44 = vadd.f32 %v3493_v6, %v8740_v55  ;;  %v1108_v51 = vsel %vm1041_vm3, %v8823_v39, -inf  ;;  %v16077_v18 = vld [vmem:[#allocation8_spill] sm:$0xff] }
  0x80   : > { %v1086_v35 = vmax.f32 %v1084_v5, %v1085_v49  ;;  %v4392_v22 = vadd.f32 %v3960_v13, %v3816_v45  ;;  %v4393_v46 = vadd.f32 %v3961_v63, %v3817_v24  ;;  %v3673_v43 = vmul.f32 %v8297_v61, %v8681_v42  ;;  %v16080_v5 = vld [vmem:[#allocation82_spill] sm:$0xff] }
  0x81   : > { %v1101_v53 = vmax.f32 %v1099_v58, %v1100_v16  ;;  %v4536_v4 = vadd.f32 %v4248_v30, %v4104_v0  ;;  %v4537_v52 = vadd.f32 %v4249_v44, %v4105_v25  ;;  %v8875_v17 = vsel %vm5523_vm0, %v16077_v18, 0  ;;  %v16081_v25 = vld [vmem:[#allocation55_spill] sm:$0xff]  ;;  %v16082_v44 = vld [vmem:[#allocation70_spill] sm:$0xff] }
  0x82   : > { %v1088_v9 = vmax.f32 %v1086_v35, %v1087_v36  ;;  %v8879_v55 = vmul.f32 %v15999_v15, %v8420_v8  ;;  %v8883_v49 = vmul.f32 %v16000_v60, %v8420_v8  ;;  %v8887_v30 = vmul.f32 %v8424_v20, %v16001_v33  ;;  %v16135_v33 = vld [vmem:[#allocation47_spill] sm:$0xff] }
  0x83   : > { %v1103_v12 = vmax.f32 %v1101_v53, %v1102_v31  ;;  %v4680_v6 = vadd.f32 %v4536_v4, %v4392_v22  ;;  %v4681_v59 = vadd.f32 %v4537_v52, %v4393_v46  ;;  %v8891_v19 = vmul.f32 %v8424_v20, %v8621_v11  ;;  %v16083_v53 = vld [vmem:[#allocation86_spill] sm:$0xff]  ;;  %v16084_v4 = vld [vmem:[#allocation87_spill] sm:$0xff] }
  0x84   : > { %v1090_v23 = vmax.f32 %v1088_v9, %v1089_v26  ;;  %v8895_v15 = vmul.f32 %v8428_v10, %v16004_v47  ;;  %v8899_v60 = vmul.f32 %v8428_v10, %v8630_v57  ;;  %v8904_v36 = vmul.f32 %v16006_v40, %v8483_v34  ;;  %v16085_v9 = vld [vmem:[#allocation88_spill] sm:$0xff] }
  0x85   : > { %v1105_v31 = vmax.f32 %v1103_v12, %v1104_v1  ;;  %v4824_v50 = vadd.f32 %v4680_v6, %v8759_v37  ;;  %v4825_v0 = vadd.f32 %v4681_v59, %v3673_v43  ;;  %v8908_v63 = vmul.f32 %v16010_v54, %v8483_v34  ;;  %v16079_v54 = vld [vmem:[#allocation81_spill] sm:$0xff]  ;;  %v16086_v59 = vld [vmem:[#allocation83_spill] sm:$0xff] }
  0x86   : > { %v1092_v26 = vmax.f32 %v1090_v23, %v1091_v56  ;;  %v8912_v32 = vmul.f32 %v8487_v14, %v16014_v29  ;;  %v8916_v16 = vmul.f32 %v8487_v14, %v8638_v27  ;;  %v3180_v40 = vmul.f32 %v8491_v28, %v8216_v21  ;;  %v16078_v56 = vld [vmem:[#allocation31_spill] sm:$0xff] }
  0x87   : > { %v1107_v1 = vmax.f32 %v1105_v31, %v1106_v3  ;;  %v8919_v37 = vadd.f32 %v8434_v48, %v4824_v50  ;;  %v3181_v45 = vmul.f32 %v8491_v28, %v16078_v56  ;;  %v8928_v58 = vadd.f32 %v8434_v48, %v4825_v0  ;;  %v16087_v31 = vld [vmem:[#allocation84_spill] sm:$0xff]  ;;  %v16088_v0 = vld [vmem:[#allocation85_spill] sm:$0xff] }
  0x88   : > { %v1316_v24 = vsub.f32 %v16079_v54, %v1092_v26  ;;  %v1332_v13 = vsub.f32 %v16080_v5, %v1092_v26  ;;  %v3360_v35 = vmul.f32 %v16082_v44, %v16081_v25  ;;  %v1348_v22 = vsub.f32 %v8778_v41, %v1092_v26  ;;  %v16091_v56 = vld [vmem:[#allocation89_spill] sm:$0xff] }
  0x89   : > { %v1109_v3 = vmax.f32 %v1107_v1, %v1108_v51  ;;  %v1364_v46 = vsub.f32 %v8784_v2, %v1092_v26  ;;  %v1380_v43 = vsub.f32 %v16083_v53, %v1092_v26  ;;  %v1396_v52 = vsub.f32 %v16084_v4, %v1092_v26  ;;  %v16089_v1 = vld [vmem:[#allocation90_spill] sm:$0xff]  ;;  %v16090_v53 = vld [vmem:[#allocation91_spill] sm:$0xff] }
  0x8a   : > { %v1412_v18 = vsub.f32 %v16085_v9, %v1092_v26  ;;  %v1462_v12 = vmul.f32 1.442695, %v1316_v24  ;;  %v1494_v6 = vmul.f32 1.442695, %v1332_v13  ;;  %v1428_v5 = vsub.f32 %v16089_v1, %v1092_v26 }
  0x8b   : > { %v1317_v23 = vsub.f32 %v16086_v59, %v1109_v3  ;;  %v1333_v50 = vsub.f32 %v16087_v31, %v1109_v3  ;;  %v1349_v54 = vsub.f32 %v16088_v0, %v1109_v3  ;;  %v1365_v51 = vsub.f32 %v8787_v62, %v1109_v3  ;;  %v16092_v59 = vld [vmem:[#allocation92_spill] sm:$0xff] }
  0x8c   : > { %v1381_v41 = vsub.f32 %v8796_v7, %v1109_v3  ;;  %v1397_v2 = vsub.f32 %v8799_v38, %v1109_v3  ;;  %v1444_v4 = vsub.f32 %v16090_v53, %v1092_v26  ;;  %v1413_v9 = vsub.f32 %v16091_v56, %v1109_v3 }
  0x8d   : > { %7487 = vpow2.f32 %v1462_v12  ;;  %v1464_v24 = vmul.f32 1.442695, %v1317_v23  ;;  %v1496_v13 = vmul.f32 1.442695, %v1333_v50  ;;  %v1429_v27 = vsub.f32 %v16092_v59, %v1109_v3 }
  0x8e   : > { %7489 = vpow2.f32 %v1494_v6  ;;  %v1526_v31 = vmul.f32 1.442695, %v1348_v22  ;;  %v1528_v0 = vmul.f32 1.442695, %v1349_v54  ;;  %v1445_v62 = vsub.f32 %v8823_v39, %v1109_v3  ;;  %v16093_v6 = vld [vmem:[#allocation72_spill] sm:$0xff]  ;;  %v16094_v3 = vld [vmem:[#allocation75_spill] sm:$0xff] }
  0x8f   : > { %7491 = vpow2.f32 %v1464_v24  ;;  %v1558_v7 = vmul.f32 1.442695, %v1364_v46  ;;  %v1560_v57 = vmul.f32 1.442695, %v1365_v51  ;;  %v1590_v38 = vmul.f32 1.442695, %v1380_v43 }
  0x90   : > { %7493 = vpow2.f32 %v1496_v13  ;;  %v1592_v1 = vmul.f32 1.442695, %v1381_v41  ;;  %v1622_v11 = vmul.f32 1.442695, %v1396_v52  ;;  %v1624_v26 = vmul.f32 1.442695, %v1397_v2 }
  0x91   : > { %7495 = vpow2.f32 %v1526_v31  ;;  %v1654_v56 = vmul.f32 1.442695, %v1412_v18  ;;  %v1656_v12 = vmul.f32 1.442695, %v1413_v9  ;;  %v1686_v23 = vmul.f32 1.442695, %v1428_v5 }
  0x92   : > { %7497 = vpow2.f32 %v1528_v0  ;;  %v1688_v50 = vmul.f32 1.442695, %v1429_v27  ;;  %v1718_v53 = vmul.f32 1.442695, %v1444_v4  ;;  %v1720_v22 = vmul.f32 1.442695, %v1445_v62 }
  0x93   : > { %7499 = vpow2.f32 %v1558_v7  ;;  %v3361_v39 = vmul.f32 %v16093_v6, %v16081_v25  ;;  %v16095_v46 = vld [vmem:[#allocation54_spill] sm:$0xff]  ;;  %v16096_v52 = vld [vmem:[#allocation76_spill] sm:$0xff]  ;;  %v16097_v51 = vld [vmem:[#allocation77_spill] sm:$0xff]  ;;  %v3864_v27 = vadd.f32 %v8887_v30, %v8879_v55  ;;  %v3865_v5 = vadd.f32 %v8891_v19, %v8883_v49 }
  0x94   : > { %v3540_v54 = vmul.f32 %v16095_v46, %v16094_v3  ;;  %7501 = vpow2.f32 %v1560_v57  ;;  %v3541_v18 = vmul.f32 %v16095_v46, %v16096_v52  ;;  %v16098_v41 = vld [vmem:[#allocation18_spill] sm:$0xff]  ;;  %v4008_v4 = vadd.f32 %v8904_v36, %v8895_v15  ;;  %v8970_v31 = vld [vmem:[%s8087_s12 + $0x30] sm:$0xff] }
  0x95   : > { %v3720_v2 = vmul.f32 %v16098_v41, %v16097_v51  ;;  %7503 = vpow2.f32 %v1590_v38  ;;  %v4009_v57 = vadd.f32 %v8908_v63, %v8899_v60  ;;  %v4152_v9 = vadd.f32 %v3180_v40, %v8912_v32 }
  0x96   : > { %7505 = vpow2.f32 %v1592_v1  ;;  %v4153_v24 = vadd.f32 %v3181_v45, %v8916_v16  ;;  %v4296_v59 = vadd.f32 %v3540_v54, %v3360_v35  ;;  %v4297_v55 = vadd.f32 %v3541_v18, %v3361_v39  ;;  %v8983_v16 = vld [vmem:[%s8087_s12 + $0x38] sm:$0xff] }
  0x97   : > { %v8967_v13 = vpop.eup %7487  ;;  %7507 = vpow2.f32 %v1622_v11  ;;  %v4440_v30 = vadd.f32 %v4008_v4, %v3864_v27  ;;  %v3721_v15 = vmul.f32 %v16098_v41, %v8681_v42  ;;  %v4441_v60 = vadd.f32 %v4009_v57, %v3865_v5  ;;  %v235_v5 = vld [vmem:[%s8087_s12 + $0x40] sm:$0x3] }
  0x98   : > { %16099 = vst [vmem:[#allocation8_spill] sm:$0xff] %v8967_v13  ;;  %v8972_v49 = vpop.eup %7489  ;;  %7509 = vpow2.f32 %v1624_v26  ;;  %v1780_v19 = vsel %vm1041_vm3, %v8967_v13, 0.0  ;;  %v4584_v63 = vadd.f32 %v4296_v59, %v4152_v9  ;;  %v4585_v32 = vadd.f32 %v4297_v55, %v4153_v24 }
  0x99   : > { %v8978_v36 = vpop.eup %7491  ;;  %7511 = vpow2.f32 %v1654_v56  ;;  %v1781_v11 = vsel %vm1041_vm3, %v8972_v49, 0.0  ;;  %v286_v0 = vrot.slane %v8970_v31, 1  ;;  %v287_v39 = vrot.slane %v8983_v16, 1 }
  0x9a   : > { %16100 = vst [vmem:[#allocation81_spill] sm:$0xff] %v8978_v36  ;;  %v8985_v40 = vpop.eup %7493  ;;  %7513 = vpow2.f32 %v1656_v12  ;;  %v1782_v45 = vadd.f32 %v1781_v11, %v1780_v19  ;;  %v1797_v35 = vsel %vm1041_vm3, %v8978_v36, 0.0  ;;  %v4728_v38 = vadd.f32 %v4584_v63, %v4440_v30  ;;  %v16130_v36 = vld [vmem:[#allocation16_spill] sm:$0xff] }
  0x9b   : > { %v8990_v62 = vpop.eup %7495  ;;  %7515 = vpow2.f32 %v1686_v23  ;;  %v1798_v7 = vsel %vm1041_vm3, %v8985_v40, 0.0  ;;  %v4729_v1 = vadd.f32 %v4585_v32, %v4441_v60  ;;  %v16105_v60 = vld [vmem:[#allocation68_spill] sm:$0xff]  ;;  %v289_v63 = vrot.slane %v235_v5, 1 }
  0x9c   : > { %16101 = vst [vmem:[#allocation82_spill] sm:$0xff] %v8990_v62  ;;  %v8994_v26 = vpop.eup %7497  ;;  %7517 = vpow2.f32 %v1688_v50  ;;  %v1783_v56 = vsel %vm1041_vm3, %v8990_v62, 0.0  ;;  %v1799_v12 = vadd.f32 %v1798_v7, %v1797_v35  ;;  %v4872_v27 = vadd.f32 %v4728_v38, %v3720_v2  ;;  %v7767_v2 = vld [vmem:[%s14914_s2 + $0xa] sm:$0x3] }
  0x9d   : > { %16102 = vst [vmem:[#allocation70_spill] sm:$0xff] %v8994_v26  ;;  %v8999_v54 = vpop.eup %7499  ;;  %7519 = vpow2.f32 %v1718_v53  ;;  %v1784_v18 = vadd.f32 %v1783_v56, %v1782_v45  ;;  %v1800_v23 = vsel %vm1041_vm3, %v8994_v26, 0.0  ;;  %v4873_v9 = vadd.f32 %v4729_v1, %v3721_v15  ;;  %v6906_v1 = vld [vmem:[%s8087_s12 + $0x58] sm:$0x3] }
  0x9e   : > { %16103 = vst [vmem:[#allocation86_spill] sm:$0xff] %v8999_v54  ;;  %v9004_v4 = vpop.eup %7501  ;;  %7521 = vpow2.f32 %v1720_v22  ;;  %v1785_v50 = vsel %vm1041_vm3, %v8999_v54, 0.0  ;;  %v1801_v57 = vadd.f32 %v1800_v23, %v1799_v12  ;;  %v9017_v22 = vsel %vm5523_vm0, %v7767_v2, 0  ;;  %v16118_v54 = vld [vmem:[#allocation73_spill] sm:$0xff] }
  0x9f   : > { %16104 = vst [vmem:[#allocation87_spill] sm:$0xff] %v9004_v4  ;;  %v9008_v24 = vpop.eup %7503  ;;  %v1786_v59 = vadd.f32 %v1785_v50, %v1784_v18  ;;  %v1802_v53 = vsel %vm1041_vm3, %v9004_v4, 0.0  ;;  %v9024_v11 = vadd.f32 %v16105_v60, %v4872_v27  ;;  %v9031_v7 = vsel %vm275_vm1, %v286_v0, %v287_v39  ;;  %v6932_v4 = vld [vmem:[%s8087_s12 + $0x70] sm:$0x3] }
  0xa0   : > { %v9019_v30 = vpop.eup %7505  ;;  %v1787_v19 = vsel %vm1041_vm3, %v9008_v24, 0.0  ;;  %v1803_v15 = vadd.f32 %v1802_v53, %v1801_v57  ;;  %16107 = vst [vmem:[#allocation83_spill] sm:$0xff] %v9031_v7  ;;  %v343_v38 = vrot.slane %v8970_v31, 2  ;;  %v9040_v23 = vadd.f32 %v16105_v60, %v4873_v9 }
  0xa1   : > { %v9026_v32 = vpop.eup %7507  ;;  %v1788_v45 = vadd.f32 %v1787_v19, %v1786_v59  ;;  %v1804_v35 = vsel %vm1041_vm3, %v9019_v30, 0.0  ;;  %v9043_v27 = vsel %vm275_vm1, %v287_v39, %v289_v63  ;;  %v344_v59 = vrot.slane %v8983_v16, 2  ;;  %v9055_v39 = vld [vmem:[%s8087_s12 + $0x60] sm:$0xff]  ;;  %v9058_v63 = vld [vmem:[%s8087_s12 + $0x68] sm:$0xff] }
  0xa2   : > { %16106 = vst [vmem:[#allocation88_spill] sm:$0xff] %v9026_v32  ;;  %v9035_v56 = vpop.eup %7509  ;;  %v1789_v12 = vsel %vm1041_vm3, %v9026_v32, 0.0  ;;  %v1805_v18 = vadd.f32 %v1804_v35, %v1803_v15  ;;  %16109 = vst [vmem:[#allocation85_spill] sm:$0xff] %v9043_v27  ;;  %v346_v53 = vrot.slane %v235_v5, 2  ;;  %v453_v15 = vrot.slane %v6906_v1, 1  ;;  %v16131_v32 = vld [vmem:[#allocation36_spill] sm:$0xff] }
  0xa3   : > { %16108 = vst [vmem:[#allocation84_spill] sm:$0xff] %v9035_v56  ;;  %v9045_v50 = vpop.eup %7511  ;;  %v1790_v0 = vadd.f32 %v1789_v12, %v1788_v45  ;;  %v1806_v57 = vsel %vm1041_vm3, %v9035_v56, 0.0  ;;  %v509_v35 = vrot.slane %v6906_v1, 2  ;;  %16112 = vst [vmem:[#allocation89_spill] sm:$0xff] %v9055_v39  ;;  %v9065_v5 = vsel %vm332_vm2, %v343_v38, %v344_v59 }
  0xa4   : > { %16110 = vst [vmem:[#allocation90_spill] sm:$0xff] %v9045_v50  ;;  %v9050_v2 = vpop.eup %7513  ;;  %v1791_v19 = vsel %vm1041_vm3, %v9045_v50, 0.0  ;;  %v1807_v9 = vadd.f32 %v1806_v57, %v1805_v18  ;;  %16113 = vst [vmem:[#allocation92_spill] sm:$0xff] %v9058_v63  ;;  %v9068_v43 = vsel %vm332_vm2, %v344_v59, %v346_v53  ;;  %v9077_v26 = vsel %vm275_vm1, %v16118_v54, %v453_v15 }
  0xa5   : > { %16111 = vst [vmem:[#allocation91_spill] sm:$0xff] %v9050_v2  ;;  %v9060_v45 = vpop.eup %7515  ;;  %v1792_v12 = vadd.f32 %v1791_v19, %v1790_v0  ;;  %v1808_v55 = vsel %vm1041_vm3, %v9050_v2, 0.0  ;;  %16115 = vst [vmem:[#allocation93_spill] sm:$0xff] %v9065_v5  ;;  %v16120_v0 = vld [vmem:[#allocation74_spill] sm:$0xff]  ;;  %v613_v53 = vrot.slane %v9055_v39, 1  ;;  %v9089_v2 = vrot.slane %v9058_v63, 1 }
  0xa6   : > { %16114 = vst [vmem:[#allocation72_spill] sm:$0xff] %v9060_v45  ;;  %16116 = vst [vmem:[#allocation94_spill] sm:$0xff] %v9068_v43  ;;  %v9071_v18 = vpop.eup %7517  ;;  %v1793_v1 = vsel %vm1041_vm3, %v9060_v45, 0.0  ;;  %v1809_v57 = vadd.f32 %v1808_v55, %v1807_v9  ;;  %v9081_v19 = vsel %vm332_vm2, %v16120_v0, %v509_v35  ;;  %v616_v15 = vrot.slane %v6932_v4, 1 }
  0xa7   : > { %16117 = vst [vmem:[#allocation95_spill] sm:$0xff] %v9071_v18  ;;  %16119 = vst [vmem:[#allocation73_spill] sm:$0xff] %v9077_v26  ;;  %v9083_v38 = vpop.eup %7519  ;;  %v1794_v62 = vadd.f32 %v1793_v1, %v1792_v12  ;;  %v1810_v59 = vsel %vm1041_vm3, %v9071_v18, 0.0  ;;  %v669_v35 = vrot.slane %v9055_v39, 2  ;;  %v9100_v1 = vsel %vm275_vm1, %v613_v53, %v9089_v2 }
  0xa8   : > { %16121 = vst [vmem:[#allocation74_spill] sm:$0xff] %v9081_v19  ;;  %16122 = vst [vmem:[#allocation96_spill] sm:$0xff] %v9083_v38  ;;  %v9091_v55 = vpop.eup %7521  ;;  %v1795_v54 = vsel %vm1041_vm3, %v9083_v38, 0.0  ;;  %v1811_v9 = vadd.f32 %v1810_v59, %v1809_v57  ;;  %v9103_v18 = vrot.slane %v9058_v63, 2  ;;  %v9107_v50 = vsel %vm275_vm1, %v9089_v2, %v616_v15 }
  0xa9   : > { %16123 = vst [vmem:[#allocation97_spill] sm:$0xff] %v9089_v2  ;;  %16124 = vst [vmem:[#allocation98_spill] sm:$0xff] %v9091_v55  ;;  %v1796_v0 = vadd.f32 %v1795_v54, %v1794_v62  ;;  %v1812_v12 = vsel %vm1041_vm3, %v9091_v55, 0.0  ;;  %v672_v57 = vrot.slane %v6932_v4, 2  ;;  %v737_v59 = vadd.f32 %v9031_v7, %v8970_v31  ;;  %v16139_v2 = vld [vmem:[#allocation6_spill] sm:$0xff] }
  0xaa   : > { %16125 = vst [vmem:[#allocation99_spill] sm:$0xff] %v9100_v1  ;;  %16126 = vst [vmem:[#allocation100_spill] sm:$0xff] %v9103_v18  ;;  %v1813_v45 = vadd.f32 %v1812_v12, %v1811_v9  ;;  %v5196_v62 = vmax.f32 %v9024_v11, 0.0  ;;  %v738_v54 = vadd.f32 %v9043_v27, %v8983_v16  ;;  %v753_v53 = vadd.f32 %v16082_v44, %v9065_v5 }
  0xab   : > { %16127 = vst [vmem:[#allocation101_spill] sm:$0xff] %v9107_v50  ;;  %7523 = vrcp.f32 %v1796_v0  ;;  %v5197_v9 = vmax.f32 %v9040_v23, 0.0  ;;  %v754_v15 = vadd.f32 %v16093_v6, %v9068_v43  ;;  %v769_v4 = vadd.f32 %v16097_v51, %v16094_v3 }
  0xac   : > { %7525 = vrcp.f32 %v1813_v45  ;;  %v770_v0 = vadd.f32 %v9081_v19, %v9077_v26  ;;  %v785_v11 = vadd.f32 %v9055_v39, %v9100_v1  ;;  %v786_v12 = vadd.f32 %v9058_v63, %v9107_v50 }
  0xad   : > { %v801_v55 = vadd.f32 %v753_v53, %v737_v59  ;;  %v9129_v45 = vsel %vm332_vm2, %v669_v35, %v9103_v18  ;;  %v9133_v23 = vsel %vm332_vm2, %v9103_v18, %v672_v57  ;;  %v802_v38 = vadd.f32 %v754_v15, %v738_v54  ;;  %v16132_v53 = vld [vmem:[#allocation39_spill] sm:$0xff]  ;;  %v16133_v54 = vld [vmem:[#allocation45_spill] sm:$0xff] }
  0xae   : > { %16128 = vst [vmem:[#allocation102_spill] sm:$0xff] %v9129_v45  ;;  %16129 = vst [vmem:[#allocation103_spill] sm:$0xff] %v9133_v23  ;;  %v2234_v13 = vmul.f32 %v16130_v36, %v8970_v31  ;;  %v817_v42 = vadd.f32 %v785_v11, %v769_v4  ;;  %v818_v52 = vadd.f32 %v786_v12, %v770_v0  ;;  %v16134_v12 = vld [vmem:[#allocation46_spill] sm:$0xff] }
  0xaf   : > { %v2235_v56 = vmul.f32 %v16130_v36, %v8983_v16  ;;  %v2414_v59 = vmul.f32 %v16131_v32, %v9031_v7  ;;  %v2415_v35 = vmul.f32 %v16131_v32, %v9043_v27  ;;  %v2594_v21 = vmul.f32 %v16132_v53, %v9065_v5  ;;  %v16137_v32 = vld [vmem:[#allocation49_spill] sm:$0xff] }
  0xb0   : > { %v9147_v57 = vmul.f32 %v16132_v53, %v9068_v43  ;;  %v2774_v15 = vmul.f32 %v16082_v44, %v16133_v54  ;;  %v833_v4 = vadd.f32 %v817_v42, %v801_v55  ;;  %v834_v0 = vadd.f32 %v818_v52, %v802_v38  ;;  %v16136_v52 = vld [vmem:[#allocation48_spill] sm:$0xff] }
  0xb1   : > { %v9153_v11 = vmul.f32 %v16093_v6, %v16133_v54  ;;  %v9157_v29 = vmul.f32 %v16134_v12, %v16094_v3  ;;  %v9161_v47 = vmul.f32 %v16134_v12, %v9077_v26  ;;  %v9165_v53 = vmul.f32 %v16135_v33, %v16097_v51 }
  0xb2   : > { %v9169_v42 = vmul.f32 %v16135_v33, %v9081_v19  ;;  %v9173_v38 = vmul.f32 %v9055_v39, %v16136_v52  ;;  %v849_v55 = vadd.f32 %v833_v4, %v9129_v45  ;;  %v850_v54 = vadd.f32 %v834_v0, %v9133_v23  ;;  %v16148_v19 = vld [vmem:[#allocation12_spill] sm:$0xff] }
  0xb3   : > { %v9179_v12 = vmul.f32 %v9058_v63, %v16136_v52  ;;  %v9183_v36 = vmul.f32 %v16137_v32, %v9100_v1  ;;  %v9187_v33 = vmul.f32 %v16137_v32, %v9107_v50  ;;  %v9191_v18 = vmul.f32 %v8297_v61, %v9129_v45  ;;  %v16144_v1 = vld [vmem:[#allocation10_spill] sm:$0xff] }
  0xb4   : > { %v9195_v4 = vmul.f32 %v8297_v61, %v9133_v23  ;;  %v9197_v0 = vadd.f32 %v2414_v59, %v2234_v13  ;;  %v9202_v60 = vmul.f32 %v16139_v2, %v849_v55  ;;  %v9205_v41 = vmul.f32 %v16139_v2, %v850_v54  ;;  %v16141_v13 = vld [vmem:[#allocation7_spill] sm:$0xff] }
  0xb5   : > { %v9199_v52 = vpop.eup %7523  ;;  %v3819_v32 = vadd.f32 %v2415_v35, %v2235_v56  ;;  %v3962_v50 = vadd.f32 %v2774_v15, %v2594_v21  ;;  %v9214_v59 = vmul.f32 %v16141_v13, %v849_v55  ;;  %v9217_v23 = vmul.f32 %v16141_v13, %v850_v54  ;;  %v16142_v56 = vld [vmem:[#allocation9_spill] sm:$0xff] }
  0xb6   : > { %16138 = vst [vmem:[#allocation104_spill] sm:$0xff] %v9199_v52  ;;  %v9207_v46 = vpop.eup %7525  ;;  %v2052_v45 = vmul.f32 %v9199_v52, %v8972_v49  ;;  %v2100_v61 = vmul.f32 %v9199_v52, %v9008_v24  ;;  %v9224_v35 = vmul.f32 %v16142_v56, %v849_v55  ;;  %v9227_v49 = vmul.f32 %v16142_v56, %v850_v54 }
  0xb7   : > { %16140 = vst [vmem:[#allocation105_spill] sm:$0xff] %v9207_v46  ;;  %v2053_v2 = vmul.f32 %v9207_v46, %v8985_v40  ;;  %v2101_v21 = vmul.f32 %v9207_v46, %v9019_v30  ;;  %v16143_v24 = vmax.f32 %v8919_v37, 0.0  ;;  %v9232_v63 = vmul.f32 %v16144_v1, %v849_v55  ;;  %v16146_v46 = vld [vmem:[#allocation11_spill] sm:$0xff] }
  0xb8   : > { %v5340_v52 = vmul.f32 %v5196_v62, %v2100_v61  ;;  %v9235_v13 = vmul.f32 %v16144_v1, %v850_v54  ;;  %v16145_v40 = vmax.f32 %v8928_v58, 0.0  ;;  %v9240_v25 = vmul.f32 %v16146_v46, %v849_v55  ;;  %v16151_v62 = vld [vmem:[#allocation13_spill] sm:$0xff] }
  0xb9   : > { %v5292_v15 = vmul.f32 %v16143_v24, %v2052_v45  ;;  %v5341_v30 = vmul.f32 %v5197_v9, %v2101_v21  ;;  %v9243_v56 = vmul.f32 %v16146_v46, %v850_v54  ;;  %v9246_v37 = vmul.f32 %v16148_v19, %v849_v55  ;;  %v16153_v9 = vld [vmem:[#allocation14_spill] sm:$0xff]  ;;  %v16155_v46 = vld [vmem:[#allocation15_spill] sm:$0xff] }
  0xba   : > { %v5293_v39 = vmul.f32 %v16145_v40, %v2053_v2  ;;  %v9249_v61 = vmul.f32 %v16148_v19, %v850_v54  ;;  %v9252_v45 = vmul.f32 %v16151_v62, %v849_v55  ;;  %v9255_v24 = vmul.f32 %v16151_v62, %v850_v54 }
  0xbb   : > { %16147 = vst [vmem:[#allocation106_spill] sm:$0xff] %v9243_v56  ;;  %16149 = vst [vmem:[#allocation107_spill] sm:$0xff] %v9246_v37  ;;  %v5451_v2 = vpack.c.bf16 %v5341_v30, %v5340_v52  ;;  %v9258_v21 = vmul.f32 %v16153_v9, %v849_v55  ;;  %v9261_v40 = vmul.f32 %v16153_v9, %v850_v54  ;;  %v1110_v19 = vsel %vm1041_vm3, %v9202_v60, -inf }
  0xbc   : > { %16150 = vst [vmem:[#allocation108_spill] sm:$0xff] %v9249_v61  ;;  %16152 = vst [vmem:[#allocation109_spill] sm:$0xff] %v9252_v45  ;;  %v5427_v58 = vpack.c.bf16 %v5293_v39, %v5292_v15  ;;  %v9264_v1 = vmul.f32 %v16155_v46, %v849_v55  ;;  %v1111_v28 = vsel %vm1041_vm3, %v9214_v59, -inf  ;;  %v1113_v62 = vsel %vm1041_vm3, %v9224_v35, -inf }
  0xbd   : > { %16154 = vst [vmem:[#allocation110_spill] sm:$0xff] %v9258_v21  ;;  %7179 = vmatmul.mubr.msk.bf16.vlgmr.msra.gmra.mrb[0].mxu0 %vm1041_vm3, %v5451_v2  ;;  %v9275_v39 = vmul.f32 %v16155_v46, %v850_v54  ;;  %v1112_v52 = vmax.f32 %v1110_v19, %v1111_v28  ;;  %v1115_v55 = vsel %vm1041_vm3, %v9232_v63, -inf  ;;  %v1117_v15 = vsel %vm1041_vm3, %v9240_v25, -inf }
  0xbe   : > { %16156 = vst [vmem:[#allocation111_spill] sm:$0xff] %v9264_v1  ;;  %7107 = vmatmul.mubr.msk.bf16.vlgmr.msra.gmra.mrb[0].mxu1 %vm1041_vm3, %v5427_v58  ;;  %7195 = vmatpush3.bf16.msra.mxu0 %v9017_v22  ;;  %v1119_v30 = vsel %vm1041_vm3, %v9246_v37, -inf  ;;  %v1121_v58 = vsel %vm1041_vm3, %v9252_v45, -inf  ;;  %v1127_v54 = vsel %vm1041_vm3, %v9205_v41, -inf  ;;  %v1128_v28 = vsel %vm1041_vm3, %v9217_v23, -inf }
  0xbf   : > { %7123 = vmatpush3.bf16.msra.mxu1 %v8875_v17  ;;  %v1114_v19 = vmax.f32 %v1112_v52, %v1113_v62  ;;  %v1123_v2 = vsel %vm1041_vm3, %v9258_v21, -inf  ;;  %v1129_v46 = vmax.f32 %v1127_v54, %v1128_v28  ;;  %v1130_v17 = vsel %vm1041_vm3, %v9227_v49, -inf }
  0xc0   : > { %v1125_v22 = vsel %vm1041_vm3, %v9264_v1, -inf  ;;  %v1132_v9 = vsel %vm1041_vm3, %v9235_v13, -inf  ;;  %v1134_v45 = vsel %vm1041_vm3, %v9243_v56, -inf  ;;  %v1136_v37 = vsel %vm1041_vm3, %v9249_v61, -inf }
  0xc1   : > { %v1116_v62 = vmax.f32 %v1114_v19, %v1115_v55  ;;  %v1131_v52 = vmax.f32 %v1129_v46, %v1130_v17  ;;  %v1138_v54 = vsel %vm1041_vm3, %v9255_v24, -inf  ;;  %v3963_v28 = vadd.f32 %v9153_v11, %v9147_v57 }
  0xc2   : > { %v4106_v1 = vadd.f32 %v9165_v53, %v9157_v29  ;;  %v4107_v21 = vadd.f32 %v9169_v42, %v9161_v47  ;;  %v4250_v56 = vadd.f32 %v9183_v36, %v9173_v38  ;;  %v4251_v61 = vadd.f32 %v9187_v33, %v9179_v12 }
  0xc3   : > { %v1118_v55 = vmax.f32 %v1116_v62, %v1117_v15  ;;  %v1133_v46 = vmax.f32 %v1131_v52, %v1132_v9  ;;  %v4394_v19 = vadd.f32 %v3962_v50, %v9197_v0  ;;  %v4395_v17 = vadd.f32 %v3963_v28, %v3819_v32  ;;  %v16160_v28 = vld [vmem:[#allocation89_spill] sm:$0xff] }
  0xc4   : > { %v1140_v57 = vsel %vm1041_vm3, %v9261_v40, -inf  ;;  %v1142_v29 = vsel %vm1041_vm3, %v9275_v39, -inf  ;;  %v4538_v53 = vadd.f32 %v4250_v56, %v4106_v1  ;;  %v4539_v11 = vadd.f32 %v4251_v61, %v4107_v21 }
  0xc5   : > { %v1120_v47 = vmax.f32 %v1118_v55, %v1119_v30  ;;  %v1135_v42 = vmax.f32 %v1133_v46, %v1134_v45  ;;  %v2282_v36 = vmul.f32 %v8420_v8, %v8970_v31  ;;  %v9324_v33 = vmul.f32 %v8420_v8, %v8983_v16  ;;  %v16161_v46 = vld [vmem:[#allocation92_spill] sm:$0xff] }
  0xc6   : > { %v4682_v12 = vadd.f32 %v4538_v53, %v4394_v19  ;;  %v4683_v50 = vadd.f32 %v4539_v11, %v4395_v17  ;;  %v2462_v32 = vmul.f32 %v8424_v20, %v9031_v7  ;;  %v9330_v38 = vmul.f32 %v8424_v20, %v9043_v27  ;;  %v16162_v11 = vld [vmem:[#allocation99_spill] sm:$0xff] }
  0xc7   : > { %v1122_v1 = vmax.f32 %v1120_v47, %v1121_v58  ;;  %v1137_v0 = vmax.f32 %v1135_v42, %v1136_v37  ;;  %v9334_v56 = vmul.f32 %v8428_v10, %v9065_v5  ;;  %v9338_v31 = vmul.f32 %v8428_v10, %v9068_v43  ;;  %v16163_v47 = vld [vmem:[#allocation54_spill] sm:$0xff] }
  0xc8   : > { %v4826_v16 = vadd.f32 %v4682_v12, %v9191_v18  ;;  %v4827_v61 = vadd.f32 %v4683_v50, %v9195_v4  ;;  %v9344_v45 = vmul.f32 %v16082_v44, %v8483_v34  ;;  %v9348_v9 = vmul.f32 %v16093_v6, %v8483_v34  ;;  %v16157_v44 = vld [vmem:[#allocation53_spill] sm:$0xff]  ;;  %v16158_v6 = vld [vmem:[#allocation74_spill] sm:$0xff] }
  0xc9   : > { %v1124_v37 = vmax.f32 %v1122_v1, %v1123_v2  ;;  %v1139_v21 = vmax.f32 %v1137_v0, %v1138_v54  ;;  %v3002_v15 = vmul.f32 %v8487_v14, %v16094_v3  ;;  %v9354_v30 = vmul.f32 %v8487_v14, %v9077_v26  ;;  %v16159_v54 = vld [vmem:[#allocation55_spill] sm:$0xff]  ;;  %v16164_v12 = vld [vmem:[#allocation101_spill] sm:$0xff]  ;;  %v16166_v0 = vld [vmem:[#allocation18_spill] sm:$0xff] }
  0xca   : > { %v9357_v18 = vadd.f32 %v8434_v48, %v4826_v16  ;;  %v9360_v4 = vadd.f32 %v8434_v48, %v4827_v61  ;;  %v3182_v58 = vmul.f32 %v16157_v44, %v16097_v51  ;;  %v3183_v2 = vmul.f32 %v16157_v44, %v16158_v6  ;;  %v16167_v61 = vld [vmem:[#allocation103_spill] sm:$0xff] }
  0xcb   : > { %v9366_v62 = vmax.f32 %v1124_v37, %v1125_v22  ;;  %v1141_v52 = vmax.f32 %v1139_v21, %v1140_v57  ;;  %v3362_v55 = vmul.f32 %v16160_v28, %v16159_v54  ;;  %v3363_v19 = vmul.f32 %v16161_v46, %v16159_v54  ;;  %v16165_v57 = vld [vmem:[#allocation102_spill] sm:$0xff] }
  0xcc   : > { %v3542_v42 = vmul.f32 %v16163_v47, %v16162_v11  ;;  %v3543_v50 = vmul.f32 %v16163_v47, %v16164_v12  ;;  %v9384_v16 = vmul.f32 %v16166_v0, %v16165_v57  ;;  %v9388_v37 = vmul.f32 %v16166_v0, %v16167_v61  ;;  %v16168_v61 = vld [vmem:[#allocation107_spill] sm:$0xff] }
  0xcd   : > { %v9378_v1 = vmax.f32 %v1141_v52, %v1142_v29  ;;  %v1318_v22 = vsub.f32 %v9202_v60, %v9366_v62  ;;  %v1334_v21 = vsub.f32 %v9214_v59, %v9366_v62  ;;  %v1350_v53 = vsub.f32 %v9224_v35, %v9366_v62  ;;  %v16169_v59 = vld [vmem:[#allocation109_spill] sm:$0xff] }
  0xce   : > { %v1366_v29 = vsub.f32 %v9232_v63, %v9366_v62  ;;  %v1382_v60 = vsub.f32 %v9240_v25, %v9366_v62  ;;  %v1398_v12 = vsub.f32 %v16168_v61, %v9366_v62  ;;  %v1414_v6 = vsub.f32 %v16169_v59, %v9366_v62  ;;  %v16170_v25 = vld [vmem:[#allocation106_spill] sm:$0xff] }
  0xcf   : > { %v1319_v52 = vsub.f32 %v9205_v41, %v9378_v1  ;;  %v1335_v17 = vsub.f32 %v9217_v23, %v9378_v1  ;;  %v1351_v35 = vsub.f32 %v9227_v49, %v9378_v1  ;;  %v1367_v63 = vsub.f32 %v9235_v13, %v9378_v1  ;;  %v16171_v41 = vld [vmem:[#allocation108_spill] sm:$0xff]  ;;  %v16172_v61 = vld [vmem:[#allocation110_spill] sm:$0xff]  ;;  %v16173_v49 = vld [vmem:[#allocation111_spill] sm:$0xff] }
  0xd0   : > { %v1383_v26 = vsub.f32 %v16170_v25, %v9378_v1  ;;  %v1399_v43 = vsub.f32 %v16171_v41, %v9378_v1  ;;  %v1415_v23 = vsub.f32 %v9255_v24, %v9378_v1  ;;  %v1430_v5 = vsub.f32 %v16172_v61, %v9366_v62 }
  0xd1   : > { %v1431_v59 = vsub.f32 %v9261_v40, %v9378_v1  ;;  %v1466_v27 = vmul.f32 1.442695, %v1318_v22  ;;  %v1446_v7 = vsub.f32 %v16173_v49, %v9366_v62  ;;  %v1468_v13 = vmul.f32 1.442695, %v1319_v52  ;;  %v16180_v49 = vld [vmem:[#allocation68_spill] sm:$0xff] }
  0xd2   : > { %v1498_v51 = vmul.f32 1.442695, %v1334_v21  ;;  %v1500_v3 = vmul.f32 1.442695, %v1335_v17  ;;  %v1447_v25 = vsub.f32 %v9275_v39, %v9378_v1  ;;  %v1530_v41 = vmul.f32 1.442695, %v1350_v53 }
  0xd3   : > { %7527 = vpow2.f32 %v1466_v27  ;;  %v3866_v0 = vadd.f32 %v2462_v32, %v2282_v36  ;;  %v1532_v24 = vmul.f32 1.442695, %v1351_v35  ;;  %v1562_v61 = vmul.f32 1.442695, %v1366_v29  ;;  %v9427_v32 = vld [vmem:[%s8087_s12 + $0x48] sm:$0xff] }
  0xd4   : > { %7529 = vpow2.f32 %v1468_v13  ;;  %v1564_v47 = vmul.f32 1.442695, %v1367_v63  ;;  %v1594_v40 = vmul.f32 1.442695, %v1382_v60  ;;  %v1596_v22 = vmul.f32 1.442695, %v1383_v26 }
  0xd5   : > { %7531 = vpow2.f32 %v1498_v51  ;;  %v1626_v54 = vmul.f32 1.442695, %v1398_v12  ;;  %v1628_v62 = vmul.f32 1.442695, %v1399_v43  ;;  %v1658_v21 = vmul.f32 1.442695, %v1414_v6 }
  0xd6   : > { %7533 = vpow2.f32 %v1500_v3  ;;  %v1660_v17 = vmul.f32 1.442695, %v1415_v23  ;;  %v1690_v39 = vmul.f32 1.442695, %v1430_v5  ;;  %v1692_v27 = vmul.f32 1.442695, %v1431_v59 }
  0xd7   : > { %7535 = vpow2.f32 %v1530_v41  ;;  %v3867_v36 = vadd.f32 %v9330_v38, %v9324_v33  ;;  %v4010_v51 = vadd.f32 %v9344_v45, %v9334_v56  ;;  %v4011_v26 = vadd.f32 %v9348_v9, %v9338_v31  ;;  %v9434_v43 = vld [vmem:[%s8087_s12 + $0x50] sm:$0xff]  ;;  %v9438_v12 = vld [vmem:[%s8087_s12 + $0x58] sm:$0x3] }
  0xd8   : > { %7537 = vpow2.f32 %v1532_v24  ;;  %v4154_v3 = vadd.f32 %v3182_v58, %v3002_v15  ;;  %v4155_v6 = vadd.f32 %v3183_v2, %v9354_v30  ;;  %v4298_v5 = vadd.f32 %v3542_v42, %v3362_v55 }
  0xd9   : > { %7539 = vpow2.f32 %v1562_v61  ;;  %v4299_v53 = vadd.f32 %v3543_v50, %v3363_v19  ;;  %v4442_v33 = vadd.f32 %v4010_v51, %v3866_v0  ;;  %v4443_v38 = vadd.f32 %v4011_v26, %v3867_v36 }
  0xda   : > { %7541 = vpow2.f32 %v1564_v47  ;;  %v291_v1 = vrot.slane %v9427_v32, 1  ;;  %v4586_v56 = vadd.f32 %v4298_v5, %v4154_v3  ;;  %v292_v31 = vrot.slane %v9434_v43, 1  ;;  %v9500_v3 = vld [vmem:[%s8087_s12 + $0x80] sm:$0xff] }
  0xdb   : > { %7543 = vpow2.f32 %v1594_v40  ;;  %v4587_v45 = vadd.f32 %v4299_v53, %v4155_v6  ;;  %v294_v9 = vrot.slane %v9438_v12, 1  ;;  %v348_v15 = vrot.slane %v9427_v32, 2  ;;  %16185 = vst [vmem:[#allocation116_spill] sm:$0xff] %v9500_v3  ;;  %v6935_v6 = vld [vmem:[%s8087_s12 + $0x88] sm:$0x3] }
  0xdc   : > { %7545 = vpow2.f32 %v1596_v22  ;;  %v349_v30 = vrot.slane %v9434_v43, 2  ;;  %v1722_v2 = vmul.f32 1.442695, %v1446_v7  ;;  %v4730_v55 = vadd.f32 %v4586_v56, %v4442_v33 }
  0xdd   : > { %v9445_v58 = vpop.eup %7527  ;;  %7547 = vpow2.f32 %v1626_v54  ;;  %v4731_v19 = vadd.f32 %v4587_v45, %v4443_v38  ;;  %v1724_v42 = vmul.f32 1.442695, %v1447_v25  ;;  %v9452_v0 = vsel %vm275_vm1, %v291_v1, %v292_v31  ;;  %v6909_v25 = vld [vmem:[%s8087_s12 + $0x70] sm:$0x3] }
  0xde   : > { %16174 = vst [vmem:[#allocation107_spill] sm:$0xff] %v9445_v58  ;;  %v9447_v47 = vpop.eup %7529  ;;  %7549 = vpow2.f32 %v1628_v62  ;;  %v1814_v50 = vsel %vm1041_vm3, %v9445_v58, 0.0  ;;  %16176 = vst [vmem:[#allocation106_spill] sm:$0xff] %v9452_v0  ;;  %v4874_v7 = vadd.f32 %v4730_v55, %v9384_v16  ;;  %v9465_v63 = vsel %vm275_vm1, %v292_v31, %v294_v9  ;;  %v16213_v58 = vld [vmem:[#allocation6_spill] sm:$0xff] }
  0xdf   : > { %16175 = vst [vmem:[#allocation109_spill] sm:$0xff] %v9447_v47  ;;  %v9454_v29 = vpop.eup %7531  ;;  %7551 = vpow2.f32 %v1658_v21  ;;  %v1831_v54 = vsel %vm1041_vm3, %v9447_v47, 0.0  ;;  %v4875_v60 = vadd.f32 %v4731_v19, %v9388_v37  ;;  %16177 = vst [vmem:[#allocation108_spill] sm:$0xff] %v9465_v63  ;;  %v9470_v23 = vsel %vm332_vm2, %v348_v15, %v349_v30 }
  0xe0   : > { %v9460_v52 = vpop.eup %7533  ;;  %7553 = vpow2.f32 %v1660_v17  ;;  %v1815_v35 = vsel %vm1041_vm3, %v9454_v29, 0.0  ;;  %16178 = vst [vmem:[#allocation110_spill] sm:$0xff] %v9470_v23  ;;  %v9477_v13 = vadd.f32 %v16180_v49, %v4874_v7  ;;  %v351_v17 = vrot.slane %v9438_v12, 2 }
  0xe1   : > { %v9472_v59 = vpop.eup %7535  ;;  %7555 = vpow2.f32 %v1690_v39  ;;  %v1816_v16 = vadd.f32 %v1815_v35, %v1814_v50  ;;  %v1832_v37 = vsel %vm1041_vm3, %v9460_v52, 0.0  ;;  %v9485_v40 = vadd.f32 %v16180_v49, %v4875_v60  ;;  %v9493_v39 = vld [vmem:[%s8087_s12 + $0x78] sm:$0xff]  ;;  %v16221_v49 = vld [vmem:[#allocation10_spill] sm:$0xff] }
  0xe2   : > { %16179 = vst [vmem:[#allocation111_spill] sm:$0xff] %v9472_v59  ;;  %v9480_v41 = vpop.eup %7537  ;;  %7557 = vpow2.f32 %v1692_v27  ;;  %v1817_v24 = vsel %vm1041_vm3, %v9472_v59, 0.0  ;;  %v1833_v61 = vadd.f32 %v1832_v37, %v1831_v54  ;;  %16183 = vst [vmem:[#allocation114_spill] sm:$0xff] %v9493_v39  ;;  %v458_v26 = vrot.slane %v6909_v25, 1  ;;  %v16190_v35 = vld [vmem:[#allocation97_spill] sm:$0xff] }
  0xe3   : > { %16181 = vst [vmem:[#allocation112_spill] sm:$0xff] %v9480_v41  ;;  %v9487_v22 = vpop.eup %7539  ;;  %7559 = vpow2.f32 %v1722_v2  ;;  %v1818_v62 = vadd.f32 %v1817_v24, %v1816_v16  ;;  %v1834_v21 = vsel %vm1041_vm3, %v9480_v41, 0.0  ;;  %v514_v31 = vrot.slane %v6909_v25, 2 }
  0xe4   : > { %16182 = vst [vmem:[#allocation113_spill] sm:$0xff] %v9487_v22  ;;  %v9495_v27 = vpop.eup %7541  ;;  %7561 = vpow2.f32 %v1724_v42  ;;  %v1819_v36 = vsel %vm1041_vm3, %v9487_v22, 0.0  ;;  %v1835_v51 = vadd.f32 %v1834_v21, %v1833_v61  ;;  %v618_v9 = vrot.slane %v9493_v39, 1  ;;  %v16193_v61 = vld [vmem:[#allocation100_spill] sm:$0xff] }
  0xe5   : > { %16184 = vst [vmem:[#allocation115_spill] sm:$0xff] %v9495_v27  ;;  %v9503_v5 = vpop.eup %7543  ;;  %v1820_v53 = vadd.f32 %v1819_v36, %v1818_v62  ;;  %v1836_v33 = vsel %vm1041_vm3, %v9495_v27, 0.0  ;;  %v9519_v19 = vrot.slane %v9500_v3, 1  ;;  %v621_v42 = vrot.slane %v6935_v6, 1 }
  0xe6   : > { %v9509_v1 = vpop.eup %7545  ;;  %v1821_v56 = vsel %vm1041_vm3, %v9503_v5, 0.0  ;;  %v1837_v45 = vadd.f32 %v1836_v33, %v1835_v51  ;;  %v9528_v60 = vsel %vm332_vm2, %v349_v30, %v351_v17  ;;  %v9532_v16 = vsel %vm275_vm1, %v16190_v35, %v458_v26 }
  0xe7   : > { %v9514_v15 = vpop.eup %7547  ;;  %v1822_v2 = vadd.f32 %v1821_v56, %v1820_v53  ;;  %v1838_v55 = vsel %vm1041_vm3, %v9509_v1, 0.0  ;;  %16187 = vst [vmem:[#allocation118_spill] sm:$0xff] %v9519_v19  ;;  %16189 = vst [vmem:[#allocation120_spill] sm:$0xff] %v9528_v60  ;;  %v9540_v62 = vsel %vm332_vm2, %v16193_v61, %v514_v31  ;;  %v674_v21 = vrot.slane %v9493_v39, 2 }
  0xe8   : > { %16186 = vst [vmem:[#allocation117_spill] sm:$0xff] %v9514_v15  ;;  %v9521_v50 = vpop.eup %7549  ;;  %v1823_v54 = vsel %vm1041_vm3, %v9514_v15, 0.0  ;;  %v1839_v7 = vadd.f32 %v1838_v55, %v1837_v45  ;;  %16191 = vst [vmem:[#allocation97_spill] sm:$0xff] %v9532_v16  ;;  %v9549_v51 = vsel %vm275_vm1, %v618_v9, %v9519_v19  ;;  %v9553_v26 = vsel %vm275_vm1, %v9519_v19, %v621_v42  ;;  %v16215_v15 = vld [vmem:[#allocation7_spill] sm:$0xff] }
  0xe9   : > { %16188 = vst [vmem:[#allocation119_spill] sm:$0xff] %v9521_v50  ;;  %v9534_v37 = vpop.eup %7551  ;;  %v1824_v25 = vadd.f32 %v1823_v54, %v1822_v2  ;;  %v1840_v24 = vsel %vm1041_vm3, %v9521_v50, 0.0  ;;  %16194 = vst [vmem:[#allocation100_spill] sm:$0xff] %v9540_v62  ;;  %v9560_v45 = vrot.slane %v9500_v3, 2  ;;  %v677_v31 = vrot.slane %v6935_v6, 2 }
  0xea   : > { %16192 = vst [vmem:[#allocation121_spill] sm:$0xff] %v9534_v37  ;;  %v9543_v36 = vpop.eup %7553  ;;  %v1825_v30 = vsel %vm1041_vm3, %v9534_v37, 0.0  ;;  %v1841_v17 = vadd.f32 %v1840_v24, %v1839_v7  ;;  %16196 = vst [vmem:[#allocation123_spill] sm:$0xff] %v9549_v51  ;;  %v739_v42 = vadd.f32 %v9452_v0, %v9427_v32  ;;  %v740_v54 = vadd.f32 %v9465_v63, %v9434_v43 }
  0xeb   : > { %16195 = vst [vmem:[#allocation122_spill] sm:$0xff] %v9543_v36  ;;  %16197 = vst [vmem:[#allocation124_spill] sm:$0xff] %v9553_v26  ;;  %v9555_v53 = vpop.eup %7555  ;;  %v1826_v33 = vadd.f32 %v1825_v30, %v1824_v25  ;;  %v1842_v56 = vsel %vm1041_vm3, %v9543_v36, 0.0  ;;  %v755_v6 = vadd.f32 %v16160_v28, %v9470_v23  ;;  %v756_v24 = vadd.f32 %v16161_v46, %v9528_v60  ;;  %v16211_v36 = vld [vmem:[#allocation48_spill] sm:$0xff] }
  0xec   : > { %16198 = vst [vmem:[#allocation125_spill] sm:$0xff] %v9555_v53  ;;  %16199 = vst [vmem:[#allocation126_spill] sm:$0xff] %v9560_v45  ;;  %v9562_v2 = vpop.eup %7557  ;;  %v1827_v9 = vsel %vm1041_vm3, %v9555_v53, 0.0  ;;  %v1843_v55 = vadd.f32 %v1842_v56, %v1841_v17  ;;  %v771_v56 = vadd.f32 %v16165_v57, %v16162_v11  ;;  %v787_v12 = vadd.f32 %v9493_v39, %v9549_v51 }
  0xed   : > { %16200 = vst [vmem:[#allocation127_spill] sm:$0xff] %v9562_v2  ;;  %v9570_v7 = vpop.eup %7559  ;;  %v1828_v35 = vadd.f32 %v1827_v9, %v1826_v33  ;;  %v1844_v25 = vsel %vm1041_vm3, %v9562_v2, 0.0  ;;  %v772_v33 = vadd.f32 %v9540_v62, %v9532_v16  ;;  %v788_v27 = vadd.f32 %v9500_v3, %v9553_v26  ;;  %v16205_v2 = vld [vmem:[#allocation16_spill] sm:$0xff] }
  0xee   : > { %16201 = vst [vmem:[#allocation128_spill] sm:$0xff] %v9570_v7  ;;  %v9578_v61 = vpop.eup %7561  ;;  %v1829_v30 = vsel %vm1041_vm3, %v9570_v7, 0.0  ;;  %v1845_v17 = vadd.f32 %v1844_v25, %v1843_v55  ;;  %v9594_v55 = vsel %vm332_vm2, %v674_v21, %v9560_v45  ;;  %v803_v25 = vadd.f32 %v755_v6, %v739_v42  ;;  %v16206_v21 = vld [vmem:[#allocation36_spill] sm:$0xff] }
  0xef   : > { %16202 = vst [vmem:[#allocation129_spill] sm:$0xff] %v9578_v61  ;;  %v1830_v9 = vadd.f32 %v1829_v30, %v1828_v35  ;;  %v1846_v38 = vsel %vm1041_vm3, %v9578_v61, 0.0  ;;  %16203 = vst [vmem:[#allocation130_spill] sm:$0xff] %v9594_v55  ;;  %v804_v7 = vadd.f32 %v756_v24, %v740_v54  ;;  %v9598_v35 = vsel %vm332_vm2, %v9560_v45, %v677_v31  ;;  %v16208_v24 = vld [vmem:[#allocation45_spill] sm:$0xff] }
  0xf0   : > { %v1847_v22 = vadd.f32 %v1846_v38, %v1845_v17  ;;  %16204 = vst [vmem:[#allocation131_spill] sm:$0xff] %v9598_v35  ;;  %v819_v30 = vadd.f32 %v787_v12, %v771_v56  ;;  %v820_v61 = vadd.f32 %v788_v27, %v772_v33  ;;  %v9602_v53 = vmul.f32 %v16205_v2, %v9427_v32 }
  0xf1   : > { %7563 = vrcp.f32 %v1830_v9  ;;  %v9606_v38 = vmul.f32 %v16205_v2, %v9434_v43  ;;  %v9610_v42 = vmul.f32 %v16206_v21, %v9452_v0  ;;  %v9614_v31 = vmul.f32 %v16206_v21, %v9465_v63  ;;  %v16219_v2 = vld [vmem:[#allocation9_spill] sm:$0xff] }
  0xf2   : > { %7565 = vrcp.f32 %v1847_v22  ;;  %v835_v54 = vadd.f32 %v819_v30, %v803_v25  ;;  %v836_v6 = vadd.f32 %v820_v61, %v804_v7  ;;  %v16207_v22 = vld [vmem:[#allocation39_spill] sm:$0xff]  ;;  %v9626_v17 = vmul.f32 %v16160_v28, %v16208_v24  ;;  %v16209_v7 = vld [vmem:[#allocation46_spill] sm:$0xff] }
  0xf3   : > { %v9618_v27 = vmul.f32 %v16207_v22, %v9470_v23  ;;  %v9622_v12 = vmul.f32 %v16207_v22, %v9528_v60  ;;  %v9630_v56 = vmul.f32 %v16161_v46, %v16208_v24  ;;  %v9634_v61 = vmul.f32 %v16209_v7, %v16162_v11  ;;  %v16210_v30 = vld [vmem:[#allocation47_spill] sm:$0xff]  ;;  %v16217_v24 = vld [vmem:[#allocation50_spill] sm:$0xff] }
  0xf4   : > { %v851_v33 = vadd.f32 %v835_v54, %v9594_v55  ;;  %v852_v9 = vadd.f32 %v836_v6, %v9598_v35  ;;  %v9640_v25 = vmul.f32 %v16209_v7, %v9532_v16  ;;  %v9644_v41 = vmul.f32 %v16210_v30, %v16165_v57  ;;  %v16212_v6 = vld [vmem:[#allocation49_spill] sm:$0xff]  ;;  %v16226_v57 = vld [vmem:[#allocation14_spill] sm:$0xff]  ;;  %v16228_v28 = vld [vmem:[#allocation15_spill] sm:$0xff] }
  0xf5   : > { %v9648_v59 = vmul.f32 %v16210_v30, %v9540_v62  ;;  %v9652_v37 = vmul.f32 %v9493_v39, %v16211_v36  ;;  %v9656_v54 = vmul.f32 %v9500_v3, %v16211_v36  ;;  %v9660_v47 = vmul.f32 %v16212_v6, %v9549_v51 }
  0xf6   : > { %v9663_v50 = vmul.f32 %v16213_v58, %v851_v33  ;;  %v9666_v7 = vmul.f32 %v16215_v15, %v851_v33  ;;  %v9670_v30 = vmul.f32 %v16212_v6, %v9553_v26  ;;  %v9674_v22 = vmul.f32 %v16217_v24, %v9594_v55  ;;  %v16222_v55 = vld [vmem:[#allocation11_spill] sm:$0xff] }
  0xf7   : > { %v9677_v36 = vmul.f32 %v16213_v58, %v852_v9  ;;  %v9680_v21 = vmul.f32 %v16215_v15, %v852_v9  ;;  %v9683_v45 = vmul.f32 %v16219_v2, %v851_v33  ;;  %v9686_v19 = vmul.f32 %v16219_v2, %v852_v9  ;;  %v16223_v15 = vld [vmem:[#allocation12_spill] sm:$0xff]  ;;  %v16224_v2 = vld [vmem:[#allocation13_spill] sm:$0xff] }
  0xf8   : > { %16214 = vst [vmem:[#allocation132_spill] sm:$0xff] %v9663_v50  ;;  %16216 = vst [vmem:[#allocation133_spill] sm:$0xff] %v9666_v7  ;;  %v9689_v51 = vmul.f32 %v16221_v49, %v851_v33  ;;  %v9692_v6 = vmul.f32 %v16221_v49, %v852_v9  ;;  %v9695_v26 = vmul.f32 %v16222_v55, %v851_v33  ;;  %v1144_v48 = vsel %vm1041_vm3, %v9663_v50, -inf }
  0xf9   : > { %16218 = vst [vmem:[#allocation134_spill] sm:$0xff] %v9674_v22  ;;  %16220 = vst [vmem:[#allocation135_spill] sm:$0xff] %v9683_v45  ;;  %v9698_v58 = vmul.f32 %v16222_v55, %v852_v9  ;;  %v9701_v3 = vmul.f32 %v16223_v15, %v851_v33  ;;  %v9704_v39 = vmul.f32 %v16223_v15, %v852_v9  ;;  %v1145_v15 = vsel %vm1041_vm3, %v9666_v7, -inf }
  0xfa   : > { %v9707_v62 = vmul.f32 %v16224_v2, %v851_v33  ;;  %v9710_v44 = vmul.f32 %v16224_v2, %v852_v9  ;;  %v9715_v16 = vmul.f32 %v16226_v57, %v851_v33  ;;  %v9718_v55 = vmul.f32 %v16226_v57, %v852_v9 }
  0xfb   : > { %v9712_v49 = vpop.eup %7563  ;;  %v1146_v11 = vmax.f32 %v1144_v48, %v1145_v15  ;;  %v1147_v46 = vsel %vm1041_vm3, %v9683_v45, -inf  ;;  %v9737_v7 = vmul.f32 %v16228_v28, %v851_v33  ;;  %v1149_v34 = vsel %vm1041_vm3, %v9689_v51, -inf }
  0xfc   : > { %16225 = vst [vmem:[#allocation136_spill] sm:$0xff] %v9712_v49  ;;  %v9724_v22 = vpop.eup %7565  ;;  %v2054_v2 = vmul.f32 %v9712_v49, %v9454_v29  ;;  %v2102_v14 = vmul.f32 %v9712_v49, %v9503_v5  ;;  %v16229_v29 = vmax.f32 %v9357_v18, 0.0  ;;  %v16230_v48 = vmax.f32 %v9477_v13, 0.0 }
  0xfd   : > { %16227 = vst [vmem:[#allocation137_spill] sm:$0xff] %v9724_v22  ;;  %v2055_v57 = vmul.f32 %v9724_v22, %v9460_v52  ;;  %v2103_v50 = vmul.f32 %v9724_v22, %v9509_v1  ;;  %v9746_v15 = vmul.f32 %v16228_v28, %v852_v9  ;;  %v1148_v49 = vmax.f32 %v1146_v11, %v1147_v46 }
  0xfe   : > { %v5294_v60 = vmul.f32 %v16229_v29, %v2054_v2  ;;  %v5342_v5 = vmul.f32 %v16230_v48, %v2102_v14  ;;  %v16231_v52 = vmax.f32 %v9360_v4, 0.0  ;;  %v16232_v1 = vmax.f32 %v9485_v40, 0.0 }
  0xff   : > { %v1151_v22 = vsel %vm1041_vm3, %v9695_v26, -inf  ;;  %v1153_v18 = vsel %vm1041_vm3, %v9701_v3, -inf  ;;  %v1150_v2 = vmax.f32 %v1148_v49, %v1149_v34  ;;  %v1155_v14 = vsel %vm1041_vm3, %v9707_v62, -inf }
 0x100   : > { %v5295_v45 = vmul.f32 %v16231_v52, %v2055_v57  ;;  %v5343_v33 = vmul.f32 %v16232_v1, %v2103_v50  ;;  %v1161_v13 = vsel %vm1041_vm3, %v9677_v36, -inf  ;;  %v1162_v4 = vsel %vm1041_vm3, %v9680_v21, -inf }
 0x101   : > { %v1163_v57 = vmax.f32 %v1161_v13, %v1162_v4  ;;  %v1164_v40 = vsel %vm1041_vm3, %v9686_v19, -inf  ;;  %v1152_v50 = vmax.f32 %v1150_v2, %v1151_v22  ;;  %v1157_v9 = vsel %vm1041_vm3, %v9715_v16, -inf }
 0x102   : > { %v5428_v46 = vpack.c.bf16 %v5295_v45, %v5294_v60  ;;  %v5452_v11 = vpack.c.bf16 %v5343_v33, %v5342_v5  ;;  %v1159_v34 = vsel %vm1041_vm3, %v9737_v7, -inf  ;;  %v1166_v49 = vsel %vm1041_vm3, %v9692_v6, -inf }
 0x103   : > { %v1165_v60 = vmax.f32 %v1163_v57, %v1164_v40  ;;  %v1168_v45 = vsel %vm1041_vm3, %v9698_v58, -inf  ;;  %v1170_v22 = vsel %vm1041_vm3, %v9704_v39, -inf  ;;  %v1172_v29 = vsel %vm1041_vm3, %v9710_v44, -inf  ;;  %v16233_v40 = vld [vmem:[#allocation120_spill] sm:$0xff] }
 0x104   : > { %7110 = vmatprep.mubr.msk.bf16.mxu1 %vm1041_vm3, %v5428_v46  ;;  %7182 = vmatprep.mubr.msk.bf16.mxu0 %vm1041_vm3, %v5452_v11  ;;  %v1154_v48 = vmax.f32 %v1152_v50, %v1153_v18  ;;  %v1174_v5 = vsel %vm1041_vm3, %v9718_v55, -inf  ;;  %v3820_v52 = vadd.f32 %v9610_v42, %v9602_v53  ;;  %v3821_v1 = vadd.f32 %v9614_v31, %v9606_v38 }
 0x105   : > { %v1167_v33 = vmax.f32 %v1165_v60, %v1166_v49  ;;  %v3964_v2 = vadd.f32 %v9626_v17, %v9618_v27  ;;  %v3965_v13 = vadd.f32 %v9630_v56, %v9622_v12  ;;  %v4108_v4 = vadd.f32 %v9644_v41, %v9634_v61  ;;  %v16235_v49 = vld [vmem:[#allocation89_spill] sm:$0xff]  ;;  %v16236_v60 = vld [vmem:[#allocation132_spill] sm:$0xff] }
 0x106   : > { %v1156_v18 = vmax.f32 %v1154_v48, %v1155_v14  ;;  %v4109_v46 = vadd.f32 %v9648_v59, %v9640_v25  ;;  %v4252_v53 = vadd.f32 %v9660_v47, %v9652_v37  ;;  %v4253_v38 = vadd.f32 %v9670_v30, %v9656_v54  ;;  %v5496_v30 = vld [vmem:[%s14914_s2 + $0xc] sm:$0x3] }
 0x107   : > { %v1169_v42 = vmax.f32 %v1167_v33, %v1168_v45  ;;  %v1176_v31 = vsel %vm1041_vm3, %v9746_v15, -inf  ;;  %v4396_v27 = vadd.f32 %v3964_v2, %v3820_v52  ;;  %v4397_v17 = vadd.f32 %v3965_v13, %v3821_v1  ;;  %7403 = vmatprep.subr.msk.bf16.mxu0 %vm5523_vm0, %v5496_v30  ;;  %v16238_v52 = vld [vmem:[#allocation135_spill] sm:$0xff] }
 0x108   : > { %v1158_v12 = vmax.f32 %v1156_v18, %v1157_v9  ;;  %v9800_v41 = vmul.f32 %v16217_v24, %v9598_v35  ;;  %v4540_v56 = vadd.f32 %v4252_v53, %v4108_v4  ;;  %v4541_v61 = vadd.f32 %v4253_v38, %v4109_v46  ;;  %v16234_v9 = vld [vmem:[#allocation51_spill] sm:$0xff]  ;;  %v16239_v4 = vld [vmem:[#allocation92_spill] sm:$0xff] }
 0x109   : > { %v1171_v59 = vmax.f32 %v1169_v42, %v1170_v22  ;;  %v9804_v47 = vmul.f32 %v8420_v8, %v9427_v32  ;;  %v9808_v37 = vmul.f32 %v8420_v8, %v9434_v43  ;;  %v9812_v25 = vmul.f32 %v8424_v20, %v9452_v0  ;;  %v16237_v22 = vld [vmem:[#allocation133_spill] sm:$0xff]  ;;  %v16240_v42 = vld [vmem:[#allocation99_spill] sm:$0xff] }
 0x10a   : > { %v1160_v54 = vmax.f32 %v1158_v12, %v1159_v34  ;;  %v4684_v14 = vadd.f32 %v4540_v56, %v4396_v27  ;;  %v9819_v11 = vmul.f32 %v8424_v20, %v9465_v63  ;;  %v9823_v32 = vmul.f32 %v8428_v10, %v9470_v23  ;;  %v16241_v27 = vld [vmem:[#allocation52_spill] sm:$0xff]  ;;  %v16277_v20 = vld [vmem:[#allocation126_spill] sm:$0xff] }
 0x10b   : > { %v1173_v43 = vmax.f32 %v1171_v59, %v1172_v29  ;;  %v4685_v57 = vadd.f32 %v4541_v61, %v4397_v17  ;;  %v9828_v50 = vmul.f32 %v8428_v10, %v16233_v40  ;;  %v9832_v34 = vmul.f32 %v16235_v49, %v16234_v9  ;;  %v16275_v10 = vld [vmem:[#allocation118_spill] sm:$0xff] }
 0x10c   : > { %v1320_v45 = vsub.f32 %v16236_v60, %v1160_v54  ;;  %v1336_v48 = vsub.f32 %v16237_v22, %v1160_v54  ;;  %v1352_v1 = vsub.f32 %v16238_v52, %v1160_v54  ;;  %v1368_v33 = vsub.f32 %v9689_v51, %v1160_v54  ;;  %v16242_v52 = vld [vmem:[#allocation134_spill] sm:$0xff] }
 0x10d   : > { %v1175_v2 = vmax.f32 %v1173_v43, %v1174_v5  ;;  %v1384_v29 = vsub.f32 %v9695_v26, %v1160_v54  ;;  %v1400_v13 = vsub.f32 %v9701_v3, %v1160_v54  ;;  %v9842_v18 = vmul.f32 %v16239_v4, %v16234_v9  ;;  %v16245_v4 = vld [vmem:[#allocation102_spill] sm:$0xff] }
 0x10e   : > { %v1416_v46 = vsub.f32 %v9707_v62, %v1160_v54  ;;  %v1432_v53 = vsub.f32 %v9715_v16, %v1160_v54  ;;  %v1470_v38 = vmul.f32 1.442695, %v1320_v45  ;;  %v3004_v17 = vmul.f32 %v16241_v27, %v16240_v42  ;;  %v16297_v63 = vld [vmem:[#allocation10_spill] sm:$0xff] }
 0x10f   : > { %v1177_v12 = vmax.f32 %v1175_v2, %v1176_v31  ;;  %v1448_v51 = vsub.f32 %v9737_v7, %v1160_v54  ;;  %v1502_v5 = vmul.f32 1.442695, %v1336_v48  ;;  %v1534_v56 = vmul.f32 1.442695, %v1352_v1 }
 0x110   : > { %7567 = vpow2.f32 %v1470_v38  ;;  %v1566_v26 = vmul.f32 1.442695, %v1368_v33  ;;  %v1598_v3 = vmul.f32 1.442695, %v1384_v29  ;;  %v1630_v61 = vmul.f32 1.442695, %v1400_v13 }
 0x111   : > { %v1321_v59 = vsub.f32 %v9677_v36, %v1177_v12  ;;  %v1337_v30 = vsub.f32 %v9680_v21, %v1177_v12  ;;  %v1353_v62 = vsub.f32 %v9686_v19, %v1177_v12  ;;  %v1369_v16 = vsub.f32 %v9692_v6, %v1177_v12  ;;  %v16243_v33 = vld [vmem:[#allocation60_spill] sm:$0xff]  ;;  %v16244_v29 = vld [vmem:[#allocation97_spill] sm:$0xff] }
 0x112   : > { %v1385_v43 = vsub.f32 %v9698_v58, %v1177_v12  ;;  %v1401_v31 = vsub.f32 %v9704_v39, %v1177_v12  ;;  %v1417_v7 = vsub.f32 %v9710_v44, %v1177_v12  ;;  %v1433_v54 = vsub.f32 %v9718_v55, %v1177_v12 }
 0x113   : > { %v1449_v49 = vsub.f32 %v9746_v15, %v1177_v12  ;;  %v1472_v60 = vmul.f32 1.442695, %v1321_v59  ;;  %7569 = vpow2.f32 %v1502_v5  ;;  %v1504_v45 = vmul.f32 1.442695, %v1337_v30  ;;  %v16249_v5 = vld [vmem:[#allocation114_spill] sm:$0xff]  ;;  %v16252_v59 = vld [vmem:[#allocation123_spill] sm:$0xff] }
 0x114   : > { %7571 = vpow2.f32 %v1534_v56  ;;  %v1536_v36 = vmul.f32 1.442695, %v1353_v62  ;;  %v1662_v21 = vmul.f32 1.442695, %v1416_v46  ;;  %v1694_v22 = vmul.f32 1.442695, %v1432_v53 }
 0x115   : > { %7573 = vpow2.f32 %v1472_v60  ;;  %v1568_v19 = vmul.f32 1.442695, %v1369_v16  ;;  %v1600_v6 = vmul.f32 1.442695, %v1385_v43  ;;  %v1632_v48 = vmul.f32 1.442695, %v1401_v31 }
 0x116   : > { %7575 = vpow2.f32 %v1504_v45  ;;  %v1664_v58 = vmul.f32 1.442695, %v1417_v7  ;;  %v1696_v39 = vmul.f32 1.442695, %v1433_v54  ;;  %v4828_v44 = vadd.f32 %v4684_v14, %v16242_v52  ;;  %v16246_v46 = vld [vmem:[#allocation53_spill] sm:$0xff]  ;;  %v16247_v14 = vld [vmem:[#allocation100_spill] sm:$0xff] }
 0x117   : > { %7577 = vpow2.f32 %v1536_v36  ;;  %v1726_v55 = vmul.f32 1.442695, %v1448_v51  ;;  %v1728_v1 = vmul.f32 1.442695, %v1449_v49  ;;  %v4829_v15 = vadd.f32 %v4685_v57, %v9800_v41  ;;  %v16248_v51 = vld [vmem:[#allocation55_spill] sm:$0xff]  ;;  %v16251_v56 = vld [vmem:[#allocation116_spill] sm:$0xff] }
 0x118   : > { %7579 = vpow2.f32 %v1566_v26  ;;  %v9861_v2 = vadd.f32 %v16243_v33, %v4828_v44  ;;  %v3005_v13 = vmul.f32 %v16241_v27, %v16244_v29  ;;  %v3184_v53 = vmul.f32 %v16246_v46, %v16245_v4  ;;  %v16253_v30 = vld [vmem:[#allocation54_spill] sm:$0xff]  ;;  %v16254_v16 = vld [vmem:[#allocation124_spill] sm:$0xff] }
 0x119   : > { %7581 = vpow2.f32 %v1568_v19  ;;  %v9868_v38 = vadd.f32 %v16243_v33, %v4829_v15  ;;  %v3185_v12 = vmul.f32 %v16246_v46, %v16247_v14  ;;  %v3364_v41 = vmul.f32 %v16249_v5, %v16248_v51  ;;  %v16255_v7 = vld [vmem:[#allocation130_spill] sm:$0xff]  ;;  %v9987_v46 = vld [vmem:[%s8087_s12 + $0x98] sm:$0xff] }
 0x11a   : > { %v9874_v57 = vpop.eup %7567  ;;  %7583 = vpow2.f32 %v1598_v3  ;;  %v3365_v26 = vmul.f32 %v16251_v56, %v16248_v51  ;;  %v3544_v62 = vmul.f32 %v16253_v30, %v16252_v59  ;;  %v3545_v43 = vmul.f32 %v16253_v30, %v16254_v16  ;;  %v16256_v54 = vld [vmem:[#allocation18_spill] sm:$0xff] }
 0x11b   : > { %16250 = vst [vmem:[#allocation89_spill] sm:$0xff] %v9874_v57  ;;  %7585 = vpow2.f32 %v1600_v6  ;;  %v1848_v31 = vsel %vm1041_vm3, %v9874_v57, 0.0  ;;  %v3724_v49 = vmul.f32 %v16256_v54, %v16255_v7  ;;  %v3725_v60 = vmul.f32 %v16256_v54, %v9598_v35  ;;  %v6938_v27 = vld [vmem:[%s8087_s12 + $0xa0] sm:$0x3] }
 0x11c   : > { %7587 = vpow2.f32 %v1630_v61  ;;  %v3868_v3 = vadd.f32 %v9812_v25, %v9804_v47  ;;  %v3869_v45 = vadd.f32 %v9819_v11, %v9808_v37  ;;  %v4012_v36 = vadd.f32 %v9832_v34, %v9823_v32 }
 0x11d   : > { %v9894_v19 = vpop.eup %7569  ;;  %7589 = vpow2.f32 %v1632_v48  ;;  %v4013_v6 = vadd.f32 %v9842_v18, %v9828_v50  ;;  %v4156_v52 = vadd.f32 %v3184_v53, %v3004_v17  ;;  %v4157_v44 = vadd.f32 %v3185_v12, %v3005_v13  ;;  %v9911_v48 = vld [vmem:[%s8087_s12 + $0x60] sm:$0xff] }
 0x11e   : > { %v9898_v15 = vpop.eup %7571  ;;  %7591 = vpow2.f32 %v1662_v21  ;;  %v1849_v47 = vsel %vm1041_vm3, %v9894_v19, 0.0  ;;  %v4300_v25 = vadd.f32 %v3544_v62, %v3364_v41  ;;  %v4301_v37 = vadd.f32 %v3545_v43, %v3365_v26  ;;  %v9922_v43 = vld [vmem:[%s8087_s12 + $0x68] sm:$0xff] }
 0x11f   : > { %16257 = vst [vmem:[#allocation132_spill] sm:$0xff] %v9898_v15  ;;  %v9902_v11 = vpop.eup %7573  ;;  %7593 = vpow2.f32 %v1664_v58  ;;  %v1850_v32 = vadd.f32 %v1849_v47, %v1848_v31  ;;  %v1851_v34 = vsel %vm1041_vm3, %v9898_v15, 0.0  ;;  %v4444_v61 = vadd.f32 %v4012_v36, %v3868_v3  ;;  %v241_v31 = vld [vmem:[%s8087_s12 + $0x70] sm:$0x3] }
 0x120   : > { %16258 = vst [vmem:[#allocation133_spill] sm:$0xff] %v9902_v11  ;;  %v9906_v50 = vpop.eup %7575  ;;  %7595 = vpow2.f32 %v1694_v22  ;;  %v1865_v18 = vsel %vm1041_vm3, %v9902_v11, 0.0  ;;  %v4445_v17 = vadd.f32 %v4013_v6, %v3869_v45  ;;  %v4588_v21 = vadd.f32 %v4300_v25, %v4156_v52  ;;  %v16284_v15 = vld [vmem:[#allocation36_spill] sm:$0xff]  ;;  %v16285_v11 = vld [vmem:[#allocation39_spill] sm:$0xff] }
 0x121   : > { %v9913_v13 = vpop.eup %7577  ;;  %7597 = vpow2.f32 %v1696_v39  ;;  %v1852_v58 = vadd.f32 %v1851_v34, %v1850_v32  ;;  %v1866_v53 = vsel %vm1041_vm3, %v9906_v50, 0.0  ;;  %v4589_v12 = vadd.f32 %v4301_v37, %v4157_v44 }
 0x122   : > { %16259 = vst [vmem:[#allocation135_spill] sm:$0xff] %v9913_v13  ;;  %v9917_v41 = vpop.eup %7579  ;;  %7599 = vpow2.f32 %v1726_v55  ;;  %v1867_v22 = vadd.f32 %v1866_v53, %v1865_v18  ;;  %v1868_v26 = vsel %vm1041_vm3, %v9913_v13, 0.0  ;;  %v4732_v62 = vadd.f32 %v4588_v21, %v4444_v61 }
 0x123   : > { %16260 = vst [vmem:[#allocation92_spill] sm:$0xff] %v9917_v41  ;;  %v9925_v3 = vpop.eup %7581  ;;  %7601 = vpow2.f32 %v1728_v1  ;;  %v1853_v39 = vsel %vm1041_vm3, %v9917_v41, 0.0  ;;  %v4733_v45 = vadd.f32 %v4589_v12, %v4445_v17  ;;  %v296_v36 = vrot.slane %v9911_v48, 1  ;;  %v16264_v12 = vld [vmem:[#allocation68_spill] sm:$0xff] }
 0x124   : > { %16261 = vst [vmem:[#allocation134_spill] sm:$0xff] %v9925_v3  ;;  %v9930_v6 = vpop.eup %7583  ;;  %v1854_v55 = vadd.f32 %v1853_v39, %v1852_v58  ;;  %v1869_v52 = vadd.f32 %v1868_v26, %v1867_v22  ;;  %v1870_v44 = vsel %vm1041_vm3, %v9925_v3, 0.0  ;;  %v4876_v47 = vadd.f32 %v4732_v62, %v3724_v49  ;;  %v16283_v41 = vld [vmem:[#allocation16_spill] sm:$0xff] }
 0x125   : > { %v9934_v25 = vpop.eup %7585  ;;  %v1855_v37 = vsel %vm1041_vm3, %v9930_v6, 0.0  ;;  %v4877_v1 = vadd.f32 %v4733_v45, %v3725_v60  ;;  %v297_v32 = vrot.slane %v9922_v43, 1  ;;  %v299_v34 = vrot.slane %v241_v31, 1 }
 0x126   : > { %v9939_v61 = vpop.eup %7587  ;;  %v1856_v18 = vadd.f32 %v1855_v37, %v1854_v55  ;;  %v1871_v17 = vadd.f32 %v1870_v44, %v1869_v52  ;;  %v1872_v21 = vsel %vm1041_vm3, %v9934_v25, 0.0  ;;  %v9950_v22 = vadd.f32 %v16264_v12, %v4876_v47  ;;  %v6912_v44 = vld [vmem:[%s8087_s12 + $0x88] sm:$0x3] }
 0x127   : > { %16262 = vst [vmem:[#allocation114_spill] sm:$0xff] %v9939_v61  ;;  %v9944_v49 = vpop.eup %7589  ;;  %v1857_v53 = vsel %vm1041_vm3, %v9939_v61, 0.0  ;;  %v9953_v26 = vadd.f32 %v16264_v12, %v4877_v1  ;;  %v9960_v52 = vsel %vm275_vm1, %v296_v36, %v297_v32  ;;  %v9968_v1 = vsel %vm275_vm1, %v297_v32, %v299_v34  ;;  %v9977_v12 = vld [vmem:[%s8087_s12 + $0x90] sm:$0xff]  ;;  %v16301_v61 = vld [vmem:[#allocation13_spill] sm:$0xff] }
 0x128   : > { %16263 = vst [vmem:[#allocation116_spill] sm:$0xff] %v9944_v49  ;;  %v9955_v62 = vpop.eup %7591  ;;  %v1858_v39 = vadd.f32 %v1857_v53, %v1856_v18  ;;  %v1873_v45 = vadd.f32 %v1872_v21, %v1871_v17  ;;  %v1874_v55 = vsel %vm1041_vm3, %v9944_v49, 0.0  ;;  %16266 = vst [vmem:[#allocation139_spill] sm:$0xff] %v9960_v52  ;;  %v353_v60 = vrot.slane %v9911_v48, 2 }
 0x129   : > { %16265 = vst [vmem:[#allocation138_spill] sm:$0xff] %v9955_v62  ;;  %v9963_v37 = vpop.eup %7593  ;;  %v1859_v47 = vsel %vm1041_vm3, %v9955_v62, 0.0  ;;  %16268 = vst [vmem:[#allocation141_spill] sm:$0xff] %v9968_v1  ;;  %v354_v18 = vrot.slane %v9922_v43, 2  ;;  %v356_v58 = vrot.slane %v241_v31, 2  ;;  %v463_v30 = vrot.slane %v6912_v44, 1 }
 0x12a   : > { %16267 = vst [vmem:[#allocation140_spill] sm:$0xff] %v9963_v37  ;;  %v9972_v17 = vpop.eup %7595  ;;  %v1860_v21 = vadd.f32 %v1859_v47, %v1858_v39  ;;  %v1875_v36 = vadd.f32 %v1874_v55, %v1873_v45  ;;  %v1876_v53 = vsel %vm1041_vm3, %v9963_v37, 0.0  ;;  %v519_v51 = vrot.slane %v6912_v44, 2 }
 0x12b   : > { %16269 = vst [vmem:[#allocation142_spill] sm:$0xff] %v9972_v17  ;;  %v9979_v54 = vpop.eup %7597  ;;  %v1861_v32 = vsel %vm1041_vm3, %v9972_v17, 0.0  ;;  %v9984_v34 = vsel %vm332_vm2, %v353_v60, %v354_v18  ;;  %v9994_v47 = vsel %vm332_vm2, %v354_v18, %v356_v58  ;;  %v10003_v44 = vsel %vm275_vm1, %v16275_v10, %v463_v30 }
 0x12c   : > { %16270 = vst [vmem:[#allocation143_spill] sm:$0xff] %v9979_v54  ;;  %16271 = vst [vmem:[#allocation144_spill] sm:$0xff] %v9984_v34  ;;  %v9989_v39 = vpop.eup %7599  ;;  %v1862_v45 = vadd.f32 %v1861_v32, %v1860_v21  ;;  %v1877_v55 = vadd.f32 %v1876_v53, %v1875_v36  ;;  %v1878_v31 = vsel %vm1041_vm3, %v9979_v54, 0.0  ;;  %v10007_v21 = vsel %vm332_vm2, %v16277_v20, %v519_v51 }
 0x12d   : > { %16272 = vst [vmem:[#allocation145_spill] sm:$0xff] %v9989_v39  ;;  %16273 = vst [vmem:[#allocation146_spill] sm:$0xff] %v9994_v47  ;;  %v9997_v9 = vpop.eup %7601  ;;  %v1863_v60 = vsel %vm1041_vm3, %v9989_v39, 0.0  ;;  %v623_v36 = vrot.slane %v9977_v12, 1  ;;  %v10013_v18 = vrot.slane %v9987_v46, 1  ;;  %v626_v8 = vrot.slane %v6938_v27, 1 }
 0x12e   : > { %16274 = vst [vmem:[#allocation147_spill] sm:$0xff] %v9997_v9  ;;  %16276 = vst [vmem:[#allocation118_spill] sm:$0xff] %v10003_v44  ;;  %v1864_v53 = vadd.f32 %v1863_v60, %v1862_v45  ;;  %v1879_v32 = vadd.f32 %v1878_v31, %v1877_v55  ;;  %v1880_v58 = vsel %vm1041_vm3, %v9997_v9, 0.0  ;;  %v679_v39 = vrot.slane %v9977_v12, 2 }
 0x12f   : > { %16278 = vst [vmem:[#allocation126_spill] sm:$0xff] %v10007_v21  ;;  %v10017_v10 = vrot.slane %v9987_v46, 2  ;;  %v682_v30 = vrot.slane %v6938_v27, 2  ;;  %v10021_v20 = vsel %vm275_vm1, %v623_v36, %v10013_v18  ;;  %v741_v51 = vadd.f32 %v9960_v52, %v9911_v48 }
 0x130   : > { %v1881_v3 = vadd.f32 %v1880_v58, %v1879_v32  ;;  %7603 = vrcp.f32 %v1864_v53  ;;  %16279 = vst [vmem:[#allocation148_spill] sm:$0xff] %v10021_v20  ;;  %v5200_v45 = vmax.f32 %v9950_v22, 0.0  ;;  %v5201_v55 = vmax.f32 %v9953_v26, 0.0 }
 0x131   : > { %v10029_v31 = vsel %vm275_vm1, %v10013_v18, %v626_v8  ;;  %v742_v27 = vadd.f32 %v9968_v1, %v9922_v43  ;;  %v757_v60 = vadd.f32 %v16249_v5, %v9984_v34  ;;  %v758_v36 = vadd.f32 %v16251_v56, %v9994_v47 }
 0x132   : > { %16280 = vst [vmem:[#allocation149_spill] sm:$0xff] %v10029_v31  ;;  %7605 = vrcp.f32 %v1881_v3  ;;  %v773_v53 = vadd.f32 %v16255_v7, %v16252_v59  ;;  %v10041_v22 = vsel %vm332_vm2, %v679_v39, %v10017_v10  ;;  %v774_v8 = vadd.f32 %v10007_v21, %v10003_v44 }
 0x133   : > { %16281 = vst [vmem:[#allocation150_spill] sm:$0xff] %v10041_v22  ;;  %v789_v26 = vadd.f32 %v9977_v12, %v10021_v20  ;;  %v790_v3 = vadd.f32 %v9987_v46, %v10029_v31  ;;  %v10051_v32 = vsel %vm332_vm2, %v10017_v10, %v682_v30  ;;  %v805_v58 = vadd.f32 %v757_v60, %v741_v51 }
 0x134   : > { %16282 = vst [vmem:[#allocation151_spill] sm:$0xff] %v10051_v32  ;;  %v806_v9 = vadd.f32 %v758_v36, %v742_v27  ;;  %v2238_v54 = vmul.f32 %v16283_v41, %v9911_v48  ;;  %v2239_v13 = vmul.f32 %v16283_v41, %v9922_v43  ;;  %v2418_v37 = vmul.f32 %v16284_v15, %v9960_v52  ;;  %v16286_v27 = vld [vmem:[#allocation45_spill] sm:$0xff] }
 0x135   : > { %v821_v39 = vadd.f32 %v789_v26, %v773_v53  ;;  %v822_v17 = vadd.f32 %v790_v3, %v774_v8  ;;  %v2419_v62 = vmul.f32 %v16284_v15, %v9968_v1  ;;  %v2598_v30 = vmul.f32 %v16285_v11, %v9984_v34  ;;  %v16287_v53 = vld [vmem:[#allocation46_spill] sm:$0xff]  ;;  %v16288_v3 = vld [vmem:[#allocation47_spill] sm:$0xff] }
 0x136   : > { %v10065_v51 = vmul.f32 %v16285_v11, %v9994_v47  ;;  %v2778_v48 = vmul.f32 %v16249_v5, %v16286_v27  ;;  %v10071_v43 = vmul.f32 %v16251_v56, %v16286_v27  ;;  %v10075_v8 = vmul.f32 %v16287_v53, %v16252_v59 }
 0x137   : > { %v837_v60 = vadd.f32 %v821_v39, %v805_v58  ;;  %v838_v36 = vadd.f32 %v822_v17, %v806_v9  ;;  %v10079_v26 = vmul.f32 %v16287_v53, %v10003_v44  ;;  %v10083_v57 = vmul.f32 %v16288_v3, %v16255_v7  ;;  %v16289_v9 = vld [vmem:[#allocation48_spill] sm:$0xff]  ;;  %v16290_v44 = vld [vmem:[#allocation49_spill] sm:$0xff] }
 0x138   : > { %v10087_v5 = vmul.f32 %v16288_v3, %v10007_v21  ;;  %v10091_v56 = vmul.f32 %v9977_v12, %v16289_v9  ;;  %v10097_v39 = vmul.f32 %v9987_v46, %v16289_v9  ;;  %v10101_v47 = vmul.f32 %v16290_v44, %v10021_v20 }
 0x139   : > { %v853_v17 = vadd.f32 %v837_v60, %v10041_v22  ;;  %v854_v58 = vadd.f32 %v838_v36, %v10051_v32  ;;  %v3499_v21 = vmul.f32 %v16290_v44, %v10029_v31  ;;  %v10109_v1 = vmul.f32 %v16217_v24, %v10041_v22  ;;  %v16293_v31 = vld [vmem:[#allocation6_spill] sm:$0xff] }
 0x13a   : > { %v10103_v34 = vpop.eup %7603  ;;  %v10113_v60 = vmul.f32 %v16217_v24, %v10051_v32  ;;  %v10115_v36 = vadd.f32 %v2418_v37, %v2238_v54  ;;  %v3823_v7 = vadd.f32 %v2419_v62, %v2239_v13  ;;  %v3966_v16 = vadd.f32 %v2778_v48, %v2598_v30  ;;  %v16294_v32 = vld [vmem:[#allocation7_spill] sm:$0xff]  ;;  %v16296_v30 = vld [vmem:[#allocation9_spill] sm:$0xff] }
 0x13b   : > { %16291 = vst [vmem:[#allocation152_spill] sm:$0xff] %v10103_v34  ;;  %v2056_v52 = vmul.f32 %v10103_v34, %v9894_v19  ;;  %v2104_v35 = vmul.f32 %v10103_v34, %v9930_v6  ;;  %v10124_v14 = vmul.f32 %v16293_v31, %v853_v17  ;;  %v10127_v29 = vmul.f32 %v16293_v31, %v854_v58 }
 0x13c   : > { %v10121_v59 = vpop.eup %7605  ;;  %v10130_v40 = vmul.f32 %v16294_v32, %v853_v17  ;;  %v10133_v54 = vmul.f32 %v16294_v32, %v854_v58  ;;  %v16295_v13 = vmax.f32 %v9861_v2, 0.0  ;;  %v10142_v48 = vmul.f32 %v16296_v30, %v853_v17 }
 0x13d   : > { %16292 = vst [vmem:[#allocation153_spill] sm:$0xff] %v10121_v59  ;;  %v2057_v19 = vmul.f32 %v10121_v59, %v9906_v50  ;;  %v2105_v62 = vmul.f32 %v10121_v59, %v9934_v25  ;;  %v5344_v37 = vmul.f32 %v5200_v45, %v2104_v35  ;;  %v10145_v23 = vmul.f32 %v16296_v30, %v854_v58  ;;  %v16300_v25 = vld [vmem:[#allocation12_spill] sm:$0xff] }
 0x13e   : > { %v5296_v6 = vmul.f32 %v16295_v13, %v2056_v52  ;;  %v10148_v0 = vmul.f32 %v16297_v63, %v853_v17  ;;  %v10151_v49 = vmul.f32 %v16297_v63, %v854_v58  ;;  %v16298_v50 = vmax.f32 %v9868_v38, 0.0  ;;  %v16299_v13 = vld [vmem:[#allocation11_spill] sm:$0xff] }
 0x13f   : > { %v5345_v52 = vmul.f32 %v5201_v55, %v2105_v62  ;;  %v10156_v34 = vmul.f32 %v16299_v13, %v853_v17  ;;  %v10159_v35 = vmul.f32 %v16299_v13, %v854_v58  ;;  %v10162_v45 = vmul.f32 %v16300_v25, %v853_v17 }
 0x140   : > { %v5297_v2 = vmul.f32 %v16298_v50, %v2057_v19  ;;  %v10165_v59 = vmul.f32 %v16300_v25, %v854_v58  ;;  %v10168_v4 = vmul.f32 %v16301_v61, %v853_v17  ;;  %v10171_v42 = vmul.f32 %v16301_v61, %v854_v58  ;;  %v16302_v19 = vld [vmem:[#allocation14_spill] sm:$0xff] }
 0x141   : > { %v5453_v55 = vpack.c.bf16 %v5345_v52, %v5344_v37  ;;  %v10174_v62 = vmul.f32 %v16302_v19, %v853_v17  ;;  %v10177_v50 = vmul.f32 %v16302_v19, %v854_v58  ;;  %v10180_v13 = vmul.f32 %v16228_v28, %v853_v17 }
 0x142   : > { %v5429_v38 = vpack.c.bf16 %v5297_v2, %v5296_v6  ;;  %v1178_v25 = vsel %vm1041_vm3, %v10124_v14, -inf  ;;  %v1179_v63 = vsel %vm1041_vm3, %v10130_v40, -inf  ;;  %v1181_v61 = vsel %vm1041_vm3, %v10142_v48, -inf }
 0x143   : > { %7183 = vmatmul.mubr.msk.bf16.gmra.mrb[4].mxu0 %vm1041_vm3, %v5453_v55  ;;  %v10191_v6 = vmul.f32 %v16228_v28, %v854_v58  ;;  %v1180_v37 = vmax.f32 %v1178_v25, %v1179_v63  ;;  %v1183_v17 = vsel %vm1041_vm3, %v10148_v0, -inf  ;;  %v1185_v2 = vsel %vm1041_vm3, %v10156_v34, -inf }
 0x144   : > { %7111 = vmatmul.mubr.msk.bf16.gmra.mrb[4].mxu1 %vm1041_vm3, %v5429_v38  ;;  %v1187_v52 = vsel %vm1041_vm3, %v10162_v45, -inf  ;;  %v1189_v19 = vsel %vm1041_vm3, %v10168_v4, -inf  ;;  %v1195_v38 = vsel %vm1041_vm3, %v10127_v29, -inf  ;;  %v1196_v58 = vsel %vm1041_vm3, %v10133_v54, -inf }
 0x145   : > { %v1182_v55 = vmax.f32 %v1180_v37, %v1181_v61  ;;  %v1191_v63 = vsel %vm1041_vm3, %v10174_v62, -inf  ;;  %v1197_v25 = vmax.f32 %v1195_v38, %v1196_v58  ;;  %v1198_v28 = vsel %vm1041_vm3, %v10145_v23, -inf }
 0x146   : > { %v1193_v30 = vsel %vm1041_vm3, %v10180_v13, -inf  ;;  %v1200_v32 = vsel %vm1041_vm3, %v10151_v49, -inf  ;;  %v1202_v31 = vsel %vm1041_vm3, %v10159_v35, -inf  ;;  %v1204_v24 = vsel %vm1041_vm3, %v10165_v59, -inf }
 0x147   : > { %v1184_v61 = vmax.f32 %v1182_v55, %v1183_v17  ;;  %v1199_v37 = vmax.f32 %v1197_v25, %v1198_v28  ;;  %v1206_v38 = vsel %vm1041_vm3, %v10171_v42, -inf  ;;  %v3967_v58 = vadd.f32 %v10071_v43, %v10065_v51  ;;  %v725_v28 = vld [vmem:[%s14913_s1 + $0x50] sm:$0xff] }
 0x148   : > { %v4110_v44 = vadd.f32 %v10083_v57, %v10075_v8  ;;  %v4111_v9 = vadd.f32 %v10087_v5, %v10079_v26  ;;  %v4254_v3 = vadd.f32 %v10101_v47, %v10091_v56  ;;  %v4255_v53 = vadd.f32 %v3499_v21, %v10097_v39  ;;  %v16303_v5 = vld [vmem:[#allocation5_spill] sm:$0xff]  ;;  %v16304_v39 = vld [vmem:[#allocation4_spill] sm:$0xff] }
 0x149   : > { %v1186_v17 = vmax.f32 %v1184_v61, %v1185_v2  ;;  %v1201_v55 = vmax.f32 %v1199_v37, %v1200_v32  ;;  %v4398_v25 = vadd.f32 %v3966_v16, %v10115_v36  ;;  %v4399_v51 = vadd.f32 %v3967_v58, %v3823_v7  ;;  %v16306_v36 = vld [vmem:[#allocation62_spill] sm:$0xff]  ;;  %v16307_v2 = vld [vmem:[#allocation79_spill] sm:$0xff] }
 0x14a   : > { %v1208_v57 = vsel %vm1041_vm3, %v10177_v50, -inf  ;;  %v1210_v43 = vsel %vm1041_vm3, %v10191_v6, -inf  ;;  %v4542_v8 = vadd.f32 %v4254_v3, %v4110_v44  ;;  %v4543_v47 = vadd.f32 %v4255_v53, %v4111_v9  ;;  %v16308_v37 = vld [vmem:[#allocation35_spill] sm:$0xff]  ;;  %v16311_v9 = vld [vmem:[#allocation80_spill] sm:$0xff] }
 0x14b   : > { %v1188_v26 = vmax.f32 %v1186_v17, %v1187_v52  ;;  %v1203_v21 = vmax.f32 %v1201_v55, %v1202_v31  ;;  %v10237_v56 = vrot.slane %v725_v28, %v16303_v5  ;;  %v10240_v32 = vrot.slane %v725_v28, %v16304_v39  ;;  %v16310_v3 = vld [vmem:[#allocation63_spill] sm:$0xff]  ;;  %v16312_v52 = vld [vmem:[#allocation40_spill] sm:$0xff] }
 0x14c   : > { %v4686_v16 = vadd.f32 %v4542_v8, %v4398_v25  ;;  %v4687_v7 = vadd.f32 %v4543_v47, %v4399_v51  ;;  %v10244_v61 = vmul.f32 %v16307_v2, %v16306_v36  ;;  %v10247_v58 = vrot.slane %v725_v28, %v16308_v37  ;;  %v7768_v51 = vld [vmem:[%s8087_s12] sm:$0xff]  ;;  %v7769_v47 = vld [vmem:[%s8087_s12 + $0x8] sm:$0xff]  ;;  %v16320_v2 = vld [vmem:[#allocation41_spill] sm:$0xff] }
 0x14d   : > { %16305 = vst [vmem:[#allocation154_spill] sm:$0xff] %v10240_v32  ;;  %v1190_v44 = vmax.f32 %v1188_v26, %v1189_v19  ;;  %v1205_v53 = vmax.f32 %v1203_v21, %v1204_v24  ;;  %v10251_v31 = vmul.f32 %v16311_v9, %v16310_v3  ;;  %v10254_v17 = vrot.slane %v725_v28, %v16312_v52  ;;  %v16314_v21 = vld [vmem:[#allocation20_spill] sm:$0xff]  ;;  %v16315_v3 = vld [vmem:[#allocation21_spill] sm:$0xff] }
 0x14e   : > { %16309 = vst [vmem:[#allocation62_spill] sm:$0xff] %v10247_v58  ;;  %v4830_v55 = vadd.f32 %v4686_v16, %v10109_v1  ;;  %v4831_v25 = vadd.f32 %v4687_v7, %v10113_v60  ;;  %v10260_v8 = vmul.f32 %v7768_v51, %v10237_v56  ;;  %v10264_v24 = vmul.f32 %v7769_v47, %v10237_v56  ;;  %v16316_v7 = vld [vmem:[#allocation24_spill] sm:$0xff]  ;;  %v10289_v47 = vld [vmem:[%s8087_s12 + $0x18] sm:$0xff] }
 0x14f   : > { %16313 = vst [vmem:[#allocation63_spill] sm:$0xff] %v10254_v17  ;;  %v1192_v19 = vmax.f32 %v1190_v44, %v1191_v63  ;;  %v1207_v26 = vmax.f32 %v1205_v53, %v1206_v38  ;;  %v10268_v36 = vmul.f32 %v10240_v32, %v16314_v21  ;;  %v10272_v1 = vmul.f32 %v10240_v32, %v16315_v3  ;;  %v16317_v63 = vld [vmem:[#allocation25_spill] sm:$0xff]  ;;  %v16322_v3 = vld [vmem:[#allocation42_spill] sm:$0xff] }
 0x150   : > { %v10275_v60 = vadd.f32 %v16243_v33, %v4830_v55  ;;  %v10278_v16 = vadd.f32 %v16243_v33, %v4831_v25  ;;  %v10282_v51 = vmul.f32 %v10247_v58, %v16316_v7  ;;  %v10286_v38 = vmul.f32 %v10247_v58, %v16317_v63  ;;  %16318 = vst [vmem:[#allocation155_spill] sm:$0xff] %v10289_v47  ;;  %v10296_v55 = vld [vmem:[%s8087_s12 + $0x20] sm:$0xff] }
 0x151   : > { %v1194_v44 = vmax.f32 %v1192_v19, %v1193_v30  ;;  %v1209_v53 = vmax.f32 %v1207_v26, %v1208_v57  ;;  %v10293_v9 = vmul.f32 %v10289_v47, %v10254_v17  ;;  %16319 = vst [vmem:[#allocation156_spill] sm:$0xff] %v10296_v55  ;;  %v10300_v25 = vmul.f32 %v10296_v55, %v10254_v17  ;;  %v16324_v30 = vld [vmem:[#allocation43_spill] sm:$0xff]  ;;  %v16326_v19 = vld [vmem:[#allocation44_spill] sm:$0xff]  ;;  %v16328_v32 = vld [vmem:[#allocation26_spill] sm:$0xff] }
 0x152   : > { %v10303_v7 = vrot.slane %v725_v28, %v16320_v2  ;;  %v10306_v63 = vrot.slane %v725_v28, %v16322_v3  ;;  %v10309_v57 = vrot.slane %v725_v28, %v16324_v30  ;;  %v10312_v26 = vrot.slane %v725_v28, %v16326_v19 }
 0x153   : > { %v1211_v21 = vmax.f32 %v1209_v53, %v1210_v43  ;;  %v1322_v52 = vsub.f32 %v10124_v14, %v1194_v44  ;;  %v1338_v39 = vsub.f32 %v10130_v40, %v1194_v44  ;;  %v1354_v33 = vsub.f32 %v10142_v48, %v1194_v44 }
 0x154   : > { %16321 = vst [vmem:[#allocation157_spill] sm:$0xff] %v10303_v7  ;;  %16323 = vst [vmem:[#allocation158_spill] sm:$0xff] %v10306_v63  ;;  %v1370_v17 = vsub.f32 %v10148_v0, %v1194_v44  ;;  %v1386_v2 = vsub.f32 %v10156_v34, %v1194_v44  ;;  %v1402_v3 = vsub.f32 %v10162_v45, %v1194_v44 }
 0x155   : > { %16325 = vst [vmem:[#allocation159_spill] sm:$0xff] %v10309_v57  ;;  %16327 = vst [vmem:[#allocation160_spill] sm:$0xff] %v10312_v26  ;;  %v1418_v58 = vsub.f32 %v10168_v4, %v1194_v44  ;;  %v1323_v30 = vsub.f32 %v10127_v29, %v1211_v21  ;;  %v1339_v28 = vsub.f32 %v10133_v54, %v1211_v21  ;;  %v1474_v53 = vmul.f32 1.442695, %v1322_v52 }
 0x156   : > { %v1355_v43 = vsub.f32 %v10145_v23, %v1211_v21  ;;  %v1371_v14 = vsub.f32 %v10151_v49, %v1211_v21  ;;  %v1387_v40 = vsub.f32 %v10159_v35, %v1211_v21  ;;  %v1403_v48 = vsub.f32 %v10165_v59, %v1211_v21 }
 0x157   : > { %v1419_v0 = vsub.f32 %v10171_v42, %v1211_v21  ;;  %v1434_v34 = vsub.f32 %v10174_v62, %v1194_v44  ;;  %v1435_v45 = vsub.f32 %v10177_v50, %v1211_v21  ;;  %v1450_v4 = vsub.f32 %v10180_v13, %v1194_v44 }
 0x158   : > { %v1451_v29 = vsub.f32 %v10191_v6, %v1211_v21  ;;  %v1476_v54 = vmul.f32 1.442695, %v1323_v30  ;;  %v1506_v19 = vmul.f32 1.442695, %v1338_v39  ;;  %v1508_v23 = vmul.f32 1.442695, %v1339_v28 }
 0x159   : > { %v3014_v49 = vmul.f32 %v10303_v7, %v16328_v32  ;;  %7607 = vpow2.f32 %v1474_v53  ;;  %v1538_v35 = vmul.f32 1.442695, %v1354_v33  ;;  %v1540_v59 = vmul.f32 1.442695, %v1355_v43  ;;  %v16329_v33 = vld [vmem:[#allocation28_spill] sm:$0xff] }
 0x15a   : > { %v1570_v55 = vmul.f32 1.442695, %v1370_v17  ;;  %7609 = vpow2.f32 %v1476_v54  ;;  %v1572_v42 = vmul.f32 1.442695, %v1371_v14  ;;  %v1602_v62 = vmul.f32 1.442695, %v1386_v2 }
 0x15b   : > { %v1604_v47 = vmul.f32 1.442695, %v1387_v40  ;;  %7611 = vpow2.f32 %v1506_v19  ;;  %v1634_v13 = vmul.f32 1.442695, %v1402_v3  ;;  %v1636_v50 = vmul.f32 1.442695, %v1403_v48 }
 0x15c   : > { %v1666_v6 = vmul.f32 1.442695, %v1418_v58  ;;  %7613 = vpow2.f32 %v1508_v23  ;;  %v1668_v39 = vmul.f32 1.442695, %v1419_v0  ;;  %v1698_v52 = vmul.f32 1.442695, %v1434_v34 }
 0x15d   : > { %v1700_v21 = vmul.f32 1.442695, %v1435_v45  ;;  %7615 = vpow2.f32 %v1538_v35  ;;  %v1730_v44 = vmul.f32 1.442695, %v1450_v4  ;;  %v10334_v30 = vmul.f32 1.442695, %v1451_v29 }
 0x15e   : > { %v3015_v17 = vmul.f32 %v10303_v7, %v16329_v33  ;;  %7617 = vpow2.f32 %v1540_v59  ;;  %v16330_v2 = vld [vmem:[#allocation30_spill] sm:$0xff]  ;;  %v16331_v19 = vld [vmem:[#allocation32_spill] sm:$0xff]  ;;  %v10348_v14 = vld [vmem:[%s8087_s12 + $0x38] sm:$0xff]  ;;  %v3879_v53 = vadd.f32 %v10272_v1, %v10264_v24  ;;  %v4022_v54 = vadd.f32 %v10293_v9, %v10282_v51 }
 0x15f   : > { %v3194_v28 = vmul.f32 %v10306_v63, %v16330_v2  ;;  %v3195_v3 = vmul.f32 %v10306_v63, %v16331_v19  ;;  %v10343_v43 = vld [vmem:[%s8087_s12 + $0x30] sm:$0xff]  ;;  %7619 = vpow2.f32 %v1570_v55  ;;  %v3375_v40 = vmul.f32 %v10348_v14, %v10309_v57  ;;  %v16332_v48 = vld [vmem:[#allocation33_spill] sm:$0xff]  ;;  %v16333_v34 = vld [vmem:[#allocation34_spill] sm:$0xff] }
 0x160   : > { %v3374_v58 = vmul.f32 %v10343_v43, %v10309_v57  ;;  %v3554_v0 = vmul.f32 %v10312_v26, %v16332_v48  ;;  %v3555_v45 = vmul.f32 %v10312_v26, %v16333_v34  ;;  %7621 = vpow2.f32 %v1572_v42  ;;  %v7774_v4 = vld [vmem:[%s14913_s1 + $0x58] sm:$0x7]  ;;  %v16336_v34 = vld [vmem:[#allocation38_spill] sm:$0xff] }
 0x161   : > { %v10360_v29 = vrot.slane %v7774_v4, %v16303_v5  ;;  %v3878_v55 = vadd.f32 %v10268_v36, %v10260_v8  ;;  %7623 = vpow2.f32 %v1602_v62  ;;  %v4023_v23 = vadd.f32 %v10300_v25, %v10286_v38  ;;  %v16335_v59 = vld [vmem:[#allocation37_spill] sm:$0xff]  ;;  %v10380_v9 = vld [vmem:[%s8087_s12 + $0x80] sm:$0xff] }
 0x162   : > { %v4166_v35 = vadd.f32 %v3194_v28, %v3014_v49  ;;  %7625 = vpow2.f32 %v1604_v47  ;;  %v4167_v8 = vadd.f32 %v3195_v3, %v3015_v17  ;;  %v4310_v24 = vadd.f32 %v3554_v0, %v3374_v58  ;;  %v10377_v33 = vld [vmem:[%s8087_s12 + $0x78] sm:$0xff] }
 0x163   : > { %16334 = vst [vmem:[#allocation161_spill] sm:$0xff] %v10360_v29  ;;  %v3734_v42 = vmul.f32 %v10360_v29, %v16335_v59  ;;  %v3735_v19 = vmul.f32 %v10360_v29, %v16336_v34  ;;  %v10374_v36 = vpop.eup %7607  ;;  %7627 = vpow2.f32 %v1634_v13  ;;  %v4311_v1 = vadd.f32 %v3555_v45, %v3375_v40 }
 0x164   : > { %16337 = vst [vmem:[#allocation162_spill] sm:$0xff] %v10374_v36  ;;  %v4454_v62 = vadd.f32 %v4022_v54, %v3878_v55  ;;  %v10382_v51 = vpop.eup %7609  ;;  %7629 = vpow2.f32 %v1636_v50  ;;  %v1882_v38 = vsel %vm1041_vm3, %v10374_v36, 0.0  ;;  %v4455_v47 = vadd.f32 %v4023_v23, %v3879_v53 }
 0x165   : > { %16338 = vst [vmem:[#allocation163_spill] sm:$0xff] %v10382_v51  ;;  %v10387_v25 = vrot.slane %v7774_v4, %v16308_v37  ;;  %v10389_v49 = vpop.eup %7611  ;;  %7631 = vpow2.f32 %v1666_v6  ;;  %v1899_v13 = vsel %vm1041_vm3, %v10382_v51, 0.0  ;;  %v4598_v17 = vadd.f32 %v4310_v24, %v4166_v35  ;;  %v244_v24 = vld [vmem:[%s8087_s12 + $0x88] sm:$0x3] }
 0x166   : > { %v4599_v28 = vadd.f32 %v4311_v1, %v4167_v8  ;;  %v10393_v3 = vpop.eup %7613  ;;  %7633 = vpow2.f32 %v1668_v39  ;;  %v1883_v50 = vsel %vm1041_vm3, %v10389_v49, 0.0  ;;  %v301_v58 = vrot.slane %v10377_v33, 1 }
 0x167   : > { %16339 = vst [vmem:[#allocation164_spill] sm:$0xff] %v10387_v25  ;;  %v302_v40 = vrot.slane %v10380_v9, 1  ;;  %v10399_v0 = vpop.eup %7615  ;;  %7635 = vpow2.f32 %v1698_v52  ;;  %v1884_v6 = vadd.f32 %v1883_v50, %v1882_v38  ;;  %v1900_v45 = vsel %vm1041_vm3, %v10393_v3, 0.0 }
 0x168   : > { %16340 = vst [vmem:[#allocation165_spill] sm:$0xff] %v10399_v0  ;;  %v4742_v4 = vadd.f32 %v4598_v17, %v4454_v62  ;;  %v10403_v55 = vpop.eup %7617  ;;  %7637 = vpow2.f32 %v1700_v21  ;;  %v1885_v39 = vsel %vm1041_vm3, %v10399_v0, 0.0  ;;  %v1901_v53 = vadd.f32 %v1900_v45, %v1899_v13 }
 0x169   : > { %16341 = vst [vmem:[#allocation166_spill] sm:$0xff] %v10403_v55  ;;  %v4743_v54 = vadd.f32 %v4599_v28, %v4455_v47  ;;  %v10407_v23 = vpop.eup %7619  ;;  %7639 = vpow2.f32 %v1730_v44  ;;  %v1886_v35 = vadd.f32 %v1885_v39, %v1884_v6  ;;  %v1902_v52 = vsel %vm1041_vm3, %v10403_v55, 0.0 }
 0x16a   : > { %16342 = vst [vmem:[#allocation167_spill] sm:$0xff] %v10407_v23  ;;  %v4886_v8 = vadd.f32 %v4742_v4, %v3734_v42  ;;  %v10412_v1 = vpop.eup %7621  ;;  %7641 = vpow2.f32 %v10334_v30  ;;  %v1887_v21 = vsel %vm1041_vm3, %v10407_v23, 0.0  ;;  %v1903_v62 = vadd.f32 %v1902_v52, %v1901_v53 }
 0x16b   : > { %16343 = vst [vmem:[#allocation168_spill] sm:$0xff] %v10412_v1  ;;  %v4887_v38 = vadd.f32 %v4743_v54, %v3735_v19  ;;  %v10417_v13 = vpop.eup %7623  ;;  %v1888_v47 = vadd.f32 %v1887_v21, %v1886_v35  ;;  %v1904_v44 = vsel %vm1041_vm3, %v10412_v1, 0.0  ;;  %v10423_v42 = vsel %vm275_vm1, %v301_v58, %v302_v40  ;;  %v10465_v1 = vld [vmem:[%s8087_s12 + $0xb0] sm:$0xff] }
 0x16c   : > { %16344 = vst [vmem:[#allocation169_spill] sm:$0xff] %v10417_v13  ;;  %v5066_v17 = vadd.f32 %v10387_v25, %v4886_v8  ;;  %16345 = vst [vmem:[#allocation170_spill] sm:$0xff] %v10423_v42  ;;  %v10425_v28 = vpop.eup %7625  ;;  %v1889_v30 = vsel %vm1041_vm3, %v10417_v13, 0.0  ;;  %v1905_v50 = vadd.f32 %v1904_v44, %v1903_v62  ;;  %v304_v6 = vrot.slane %v244_v24, 1  ;;  %v6915_v62 = vld [vmem:[%s8087_s12 + $0xa0] sm:$0x3] }
 0x16d   : > { %16346 = vst [vmem:[#allocation171_spill] sm:$0xff] %v10425_v28  ;;  %v5067_v19 = vadd.f32 %v10387_v25, %v4887_v38  ;;  %v10430_v45 = vpop.eup %7627  ;;  %v1890_v4 = vadd.f32 %v1889_v30, %v1888_v47  ;;  %v1906_v39 = vsel %vm1041_vm3, %v10425_v28, 0.0  ;;  %v358_v58 = vrot.slane %v10377_v33, 2  ;;  %v10462_v13 = vld [vmem:[%s8087_s12 + $0xa8] sm:$0xff]  ;;  %16355 = vst [vmem:[#allocation180_spill] sm:$0xff] %v10465_v1 }
 0x16e   : > { %16347 = vst [vmem:[#allocation172_spill] sm:$0xff] %v10430_v45  ;;  %v5210_v53 = vmax.f32 %v5066_v17, 0.0  ;;  %v10435_v54 = vpop.eup %7629  ;;  %v1891_v35 = vsel %vm1041_vm3, %v10430_v45, 0.0  ;;  %v1907_v52 = vadd.f32 %v1906_v39, %v1905_v50  ;;  %v10440_v21 = vsel %vm275_vm1, %v302_v40, %v304_v6  ;;  %16354 = vst [vmem:[#allocation179_spill] sm:$0xff] %v10462_v13 }
 0x16f   : > { %16348 = vst [vmem:[#allocation173_spill] sm:$0xff] %v10435_v54  ;;  %v5211_v8 = vmax.f32 %v5067_v19, 0.0  ;;  %16349 = vst [vmem:[#allocation174_spill] sm:$0xff] %v10440_v21  ;;  %v10443_v38 = vpop.eup %7631  ;;  %v1892_v47 = vadd.f32 %v1891_v35, %v1890_v4  ;;  %v1908_v44 = vsel %vm1041_vm3, %v10435_v54, 0.0  ;;  %v359_v30 = vrot.slane %v10380_v9, 2 }
 0x170   : > { %16350 = vst [vmem:[#allocation175_spill] sm:$0xff] %v10443_v38  ;;  %v5354_v17 = vmul.f32 %v5210_v53, %v10244_v61  ;;  %v10449_v28 = vpop.eup %7633  ;;  %v1893_v50 = vsel %vm1041_vm3, %v10443_v38, 0.0  ;;  %v1909_v40 = vadd.f32 %v1908_v44, %v1907_v52  ;;  %v361_v6 = vrot.slane %v244_v24, 2 }
 0x171   : > { %16351 = vst [vmem:[#allocation176_spill] sm:$0xff] %v10449_v28  ;;  %v5355_v19 = vmul.f32 %v5211_v8, %v10251_v31  ;;  %v10454_v39 = vpop.eup %7635  ;;  %v1894_v4 = vadd.f32 %v1893_v50, %v1892_v47  ;;  %v1910_v35 = vsel %vm1041_vm3, %v10449_v28, 0.0  ;;  %v10459_v61 = vsel %vm332_vm2, %v358_v58, %v359_v30  ;;  %v6941_v47 = vld [vmem:[%s8087_s12 + $0xb8] sm:$0x3] }
 0x172   : > { %16352 = vst [vmem:[#allocation177_spill] sm:$0xff] %v10454_v39  ;;  %16353 = vst [vmem:[#allocation178_spill] sm:$0xff] %v10459_v61  ;;  %v468_v53 = vrot.slane %v6915_v62, 1  ;;  %v10467_v23 = vpop.eup %7637  ;;  %v1895_v31 = vsel %vm1041_vm3, %v10454_v39, 0.0  ;;  %v1911_v24 = vadd.f32 %v1910_v35, %v1909_v40  ;;  %v10472_v8 = vsel %vm332_vm2, %v359_v30, %v361_v6 }
 0x173   : > { %16356 = vst [vmem:[#allocation181_spill] sm:$0xff] %v10467_v23  ;;  %v5458_v52 = vpack.c.bf16 %v5355_v19, %v5354_v17  ;;  %16357 = vst [vmem:[#allocation182_spill] sm:$0xff] %v10472_v8  ;;  %v10475_v44 = vpop.eup %7639  ;;  %v1896_v58 = vadd.f32 %v1895_v31, %v1894_v4  ;;  %v1912_v50 = vsel %vm1041_vm3, %v10467_v23, 0.0  ;;  %v524_v0 = vrot.slane %v6915_v62, 2 }
 0x174   : > { %16358 = vst [vmem:[#allocation183_spill] sm:$0xff] %v10475_v44  ;;  %v10481_v55 = vsel %vm275_vm1, %v10013_v18, %v468_v53  ;;  %v10483_v28 = vpop.eup %7641  ;;  %v1897_v17 = vsel %vm1041_vm3, %v10475_v44, 0.0  ;;  %v1913_v40 = vadd.f32 %v1912_v50, %v1911_v24  ;;  %v628_v30 = vrot.slane %v10462_v13, 1 }
 0x175   : > { %16359 = vst [vmem:[#allocation184_spill] sm:$0xff] %v10481_v55  ;;  %16360 = vst [vmem:[#allocation185_spill] sm:$0xff] %v10483_v28  ;;  %7196 = vmatprep.mubr.msk.bf16.mxu0 %vm1041_vm3, %v5458_v52  ;;  %v10490_v19 = vrot.slane %v10465_v1, 1  ;;  %v1898_v6 = vadd.f32 %v1897_v17, %v1896_v58  ;;  %v1914_v4 = vsel %vm1041_vm3, %v10483_v28, 0.0  ;;  %v10496_v18 = vsel %vm332_vm2, %v10017_v10, %v524_v0 }
 0x176   : > { %16362 = vst [vmem:[#allocation187_spill] sm:$0xff] %v10496_v18  ;;  %v631_v62 = vrot.slane %v6941_v47, 1  ;;  %v1915_v35 = vadd.f32 %v1914_v4, %v1913_v40  ;;  %v684_v31 = vrot.slane %v10462_v13, 2  ;;  %v10504_v24 = vrot.slane %v10465_v1, 2 }
 0x177   : > { %16361 = vst [vmem:[#allocation186_spill] sm:$0xff] %v10490_v19  ;;  %v10500_v53 = vsel %vm275_vm1, %v628_v30, %v10490_v19  ;;  %7643 = vrcp.f32 %v1898_v6  ;;  %v687_v58 = vrot.slane %v6941_v47, 2  ;;  %v743_v10 = vadd.f32 %v10423_v42, %v10377_v33 }
 0x178   : > { %16363 = vst [vmem:[#allocation188_spill] sm:$0xff] %v10500_v53  ;;  %16364 = vst [vmem:[#allocation189_spill] sm:$0xff] %v10504_v24  ;;  %v10508_v52 = vsel %vm275_vm1, %v10490_v19, %v631_v62  ;;  %7645 = vrcp.f32 %v1915_v35  ;;  %v5154_v0 = vmax.f32 %v10275_v60, 0.0  ;;  %v744_v50 = vadd.f32 %v10440_v21, %v10380_v9 }
 0x179   : > { %16365 = vst [vmem:[#allocation190_spill] sm:$0xff] %v10508_v52  ;;  %v759_v17 = vadd.f32 %v9977_v12, %v10459_v61  ;;  %v5155_v40 = vmax.f32 %v10278_v16, 0.0  ;;  %v760_v30 = vadd.f32 %v9987_v46, %v10472_v8  ;;  %v775_v47 = vadd.f32 %v10041_v22, %v10021_v20 }
 0x17a   : > { %v776_v6 = vadd.f32 %v10496_v18, %v10481_v55  ;;  %v10526_v60 = vsel %vm332_vm2, %v684_v31, %v10504_v24  ;;  %v791_v4 = vadd.f32 %v10462_v13, %v10500_v53  ;;  %v792_v62 = vadd.f32 %v10465_v1, %v10508_v52 }
 0x17b   : > { %16366 = vst [vmem:[#allocation191_spill] sm:$0xff] %v10526_v60  ;;  %v807_v16 = vadd.f32 %v759_v17, %v743_v10  ;;  %v10534_v35 = vsel %vm332_vm2, %v10504_v24, %v687_v58  ;;  %v808_v28 = vadd.f32 %v760_v30, %v744_v50  ;;  %v2240_v44 = vmul.f32 %v16283_v41, %v10377_v33  ;;  %v16368_v30 = vld [vmem:[#allocation46_spill] sm:$0xff] }
 0x17c   : > { %16367 = vst [vmem:[#allocation192_spill] sm:$0xff] %v10534_v35  ;;  %v2241_v23 = vmul.f32 %v16283_v41, %v10380_v9  ;;  %v823_v31 = vadd.f32 %v791_v4, %v775_v47  ;;  %v824_v39 = vadd.f32 %v792_v62, %v776_v6  ;;  %v2420_v38 = vmul.f32 %v16284_v15, %v10423_v42  ;;  %v16369_v4 = vld [vmem:[#allocation47_spill] sm:$0xff] }
 0x17d   : > { %v2421_v51 = vmul.f32 %v16284_v15, %v10440_v21  ;;  %v2600_v10 = vmul.f32 %v16285_v11, %v10459_v61  ;;  %v2601_v58 = vmul.f32 %v16285_v11, %v10472_v8  ;;  %v2780_v33 = vmul.f32 %v9977_v12, %v16286_v27  ;;  %v16370_v12 = vld [vmem:[#allocation48_spill] sm:$0xff] }
 0x17e   : > { %v2781_v9 = vmul.f32 %v9987_v46, %v16286_v27  ;;  %v839_v50 = vadd.f32 %v823_v31, %v807_v16  ;;  %v840_v17 = vadd.f32 %v824_v39, %v808_v28  ;;  %v10554_v47 = vmul.f32 %v16368_v30, %v10021_v20  ;;  %v16371_v16 = vld [vmem:[#allocation49_spill] sm:$0xff]  ;;  %v16375_v20 = vld [vmem:[#allocation6_spill] sm:$0xff] }
 0x17f   : > { %v10558_v6 = vmul.f32 %v16368_v30, %v10481_v55  ;;  %v3140_v62 = vmul.f32 %v16369_v4, %v10041_v22  ;;  %v3141_v36 = vmul.f32 %v16369_v4, %v10496_v18  ;;  %v3320_v8 = vmul.f32 %v10462_v13, %v16370_v12  ;;  %v16373_v18 = vld [vmem:[#allocation50_spill] sm:$0xff] }
 0x180   : > { %v3321_v46 = vmul.f32 %v10465_v1, %v16370_v12  ;;  %v855_v28 = vadd.f32 %v839_v50, %v10526_v60  ;;  %v856_v39 = vadd.f32 %v840_v17, %v10534_v35  ;;  %v3500_v31 = vmul.f32 %v16371_v16, %v10500_v53  ;;  %v16389_v12 = vld [vmem:[#allocation15_spill] sm:$0xff] }
 0x181   : > { %v3501_v55 = vmul.f32 %v16371_v16, %v10508_v52  ;;  %v10574_v61 = vpop.eup %7643  ;;  %v10578_v21 = vmul.f32 %v16373_v18, %v10526_v60  ;;  %v10582_v42 = vmul.f32 %v16373_v18, %v10534_v35  ;;  %v3824_v54 = vadd.f32 %v2420_v38, %v2240_v44  ;;  %v16376_v35 = vld [vmem:[#allocation7_spill] sm:$0xff]  ;;  %v16377_v38 = vld [vmem:[#allocation9_spill] sm:$0xff] }
 0x182   : > { %16372 = vst [vmem:[#allocation193_spill] sm:$0xff] %v10574_v61  ;;  %v3825_v50 = vadd.f32 %v2421_v51, %v2241_v23  ;;  %v10584_v22 = vpop.eup %7645  ;;  %v2058_v17 = vmul.f32 %v10574_v61, %v10389_v49  ;;  %v10589_v45 = vmul.f32 %v16375_v20, %v855_v28  ;;  %v3968_v52 = vadd.f32 %v2780_v33, %v2600_v10  ;;  %v16379_v10 = vld [vmem:[#allocation10_spill] sm:$0xff]  ;;  %v16382_v61 = vld [vmem:[#allocation12_spill] sm:$0xff] }
 0x183   : > { %16374 = vst [vmem:[#allocation194_spill] sm:$0xff] %v10584_v22  ;;  %v3969_v34 = vadd.f32 %v2781_v9, %v2601_v58  ;;  %v2059_v37 = vmul.f32 %v10584_v22, %v10393_v3  ;;  %v10594_v5 = vmul.f32 %v16375_v20, %v856_v39  ;;  %v10597_v18 = vmul.f32 %v16376_v35, %v855_v28  ;;  %v16381_v9 = vld [vmem:[#allocation11_spill] sm:$0xff] }
 0x184   : > { %v10600_v51 = vmul.f32 %v16376_v35, %v856_v39  ;;  %v5298_v23 = vmul.f32 %v5154_v0, %v2058_v17  ;;  %v10603_v49 = vmul.f32 %v16377_v38, %v855_v28  ;;  %v10606_v44 = vmul.f32 %v16377_v38, %v856_v39  ;;  %v16385_v38 = vld [vmem:[#allocation13_spill] sm:$0xff] }
 0x185   : > { %v10609_v58 = vmul.f32 %v16379_v10, %v855_v28  ;;  %v5299_v3 = vmul.f32 %v5155_v40, %v2059_v37  ;;  %v10612_v33 = vmul.f32 %v16379_v10, %v856_v39  ;;  %v10615_v22 = vmul.f32 %v16381_v9, %v855_v28  ;;  %v16387_v10 = vld [vmem:[#allocation14_spill] sm:$0xff] }
 0x186   : > { %16378 = vst [vmem:[#allocation195_spill] sm:$0xff] %v10606_v44  ;;  %v10618_v35 = vmul.f32 %v16382_v61, %v855_v28  ;;  %v10621_v0 = vmul.f32 %v16381_v9, %v856_v39  ;;  %v10624_v17 = vmul.f32 %v16382_v61, %v856_v39  ;;  %v10627_v20 = vmul.f32 %v16385_v38, %v855_v28 }
 0x187   : > { %16380 = vst [vmem:[#allocation196_spill] sm:$0xff] %v10612_v33  ;;  %v10630_v37 = vmul.f32 %v16385_v38, %v856_v39  ;;  %v5430_v40 = vpack.c.bf16 %v5299_v3, %v5298_v23  ;;  %v10633_v16 = vmul.f32 %v16387_v10, %v855_v28  ;;  %v10636_v4 = vmul.f32 %v16389_v12, %v855_v28 }
 0x188   : > { %16383 = vst [vmem:[#allocation197_spill] sm:$0xff] %v10621_v0  ;;  %16384 = vst [vmem:[#allocation198_spill] sm:$0xff] %v10624_v17  ;;  %v1212_v9 = vsel %vm1041_vm3, %v10589_v45, -inf  ;;  %v10641_v30 = vmul.f32 %v16387_v10, %v856_v39  ;;  %v10644_v61 = vmul.f32 %v16389_v12, %v856_v39  ;;  %v1213_v38 = vsel %vm1041_vm3, %v10597_v18, -inf }
 0x189   : > { %16386 = vst [vmem:[#allocation199_spill] sm:$0xff] %v10630_v37  ;;  %16388 = vst [vmem:[#allocation200_spill] sm:$0xff] %v10633_v16  ;;  %v1215_v23 = vsel %vm1041_vm3, %v10603_v49, -inf  ;;  %7114 = vmatprep.mubr.msk.bf16.mxu1 %vm1041_vm3, %v5430_v40  ;;  %v1214_v3 = vmax.f32 %v1212_v9, %v1213_v38  ;;  %v1217_v28 = vsel %vm1041_vm3, %v10609_v58, -inf  ;;  %v1219_v27 = vsel %vm1041_vm3, %v10615_v22, -inf }
 0x18a   : > { %16390 = vst [vmem:[#allocation201_spill] sm:$0xff] %v10636_v4  ;;  %v1221_v10 = vsel %vm1041_vm3, %v10618_v35, -inf  ;;  %v1223_v39 = vsel %vm1041_vm3, %v10627_v20, -inf  ;;  %v1229_v12 = vsel %vm1041_vm3, %v10594_v5, -inf  ;;  %v1230_v11 = vsel %vm1041_vm3, %v10600_v51, -inf }
 0x18b   : > { %v1232_v38 = vsel %vm1041_vm3, %v10606_v44, -inf  ;;  %v1216_v9 = vmax.f32 %v1214_v3, %v1215_v23  ;;  %v1225_v40 = vsel %vm1041_vm3, %v10633_v16, -inf  ;;  %v1227_v15 = vsel %vm1041_vm3, %v10636_v4, -inf }
 0x18c   : > { %v1231_v41 = vmax.f32 %v1229_v12, %v1230_v11  ;;  %v1234_v60 = vsel %vm1041_vm3, %v10612_v33, -inf  ;;  %v1236_v53 = vsel %vm1041_vm3, %v10621_v0, -inf  ;;  %v1238_v1 = vsel %vm1041_vm3, %v10624_v17, -inf }
 0x18d   : > { %v1240_v13 = vsel %vm1041_vm3, %v10630_v37, -inf  ;;  %v1218_v23 = vmax.f32 %v1216_v9, %v1217_v28  ;;  %v4112_v24 = vadd.f32 %v3140_v62, %v10554_v47  ;;  %v4113_v19 = vadd.f32 %v3141_v36, %v10558_v6  ;;  %v16391_v28 = vld [vmem:[#allocation88_spill] sm:$0xff]  ;;  %v16394_v36 = vld [vmem:[#allocation105_spill] sm:$0xff]  ;;  %v16398_v62 = vld [vmem:[#allocation19_spill] sm:$0xff] }
 0x18e   : > { %v1233_v3 = vmax.f32 %v1231_v41, %v1232_v38  ;;  %v4256_v25 = vadd.f32 %v3500_v31, %v3320_v8  ;;  %v4257_v11 = vadd.f32 %v3501_v55, %v3321_v46  ;;  %v4400_v12 = vadd.f32 %v3968_v52, %v3824_v54  ;;  %v16392_v41 = vld [vmem:[#allocation104_spill] sm:$0xff] }
 0x18f   : > { %v4401_v4 = vadd.f32 %v3969_v34, %v3825_v50  ;;  %v1220_v16 = vmax.f32 %v1218_v23, %v1219_v27  ;;  %v1242_v0 = vsel %vm1041_vm3, %v10641_v30, -inf  ;;  %v1244_v17 = vsel %vm1041_vm3, %v10644_v61, -inf  ;;  %v16393_v47 = vld [vmem:[#allocation84_spill] sm:$0xff]  ;;  %v16395_v27 = vld [vmem:[#allocation155_spill] sm:$0xff] }
 0x190   : > { %v1235_v33 = vmax.f32 %v1233_v3, %v1234_v60  ;;  %v4544_v44 = vadd.f32 %v4256_v25, %v4112_v24  ;;  %v4545_v37 = vadd.f32 %v4257_v11, %v4113_v19  ;;  %v10685_v38 = vmul.f32 %v16392_v41, %v16391_v28  ;;  %v16396_v52 = vld [vmem:[#allocation156_spill] sm:$0xff]  ;;  %v16397_v19 = vld [vmem:[#allocation154_spill] sm:$0xff]  ;;  %v16402_v11 = vld [vmem:[#allocation29_spill] sm:$0xff] }
 0x191   : > { %v10689_v8 = vmul.f32 %v16394_v36, %v16393_v47  ;;  %v1222_v55 = vmax.f32 %v1220_v16, %v1221_v10  ;;  %v2296_v54 = vmul.f32 %v16395_v27, %v10237_v56  ;;  %v10695_v60 = vmul.f32 %v16396_v52, %v10237_v56  ;;  %v16400_v10 = vld [vmem:[#allocation27_spill] sm:$0xff]  ;;  %v10747_v27 = vld [vmem:[%s8087_s12 + $0x50] sm:$0xff]  ;;  %v16408_v36 = vld [vmem:[#allocation78_spill] sm:$0xff] }
 0x192   : > { %v1237_v34 = vmax.f32 %v1235_v33, %v1236_v53  ;;  %v4688_v6 = vadd.f32 %v4544_v44, %v4400_v12  ;;  %v4689_v25 = vadd.f32 %v4545_v37, %v4401_v4  ;;  %v2476_v24 = vmul.f32 %v16397_v19, %v16328_v32  ;;  %v16399_v53 = vld [vmem:[#allocation62_spill] sm:$0xff]  ;;  %v16401_v37 = vld [vmem:[#allocation63_spill] sm:$0xff]  ;;  %v16403_v12 = vld [vmem:[#allocation60_spill] sm:$0xff] }
 0x193   : > { %v10701_v46 = vmul.f32 %v16397_v19, %v16398_v62  ;;  %v1224_v31 = vmax.f32 %v1222_v55, %v1223_v39  ;;  %v10705_v16 = vmul.f32 %v16399_v53, %v16330_v2  ;;  %v10709_v33 = vmul.f32 %v16399_v53, %v16400_v10  ;;  %v16404_v28 = vld [vmem:[#allocation31_spill] sm:$0xff]  ;;  %v16410_v10 = vld [vmem:[#allocation196_spill] sm:$0xff]  ;;  %v16411_v62 = vld [vmem:[#allocation197_spill] sm:$0xff] }
 0x194   : > { %v1239_v50 = vmax.f32 %v1237_v34, %v1238_v1  ;;  %v4832_v4 = vadd.f32 %v4688_v6, %v10578_v21  ;;  %v4833_v44 = vadd.f32 %v4689_v25, %v10582_v42  ;;  %v10715_v9 = vmul.f32 %v10343_v43, %v16401_v37  ;;  %v10742_v55 = vld [vmem:[%s8087_s12 + $0x48] sm:$0xff] }
 0x195   : > { %v10719_v1 = vmul.f32 %v10348_v14, %v16401_v37  ;;  %v1226_v39 = vmax.f32 %v1224_v31, %v1225_v40  ;;  %v10723_v3 = vmul.f32 %v10303_v7, %v16332_v48  ;;  %v10727_v21 = vmul.f32 %v10303_v7, %v16402_v11  ;;  %v16405_v31 = vld [vmem:[#allocation75_spill] sm:$0xff] }
 0x196   : > { %v1241_v23 = vmax.f32 %v1239_v50, %v1240_v13  ;;  %v10730_v42 = vadd.f32 %v16403_v12, %v4832_v4  ;;  %v10733_v43 = vadd.f32 %v16403_v12, %v4833_v44  ;;  %v3196_v14 = vmul.f32 %v10306_v63, %v16335_v59  ;;  %v16413_v2 = vld [vmem:[#allocation199_spill] sm:$0xff] }
 0x197   : > { %v3197_v13 = vmul.f32 %v10306_v63, %v16404_v28  ;;  %v10739_v40 = vmax.f32 %v1226_v39, %v1227_v15  ;;  %v3376_v34 = vmul.f32 %v10742_v55, %v10309_v57  ;;  %v3377_v52 = vmul.f32 %v10747_v27, %v10309_v57  ;;  %v16406_v15 = vld [vmem:[#allocation76_spill] sm:$0xff]  ;;  %v16407_v39 = vld [vmem:[#allocation77_spill] sm:$0xff] }
 0x198   : > { %v1243_v47 = vmax.f32 %v1241_v23, %v1242_v0  ;;  %v3556_v50 = vmul.f32 %v10312_v26, %v16405_v31  ;;  %v3557_v0 = vmul.f32 %v10312_v26, %v16406_v15  ;;  %v10761_v23 = vmul.f32 %v10360_v29, %v16407_v39 }
 0x199   : > { %v1324_v44 = vsub.f32 %v10589_v45, %v10739_v40  ;;  %v10765_v41 = vmul.f32 %v10360_v29, %v16408_v36  ;;  %v1340_v25 = vsub.f32 %v10597_v18, %v10739_v40  ;;  %v1356_v6 = vsub.f32 %v10603_v49, %v10739_v40  ;;  %v16409_v18 = vld [vmem:[#allocation195_spill] sm:$0xff] }
 0x19a   : > { %v1245_v4 = vmax.f32 %v1243_v47, %v1244_v17  ;;  %v1372_v17 = vsub.f32 %v10609_v58, %v10739_v40  ;;  %v1388_v45 = vsub.f32 %v10615_v22, %v10739_v40  ;;  %v1404_v36 = vsub.f32 %v10618_v35, %v10739_v40  ;;  %v16412_v58 = vld [vmem:[#allocation198_spill] sm:$0xff]  ;;  %v16415_v35 = vld [vmem:[#allocation201_spill] sm:$0xff] }
 0x19b   : > { %v1420_v28 = vsub.f32 %v10627_v20, %v10739_v40  ;;  %v1478_v29 = vmul.f32 1.442695, %v1324_v44  ;;  %v1452_v26 = vsub.f32 %v16415_v35, %v10739_v40  ;;  %v1510_v57 = vmul.f32 1.442695, %v1340_v25 }
 0x19c   : > { %v1325_v47 = vsub.f32 %v10594_v5, %v1245_v4  ;;  %v1341_v15 = vsub.f32 %v10600_v51, %v1245_v4  ;;  %v1357_v11 = vsub.f32 %v16409_v18, %v1245_v4  ;;  %v1373_v49 = vsub.f32 %v16410_v10, %v1245_v4  ;;  %v16414_v5 = vld [vmem:[#allocation200_spill] sm:$0xff] }
 0x19d   : > { %v1389_v59 = vsub.f32 %v16411_v62, %v1245_v4  ;;  %v1405_v48 = vsub.f32 %v16412_v58, %v1245_v4  ;;  %v1421_v22 = vsub.f32 %v16413_v2, %v1245_v4  ;;  %v1436_v32 = vsub.f32 %v16414_v5, %v10739_v40 }
 0x19e   : > { %v1437_v51 = vsub.f32 %v10641_v30, %v1245_v4  ;;  %v1480_v20 = vmul.f32 1.442695, %v1325_v47  ;;  %v1512_v18 = vmul.f32 1.442695, %v1341_v15  ;;  %v1453_v10 = vsub.f32 %v10644_v61, %v1245_v4 }
 0x19f   : > { %7647 = vpow2.f32 %v1478_v29  ;;  %v1542_v62 = vmul.f32 1.442695, %v1356_v6  ;;  %v3880_v63 = vadd.f32 %v2476_v24, %v2296_v54  ;;  %v1544_v58 = vmul.f32 1.442695, %v1357_v11  ;;  %v10807_v6 = vld [vmem:[%s8087_s12 + $0xa0] sm:$0x3] }
 0x1a0   : > { %7649 = vpow2.f32 %v1480_v20  ;;  %v1574_v2 = vmul.f32 1.442695, %v1372_v17  ;;  %v1576_v39 = vmul.f32 1.442695, %v1373_v49  ;;  %v1606_v5 = vmul.f32 1.442695, %v1388_v45 }
 0x1a1   : > { %7651 = vpow2.f32 %v1510_v57  ;;  %v1608_v7 = vmul.f32 1.442695, %v1389_v59  ;;  %v1638_v30 = vmul.f32 1.442695, %v1404_v36  ;;  %v1640_v44 = vmul.f32 1.442695, %v1405_v48 }
 0x1a2   : > { %7653 = vpow2.f32 %v1512_v18  ;;  %v1670_v40 = vmul.f32 1.442695, %v1420_v28  ;;  %v1672_v25 = vmul.f32 1.442695, %v1421_v22  ;;  %v1702_v61 = vmul.f32 1.442695, %v1436_v32 }
 0x1a3   : > { %7655 = vpow2.f32 %v1542_v62  ;;  %v1704_v29 = vmul.f32 1.442695, %v1437_v51  ;;  %v3881_v54 = vadd.f32 %v10701_v46, %v10695_v60  ;;  %v4024_v57 = vadd.f32 %v10715_v9, %v10705_v16  ;;  %v10801_v28 = vld [vmem:[%s8087_s12 + $0x90] sm:$0xff]  ;;  %v10804_v32 = vld [vmem:[%s8087_s12 + $0x98] sm:$0xff] }
 0x1a4   : > { %7657 = vpow2.f32 %v1544_v58  ;;  %v4025_v59 = vadd.f32 %v10719_v1, %v10709_v33  ;;  %v4168_v36 = vadd.f32 %v3196_v14, %v10723_v3  ;;  %v4169_v48 = vadd.f32 %v3197_v13, %v10727_v21 }
 0x1a5   : > { %7659 = vpow2.f32 %v1574_v2  ;;  %v4312_v24 = vadd.f32 %v3556_v50, %v3376_v34  ;;  %v4313_v11 = vadd.f32 %v3557_v0, %v3377_v52  ;;  %v1734_v60 = vmul.f32 1.442695, %v1452_v26 }
 0x1a6   : > { %7661 = vpow2.f32 %v1576_v39  ;;  %v4456_v46 = vadd.f32 %v4024_v57, %v3880_v63  ;;  %v4457_v16 = vadd.f32 %v4025_v59, %v3881_v54  ;;  %v1736_v9 = vmul.f32 1.442695, %v1453_v10  ;;  %v7777_v63 = vld [vmem:[%s14914_s2 + $0xc] sm:$0x3] }
 0x1a7   : > { %7663 = vpow2.f32 %v1606_v5  ;;  %v4600_v33 = vadd.f32 %v4312_v24, %v4168_v36  ;;  %v4601_v1 = vadd.f32 %v4313_v11, %v4169_v48  ;;  %v306_v3 = vrot.slane %v10801_v28, 1 }
 0x1a8   : > { %7665 = vpow2.f32 %v1608_v7  ;;  %v307_v21 = vrot.slane %v10804_v32, 1  ;;  %v309_v14 = vrot.slane %v10807_v6, 1  ;;  %v10818_v26 = vsel %vm5523_vm0, %v7777_v63, 0 }
 0x1a9   : > { %v10812_v13 = vpop.eup %7647  ;;  %7667 = vpow2.f32 %v1638_v30  ;;  %v4744_v34 = vadd.f32 %v4600_v33, %v4456_v46  ;;  %v4745_v52 = vadd.f32 %v4601_v1, %v4457_v16  ;;  %v363_v15 = vrot.slane %v10801_v28, 2 }
 0x1aa   : > { %16416 = vst [vmem:[#allocation88_spill] sm:$0xff] %v10812_v13  ;;  %v10820_v50 = vpop.eup %7649  ;;  %7669 = vpow2.f32 %v1640_v44  ;;  %v1916_v7 = vsel %vm1041_vm3, %v10812_v13, 0.0  ;;  %v364_v0 = vrot.slane %v10804_v32, 2  ;;  %v10837_v22 = vsel %vm275_vm1, %v306_v3, %v307_v21  ;;  %v10876_v3 = vld [vmem:[%s8087_s12 + $0xc8] sm:$0xff] }
 0x1ab   : > { %16417 = vst [vmem:[#allocation84_spill] sm:$0xff] %v10820_v50  ;;  %v10826_v4 = vpop.eup %7651  ;;  %7671 = vpow2.f32 %v1670_v40  ;;  %v1933_v39 = vsel %vm1041_vm3, %v10820_v50, 0.0  ;;  %v4888_v17 = vadd.f32 %v4744_v34, %v10761_v23  ;;  %v4889_v45 = vadd.f32 %v4745_v52, %v10765_v41  ;;  %16418 = vst [vmem:[#allocation155_spill] sm:$0xff] %v10837_v22  ;;  %v16421_v23 = vld [vmem:[#allocation164_spill] sm:$0xff] }
 0x1ac   : > { %v10832_v47 = vpop.eup %7653  ;;  %7673 = vpow2.f32 %v1672_v25  ;;  %v1917_v49 = vsel %vm1041_vm3, %v10826_v4, 0.0  ;;  %v10840_v51 = vsel %vm275_vm1, %v307_v21, %v309_v14  ;;  %v6918_v25 = vld [vmem:[%s8087_s12 + $0xb8] sm:$0x3]  ;;  %v366_v11 = vrot.slane %v10807_v6, 2  ;;  %16428 = vst [vmem:[#allocation198_spill] sm:$0xff] %v10876_v3 }
 0x1ad   : > { %16419 = vst [vmem:[#allocation156_spill] sm:$0xff] %v10840_v51  ;;  %v10842_v35 = vpop.eup %7655  ;;  %7675 = vpow2.f32 %v1702_v61  ;;  %v1918_v20 = vadd.f32 %v1917_v49, %v1916_v7  ;;  %v1934_v41 = vsel %vm1041_vm3, %v10832_v47, 0.0  ;;  %v5068_v18 = vadd.f32 %v16421_v23, %v4888_v17  ;;  %v6944_v52 = vld [vmem:[%s8087_s12 + $0xd0] sm:$0x3] }
 0x1ae   : > { %16420 = vst [vmem:[#allocation154_spill] sm:$0xff] %v10842_v35  ;;  %v10847_v10 = vpop.eup %7657  ;;  %7677 = vpow2.f32 %v1704_v29  ;;  %v1919_v62 = vsel %vm1041_vm3, %v10842_v35, 0.0  ;;  %v1935_v58 = vadd.f32 %v1934_v41, %v1933_v39  ;;  %v5069_v2 = vadd.f32 %v16421_v23, %v4889_v45  ;;  %v16462_v35 = vld [vmem:[#allocation7_spill] sm:$0xff] }
 0x1af   : > { %16422 = vst [vmem:[#allocation62_spill] sm:$0xff] %v10847_v10  ;;  %v10852_v5 = vpop.eup %7659  ;;  %7679 = vpow2.f32 %v1734_v60  ;;  %v1920_v30 = vadd.f32 %v1919_v62, %v1918_v20  ;;  %v1936_v44 = vsel %vm1041_vm3, %v10847_v10, 0.0  ;;  %v5212_v40 = vmax.f32 %v5068_v18, 0.0  ;;  %v10868_v60 = vld [vmem:[%s8087_s12 + $0xc0] sm:$0xff] }
 0x1b0   : > { %16423 = vst [vmem:[#allocation63_spill] sm:$0xff] %v10852_v5  ;;  %v10857_v61 = vpop.eup %7661  ;;  %7681 = vpow2.f32 %v1736_v9  ;;  %v1921_v29 = vsel %vm1041_vm3, %v10852_v5, 0.0  ;;  %v1937_v54 = vadd.f32 %v1936_v44, %v1935_v58  ;;  %v5213_v57 = vmax.f32 %v5069_v2, 0.0  ;;  %16426 = vst [vmem:[#allocation196_spill] sm:$0xff] %v10868_v60  ;;  %v16436_v2 = vld [vmem:[#allocation186_spill] sm:$0xff] }
 0x1b1   : > { %16424 = vst [vmem:[#allocation60_spill] sm:$0xff] %v10857_v61  ;;  %v10861_v59 = vpop.eup %7663  ;;  %v1922_v36 = vadd.f32 %v1921_v29, %v1920_v30  ;;  %v1938_v48 = vsel %vm1041_vm3, %v10857_v61, 0.0  ;;  %v5356_v24 = vmul.f32 %v5212_v40, %v10685_v38  ;;  %v473_v1 = vrot.slane %v6918_v25, 1  ;;  %v16439_v29 = vld [vmem:[#allocation189_spill] sm:$0xff] }
 0x1b2   : > { %16425 = vst [vmem:[#allocation195_spill] sm:$0xff] %v10861_v59  ;;  %v10870_v46 = vpop.eup %7665  ;;  %v1923_v16 = vsel %vm1041_vm3, %v10861_v59, 0.0  ;;  %v1939_v9 = vadd.f32 %v1938_v48, %v1937_v54  ;;  %v5357_v33 = vmul.f32 %v5213_v57, %v10689_v8  ;;  %v10883_v6 = vsel %vm332_vm2, %v363_v15, %v364_v0 }
 0x1b3   : > { %16427 = vst [vmem:[#allocation197_spill] sm:$0xff] %v10870_v46  ;;  %v10878_v21 = vpop.eup %7667  ;;  %v1924_v14 = vadd.f32 %v1923_v16, %v1922_v36  ;;  %v1940_v38 = vsel %vm1041_vm3, %v10870_v46, 0.0  ;;  %16430 = vst [vmem:[#allocation200_spill] sm:$0xff] %v10883_v6  ;;  %v529_v34 = vrot.slane %v6918_v25, 2  ;;  %v633_v17 = vrot.slane %v10868_v60, 1 }
 0x1b4   : > { %16429 = vst [vmem:[#allocation199_spill] sm:$0xff] %v10878_v21  ;;  %v10886_v63 = vpop.eup %7669  ;;  %v1925_v7 = vsel %vm1041_vm3, %v10878_v21, 0.0  ;;  %v1941_v8 = vadd.f32 %v1940_v38, %v1939_v9  ;;  %v5459_v39 = vpack.c.bf16 %v5357_v33, %v5356_v24  ;;  %v10896_v15 = vsel %vm332_vm2, %v364_v0, %v366_v11 }
 0x1b5   : > { %16431 = vst [vmem:[#allocation201_spill] sm:$0xff] %v10886_v63  ;;  %v10891_v45 = vpop.eup %7671  ;;  %v1926_v49 = vadd.f32 %v1925_v7, %v1924_v14  ;;  %v1942_v20 = vsel %vm1041_vm3, %v10886_v63, 0.0  ;;  %16433 = vst [vmem:[#allocation203_spill] sm:$0xff] %v10896_v15  ;;  %v10899_v41 = vrot.slane %v10876_v3, 1  ;;  %v10908_v30 = vsel %vm275_vm1, %v16436_v2, %v473_v1 }
 0x1b6   : > { %16432 = vst [vmem:[#allocation202_spill] sm:$0xff] %v10891_v45  ;;  %v10901_v18 = vpop.eup %7673  ;;  %v1927_v62 = vsel %vm1041_vm3, %v10891_v45, 0.0  ;;  %v1943_v58 = vadd.f32 %v1942_v20, %v1941_v8  ;;  %7197 = vmatmul.mubr.msk.bf16.vlgmr.msra.gmra.mrb[0].mxu0 %vm1041_vm3, %v5459_v39  ;;  %16437 = vst [vmem:[#allocation186_spill] sm:$0xff] %v10908_v30  ;;  %v636_v44 = vrot.slane %v6944_v52, 1  ;;  %v10917_v54 = vsel %vm332_vm2, %v16439_v29, %v529_v34  ;;  %v16447_v20 = vld [vmem:[#allocation179_spill] sm:$0xff] }
 0x1b7   : > { %16434 = vst [vmem:[#allocation204_spill] sm:$0xff] %v10899_v41  ;;  %16435 = vst [vmem:[#allocation205_spill] sm:$0xff] %v10901_v18  ;;  %v10910_v40 = vpop.eup %7675  ;;  %v1928_v0 = vadd.f32 %v1927_v62, %v1926_v49  ;;  %v1944_v25 = vsel %vm1041_vm3, %v10901_v18, 0.0  ;;  %7213 = vmatpush3.bf16.msra.mxu0 %v10818_v26  ;;  %v689_v57 = vrot.slane %v10868_v60, 2  ;;  %v10926_v11 = vsel %vm275_vm1, %v633_v17, %v10899_v41 }
 0x1b8   : > { %16438 = vst [vmem:[#allocation206_spill] sm:$0xff] %v10910_v40  ;;  %16440 = vst [vmem:[#allocation189_spill] sm:$0xff] %v10917_v54  ;;  %v10920_v36 = vpop.eup %7677  ;;  %v1929_v48 = vsel %vm1041_vm3, %v10910_v40, 0.0  ;;  %v1945_v24 = vadd.f32 %v1944_v25, %v1943_v58  ;;  %v10929_v16 = vrot.slane %v10876_v3, 2  ;;  %v10937_v1 = vsel %vm275_vm1, %v10899_v41, %v636_v44  ;;  %v16448_v58 = vld [vmem:[#allocation180_spill] sm:$0xff]  ;;  %v16450_v25 = vld [vmem:[#allocation191_spill] sm:$0xff] }
 0x1b9   : > { %16441 = vst [vmem:[#allocation207_spill] sm:$0xff] %v10920_v36  ;;  %16442 = vst [vmem:[#allocation208_spill] sm:$0xff] %v10926_v11  ;;  %v10931_v26 = vpop.eup %7679  ;;  %v1930_v9 = vadd.f32 %v1929_v48, %v1928_v0  ;;  %v1946_v33 = vsel %vm1041_vm3, %v10920_v36, 0.0  ;;  %v745_v14 = vadd.f32 %v10837_v22, %v10801_v28  ;;  %v692_v8 = vrot.slane %v6944_v52, 2  ;;  %v16449_v0 = vld [vmem:[#allocation188_spill] sm:$0xff]  ;;  %v16461_v40 = vld [vmem:[#allocation6_spill] sm:$0xff] }
 0x1ba   : > { %16443 = vst [vmem:[#allocation209_spill] sm:$0xff] %v10929_v16  ;;  %16444 = vst [vmem:[#allocation210_spill] sm:$0xff] %v10931_v26  ;;  %v10941_v38 = vpop.eup %7681  ;;  %v1931_v34 = vsel %vm1041_vm3, %v10931_v26, 0.0  ;;  %v1947_v7 = vadd.f32 %v1946_v33, %v1945_v24  ;;  %v746_v39 = vadd.f32 %v10840_v51, %v10804_v32  ;;  %v761_v62 = vadd.f32 %v16447_v20, %v10883_v6  ;;  %v16453_v26 = vld [vmem:[#allocation16_spill] sm:$0xff] }
 0x1bb   : > { %16445 = vst [vmem:[#allocation211_spill] sm:$0xff] %v10937_v1  ;;  %16446 = vst [vmem:[#allocation212_spill] sm:$0xff] %v10941_v38  ;;  %v1932_v17 = vadd.f32 %v1931_v34, %v1930_v9  ;;  %v1948_v49 = vsel %vm1041_vm3, %v10941_v38, 0.0  ;;  %v762_v2 = vadd.f32 %v16448_v58, %v10896_v15  ;;  %v777_v29 = vadd.f32 %v16450_v25, %v16449_v0 }
 0x1bc   : > { %v1949_v44 = vadd.f32 %v1948_v49, %v1947_v7  ;;  %v778_v52 = vadd.f32 %v10917_v54, %v10908_v30  ;;  %v793_v48 = vadd.f32 %v10868_v60, %v10926_v11  ;;  %v794_v24 = vadd.f32 %v10876_v3, %v10937_v1 }
 0x1bd   : > { %7683 = vrcp.f32 %v1932_v17  ;;  %v809_v9 = vadd.f32 %v761_v62, %v745_v14  ;;  %v810_v33 = vadd.f32 %v762_v2, %v746_v39  ;;  %v10963_v34 = vsel %vm332_vm2, %v689_v57, %v10929_v16  ;;  %v16454_v14 = vld [vmem:[#allocation36_spill] sm:$0xff] }
 0x1be   : > { %7685 = vrcp.f32 %v1949_v44  ;;  %16451 = vst [vmem:[#allocation179_spill] sm:$0xff] %v10963_v34  ;;  %v10967_v7 = vsel %vm332_vm2, %v10929_v16, %v692_v8  ;;  %v825_v49 = vadd.f32 %v793_v48, %v777_v29  ;;  %v826_v38 = vadd.f32 %v794_v24, %v778_v52  ;;  %v16455_v8 = vld [vmem:[#allocation39_spill] sm:$0xff]  ;;  %v16457_v48 = vld [vmem:[#allocation46_spill] sm:$0xff] }
 0x1bf   : > { %16452 = vst [vmem:[#allocation180_spill] sm:$0xff] %v10967_v7  ;;  %v10971_v46 = vmul.f32 %v16453_v26, %v10801_v28  ;;  %v10975_v17 = vmul.f32 %v16453_v26, %v10804_v32  ;;  %v10979_v39 = vmul.f32 %v16454_v14, %v10837_v22  ;;  %v10983_v62 = vmul.f32 %v16454_v14, %v10840_v51  ;;  %v16456_v32 = vld [vmem:[#allocation45_spill] sm:$0xff]  ;;  %v16474_v26 = vld [vmem:[#allocation15_spill] sm:$0xff] }
 0x1c0   : > { %v841_v57 = vadd.f32 %v825_v49, %v809_v9  ;;  %v10987_v2 = vmul.f32 %v16455_v8, %v10883_v6  ;;  %v10991_v28 = vmul.f32 %v16455_v8, %v10896_v15  ;;  %v842_v44 = vadd.f32 %v826_v38, %v810_v33  ;;  %v16458_v38 = vld [vmem:[#allocation47_spill] sm:$0xff]  ;;  %v16465_v6 = vld [vmem:[#allocation10_spill] sm:$0xff] }
 0x1c1   : > { %v10995_v29 = vmul.f32 %v16447_v20, %v16456_v32  ;;  %v10999_v52 = vmul.f32 %v16448_v58, %v16456_v32  ;;  %v11003_v24 = vmul.f32 %v16457_v48, %v16449_v0  ;;  %v11008_v49 = vmul.f32 %v16457_v48, %v10908_v30  ;;  %v16459_v58 = vld [vmem:[#allocation48_spill] sm:$0xff]  ;;  %v16464_v30 = vld [vmem:[#allocation9_spill] sm:$0xff]  ;;  %v16472_v48 = vld [vmem:[#allocation14_spill] sm:$0xff] }
 0x1c2   : > { %v857_v9 = vadd.f32 %v841_v57, %v10963_v34  ;;  %v3142_v33 = vmul.f32 %v16458_v38, %v16450_v25  ;;  %v3143_v20 = vmul.f32 %v16458_v38, %v10917_v54  ;;  %v858_v59 = vadd.f32 %v842_v44, %v10967_v7  ;;  %v16460_v57 = vld [vmem:[#allocation49_spill] sm:$0xff]  ;;  %v16463_v44 = vld [vmem:[#allocation50_spill] sm:$0xff]  ;;  %v16466_v25 = vld [vmem:[#allocation11_spill] sm:$0xff] }
 0x1c3   : > { %v3322_v61 = vmul.f32 %v10868_v60, %v16459_v58  ;;  %v3323_v5 = vmul.f32 %v10876_v3, %v16459_v58  ;;  %v3502_v36 = vmul.f32 %v16460_v57, %v10926_v11  ;;  %v3503_v45 = vmul.f32 %v16460_v57, %v10937_v1  ;;  %v16469_v58 = vld [vmem:[#allocation13_spill] sm:$0xff] }
 0x1c4   : > { %v11022_v10 = vmul.f32 %v16461_v40, %v857_v9  ;;  %v11025_v18 = vmul.f32 %v16462_v35, %v857_v9  ;;  %v11031_v50 = vmul.f32 %v16463_v44, %v10963_v34  ;;  %v11034_v13 = vmul.f32 %v16461_v40, %v858_v59 }
 0x1c5   : > { %v11037_v54 = vmul.f32 %v16462_v35, %v858_v59  ;;  %v11040_v15 = vmul.f32 %v16464_v30, %v857_v9  ;;  %v11043_v51 = vmul.f32 %v16465_v6, %v857_v9  ;;  %v11046_v22 = vmul.f32 %v16464_v30, %v858_v59  ;;  %v16468_v35 = vld [vmem:[#allocation12_spill] sm:$0xff] }
 0x1c6   : > { %v11049_v1 = vmul.f32 %v16465_v6, %v858_v59  ;;  %v11052_v63 = vmul.f32 %v16466_v25, %v857_v9  ;;  %v11055_v21 = vmul.f32 %v16466_v25, %v858_v59  ;;  %v11060_v40 = vmul.f32 %v16468_v35, %v857_v9 }
 0x1c7   : > { %v11057_v0 = vpop.eup %7683  ;;  %v11063_v57 = vmul.f32 %v16468_v35, %v858_v59  ;;  %v11066_v30 = vmul.f32 %v16469_v58, %v857_v9  ;;  %v11069_v6 = vmul.f32 %v16469_v58, %v858_v59  ;;  %v11076_v32 = vmul.f32 %v16472_v48, %v857_v9 }
 0x1c8   : > { %16467 = vst [vmem:[#allocation50_spill] sm:$0xff] %v11057_v0  ;;  %v11071_v38 = vpop.eup %7685  ;;  %v2060_v25 = vmul.f32 %v11057_v0, %v10826_v4  ;;  %v11079_v8 = vmul.f32 %v16472_v48, %v858_v59  ;;  %v1246_v35 = vsel %vm1041_vm3, %v11022_v10, -inf  ;;  %v11086_v58 = vmul.f32 %v16474_v26, %v857_v9 }
 0x1c9   : > { %16470 = vst [vmem:[#allocation213_spill] sm:$0xff] %v11069_v6  ;;  %16471 = vst [vmem:[#allocation214_spill] sm:$0xff] %v11071_v38  ;;  %v2061_v14 = vmul.f32 %v11071_v38, %v10832_v47  ;;  %v1247_v34 = vsel %vm1041_vm3, %v11025_v18, -inf  ;;  %v1249_v4 = vsel %vm1041_vm3, %v11040_v15, -inf  ;;  %v16476_v0 = vmax.f32 %v10730_v42, 0.0 }
 0x1ca   : > { %16473 = vst [vmem:[#allocation215_spill] sm:$0xff] %v11079_v8  ;;  %16475 = vst [vmem:[#allocation216_spill] sm:$0xff] %v11086_v58  ;;  %v11095_v48 = vmul.f32 %v16474_v26, %v858_v59  ;;  %v1248_v3 = vmax.f32 %v1246_v35, %v1247_v34  ;;  %v1251_v60 = vsel %vm1041_vm3, %v11043_v51, -inf  ;;  %v16477_v47 = vmax.f32 %v10733_v43, 0.0 }
 0x1cb   : > { %v5300_v11 = vmul.f32 %v16476_v0, %v2060_v25  ;;  %v1253_v38 = vsel %vm1041_vm3, %v11052_v63, -inf  ;;  %v1255_v16 = vsel %vm1041_vm3, %v11060_v40, -inf  ;;  %v1257_v42 = vsel %vm1041_vm3, %v11066_v30, -inf }
 0x1cc   : > { %v5301_v9 = vmul.f32 %v16477_v47, %v2061_v14  ;;  %v1250_v0 = vmax.f32 %v1248_v3, %v1249_v4  ;;  %v1263_v59 = vsel %vm1041_vm3, %v11034_v13, -inf  ;;  %v1264_v35 = vsel %vm1041_vm3, %v11037_v54, -inf }
 0x1cd   : > { %v1266_v43 = vsel %vm1041_vm3, %v11046_v22, -inf  ;;  %v1259_v34 = vsel %vm1041_vm3, %v11076_v32, -inf  ;;  %v1261_v14 = vsel %vm1041_vm3, %v11086_v58, -inf  ;;  %v1265_v47 = vmax.f32 %v1263_v59, %v1264_v35 }
 0x1ce   : > { %v5431_v25 = vpack.c.bf16 %v5301_v9, %v5300_v11  ;;  %v1252_v26 = vmax.f32 %v1250_v0, %v1251_v60  ;;  %v1268_v3 = vsel %vm1041_vm3, %v11049_v1, -inf  ;;  %v1270_v4 = vsel %vm1041_vm3, %v11055_v21, -inf }
 0x1cf   : > { %v1272_v41 = vsel %vm1041_vm3, %v11063_v57, -inf  ;;  %v1267_v11 = vmax.f32 %v1265_v47, %v1266_v43  ;;  %v1274_v9 = vsel %vm1041_vm3, %v11069_v6, -inf  ;;  %v1276_v23 = vsel %vm1041_vm3, %v11079_v8, -inf }
 0x1d0   : > { %7115 = vmatmul.mubr.msk.bf16.gmra.mrb[8].mxu1 %vm1041_vm3, %v5431_v25  ;;  %v3826_v60 = vadd.f32 %v10979_v39, %v10971_v46  ;;  %v1254_v0 = vmax.f32 %v1252_v26, %v1253_v38  ;;  %v3827_v59 = vadd.f32 %v10983_v62, %v10975_v17  ;;  %v3970_v35 = vadd.f32 %v10995_v29, %v10987_v2 }
 0x1d1   : > { %v3971_v25 = vadd.f32 %v10999_v52, %v10991_v28  ;;  %v1269_v43 = vmax.f32 %v1267_v11, %v1268_v3  ;;  %v4114_v47 = vadd.f32 %v3142_v33, %v11003_v24  ;;  %v4115_v6 = vadd.f32 %v3143_v20, %v11008_v49  ;;  %v16478_v52 = vld [vmem:[#allocation117_spill] sm:$0xff]  ;;  %v16479_v24 = vld [vmem:[#allocation136_spill] sm:$0xff] }
 0x1d2   : > { %v4258_v8 = vadd.f32 %v3502_v36, %v3322_v61  ;;  %v1256_v58 = vmax.f32 %v1254_v0, %v1255_v16  ;;  %v4259_v46 = vadd.f32 %v3503_v45, %v3323_v5  ;;  %v4402_v26 = vadd.f32 %v3970_v35, %v3826_v60  ;;  %v16480_v61 = vld [vmem:[#allocation119_spill] sm:$0xff]  ;;  %v16481_v36 = vld [vmem:[#allocation137_spill] sm:$0xff]  ;;  %v7778_v33 = vld [vmem:[%s8087_s12 + $0x30] sm:$0xff] }
 0x1d3   : > { %v4403_v39 = vadd.f32 %v3971_v25, %v3827_v59  ;;  %v1271_v38 = vmax.f32 %v1269_v43, %v1270_v4  ;;  %v1278_v17 = vsel %vm1041_vm3, %v11095_v48, -inf  ;;  %v3683_v62 = vmul.f32 %v16463_v44, %v10967_v7  ;;  %v7779_v3 = vld [vmem:[%s8087_s12 + $0x38] sm:$0xff] }
 0x1d4   : > { %v4546_v2 = vadd.f32 %v4258_v8, %v4114_v47  ;;  %v1258_v28 = vmax.f32 %v1256_v58, %v1257_v42  ;;  %v4547_v29 = vadd.f32 %v4259_v46, %v4115_v6  ;;  %v11144_v49 = vmul.f32 %v16479_v24, %v16478_v52  ;;  %v16482_v58 = vld [vmem:[#allocation83_spill] sm:$0xff]  ;;  %v16483_v11 = vld [vmem:[#allocation85_spill] sm:$0xff]  ;;  %v16489_v52 = vld [vmem:[#allocation158_spill] sm:$0xff] }
 0x1d5   : > { %v11148_v16 = vmul.f32 %v16481_v36, %v16480_v61  ;;  %v1273_v5 = vmax.f32 %v1271_v38, %v1272_v41  ;;  %v11152_v20 = vmul.f32 %v7778_v33, %v10237_v56  ;;  %v11156_v4 = vmul.f32 %v7779_v3, %v10237_v56  ;;  %v5492_v41 = vld [vmem:[%s14914_s2 + $0x4] sm:$0x3]  ;;  %v16484_v35 = vld [vmem:[#allocation93_spill] sm:$0xff] }
 0x1d6   : > { %v4690_v45 = vadd.f32 %v4546_v2, %v4402_v26  ;;  %v1260_v8 = vmax.f32 %v1258_v28, %v1259_v34  ;;  %v4691_v6 = vadd.f32 %v4547_v29, %v4403_v39  ;;  %v11160_v42 = vmul.f32 %v16397_v19, %v16482_v58  ;;  %v16485_v34 = vld [vmem:[#allocation94_spill] sm:$0xff]  ;;  %7398 = vmatprep.subr.msk.bf16.mxu1 %vm5523_vm0, %v5492_v41  ;;  %v16486_v38 = vld [vmem:[#allocation157_spill] sm:$0xff] }
 0x1d7   : > { %v11164_v60 = vmul.f32 %v16397_v19, %v16483_v11  ;;  %v1275_v0 = vmax.f32 %v1273_v5, %v1274_v9  ;;  %v11172_v25 = vmul.f32 %v16399_v53, %v16484_v35  ;;  %v11176_v43 = vmul.f32 %v16399_v53, %v16485_v34  ;;  %v16487_v28 = vld [vmem:[#allocation73_spill] sm:$0xff]  ;;  %v16490_v61 = vld [vmem:[#allocation74_spill] sm:$0xff]  ;;  %v16536_v34 = vld [vmem:[#allocation39_spill] sm:$0xff] }
 0x1d8   : > { %v4834_v59 = vadd.f32 %v4690_v45, %v11031_v50  ;;  %v1262_v47 = vmax.f32 %v1260_v8, %v1261_v14  ;;  %v4835_v46 = vadd.f32 %v4691_v6, %v3683_v62  ;;  %v11181_v26 = vmul.f32 %v10742_v55, %v16401_v37  ;;  %v16488_v29 = vld [vmem:[#allocation77_spill] sm:$0xff] }
 0x1d9   : > { %v11185_v9 = vmul.f32 %v10747_v27, %v16401_v37  ;;  %v1277_v50 = vmax.f32 %v1275_v0, %v1276_v23  ;;  %v11192_v2 = vmul.f32 %v16486_v38, %v16405_v31  ;;  %v11196_v14 = vmul.f32 %v16486_v38, %v16487_v28  ;;  %v16492_v7 = vld [vmem:[#allocation213_spill] sm:$0xff] }
 0x1da   : > { %v11188_v39 = vadd.f32 %v16403_v12, %v4834_v59  ;;  %v1326_v62 = vsub.f32 %v11022_v10, %v1262_v47  ;;  %v1342_v55 = vsub.f32 %v11025_v18, %v1262_v47  ;;  %v3198_v27 = vmul.f32 %v16489_v52, %v16488_v29 }
 0x1db   : > { %v3199_v23 = vmul.f32 %v16489_v52, %v16490_v61  ;;  %v1279_v5 = vmax.f32 %v1277_v50, %v1278_v17  ;;  %v1358_v45 = vsub.f32 %v11040_v15, %v1262_v47  ;;  %v1374_v33 = vsub.f32 %v11043_v51, %v1262_v47  ;;  %v16491_v50 = vld [vmem:[#allocation216_spill] sm:$0xff] }
 0x1dc   : > { %v1390_v3 = vsub.f32 %v11052_v63, %v1262_v47  ;;  %v1406_v8 = vsub.f32 %v11060_v40, %v1262_v47  ;;  %v1422_v6 = vsub.f32 %v11066_v30, %v1262_v47  ;;  %v1482_v10 = vmul.f32 1.442695, %v1326_v62 }
 0x1dd   : > { %v1514_v41 = vmul.f32 1.442695, %v1342_v55  ;;  %v1327_v18 = vsub.f32 %v11034_v13, %v1279_v5  ;;  %v1343_v0 = vsub.f32 %v11037_v54, %v1279_v5  ;;  %v1359_v59 = vsub.f32 %v11046_v22, %v1279_v5  ;;  %v16493_v13 = vld [vmem:[#allocation215_spill] sm:$0xff] }
 0x1de   : > { %v1375_v17 = vsub.f32 %v11049_v1, %v1279_v5  ;;  %v1391_v15 = vsub.f32 %v11055_v21, %v1279_v5  ;;  %v1407_v51 = vsub.f32 %v11063_v57, %v1279_v5  ;;  %v1438_v63 = vsub.f32 %v11076_v32, %v1262_v47 }
 0x1df   : > { %v1454_v40 = vsub.f32 %v16491_v50, %v1262_v47  ;;  %v1423_v30 = vsub.f32 %v16492_v7, %v1279_v5  ;;  %7687 = vpow2.f32 %v1482_v10  ;;  %v1484_v62 = vmul.f32 1.442695, %v1327_v18  ;;  %v16499_v50 = vld [vmem:[#allocation161_spill] sm:$0xff] }
 0x1e0   : > { %v1516_v55 = vmul.f32 1.442695, %v1343_v0  ;;  %v1439_v36 = vsub.f32 %v16493_v13, %v1279_v5  ;;  %7689 = vpow2.f32 %v1514_v41  ;;  %v1546_v54 = vmul.f32 1.442695, %v1358_v45 }
 0x1e1   : > { %v1548_v22 = vmul.f32 1.442695, %v1359_v59  ;;  %v1455_v1 = vsub.f32 %v11095_v48, %v1279_v5  ;;  %7691 = vpow2.f32 %v1484_v62  ;;  %v1578_v21 = vmul.f32 1.442695, %v1374_v33  ;;  %v11224_v5 = vld [vmem:[%s8087_s12 + $0x60] sm:$0xff]  ;;  %v16494_v33 = vld [vmem:[#allocation159_spill] sm:$0xff] }
 0x1e2   : > { %v1580_v24 = vmul.f32 1.442695, %v1375_v17  ;;  %7693 = vpow2.f32 %v1516_v55  ;;  %v1610_v32 = vmul.f32 1.442695, %v1390_v3  ;;  %v1612_v57 = vmul.f32 1.442695, %v1391_v15 }
 0x1e3   : > { %v1642_v47 = vmul.f32 1.442695, %v1406_v8  ;;  %7695 = vpow2.f32 %v1546_v54  ;;  %v1644_v7 = vmul.f32 1.442695, %v1407_v51  ;;  %v1674_v10 = vmul.f32 1.442695, %v1422_v6 }
 0x1e4   : > { %v1676_v18 = vmul.f32 1.442695, %v1423_v30  ;;  %7697 = vpow2.f32 %v1548_v22  ;;  %v1706_v0 = vmul.f32 1.442695, %v1438_v63  ;;  %v1708_v41 = vmul.f32 1.442695, %v1439_v36 }
 0x1e5   : > { %v1738_v45 = vmul.f32 1.442695, %v1454_v40  ;;  %7699 = vpow2.f32 %v1578_v21  ;;  %v1740_v59 = vmul.f32 1.442695, %v1455_v1  ;;  %v11221_v48 = vadd.f32 %v16403_v12, %v4835_v46  ;;  %v11229_v8 = vld [vmem:[%s8087_s12 + $0x68] sm:$0xff]  ;;  %v16496_v15 = vld [vmem:[#allocation160_spill] sm:$0xff] }
 0x1e6   : > { %v3378_v3 = vmul.f32 %v11224_v5, %v16494_v33  ;;  %7701 = vpow2.f32 %v1580_v24  ;;  %v3379_v6 = vmul.f32 %v11229_v8, %v16494_v33  ;;  %v16495_v17 = vld [vmem:[#allocation99_spill] sm:$0xff]  ;;  %v16497_v51 = vld [vmem:[#allocation101_spill] sm:$0xff]  ;;  %v16498_v46 = vld [vmem:[#allocation102_spill] sm:$0xff]  ;;  %v3882_v24 = vadd.f32 %v11160_v42, %v11152_v20 }
 0x1e7   : > { %v3558_v36 = vmul.f32 %v16496_v15, %v16495_v17  ;;  %v3559_v63 = vmul.f32 %v16496_v15, %v16497_v51  ;;  %7703 = vpow2.f32 %v1610_v32  ;;  %v3738_v40 = vmul.f32 %v16499_v50, %v16498_v46  ;;  %v16500_v30 = vld [vmem:[#allocation103_spill] sm:$0xff]  ;;  %v16535_v51 = vld [vmem:[#allocation36_spill] sm:$0xff] }
 0x1e8   : > { %v3739_v62 = vmul.f32 %v16499_v50, %v16500_v30  ;;  %7705 = vpow2.f32 %v1612_v57  ;;  %v3883_v55 = vadd.f32 %v11164_v60, %v11156_v4  ;;  %v4026_v13 = vadd.f32 %v11181_v26, %v11172_v25  ;;  %v11258_v60 = vld [vmem:[%s8087_s12 + $0xa8] sm:$0xff] }
 0x1e9   : > { %v4027_v54 = vadd.f32 %v11185_v9, %v11176_v43  ;;  %v11249_v22 = vpop.eup %7687  ;;  %7707 = vpow2.f32 %v1642_v47  ;;  %v4170_v1 = vadd.f32 %v3198_v27, %v11192_v2  ;;  %v4171_v21 = vadd.f32 %v3199_v23, %v11196_v14 }
 0x1ea   : > { %16501 = vst [vmem:[#allocation117_spill] sm:$0xff] %v11249_v22  ;;  %v4314_v32 = vadd.f32 %v3558_v36, %v3378_v3  ;;  %v11253_v30 = vpop.eup %7689  ;;  %7709 = vpow2.f32 %v1644_v7  ;;  %v1950_v20 = vsel %vm1041_vm3, %v11249_v22, 0.0  ;;  %v4315_v4 = vadd.f32 %v3559_v63, %v3379_v6  ;;  %v11278_v63 = vld [vmem:[%s8087_s12 + $0xb0] sm:$0xff] }
 0x1eb   : > { %v4458_v42 = vadd.f32 %v4026_v13, %v3882_v24  ;;  %v11260_v25 = vpop.eup %7691  ;;  %7711 = vpow2.f32 %v1674_v10  ;;  %v1951_v43 = vsel %vm1041_vm3, %v11253_v30, 0.0  ;;  %v4459_v26 = vadd.f32 %v4027_v54, %v3883_v55  ;;  %v250_v54 = vld [vmem:[%s8087_s12 + $0xb8] sm:$0x3] }
 0x1ec   : > { %16502 = vst [vmem:[#allocation119_spill] sm:$0xff] %v11260_v25  ;;  %v4602_v9 = vadd.f32 %v4314_v32, %v4170_v1  ;;  %v11264_v2 = vpop.eup %7693  ;;  %7713 = vpow2.f32 %v1676_v18  ;;  %v1952_v14 = vadd.f32 %v1951_v43, %v1950_v20  ;;  %v1967_v27 = vsel %vm1041_vm3, %v11260_v25, 0.0  ;;  %v16534_v25 = vld [vmem:[#allocation16_spill] sm:$0xff] }
 0x1ed   : > { %v4603_v23 = vadd.f32 %v4315_v4, %v4171_v21  ;;  %v11268_v57 = vpop.eup %7695  ;;  %7715 = vpow2.f32 %v1706_v0  ;;  %v1968_v47 = vsel %vm1041_vm3, %v11264_v2, 0.0  ;;  %v311_v10 = vrot.slane %v11258_v60, 1 }
 0x1ee   : > { %16503 = vst [vmem:[#allocation157_spill] sm:$0xff] %v11268_v57  ;;  %v4746_v7 = vadd.f32 %v4602_v9, %v4458_v42  ;;  %v11273_v3 = vpop.eup %7697  ;;  %7717 = vpow2.f32 %v1708_v41  ;;  %v1953_v18 = vsel %vm1041_vm3, %v11268_v57, 0.0  ;;  %v1969_v6 = vadd.f32 %v1968_v47, %v1967_v27  ;;  %v16508_v42 = vld [vmem:[#allocation164_spill] sm:$0xff] }
 0x1ef   : > { %16504 = vst [vmem:[#allocation216_spill] sm:$0xff] %v11273_v3  ;;  %v4747_v36 = vadd.f32 %v4603_v23, %v4459_v26  ;;  %v11280_v24 = vpop.eup %7699  ;;  %7719 = vpow2.f32 %v1738_v45  ;;  %v1954_v0 = vadd.f32 %v1953_v18, %v1952_v14  ;;  %v1970_v55 = vsel %vm1041_vm3, %v11273_v3, 0.0  ;;  %v16521_v3 = vld [vmem:[#allocation204_spill] sm:$0xff] }
 0x1f0   : > { %16505 = vst [vmem:[#allocation213_spill] sm:$0xff] %v11280_v24  ;;  %v4890_v13 = vadd.f32 %v4746_v7, %v3738_v40  ;;  %v11285_v1 = vpop.eup %7701  ;;  %7721 = vpow2.f32 %v1740_v59  ;;  %v1955_v41 = vsel %vm1041_vm3, %v11280_v24, 0.0  ;;  %v1971_v21 = vadd.f32 %v1970_v55, %v1969_v6 }
 0x1f1   : > { %16506 = vst [vmem:[#allocation215_spill] sm:$0xff] %v11285_v1  ;;  %v4891_v32 = vadd.f32 %v4747_v36, %v3739_v62  ;;  %v11289_v20 = vpop.eup %7703  ;;  %v1956_v4 = vadd.f32 %v1955_v41, %v1954_v0  ;;  %v1972_v45 = vsel %vm1041_vm3, %v11285_v1, 0.0  ;;  %v312_v26 = vrot.slane %v11278_v63, 1  ;;  %v6921_v41 = vld [vmem:[%s8087_s12 + $0xd0] sm:$0x3] }
 0x1f2   : > { %16507 = vst [vmem:[#allocation161_spill] sm:$0xff] %v11289_v20  ;;  %v5070_v43 = vadd.f32 %v16508_v42, %v4890_v13  ;;  %v11295_v40 = vpop.eup %7705  ;;  %v1957_v59 = vsel %vm1041_vm3, %v11289_v20, 0.0  ;;  %v1973_v9 = vadd.f32 %v1972_v45, %v1971_v21  ;;  %v314_v62 = vrot.slane %v250_v54, 1 }
 0x1f3   : > { %16509 = vst [vmem:[#allocation217_spill] sm:$0xff] %v11295_v40  ;;  %v5071_v14 = vadd.f32 %v16508_v42, %v4891_v32  ;;  %v11300_v27 = vpop.eup %7707  ;;  %v1958_v23 = vadd.f32 %v1957_v59, %v1956_v4  ;;  %v1974_v47 = vsel %vm1041_vm3, %v11295_v40, 0.0  ;;  %v11305_v18 = vsel %vm275_vm1, %v311_v10, %v312_v26 }
 0x1f4   : > { %16510 = vst [vmem:[#allocation218_spill] sm:$0xff] %v11300_v27  ;;  %v5214_v7 = vmax.f32 %v5070_v43, 0.0  ;;  %16511 = vst [vmem:[#allocation219_spill] sm:$0xff] %v11305_v18  ;;  %v11307_v6 = vpop.eup %7709  ;;  %v1959_v36 = vsel %vm1041_vm3, %v11300_v27, 0.0  ;;  %v1975_v0 = vadd.f32 %v1974_v47, %v1973_v9  ;;  %v11312_v13 = vsel %vm275_vm1, %v312_v26, %v314_v62 }
 0x1f5   : > { %16512 = vst [vmem:[#allocation220_spill] sm:$0xff] %v11307_v6  ;;  %v5215_v55 = vmax.f32 %v5071_v14, 0.0  ;;  %16513 = vst [vmem:[#allocation221_spill] sm:$0xff] %v11312_v13  ;;  %v11315_v21 = vpop.eup %7711  ;;  %v1960_v32 = vadd.f32 %v1959_v36, %v1958_v23  ;;  %v1976_v4 = vsel %vm1041_vm3, %v11307_v6, 0.0  ;;  %v368_v45 = vrot.slane %v11258_v60, 2  ;;  %v6945_v36 = vld [vmem:[%s8087_s12 + $0xd8] sm:$0xff] }
 0x1f6   : > { %16514 = vst [vmem:[#allocation222_spill] sm:$0xff] %v11315_v21  ;;  %v5358_v10 = vmul.f32 %v5214_v7, %v11144_v49  ;;  %v11321_v43 = vpop.eup %7713  ;;  %v1961_v59 = vsel %vm1041_vm3, %v11315_v21, 0.0  ;;  %v1977_v26 = vadd.f32 %v1976_v4, %v1975_v0  ;;  %v369_v14 = vrot.slane %v11278_v63, 2  ;;  %v6947_v4 = vld [vmem:[%s8087_s12 + $0xe8] sm:$0x3] }
 0x1f7   : > { %16515 = vst [vmem:[#allocation223_spill] sm:$0xff] %v11321_v43  ;;  %v5359_v9 = vmul.f32 %v5215_v55, %v11148_v16  ;;  %v11327_v62 = vpop.eup %7715  ;;  %v1962_v23 = vadd.f32 %v1961_v59, %v1960_v32  ;;  %v1978_v49 = vsel %vm1041_vm3, %v11321_v43, 0.0  ;;  %v371_v47 = vrot.slane %v250_v54, 2  ;;  %v6946_v55 = vld [vmem:[%s8087_s12 + $0xe0] sm:$0xff] }
 0x1f8   : > { %16516 = vst [vmem:[#allocation224_spill] sm:$0xff] %v11327_v62  ;;  %v478_v7 = vrot.slane %v6921_v41, 1  ;;  %v11332_v40 = vpop.eup %7717  ;;  %v1963_v20 = vsel %vm1041_vm3, %v11327_v62, 0.0  ;;  %v1979_v1 = vadd.f32 %v1978_v49, %v1977_v26  ;;  %v11337_v16 = vsel %vm332_vm2, %v368_v45, %v369_v14  ;;  %v16524_v62 = vld [vmem:[#allocation209_spill] sm:$0xff] }
 0x1f9   : > { %16517 = vst [vmem:[#allocation225_spill] sm:$0xff] %v11332_v40  ;;  %v5460_v0 = vpack.c.bf16 %v5359_v9, %v5358_v10  ;;  %16518 = vst [vmem:[#allocation226_spill] sm:$0xff] %v11337_v16  ;;  %v11341_v24 = vpop.eup %7719  ;;  %v1964_v32 = vadd.f32 %v1963_v20, %v1962_v23  ;;  %v1980_v54 = vsel %vm1041_vm3, %v11332_v40, 0.0  ;;  %v11346_v59 = vsel %vm332_vm2, %v369_v14, %v371_v47 }
 0x1fa   : > { %16519 = vst [vmem:[#allocation227_spill] sm:$0xff] %v11341_v24  ;;  %16520 = vst [vmem:[#allocation228_spill] sm:$0xff] %v11346_v59  ;;  %v11350_v57 = vsel %vm275_vm1, %v16521_v3, %v478_v7  ;;  %v11352_v26 = vpop.eup %7721  ;;  %v1965_v10 = vsel %vm1041_vm3, %v11341_v24, 0.0  ;;  %v1981_v45 = vadd.f32 %v1980_v54, %v1979_v1  ;;  %v534_v9 = vrot.slane %v6921_v41, 2 }
 0x1fb   : > { %16522 = vst [vmem:[#allocation204_spill] sm:$0xff] %v11350_v57  ;;  %16523 = vst [vmem:[#allocation229_spill] sm:$0xff] %v11352_v26  ;;  %7200 = vmatprep.mubr.msk.bf16.mxu0 %vm1041_vm3, %v5460_v0  ;;  %v638_v20 = vrot.slane %v6945_v36, 1  ;;  %v1966_v23 = vadd.f32 %v1965_v10, %v1964_v32  ;;  %v1982_v49 = vsel %vm1041_vm3, %v11352_v26, 0.0  ;;  %v639_v14 = vrot.slane %v6946_v55, 1 }
 0x1fc   : > { %v641_v47 = vrot.slane %v6947_v4, 1  ;;  %v1983_v40 = vadd.f32 %v1982_v49, %v1981_v45  ;;  %v11361_v3 = vsel %vm332_vm2, %v16524_v62, %v534_v9  ;;  %v694_v7 = vrot.slane %v6945_v36, 2  ;;  %v16528_v45 = vld [vmem:[#allocation196_spill] sm:$0xff] }
 0x1fd   : > { %16525 = vst [vmem:[#allocation209_spill] sm:$0xff] %v11361_v3  ;;  %v695_v43 = vrot.slane %v6946_v55, 2  ;;  %7723 = vrcp.f32 %v1966_v23  ;;  %v11364_v1 = vsel %vm275_vm1, %v638_v20, %v639_v14  ;;  %v697_v0 = vrot.slane %v6947_v4, 2  ;;  %v16529_v20 = vld [vmem:[#allocation198_spill] sm:$0xff]  ;;  %v16530_v49 = vld [vmem:[#allocation208_spill] sm:$0xff] }
 0x1fe   : > { %16526 = vst [vmem:[#allocation230_spill] sm:$0xff] %v11364_v1  ;;  %v11367_v41 = vsel %vm275_vm1, %v639_v14, %v641_v47  ;;  %7725 = vrcp.f32 %v1983_v40  ;;  %v5158_v32 = vmax.f32 %v11188_v39, 0.0  ;;  %v747_v54 = vadd.f32 %v11305_v18, %v11258_v60  ;;  %v16531_v14 = vld [vmem:[#allocation179_spill] sm:$0xff] }
 0x1ff   : > { %16527 = vst [vmem:[#allocation231_spill] sm:$0xff] %v11367_v41  ;;  %v748_v62 = vadd.f32 %v11312_v13, %v11278_v63  ;;  %v5159_v10 = vmax.f32 %v11221_v48, 0.0  ;;  %v763_v9 = vadd.f32 %v16528_v45, %v11337_v16  ;;  %v764_v23 = vadd.f32 %v16529_v20, %v11346_v59 }
 0x200   : > { %v779_v4 = vadd.f32 %v16531_v14, %v16530_v49  ;;  %v11382_v40 = vsel %vm332_vm2, %v694_v7, %v695_v43  ;;  %v780_v39 = vadd.f32 %v11361_v3, %v11350_v57  ;;  %v795_v47 = vadd.f32 %v6945_v36, %v11364_v1 }
 0x201   : > { %16532 = vst [vmem:[#allocation196_spill] sm:$0xff] %v11382_v40  ;;  %v796_v26 = vadd.f32 %v6946_v55, %v11367_v41  ;;  %v11389_v48 = vsel %vm332_vm2, %v695_v43, %v697_v0  ;;  %v811_v24 = vadd.f32 %v763_v9, %v747_v54  ;;  %v812_v21 = vadd.f32 %v764_v23, %v748_v62  ;;  %v16537_v54 = vld [vmem:[#allocation45_spill] sm:$0xff] }
 0x202   : > { %16533 = vst [vmem:[#allocation198_spill] sm:$0xff] %v11389_v48  ;;  %v2244_v22 = vmul.f32 %v16534_v25, %v11258_v60  ;;  %v827_v6 = vadd.f32 %v795_v47, %v779_v4  ;;  %v2245_v7 = vmul.f32 %v16534_v25, %v11278_v63  ;;  %v2424_v61 = vmul.f32 %v16535_v51, %v11305_v18  ;;  %v16538_v63 = vld [vmem:[#allocation46_spill] sm:$0xff]  ;;  %v16541_v4 = vld [vmem:[#allocation49_spill] sm:$0xff]  ;;  %v16559_v18 = vld [vmem:[#allocation15_spill] sm:$0xff] }
 0x203   : > { %v828_v27 = vadd.f32 %v796_v26, %v780_v39  ;;  %v2425_v28 = vmul.f32 %v16535_v51, %v11312_v13  ;;  %v2604_v43 = vmul.f32 %v16536_v34, %v11337_v16  ;;  %v11403_v0 = vmul.f32 %v16536_v34, %v11346_v59  ;;  %v16539_v34 = vld [vmem:[#allocation47_spill] sm:$0xff]  ;;  %v16551_v59 = vld [vmem:[#allocation12_spill] sm:$0xff] }
 0x204   : > { %v2784_v60 = vmul.f32 %v16528_v45, %v16537_v54  ;;  %v843_v26 = vadd.f32 %v827_v6, %v811_v24  ;;  %v11409_v25 = vmul.f32 %v16529_v20, %v16537_v54  ;;  %v11413_v9 = vmul.f32 %v16538_v63, %v16530_v49  ;;  %v16540_v24 = vld [vmem:[#allocation48_spill] sm:$0xff] }
 0x205   : > { %v844_v62 = vadd.f32 %v828_v27, %v812_v21  ;;  %v11417_v51 = vmul.f32 %v16538_v63, %v11350_v57  ;;  %v3144_v23 = vmul.f32 %v16539_v34, %v16531_v14  ;;  %v3145_v45 = vmul.f32 %v16539_v34, %v11361_v3  ;;  %v16544_v34 = vld [vmem:[#allocation6_spill] sm:$0xff] }
 0x206   : > { %v3324_v27 = vmul.f32 %v6945_v36, %v16540_v24  ;;  %v859_v6 = vadd.f32 %v843_v26, %v11382_v40  ;;  %v3325_v20 = vmul.f32 %v6946_v55, %v16540_v24  ;;  %v3504_v39 = vmul.f32 %v16541_v4, %v11364_v1 }
 0x207   : > { %v860_v21 = vadd.f32 %v844_v62, %v11389_v48  ;;  %v11429_v47 = vpop.eup %7723  ;;  %v3505_v54 = vmul.f32 %v16541_v4, %v11367_v41  ;;  %v11435_v63 = vmul.f32 %v16463_v44, %v11382_v40  ;;  %v11439_v36 = vmul.f32 %v16463_v44, %v11389_v48  ;;  %v16545_v41 = vld [vmem:[#allocation7_spill] sm:$0xff]  ;;  %v16546_v48 = vld [vmem:[#allocation9_spill] sm:$0xff] }
 0x208   : > { %16542 = vst [vmem:[#allocation16_spill] sm:$0xff] %v11429_v47  ;;  %v3828_v26 = vadd.f32 %v2424_v61, %v2244_v22  ;;  %v11441_v62 = vpop.eup %7725  ;;  %v2062_v55 = vmul.f32 %v11429_v47, %v11253_v30  ;;  %v11446_v24 = vmul.f32 %v16544_v34, %v859_v6  ;;  %v3829_v1 = vadd.f32 %v2425_v28, %v2245_v7  ;;  %v16548_v28 = vld [vmem:[#allocation10_spill] sm:$0xff] }
 0x209   : > { %16543 = vst [vmem:[#allocation36_spill] sm:$0xff] %v11441_v62  ;;  %v3972_v3 = vadd.f32 %v2784_v60, %v2604_v43  ;;  %v2063_v4 = vmul.f32 %v11441_v62, %v11264_v2  ;;  %v11451_v40 = vmul.f32 %v16544_v34, %v860_v21  ;;  %v11454_v44 = vmul.f32 %v16545_v41, %v859_v6  ;;  %v16550_v60 = vld [vmem:[#allocation11_spill] sm:$0xff] }
 0x20a   : > { %v11457_v61 = vmul.f32 %v16545_v41, %v860_v21  ;;  %v5302_v22 = vmul.f32 %v5158_v32, %v2062_v55  ;;  %v11460_v30 = vmul.f32 %v16546_v48, %v859_v6  ;;  %v11463_v57 = vmul.f32 %v16546_v48, %v860_v21  ;;  %v16554_v48 = vld [vmem:[#allocation13_spill] sm:$0xff] }
 0x20b   : > { %v11466_v7 = vmul.f32 %v16548_v28, %v859_v6  ;;  %v5303_v2 = vmul.f32 %v5159_v10, %v2063_v4  ;;  %v11469_v43 = vmul.f32 %v16548_v28, %v860_v21  ;;  %v11472_v34 = vmul.f32 %v16550_v60, %v859_v6  ;;  %v16557_v28 = vld [vmem:[#allocation14_spill] sm:$0xff] }
 0x20c   : > { %16547 = vst [vmem:[#allocation39_spill] sm:$0xff] %v11463_v57  ;;  %v11475_v41 = vmul.f32 %v16551_v59, %v859_v6  ;;  %v11478_v32 = vmul.f32 %v16550_v60, %v860_v21  ;;  %v11481_v55 = vmul.f32 %v16551_v59, %v860_v21  ;;  %v11484_v16 = vmul.f32 %v16554_v48, %v859_v6 }
 0x20d   : > { %16549 = vst [vmem:[#allocation45_spill] sm:$0xff] %v11469_v43  ;;  %v11487_v10 = vmul.f32 %v16554_v48, %v860_v21  ;;  %v5432_v4 = vpack.c.bf16 %v5303_v2, %v5302_v22  ;;  %v11490_v13 = vmul.f32 %v16557_v28, %v859_v6  ;;  %v11493_v14 = vmul.f32 %v16559_v18, %v859_v6 }
 0x20e   : > { %16552 = vst [vmem:[#allocation46_spill] sm:$0xff] %v11478_v32  ;;  %16553 = vst [vmem:[#allocation47_spill] sm:$0xff] %v11481_v55  ;;  %v1280_v60 = vsel %vm1041_vm3, %v11446_v24, -inf  ;;  %v11498_v62 = vmul.f32 %v16557_v28, %v860_v21  ;;  %v11501_v59 = vmul.f32 %v16559_v18, %v860_v21  ;;  %v1281_v48 = vsel %vm1041_vm3, %v11454_v44, -inf }
 0x20f   : > { %16555 = vst [vmem:[#allocation48_spill] sm:$0xff] %v11484_v16  ;;  %16556 = vst [vmem:[#allocation49_spill] sm:$0xff] %v11487_v10  ;;  %v1283_v22 = vsel %vm1041_vm3, %v11460_v30, -inf  ;;  %7118 = vmatprep.mubr.msk.bf16.mxu1 %vm1041_vm3, %v5432_v4  ;;  %v1282_v2 = vmax.f32 %v1280_v60, %v1281_v48  ;;  %v1285_v6 = vsel %vm1041_vm3, %v11466_v7, -inf  ;;  %v1287_v47 = vsel %vm1041_vm3, %v11472_v34, -inf }
 0x210   : > { %16558 = vst [vmem:[#allocation6_spill] sm:$0xff] %v11490_v13  ;;  %16560 = vst [vmem:[#allocation7_spill] sm:$0xff] %v11493_v14  ;;  %v1289_v28 = vsel %vm1041_vm3, %v11475_v41, -inf  ;;  %v1291_v18 = vsel %vm1041_vm3, %v11484_v16, -inf  ;;  %v1297_v21 = vsel %vm1041_vm3, %v11451_v40, -inf  ;;  %v1298_v49 = vsel %vm1041_vm3, %v11457_v61, -inf }
 0x211   : > { %v1300_v4 = vsel %vm1041_vm3, %v11463_v57, -inf  ;;  %v1284_v60 = vmax.f32 %v1282_v2, %v1283_v22  ;;  %v1293_v48 = vsel %vm1041_vm3, %v11490_v13, -inf  ;;  %v1295_v35 = vsel %vm1041_vm3, %v11493_v14, -inf }
 0x212   : > { %v1299_v11 = vmax.f32 %v1297_v21, %v1298_v49  ;;  %v1302_v58 = vsel %vm1041_vm3, %v11469_v43, -inf  ;;  %v1304_v29 = vsel %vm1041_vm3, %v11478_v32, -inf  ;;  %v1306_v31 = vsel %vm1041_vm3, %v11481_v55, -inf }
 0x213   : > { %v1308_v42 = vsel %vm1041_vm3, %v11487_v10, -inf  ;;  %v1286_v22 = vmax.f32 %v1284_v60, %v1285_v6  ;;  %v3973_v13 = vadd.f32 %v11409_v25, %v11403_v0  ;;  %v4116_v14 = vadd.f32 %v3144_v23, %v11413_v9  ;;  %v16561_v25 = vld [vmem:[#allocation114_spill] sm:$0xff]  ;;  %v16562_v9 = vld [vmem:[#allocation152_spill] sm:$0xff] }
 0x214   : > { %v1301_v2 = vmax.f32 %v1299_v11, %v1300_v4  ;;  %v4117_v49 = vadd.f32 %v3145_v45, %v11417_v51  ;;  %v4260_v21 = vadd.f32 %v3504_v39, %v3324_v27  ;;  %v4261_v43 = vadd.f32 %v3505_v54, %v3325_v20  ;;  %v16563_v27 = vld [vmem:[#allocation116_spill] sm:$0xff]  ;;  %v16567_v54 = vld [vmem:[#allocation106_spill] sm:$0xff] }
 0x215   : > { %v4404_v57 = vadd.f32 %v3972_v3, %v3828_v26  ;;  %v1288_v32 = vmax.f32 %v1286_v22, %v1287_v47  ;;  %v1310_v55 = vsel %vm1041_vm3, %v11498_v62, -inf  ;;  %v4405_v10 = vadd.f32 %v3973_v13, %v3829_v1  ;;  %v16564_v3 = vld [vmem:[#allocation153_spill] sm:$0xff]  ;;  %v16570_v60 = vld [vmem:[#allocation120_spill] sm:$0xff] }
 0x216   : > { %v1303_v16 = vmax.f32 %v1301_v2, %v1302_v58  ;;  %v1312_v11 = vsel %vm1041_vm3, %v11501_v59, -inf  ;;  %v4548_v6 = vadd.f32 %v4260_v21, %v4116_v14  ;;  %v4549_v0 = vadd.f32 %v4261_v43, %v4117_v49  ;;  %v11551_v58 = vld [vmem:[%s8087_s12 + $0x48] sm:$0xff]  ;;  %v11558_v14 = vld [vmem:[%s8087_s12 + $0x50] sm:$0xff] }
 0x217   : > { %v11544_v23 = vmul.f32 %v16562_v9, %v16561_v25  ;;  %v1290_v51 = vmax.f32 %v1288_v32, %v1289_v28  ;;  %v11548_v20 = vmul.f32 %v16564_v3, %v16563_v27  ;;  %16565 = vst [vmem:[#allocation9_spill] sm:$0xff] %v11551_v58  ;;  %v11555_v13 = vmul.f32 %v11551_v58, %v10237_v56  ;;  %v16568_v43 = vld [vmem:[#allocation108_spill] sm:$0xff]  ;;  %v16569_v28 = vld [vmem:[#allocation110_spill] sm:$0xff] }
 0x218   : > { %v1305_v45 = vmax.f32 %v1303_v16, %v1304_v29  ;;  %v4692_v1 = vadd.f32 %v4548_v6, %v4404_v57  ;;  %v4693_v39 = vadd.f32 %v4549_v0, %v4405_v10  ;;  %16566 = vst [vmem:[#allocation10_spill] sm:$0xff] %v11558_v14  ;;  %v11562_v47 = vmul.f32 %v11558_v14, %v10237_v56  ;;  %v16573_v6 = vld [vmem:[#allocation97_spill] sm:$0xff]  ;;  %v16574_v0 = vld [vmem:[#allocation100_spill] sm:$0xff] }
 0x219   : > { %v11566_v29 = vmul.f32 %v16397_v19, %v16567_v54  ;;  %v1292_v16 = vmax.f32 %v1290_v51, %v1291_v18  ;;  %v11570_v32 = vmul.f32 %v16397_v19, %v16568_v43  ;;  %v11574_v57 = vmul.f32 %v16399_v53, %v16569_v28  ;;  %v11609_v51 = vld [vmem:[%s8087_s12 + $0x78] sm:$0xff]  ;;  %v16583_v28 = vld [vmem:[#allocation46_spill] sm:$0xff] }
 0x21a   : > { %v1307_v26 = vmax.f32 %v1305_v45, %v1306_v31  ;;  %v4836_v10 = vadd.f32 %v4692_v1, %v11435_v63  ;;  %v4837_v4 = vadd.f32 %v4693_v39, %v11439_v36  ;;  %v11580_v22 = vmul.f32 %v16399_v53, %v16570_v60  ;;  %16575 = vst [vmem:[#allocation13_spill] sm:$0xff] %v11609_v51  ;;  %v11616_v1 = vld [vmem:[%s8087_s12 + $0x80] sm:$0xff]  ;;  %v16582_v60 = vld [vmem:[#allocation45_spill] sm:$0xff] }
 0x21b   : > { %v11584_v31 = vmul.f32 %v11224_v5, %v16401_v37  ;;  %v1294_v18 = vmax.f32 %v1292_v16, %v1293_v48  ;;  %v11588_v49 = vmul.f32 %v11229_v8, %v16401_v37  ;;  %v11592_v63 = vmul.f32 %v16486_v38, %v16495_v17  ;;  %16576 = vst [vmem:[#allocation14_spill] sm:$0xff] %v11616_v1  ;;  %v16585_v14 = vld [vmem:[#allocation49_spill] sm:$0xff] }
 0x21c   : > { %v1309_v2 = vmax.f32 %v1307_v26, %v1308_v42  ;;  %v11595_v36 = vadd.f32 %v16403_v12, %v4836_v10  ;;  %v11598_v21 = vadd.f32 %v16403_v12, %v4837_v4  ;;  %v3021_v5 = vmul.f32 %v16486_v38, %v16573_v6  ;;  %v16578_v10 = vld [vmem:[#allocation124_spill] sm:$0xff] }
 0x21d   : > { %v3200_v42 = vmul.f32 %v16489_v52, %v16498_v46  ;;  %v11604_v48 = vmax.f32 %v1294_v18, %v1295_v35  ;;  %v3201_v25 = vmul.f32 %v16489_v52, %v16574_v0  ;;  %v3380_v45 = vmul.f32 %v11609_v51, %v16494_v33  ;;  %v16577_v35 = vld [vmem:[#allocation123_spill] sm:$0xff]  ;;  %v16579_v18 = vld [vmem:[#allocation130_spill] sm:$0xff] }
 0x21e   : > { %16571 = vst [vmem:[#allocation11_spill] sm:$0xff] %v11595_v36  ;;  %16572 = vst [vmem:[#allocation12_spill] sm:$0xff] %v11598_v21  ;;  %v1311_v8 = vmax.f32 %v1309_v2, %v1310_v55  ;;  %v3381_v39 = vmul.f32 %v11616_v1, %v16494_v33  ;;  %v3560_v55 = vmul.f32 %v16496_v15, %v16577_v35  ;;  %v16588_v36 = vld [vmem:[#allocation131_spill] sm:$0xff] }
 0x21f   : > { %v1328_v26 = vsub.f32 %v11446_v24, %v11604_v48  ;;  %v3561_v4 = vmul.f32 %v16496_v15, %v16578_v10  ;;  %v11628_v2 = vmul.f32 %v16499_v50, %v16579_v18  ;;  %v1344_v27 = vsub.f32 %v11454_v44, %v11604_v48  ;;  %v16580_v10 = vld [vmem:[#allocation48_spill] sm:$0xff]  ;;  %v16581_v44 = vld [vmem:[#allocation39_spill] sm:$0xff] }
 0x220   : > { %v1313_v16 = vmax.f32 %v1311_v8, %v1312_v11  ;;  %v1360_v12 = vsub.f32 %v11460_v30, %v11604_v48  ;;  %v1376_v3 = vsub.f32 %v11466_v7, %v11604_v48  ;;  %v1392_v11 = vsub.f32 %v11472_v34, %v11604_v48  ;;  %v16584_v7 = vld [vmem:[#allocation47_spill] sm:$0xff] }
 0x221   : > { %v1408_v9 = vsub.f32 %v11475_v41, %v11604_v48  ;;  %v1424_v0 = vsub.f32 %v16580_v10, %v11604_v48  ;;  %v1486_v46 = vmul.f32 1.442695, %v1328_v26  ;;  %v16587_v41 = vld [vmem:[#allocation7_spill] sm:$0xff]  ;;  %v1518_v21 = vmul.f32 1.442695, %v1344_v27 }
 0x222   : > { %v1329_v24 = vsub.f32 %v11451_v40, %v1313_v16  ;;  %v1345_v8 = vsub.f32 %v11457_v61, %v1313_v16  ;;  %v1361_v6 = vsub.f32 %v16581_v44, %v1313_v16  ;;  %v1377_v30 = vsub.f32 %v16582_v60, %v1313_v16  ;;  %v16586_v40 = vld [vmem:[#allocation6_spill] sm:$0xff] }
 0x223   : > { %v1393_v43 = vsub.f32 %v16583_v28, %v1313_v16  ;;  %v1409_v54 = vsub.f32 %v16584_v7, %v1313_v16  ;;  %v1425_v34 = vsub.f32 %v16585_v14, %v1313_v16  ;;  %v1440_v58 = vsub.f32 %v16586_v40, %v11604_v48 }
 0x224   : > { %v1441_v61 = vsub.f32 %v11498_v62, %v1313_v16  ;;  %v1456_v17 = vsub.f32 %v16587_v41, %v11604_v48  ;;  %v1488_v10 = vmul.f32 1.442695, %v1329_v24  ;;  %v1520_v44 = vmul.f32 1.442695, %v1345_v8 }
 0x225   : > { %v1457_v60 = vsub.f32 %v11501_v59, %v1313_v16  ;;  %7727 = vpow2.f32 %v1486_v46  ;;  %v1550_v28 = vmul.f32 1.442695, %v1360_v12  ;;  %v3741_v7 = vmul.f32 %v16499_v50, %v16588_v36 }
 0x226   : > { %7729 = vpow2.f32 %v1488_v10  ;;  %v1552_v14 = vmul.f32 1.442695, %v1361_v6  ;;  %v1582_v15 = vmul.f32 1.442695, %v1376_v3  ;;  %v1584_v40 = vmul.f32 1.442695, %v1377_v30 }
 0x227   : > { %7731 = vpow2.f32 %v1518_v21  ;;  %v1614_v62 = vmul.f32 1.442695, %v1392_v11  ;;  %v1616_v26 = vmul.f32 1.442695, %v1393_v43  ;;  %v1646_v33 = vmul.f32 1.442695, %v1408_v9 }
 0x228   : > { %7733 = vpow2.f32 %v1520_v44  ;;  %v1648_v48 = vmul.f32 1.442695, %v1409_v54  ;;  %v1678_v24 = vmul.f32 1.442695, %v1424_v0  ;;  %v1680_v27 = vmul.f32 1.442695, %v1425_v34 }
 0x229   : > { %7735 = vpow2.f32 %v1550_v28  ;;  %v1710_v8 = vmul.f32 1.442695, %v1440_v58  ;;  %v1712_v59 = vmul.f32 1.442695, %v1441_v61  ;;  %v3884_v46 = vadd.f32 %v11566_v29, %v11555_v13  ;;  %v11669_v58 = vld [vmem:[%s14913_s1] sm:$0xff]  ;;  %v11706_v61 = vld [vmem:[%s8087_s12 + $0x8] sm:$0xff] }
 0x22a   : > { %7737 = vpow2.f32 %v1552_v14  ;;  %v3885_v6 = vadd.f32 %v11570_v32, %v11562_v47  ;;  %v4028_v3 = vadd.f32 %v11584_v31, %v11574_v57  ;;  %v4029_v9 = vadd.f32 %v11588_v49, %v11580_v22  ;;  %v16589_v22 = vld [vmem:[#allocation5_spill] sm:$0xff]  ;;  %16596 = vst [vmem:[#allocation48_spill] sm:$0xff] %v11706_v61  ;;  %v16597_v28 = vld [vmem:[#allocation20_spill] sm:$0xff] }
 0x22b   : > { %7739 = vpow2.f32 %v1582_v15  ;;  %v4172_v54 = vadd.f32 %v3200_v42, %v11592_v63  ;;  %v4173_v43 = vadd.f32 %v3201_v25, %v3021_v5  ;;  %v4316_v21 = vadd.f32 %v3560_v55, %v3380_v45  ;;  %v16590_v63 = vld [vmem:[#allocation4_spill] sm:$0xff]  ;;  %v16592_v25 = vld [vmem:[#allocation35_spill] sm:$0xff] }
 0x22c   : > { %7741 = vpow2.f32 %v1584_v40  ;;  %v4317_v13 = vadd.f32 %v3561_v4, %v3381_v39  ;;  %v4460_v29 = vadd.f32 %v4028_v3, %v3884_v46  ;;  %v4461_v47 = vadd.f32 %v4029_v9, %v3885_v6  ;;  %v16593_v45 = vld [vmem:[#allocation40_spill] sm:$0xff]  ;;  %v11694_v4 = vld [vmem:[%s8087_s12] sm:$0xff] }
 0x22d   : > { %7743 = vpow2.f32 %v1614_v62  ;;  %v1742_v32 = vmul.f32 1.442695, %v1456_v17  ;;  %v1744_v57 = vmul.f32 1.442695, %v1457_v60  ;;  %v4604_v31 = vadd.f32 %v4316_v21, %v4172_v54  ;;  %16595 = vst [vmem:[#allocation116_spill] sm:$0xff] %v11694_v4 }
 0x22e   : > { %7745 = vpow2.f32 %v1616_v26  ;;  %v4605_v15 = vadd.f32 %v4317_v13, %v4173_v43  ;;  %v11673_v49 = vrot.slane %v11669_v58, %v16589_v22  ;;  %v11677_v5 = vrot.slane %v11669_v58, %v16590_v63  ;;  %v16599_v26 = vld [vmem:[#allocation164_spill] sm:$0xff] }
 0x22f   : > { %v11679_v42 = vpop.eup %7727  ;;  %7747 = vpow2.f32 %v1646_v33  ;;  %v4748_v0 = vadd.f32 %v4604_v31, %v4460_v29  ;;  %v11683_v17 = vrot.slane %v11669_v58, %v16592_v25  ;;  %v11687_v12 = vrot.slane %v11669_v58, %v16593_v45  ;;  %v16604_v31 = vld [vmem:[#allocation21_spill] sm:$0xff] }
 0x230   : > { %16591 = vst [vmem:[#allocation15_spill] sm:$0xff] %v11679_v42  ;;  %v11689_v39 = vpop.eup %7729  ;;  %7749 = vpow2.f32 %v1648_v48  ;;  %v1984_v55 = vsel %vm1041_vm3, %v11679_v42, 0.0  ;;  %v4749_v16 = vadd.f32 %v4605_v15, %v4461_v47  ;;  %v11698_v33 = vmul.f32 %v11694_v4, %v11673_v49  ;;  %v16623_v42 = vld [vmem:[#allocation30_spill] sm:$0xff]  ;;  %v7792_v4 = vld [vmem:[%s14913_s1 + $0x8] sm:$0x7] }
 0x231   : > { %16594 = vst [vmem:[#allocation114_spill] sm:$0xff] %v11689_v39  ;;  %v11700_v11 = vpop.eup %7731  ;;  %7751 = vpow2.f32 %v1678_v24  ;;  %v2001_v30 = vsel %vm1041_vm3, %v11689_v39, 0.0  ;;  %v4892_v34 = vadd.f32 %v4748_v0, %v11628_v2  ;;  %v11710_v41 = vmul.f32 %v11706_v61, %v11673_v49 }
 0x232   : > { %v11712_v10 = vpop.eup %7733  ;;  %7753 = vpow2.f32 %v1680_v27  ;;  %v1985_v44 = vsel %vm1041_vm3, %v11700_v11, 0.0  ;;  %v4893_v60 = vadd.f32 %v4749_v16, %v3741_v7  ;;  %v11718_v14 = vmul.f32 %v11677_v5, %v16597_v28 }
 0x233   : > { %v11720_v40 = vpop.eup %7735  ;;  %7755 = vpow2.f32 %v1710_v8  ;;  %v1986_v2 = vadd.f32 %v1985_v44, %v1984_v55  ;;  %v2002_v62 = vsel %vm1041_vm3, %v11712_v10, 0.0  ;;  %v5072_v48 = vadd.f32 %v16599_v26, %v4892_v34 }
 0x234   : > { %16598 = vst [vmem:[#allocation39_spill] sm:$0xff] %v11720_v40  ;;  %v11725_v24 = vpop.eup %7737  ;;  %7757 = vpow2.f32 %v1712_v59  ;;  %v1987_v27 = vsel %vm1041_vm3, %v11720_v40, 0.0  ;;  %v2003_v7 = vadd.f32 %v2002_v62, %v2001_v30  ;;  %v5073_v46 = vadd.f32 %v16599_v26, %v4893_v60  ;;  %v16606_v30 = vld [vmem:[#allocation24_spill] sm:$0xff]  ;;  %v16620_v40 = vld [vmem:[#allocation26_spill] sm:$0xff] }
 0x235   : > { %16600 = vst [vmem:[#allocation45_spill] sm:$0xff] %v11725_v24  ;;  %v11730_v6 = vpop.eup %7739  ;;  %7759 = vpow2.f32 %v1742_v32  ;;  %v1988_v3 = vadd.f32 %v1987_v27, %v1986_v2  ;;  %v2004_v8 = vsel %vm1041_vm3, %v11725_v24, 0.0  ;;  %v5216_v9 = vmax.f32 %v5072_v48, 0.0  ;;  %v16608_v2 = vld [vmem:[#allocation25_spill] sm:$0xff] }
 0x236   : > { %16601 = vst [vmem:[#allocation46_spill] sm:$0xff] %v11730_v6  ;;  %v11734_v54 = vpop.eup %7741  ;;  %7761 = vpow2.f32 %v1744_v57  ;;  %v1989_v59 = vsel %vm1041_vm3, %v11730_v6, 0.0  ;;  %v2005_v43 = vadd.f32 %v2004_v8, %v2003_v7  ;;  %v5217_v21 = vmax.f32 %v5073_v46, 0.0  ;;  %v11759_v48 = vld [vmem:[%s8087_s12 + $0x18] sm:$0xff] }
 0x237   : > { %16602 = vst [vmem:[#allocation47_spill] sm:$0xff] %v11734_v54  ;;  %v11738_v13 = vpop.eup %7743  ;;  %v1990_v29 = vadd.f32 %v1989_v59, %v1988_v3  ;;  %v2006_v47 = vsel %vm1041_vm3, %v11734_v54, 0.0  ;;  %v5360_v32 = vmul.f32 %v5216_v9, %v11544_v23  ;;  %v2395_v15 = vmul.f32 %v11677_v5, %v16604_v31  ;;  %16609 = vst [vmem:[#allocation232_spill] sm:$0xff] %v11759_v48  ;;  %v11771_v9 = vld [vmem:[%s8087_s12 + $0x20] sm:$0xff] }
 0x238   : > { %16603 = vst [vmem:[#allocation49_spill] sm:$0xff] %v11738_v13  ;;  %v11745_v0 = vpop.eup %7745  ;;  %v1991_v57 = vsel %vm1041_vm3, %v11738_v13, 0.0  ;;  %v2007_v55 = vadd.f32 %v2006_v47, %v2005_v43  ;;  %v5361_v16 = vmul.f32 %v5217_v21, %v11548_v20  ;;  %v2574_v34 = vmul.f32 %v11683_v17, %v16606_v30  ;;  %v5497_v20 = vld [vmem:[%s14914_s2 + $0xe] sm:$0x3]  ;;  %16611 = vst [vmem:[#allocation234_spill] sm:$0xff] %v11771_v9  ;;  %v16613_v47 = vld [vmem:[#allocation41_spill] sm:$0xff] }
 0x239   : > { %16605 = vst [vmem:[#allocation6_spill] sm:$0xff] %v11745_v0  ;;  %v11752_v44 = vpop.eup %7747  ;;  %v1992_v60 = vadd.f32 %v1991_v57, %v1990_v29  ;;  %v2008_v23 = vsel %vm1041_vm3, %v11745_v0, 0.0  ;;  %v2575_v62 = vmul.f32 %v11683_v17, %v16608_v2  ;;  %v2754_v27 = vmul.f32 %v11759_v48, %v11687_v12  ;;  %7404 = vmatprep.subr.msk.bf16.mxu0 %vm5523_vm0, %v5497_v20  ;;  %v16614_v0 = vld [vmem:[#allocation42_spill] sm:$0xff]  ;;  %v11822_v2 = vld [vmem:[%s8087_s12 + $0x30] sm:$0xff]  ;;  %v11827_v30 = vld [vmem:[%s8087_s12 + $0x38] sm:$0xff] }
 0x23a   : > { %16607 = vst [vmem:[#allocation7_spill] sm:$0xff] %v11752_v44  ;;  %v11766_v7 = vpop.eup %7749  ;;  %v1993_v46 = vsel %vm1041_vm3, %v11752_v44, 0.0  ;;  %v2009_v3 = vadd.f32 %v2008_v23, %v2007_v55  ;;  %v5461_v8 = vpack.c.bf16 %v5361_v16, %v5360_v32  ;;  %v2755_v59 = vmul.f32 %v11771_v9, %v11687_v12  ;;  %16626 = vst [vmem:[#allocation241_spill] sm:$0xff] %v11822_v2 }
 0x23b   : > { %16610 = vst [vmem:[#allocation233_spill] sm:$0xff] %v11766_v7  ;;  %v11776_v43 = vpop.eup %7751  ;;  %v1994_v21 = vadd.f32 %v1993_v46, %v1992_v60  ;;  %v2010_v29 = vsel %vm1041_vm3, %v11766_v7, 0.0  ;;  %v11782_v57 = vrot.slane %v11669_v58, %v16613_v47  ;;  %v11786_v32 = vrot.slane %v11669_v58, %v16614_v0  ;;  %v16616_v60 = vld [vmem:[#allocation43_spill] sm:$0xff]  ;;  %v16617_v46 = vld [vmem:[#allocation44_spill] sm:$0xff]  ;;  %16627 = vst [vmem:[#allocation242_spill] sm:$0xff] %v11827_v30 }
 0x23c   : > { %16612 = vst [vmem:[#allocation235_spill] sm:$0xff] %v11776_v43  ;;  %v11788_v55 = vpop.eup %7753  ;;  %v1995_v16 = vsel %vm1041_vm3, %v11776_v43, 0.0  ;;  %v2011_v23 = vadd.f32 %v2010_v29, %v2009_v3  ;;  %7201 = vmatmul.mubr.msk.bf16.gmra.mrb[4].mxu0 %vm1041_vm3, %v5461_v8  ;;  %v11795_v20 = vrot.slane %v11669_v58, %v16616_v60  ;;  %v11799_v13 = vrot.slane %v11669_v58, %v16617_v46  ;;  %v16621_v8 = vld [vmem:[#allocation28_spill] sm:$0xff] }
 0x23d   : > { %16615 = vst [vmem:[#allocation236_spill] sm:$0xff] %v11788_v55  ;;  %v11801_v54 = vpop.eup %7755  ;;  %v1996_v6 = vadd.f32 %v1995_v16, %v1994_v21  ;;  %v2012_v24 = vsel %vm1041_vm3, %v11788_v55, 0.0  ;;  %v2934_v3 = vmul.f32 %v11782_v57, %v16620_v40  ;;  %v2935_v29 = vmul.f32 %v11782_v57, %v16621_v8  ;;  %v16624_v60 = vld [vmem:[#allocation32_spill] sm:$0xff] }
 0x23e   : > { %16618 = vst [vmem:[#allocation237_spill] sm:$0xff] %v11799_v13  ;;  %16619 = vst [vmem:[#allocation238_spill] sm:$0xff] %v11801_v54  ;;  %v11809_v43 = vpop.eup %7757  ;;  %v1997_v39 = vsel %vm1041_vm3, %v11801_v54, 0.0  ;;  %v2013_v58 = vadd.f32 %v2012_v24, %v2011_v23  ;;  %v3114_v46 = vmul.f32 %v11786_v32, %v16623_v42  ;;  %v3115_v21 = vmul.f32 %v11786_v32, %v16624_v60  ;;  %v16634_v7 = vld [vmem:[#allocation80_spill] sm:$0xff] }
 0x23f   : > { %16622 = vst [vmem:[#allocation239_spill] sm:$0xff] %v11809_v43  ;;  %v11817_v16 = vpop.eup %7759  ;;  %v1998_v55 = vadd.f32 %v1997_v39, %v1996_v6  ;;  %v2014_v0 = vsel %vm1041_vm3, %v11809_v43, 0.0  ;;  %v3294_v8 = vmul.f32 %v11822_v2, %v11795_v20  ;;  %v3295_v24 = vmul.f32 %v11827_v30, %v11795_v20  ;;  %v16629_v39 = vld [vmem:[#allocation33_spill] sm:$0xff]  ;;  %v16630_v43 = vld [vmem:[#allocation34_spill] sm:$0xff] }
 0x240   : > { %16625 = vst [vmem:[#allocation240_spill] sm:$0xff] %v11817_v16  ;;  %v11831_v23 = vpop.eup %7761  ;;  %v1999_v54 = vsel %vm1041_vm3, %v11817_v16, 0.0  ;;  %v2015_v60 = vadd.f32 %v2014_v0, %v2013_v58  ;;  %v3474_v6 = vmul.f32 %v11799_v13, %v16629_v39  ;;  %v3475_v31 = vmul.f32 %v11799_v13, %v16630_v43  ;;  %v16633_v43 = vld [vmem:[#allocation17_spill] sm:$0xff] }
 0x241   : > { %16628 = vst [vmem:[#allocation243_spill] sm:$0xff] %v11831_v23  ;;  %v2000_v28 = vadd.f32 %v1999_v54, %v1998_v55  ;;  %v2016_v61 = vsel %vm1041_vm3, %v11831_v23, 0.0  ;;  %v11845_v47 = vrot.slane %v7792_v4, %v16589_v22  ;;  %v3798_v0 = vadd.f32 %v11718_v14, %v11698_v33  ;;  %v16631_v54 = vld [vmem:[#allocation56_spill] sm:$0xff]  ;;  %v16632_v55 = vld [vmem:[#allocation79_spill] sm:$0xff]  ;;  %v16635_v33 = vld [vmem:[#allocation37_spill] sm:$0xff] }
 0x242   : > { %v2017_v58 = vadd.f32 %v2016_v61, %v2015_v60  ;;  %v3799_v16 = vadd.f32 %v2395_v15, %v11710_v41  ;;  %v3942_v45 = vadd.f32 %v2754_v27, %v2574_v34  ;;  %v3943_v63 = vadd.f32 %v2755_v59, %v2575_v62  ;;  %v16636_v41 = vld [vmem:[#allocation38_spill] sm:$0xff]  ;;  %v16638_v59 = vld [vmem:[#allocation172_spill] sm:$0xff] }
 0x243   : > { %7763 = vrcp.f32 %v2000_v28  ;;  %v2034_v23 = vmul.f32 %v16632_v55, %v16631_v54  ;;  %v2035_v44 = vmul.f32 %v16634_v7, %v16633_v43  ;;  %v4086_v36 = vadd.f32 %v3114_v46, %v2934_v3  ;;  %v16639_v43 = vld [vmem:[#allocation193_spill] sm:$0xff]  ;;  %v11866_v46 = vld [vmem:[%s8087_s12 + $0x60] sm:$0xff]  ;;  %v11871_v3 = vld [vmem:[%s8087_s12 + $0x68] sm:$0xff] }
 0x244   : > { %7765 = vrcp.f32 %v2017_v58  ;;  %v4087_v22 = vadd.f32 %v3115_v21, %v2935_v29  ;;  %v4230_v13 = vadd.f32 %v3474_v6, %v3294_v8  ;;  %v4231_v26 = vadd.f32 %v3475_v31, %v3295_v24  ;;  %16640 = vst [vmem:[#allocation17_spill] sm:$0xff] %v11866_v46  ;;  %16641 = vst [vmem:[#allocation172_spill] sm:$0xff] %v11871_v3  ;;  %v16644_v8 = vld [vmem:[#allocation144_spill] sm:$0xff]  ;;  %v16645_v21 = vld [vmem:[#allocation146_spill] sm:$0xff] }
 0x245   : > { %v3654_v61 = vmul.f32 %v11845_v47, %v16635_v33  ;;  %v3655_v14 = vmul.f32 %v11845_v47, %v16636_v41  ;;  %v4374_v28 = vadd.f32 %v3942_v45, %v3798_v0  ;;  %v4375_v15 = vadd.f32 %v3943_v63, %v3799_v16  ;;  %v16643_v45 = vld [vmem:[#allocation141_spill] sm:$0xff]  ;;  %v11896_v41 = vld [vmem:[%s8087_s12 + $0x90] sm:$0xff]  ;;  %v16649_v7 = vld [vmem:[#allocation159_spill] sm:$0xff] }
 0x246   : > { %v4518_v34 = vadd.f32 %v4230_v13, %v4086_v36  ;;  %v4519_v62 = vadd.f32 %v4231_v26, %v4087_v22  ;;  %v11859_v27 = vrot.slane %v7792_v4, %v16592_v25  ;;  %v11863_v60 = vmul.f32 %v16639_v43, %v16638_v59  ;;  %v16642_v36 = vld [vmem:[#allocation139_spill] sm:$0xff]  ;;  %16648 = vst [vmem:[#allocation244_spill] sm:$0xff] %v11896_v41  ;;  %v11901_v25 = vld [vmem:[%s8087_s12 + $0x98] sm:$0xff] }
 0x247   : > { %v2302_v31 = vmul.f32 %v11866_v46, %v10237_v56  ;;  %v2303_v63 = vmul.f32 %v11871_v3, %v10237_v56  ;;  %v2482_v22 = vmul.f32 %v16397_v19, %v16642_v36  ;;  %v2483_v4 = vmul.f32 %v16397_v19, %v16643_v45  ;;  %16650 = vst [vmem:[#allocation245_spill] sm:$0xff] %v11901_v25 }
 0x248   : > { %16637 = vst [vmem:[#allocation56_spill] sm:$0xff] %v11859_v27  ;;  %v4662_v26 = vadd.f32 %v4518_v34, %v4374_v28  ;;  %v4663_v13 = vadd.f32 %v4519_v62, %v4375_v15  ;;  %v2662_v29 = vmul.f32 %v16399_v53, %v16644_v8  ;;  %v2663_v16 = vmul.f32 %v16399_v53, %v16645_v21  ;;  %v16646_v15 = vld [vmem:[#allocation118_spill] sm:$0xff]  ;;  %v16651_v21 = vld [vmem:[#allocation148_spill] sm:$0xff] }
 0x249   : > { %v2842_v24 = vmul.f32 %v11609_v51, %v16401_v37  ;;  %v2843_v6 = vmul.f32 %v11616_v1, %v16401_v37  ;;  %v3022_v0 = vmul.f32 %v16486_v38, %v16577_v35  ;;  %v3202_v58 = vmul.f32 %v16489_v52, %v16579_v18  ;;  %v16647_v62 = vld [vmem:[#allocation126_spill] sm:$0xff]  ;;  %v16652_v8 = vld [vmem:[#allocation160_spill] sm:$0xff] }
 0x24a   : > { %v4806_v54 = vadd.f32 %v4662_v26, %v3654_v61  ;;  %v4807_v28 = vadd.f32 %v4663_v13, %v3655_v14  ;;  %v3023_v34 = vmul.f32 %v16486_v38, %v16646_v15  ;;  %v3203_v59 = vmul.f32 %v16489_v52, %v16647_v62  ;;  %v16653_v14 = vld [vmem:[#allocation149_spill] sm:$0xff]  ;;  %v16654_v15 = vld [vmem:[#allocation150_spill] sm:$0xff] }
 0x24b   : > { %v3382_v55 = vmul.f32 %v11896_v41, %v16649_v7  ;;  %v3383_v43 = vmul.f32 %v11901_v25, %v16649_v7  ;;  %v3562_v61 = vmul.f32 %v16652_v8, %v16651_v21  ;;  %v3563_v26 = vmul.f32 %v16652_v8, %v16653_v14 }
 0x24c   : > { %v4986_v13 = vadd.f32 %v11859_v27, %v4806_v54  ;;  %v4987_v62 = vadd.f32 %v11859_v27, %v4807_v28  ;;  %v3742_v45 = vmul.f32 %v16499_v50, %v16654_v15  ;;  %v3886_v36 = vadd.f32 %v2482_v22, %v2302_v31  ;;  %v16657_v22 = vld [vmem:[#allocation11_spill] sm:$0xff] }
 0x24d   : > { %v11913_v3 = vpop.eup %7763  ;;  %v3887_v46 = vadd.f32 %v2483_v4, %v2303_v63  ;;  %v4030_v18 = vadd.f32 %v2842_v24, %v2662_v29  ;;  %v4031_v35 = vadd.f32 %v2843_v6, %v2663_v16  ;;  %v4174_v1 = vadd.f32 %v3202_v58, %v3022_v0  ;;  %v16659_v24 = vld [vmem:[#allocation12_spill] sm:$0xff]  ;;  %v16661_v58 = vld [vmem:[#allocation151_spill] sm:$0xff] }
 0x24e   : > { %16655 = vst [vmem:[#allocation246_spill] sm:$0xff] %v11913_v3  ;;  %v11915_v51 = vpop.eup %7765  ;;  %v2064_v7 = vmul.f32 %v11913_v3, %v11700_v11  ;;  %v5130_v14 = vmax.f32 %v4986_v13, 0.0  ;;  %v5131_v8 = vmax.f32 %v4987_v62, 0.0  ;;  %v4175_v54 = vadd.f32 %v3203_v59, %v3023_v34  ;;  %v16662_v13 = vld [vmem:[#allocation173_spill] sm:$0xff] }
 0x24f   : > { %16656 = vst [vmem:[#allocation247_spill] sm:$0xff] %v11915_v51  ;;  %v2065_v28 = vmul.f32 %v11915_v51, %v11712_v10  ;;  %v4318_v27 = vadd.f32 %v3562_v61, %v3382_v55  ;;  %v4319_v52 = vadd.f32 %v3563_v26, %v3383_v43  ;;  %v4462_v31 = vadd.f32 %v4030_v18, %v3886_v36  ;;  %v16663_v10 = vld [vmem:[#allocation194_spill] sm:$0xff] }
 0x250   : > { %v16658_v15 = vmax.f32 %v16657_v22, 0.0  ;;  %v5274_v4 = vmul.f32 %v5130_v14, %v2034_v23  ;;  %v5275_v29 = vmul.f32 %v5131_v8, %v2035_v44  ;;  %v4463_v16 = vadd.f32 %v4031_v35, %v3887_v46  ;;  %v16664_v46 = vld [vmem:[#allocation19_spill] sm:$0xff] }
 0x251   : > { %v16660_v6 = vmax.f32 %v16659_v24, 0.0  ;;  %v3743_v11 = vmul.f32 %v16499_v50, %v16661_v58  ;;  %v4606_v62 = vadd.f32 %v4318_v27, %v4174_v1  ;;  %v4607_v34 = vadd.f32 %v4319_v52, %v4175_v54  ;;  %v16665_v27 = vld [vmem:[#allocation27_spill] sm:$0xff]  ;;  %v16666_v54 = vld [vmem:[#allocation29_spill] sm:$0xff] }
 0x252   : > { %v5304_v63 = vmul.f32 %v16658_v15, %v2064_v7  ;;  %v5418_v59 = vpack.c.bf16 %v5275_v29, %v5274_v4  ;;  %v2123_v55 = vmul.f32 %v16663_v10, %v16662_v13  ;;  %v2216_v18 = vmul.f32 %v11759_v48, %v11673_v49  ;;  %v16667_v22 = vld [vmem:[#allocation31_spill] sm:$0xff]  ;;  %v16669_v29 = vld [vmem:[#allocation164_spill] sm:$0xff] }
 0x253   : > { %v5305_v0 = vmul.f32 %v16660_v6, %v2065_v28  ;;  %v2217_v7 = vmul.f32 %v11771_v9, %v11673_v49  ;;  %v4750_v35 = vadd.f32 %v4606_v62, %v4462_v31  ;;  %v4751_v23 = vadd.f32 %v4607_v34, %v4463_v16  ;;  %v11956_v4 = vld [vmem:[%s8087_s12 + $0x48] sm:$0xff]  ;;  %v11963_v6 = vld [vmem:[%s8087_s12 + $0x50] sm:$0xff]  ;;  %v16672_v62 = vld [vmem:[#allocation237_spill] sm:$0xff] }
 0x254   : > { %v2396_v43 = vmul.f32 %v11677_v5, %v16620_v40  ;;  %v2397_v52 = vmul.f32 %v11677_v5, %v16664_v46  ;;  %v2576_v1 = vmul.f32 %v11683_v17, %v16623_v42  ;;  %v2577_v36 = vmul.f32 %v11683_v17, %v16665_v27  ;;  %16668 = vst [vmem:[#allocation11_spill] sm:$0xff] %v11956_v4  ;;  %v16674_v13 = vld [vmem:[#allocation104_spill] sm:$0xff] }
 0x255   : > { %v5433_v44 = vpack.c.bf16 %v5305_v0, %v5304_v63  ;;  %v2756_v8 = vmul.f32 %v11822_v2, %v11687_v12  ;;  %v4894_v15 = vadd.f32 %v4750_v35, %v3742_v45  ;;  %v4895_v61 = vadd.f32 %v4751_v23, %v3743_v11  ;;  %16670 = vst [vmem:[#allocation12_spill] sm:$0xff] %v11963_v6  ;;  %v16671_v11 = vld [vmem:[#allocation75_spill] sm:$0xff]  ;;  %v16675_v35 = vld [vmem:[#allocation81_spill] sm:$0xff] }
 0x256   : > { %v2757_v14 = vmul.f32 %v11827_v30, %v11687_v12  ;;  %v2936_v26 = vmul.f32 %v11782_v57, %v16629_v39  ;;  %v2937_v28 = vmul.f32 %v11782_v57, %v16666_v54  ;;  %v3116_v31 = vmul.f32 %v11786_v32, %v16635_v33  ;;  %v16676_v23 = vld [vmem:[#allocation105_spill] sm:$0xff]  ;;  %v16677_v54 = vld [vmem:[#allocation76_spill] sm:$0xff] }
 0x257   : > { %7119 = vmatmul.mubr.msk.bf16.gmra.mrb[12].mxu1 %vm1041_vm3, %v5433_v44  ;;  %v3117_v63 = vmul.f32 %v11786_v32, %v16667_v22  ;;  %v3296_v45 = vmul.f32 %v11956_v4, %v11795_v20  ;;  %v5074_v16 = vadd.f32 %v16669_v29, %v4894_v15  ;;  %v5075_v24 = vadd.f32 %v16669_v29, %v4895_v61 }
 0x258   : > { %7124 = vmatprep.mubr.msk.bf16.mxu1 %vm1041_vm3, %v5418_v59  ;;  %v3297_v0 = vmul.f32 %v11963_v6, %v11795_v20  ;;  %v3476_v34 = vmul.f32 %v16672_v62, %v16671_v11  ;;  %v16673_v59 = vld [vmem:[#allocation8_spill] sm:$0xff]  ;;  %v11973_v22 = vmul.f32 %v16676_v23, %v16675_v35  ;;  %v3477_v15 = vmul.f32 %v16672_v62, %v16677_v54  ;;  %v16678_v23 = vld [vmem:[#allocation77_spill] sm:$0xff]  ;;  %v16679_v54 = vld [vmem:[#allocation78_spill] sm:$0xff] }
 0x259   : > { %v2036_v44 = vmul.f32 %v16674_v13, %v16673_v59  ;;  %v3800_v27 = vadd.f32 %v2396_v43, %v2216_v18  ;;  %v5218_v61 = vmax.f32 %v5074_v16, 0.0  ;;  %v5219_v46 = vmax.f32 %v5075_v24, 0.0  ;;  %v16686_v24 = vld [vmem:[#allocation184_spill] sm:$0xff] }
 0x25a   : > { %v3801_v33 = vadd.f32 %v2397_v52, %v2217_v7  ;;  %v3944_v39 = vadd.f32 %v2756_v8, %v2576_v1  ;;  %v3945_v30 = vadd.f32 %v2757_v14, %v2577_v36  ;;  %v4088_v2 = vadd.f32 %v3116_v31, %v2936_v26  ;;  %v7799_v36 = vld [vmem:[%s14914_s2 + $0x4] sm:$0x3] }
 0x25b   : > { %v4089_v42 = vadd.f32 %v3117_v63, %v2937_v28  ;;  %v4232_v40 = vadd.f32 %v3476_v34, %v3296_v45  ;;  %v5362_v59 = vmul.f32 %v5218_v61, %v11863_v60  ;;  %v5363_v13 = vmul.f32 %v5219_v46, %v2123_v55  ;;  %v11989_v60 = vld [vmem:[%s8087_s12 + $0x78] sm:$0xff]  ;;  %v11994_v46 = vld [vmem:[%s8087_s12 + $0x80] sm:$0xff] }
 0x25c   : > { %v4233_v9 = vadd.f32 %v3477_v15, %v3297_v0  ;;  %v4376_v35 = vadd.f32 %v3944_v39, %v3800_v27  ;;  %v3656_v48 = vmul.f32 %v11845_v47, %v16678_v23  ;;  %v3657_v18 = vmul.f32 %v11845_v47, %v16679_v54  ;;  %16680 = vst [vmem:[#allocation173_spill] sm:$0xff] %v11989_v60  ;;  %v16684_v27 = vld [vmem:[#allocation178_spill] sm:$0xff]  ;;  %v16694_v54 = vld [vmem:[#allocation188_spill] sm:$0xff] }
 0x25d   : > { %v4377_v43 = vadd.f32 %v3945_v30, %v3801_v33  ;;  %v4520_v7 = vadd.f32 %v4232_v40, %v4088_v2  ;;  %v5462_v52 = vpack.c.bf16 %v5363_v13, %v5362_v59  ;;  %v11986_v8 = vsel %vm5523_vm0, %v7799_v36, 0  ;;  %16681 = vst [vmem:[#allocation164_spill] sm:$0xff] %v11994_v46  ;;  %v16683_v2 = vld [vmem:[#allocation174_spill] sm:$0xff]  ;;  %v16689_v59 = vld [vmem:[#allocation187_spill] sm:$0xff]  ;;  %v12026_v36 = vld [vmem:[%s8087_s12 + $0xb0] sm:$0xff] }
 0x25e   : > { %v4521_v1 = vadd.f32 %v4233_v9, %v4089_v42  ;;  %v2304_v39 = vmul.f32 %v11989_v60, %v10237_v56  ;;  %v2305_v40 = vmul.f32 %v11994_v46, %v10237_v56  ;;  %v16682_v42 = vld [vmem:[#allocation170_spill] sm:$0xff]  ;;  %v2485_v9 = vmul.f32 %v16397_v19, %v16683_v2  ;;  %16693 = vst [vmem:[#allocation81_spill] sm:$0xff] %v12026_v36  ;;  %v16699_v46 = vld [vmem:[#allocation201_spill] sm:$0xff] }
 0x25f   : > { %v4664_v55 = vadd.f32 %v4520_v7, %v4376_v35  ;;  %v2484_v30 = vmul.f32 %v16397_v19, %v16682_v42  ;;  %7204 = vmatprep.mubr.msk.bf16.mxu0 %vm1041_vm3, %v5462_v52  ;;  %v2664_v14 = vmul.f32 %v16399_v53, %v16684_v27  ;;  %v16685_v26 = vld [vmem:[#allocation182_spill] sm:$0xff]  ;;  %v2844_v31 = vmul.f32 %v11896_v41, %v16401_v37  ;;  %v16691_v7 = vld [vmem:[#allocation159_spill] sm:$0xff]  ;;  %v16692_v52 = vld [vmem:[#allocation56_spill] sm:$0xff] }
 0x260   : > { %v4665_v33 = vadd.f32 %v4521_v1, %v4377_v43  ;;  %v2665_v28 = vmul.f32 %v16399_v53, %v16685_v26  ;;  %v2845_v45 = vmul.f32 %v11901_v25, %v16401_v37  ;;  %v3024_v16 = vmul.f32 %v16486_v38, %v16651_v21  ;;  %v16687_v13 = vld [vmem:[#allocation150_spill] sm:$0xff]  ;;  %v12020_v43 = vld [vmem:[%s8087_s12 + $0xa8] sm:$0xff] }
 0x261   : > { %v4808_v63 = vadd.f32 %v4664_v55, %v3656_v48  ;;  %v3025_v0 = vmul.f32 %v16486_v38, %v16686_v24  ;;  %v16688_v15 = vld [vmem:[#allocation158_spill] sm:$0xff]  ;;  %16690 = vst [vmem:[#allocation8_spill] sm:$0xff] %v12020_v43  ;;  %v3384_v48 = vmul.f32 %v12020_v43, %v16691_v7  ;;  %v3385_v55 = vmul.f32 %v12026_v36, %v16691_v7  ;;  %v16697_v27 = vld [vmem:[#allocation199_spill] sm:$0xff] }
 0x262   : > { %v4809_v34 = vadd.f32 %v4665_v33, %v3657_v18  ;;  %v3204_v61 = vmul.f32 %v16688_v15, %v16687_v13  ;;  %v3205_v35 = vmul.f32 %v16688_v15, %v16689_v59  ;;  %v16695_v18 = vld [vmem:[#allocation160_spill] sm:$0xff]  ;;  %v16696_v24 = vld [vmem:[#allocation190_spill] sm:$0xff]  ;;  %v3889_v10 = vadd.f32 %v2485_v9, %v2305_v40 }
 0x263   : > { %v4988_v1 = vadd.f32 %v16692_v52, %v4808_v63  ;;  %v3564_v33 = vmul.f32 %v16695_v18, %v16694_v54  ;;  %v3565_v26 = vmul.f32 %v16695_v18, %v16696_v24  ;;  %v16698_v2 = vld [vmem:[#allocation50_spill] sm:$0xff]  ;;  %v3888_v63 = vadd.f32 %v2484_v30, %v2304_v39  ;;  %v16702_v39 = vld [vmem:[#allocation192_spill] sm:$0xff] }
 0x264   : > { %v4989_v59 = vadd.f32 %v16692_v52, %v4809_v34  ;;  %v2124_v42 = vmul.f32 %v16698_v2, %v16697_v27  ;;  %v16700_v60 = vld [vmem:[#allocation214_spill] sm:$0xff]  ;;  %v4032_v21 = vadd.f32 %v2844_v31, %v2664_v14  ;;  %v4033_v25 = vadd.f32 %v2845_v45, %v2665_v28  ;;  %v16701_v2 = vld [vmem:[#allocation191_spill] sm:$0xff]  ;;  %v12047_v14 = vld [vmem:[%s8087_s12 + $0x30] sm:$0xff] }
 0x265   : > { %v12039_v58 = vmul.f32 %v16700_v60, %v16699_v46  ;;  %v5132_v13 = vmax.f32 %v4988_v1, 0.0  ;;  %v4176_v51 = vadd.f32 %v3204_v61, %v3024_v16  ;;  %v4177_v3 = vadd.f32 %v3205_v35, %v3025_v0  ;;  %16703 = vst [vmem:[#allocation199_spill] sm:$0xff] %v12047_v14  ;;  %v12052_v31 = vld [vmem:[%s8087_s12 + $0x38] sm:$0xff]  ;;  %v16708_v16 = vld [vmem:[#allocation94_spill] sm:$0xff] }
 0x266   : > { %v5133_v41 = vmax.f32 %v4989_v59, 0.0  ;;  %v4320_v24 = vadd.f32 %v3564_v33, %v3384_v48  ;;  %v4321_v34 = vadd.f32 %v3565_v26, %v3385_v55  ;;  %v4464_v52 = vadd.f32 %v4032_v21, %v3888_v63  ;;  %16704 = vst [vmem:[#allocation201_spill] sm:$0xff] %v12052_v31  ;;  %v16705_v21 = vld [vmem:[#allocation83_spill] sm:$0xff]  ;;  %v16709_v35 = vld [vmem:[#allocation73_spill] sm:$0xff]  ;;  %v16710_v1 = vld [vmem:[#allocation74_spill] sm:$0xff] }
 0x267   : > { %v5276_v18 = vmul.f32 %v5132_v13, %v2036_v44  ;;  %v4465_v7 = vadd.f32 %v4033_v25, %v3889_v10  ;;  %v3744_v46 = vmul.f32 %v16499_v50, %v16701_v2  ;;  %v3745_v40 = vmul.f32 %v16499_v50, %v16702_v39  ;;  %v16706_v44 = vld [vmem:[#allocation85_spill] sm:$0xff]  ;;  %v12084_v63 = vld [vmem:[%s8087_s12 + $0x68] sm:$0xff] }
 0x268   : > { %v5277_v27 = vmul.f32 %v5133_v41, %v11973_v22  ;;  %v4608_v30 = vadd.f32 %v4320_v24, %v4176_v51  ;;  %v4609_v9 = vadd.f32 %v4321_v34, %v4177_v3  ;;  %v2218_v28 = vmul.f32 %v12047_v14, %v11673_v49  ;;  %v16707_v3 = vld [vmem:[#allocation93_spill] sm:$0xff]  ;;  %16712 = vst [vmem:[#allocation249_spill] sm:$0xff] %v12084_v63 }
 0x269   : > { %v2219_v25 = vmul.f32 %v12052_v31, %v11673_v49  ;;  %v2398_v41 = vmul.f32 %v11677_v5, %v16705_v21  ;;  %v2399_v51 = vmul.f32 %v11677_v5, %v16706_v44  ;;  %v2578_v26 = vmul.f32 %v11683_v17, %v16707_v3 }
 0x26a   : > { %v5419_v10 = vpack.c.bf16 %v5277_v27, %v5276_v18  ;;  %v4752_v22 = vadd.f32 %v4608_v30, %v4464_v52  ;;  %v4753_v45 = vadd.f32 %v4609_v9, %v4465_v7  ;;  %v2579_v24 = vmul.f32 %v11683_v17, %v16708_v16  ;;  %v12079_v18 = vld [vmem:[%s8087_s12 + $0x60] sm:$0xff]  ;;  %v16714_v30 = vld [vmem:[#allocation136_spill] sm:$0xff] }
 0x26b   : > { %v2758_v0 = vmul.f32 %v11956_v4, %v11687_v12  ;;  %v2759_v13 = vmul.f32 %v11963_v6, %v11687_v12  ;;  %v2938_v59 = vmul.f32 %v11782_v57, %v16671_v11  ;;  %v2939_v48 = vmul.f32 %v11782_v57, %v16709_v35  ;;  %16711 = vst [vmem:[#allocation248_spill] sm:$0xff] %v12079_v18  ;;  %v16718_v35 = vld [vmem:[#allocation137_spill] sm:$0xff]  ;;  %v16719_v4 = vld [vmem:[#allocation102_spill] sm:$0xff] }
 0x26c   : > { %7125 = vmatmul.mubr.msk.bf16.vlgmr.msra.gmra.mrb[0].mxu1 %vm1041_vm3, %v5419_v10  ;;  %v4896_v61 = vadd.f32 %v4752_v22, %v3744_v46  ;;  %v3118_v7 = vmul.f32 %v11786_v32, %v16678_v23  ;;  %v4897_v52 = vadd.f32 %v4753_v45, %v3745_v40  ;;  %v3119_v55 = vmul.f32 %v11786_v32, %v16710_v1  ;;  %v16713_v46 = vld [vmem:[#allocation107_spill] sm:$0xff]  ;;  %v16716_v10 = vld [vmem:[#allocation101_spill] sm:$0xff] }
 0x26d   : > { %7141 = vmatpush3.bf16.msra.mxu1 %v11986_v8  ;;  %v3298_v33 = vmul.f32 %v12079_v18, %v11795_v20  ;;  %v3299_v34 = vmul.f32 %v12084_v63, %v11795_v20  ;;  %v12091_v9 = vmul.f32 %v16714_v30, %v16713_v46  ;;  %v16715_v8 = vld [vmem:[#allocation99_spill] sm:$0xff]  ;;  %v3479_v22 = vmul.f32 %v16672_v62, %v16716_v10  ;;  %v16717_v1 = vld [vmem:[#allocation109_spill] sm:$0xff] }
 0x26e   : > { %v5076_v27 = vadd.f32 %v16669_v29, %v4896_v61  ;;  %v3478_v40 = vmul.f32 %v16672_v62, %v16715_v8  ;;  %v5077_v45 = vadd.f32 %v16669_v29, %v4897_v52  ;;  %v2039_v16 = vmul.f32 %v16718_v35, %v16717_v1 }
 0x26f   : > { %v3802_v3 = vadd.f32 %v2398_v41, %v2218_v28  ;;  %v3803_v44 = vadd.f32 %v2399_v51, %v2219_v25  ;;  %v3946_v61 = vadd.f32 %v2758_v0, %v2578_v26  ;;  %v3947_v31 = vadd.f32 %v2759_v13, %v2579_v24  ;;  %v16720_v28 = vld [vmem:[#allocation103_spill] sm:$0xff]  ;;  %v12106_v26 = vld [vmem:[%s8087_s12 + $0x90] sm:$0xff]  ;;  %v12111_v0 = vld [vmem:[%s8087_s12 + $0x98] sm:$0xff] }
 0x270   : > { %v5220_v21 = vmax.f32 %v5076_v27, 0.0  ;;  %v4090_v46 = vadd.f32 %v3118_v7, %v2938_v59  ;;  %v5221_v30 = vmax.f32 %v5077_v45, 0.0  ;;  %v4091_v14 = vadd.f32 %v3119_v55, %v2939_v48  ;;  %16721 = vst [vmem:[#allocation107_spill] sm:$0xff] %v12106_v26  ;;  %16722 = vst [vmem:[#allocation109_spill] sm:$0xff] %v12111_v0  ;;  %v16726_v59 = vld [vmem:[#allocation203_spill] sm:$0xff]  ;;  %v12137_v45 = vld [vmem:[%s8087_s12 + $0xc0] sm:$0xff] }
 0x271   : > { %v4234_v23 = vadd.f32 %v3478_v40, %v3298_v33  ;;  %v4235_v11 = vadd.f32 %v3479_v22, %v3299_v34  ;;  %v3658_v10 = vmul.f32 %v11845_v47, %v16719_v4  ;;  %v4378_v52 = vadd.f32 %v3946_v61, %v3802_v3  ;;  %v16728_v40 = vld [vmem:[#allocation189_spill] sm:$0xff]  ;;  %16729 = vst [vmem:[#allocation250_spill] sm:$0xff] %v12137_v45  ;;  %v16730_v61 = vld [vmem:[#allocation159_spill] sm:$0xff] }
 0x272   : > { %v5364_v6 = vmul.f32 %v5220_v21, %v2124_v42  ;;  %v4379_v39 = vadd.f32 %v3947_v31, %v3803_v44  ;;  %v5365_v1 = vmul.f32 %v5221_v30, %v12039_v58  ;;  %v3659_v25 = vmul.f32 %v11845_v47, %v16720_v28  ;;  %v16723_v21 = vld [vmem:[#allocation155_spill] sm:$0xff]  ;;  %v16724_v44 = vld [vmem:[#allocation156_spill] sm:$0xff] }
 0x273   : > { %v4522_v41 = vadd.f32 %v4234_v23, %v4090_v46  ;;  %v4523_v51 = vadd.f32 %v4235_v11, %v4091_v14  ;;  %v2306_v24 = vmul.f32 %v12106_v26, %v10237_v56  ;;  %v2307_v42 = vmul.f32 %v12111_v0, %v10237_v56  ;;  %v16725_v14 = vld [vmem:[#allocation200_spill] sm:$0xff] }
 0x274   : > { %v2486_v31 = vmul.f32 %v16397_v19, %v16723_v21  ;;  %v2487_v58 = vmul.f32 %v16397_v19, %v16724_v44  ;;  %v5463_v3 = vpack.c.bf16 %v5365_v1, %v5364_v6  ;;  %v2666_v13 = vmul.f32 %v16399_v53, %v16725_v14  ;;  %v16732_v1 = vld [vmem:[#allocation208_spill] sm:$0xff] }
 0x275   : > { %v4666_v11 = vadd.f32 %v4522_v41, %v4378_v52  ;;  %v4667_v23 = vadd.f32 %v4523_v51, %v4379_v39  ;;  %v2667_v48 = vmul.f32 %v16399_v53, %v16726_v59  ;;  %v2846_v7 = vmul.f32 %v12020_v43, %v16401_v37  ;;  %v16727_v39 = vld [vmem:[#allocation186_spill] sm:$0xff]  ;;  %v12142_v52 = vld [vmem:[%s8087_s12 + $0xc8] sm:$0xff]  ;;  %v16734_v51 = vld [vmem:[#allocation56_spill] sm:$0xff] }
 0x276   : > { %v2847_v55 = vmul.f32 %v12026_v36, %v16401_v37  ;;  %v3026_v33 = vmul.f32 %v16486_v38, %v16694_v54  ;;  %7205 = vmatmul.mubr.msk.bf16.gmra.mrb[8].mxu0 %vm1041_vm3, %v5463_v3  ;;  %v3027_v27 = vmul.f32 %v16486_v38, %v16727_v39  ;;  %v3206_v30 = vmul.f32 %v16688_v15, %v16701_v2  ;;  %v16736_v28 = vld [vmem:[#allocation16_spill] sm:$0xff] }
 0x277   : > { %v4810_v6 = vadd.f32 %v4666_v11, %v3658_v10  ;;  %v4811_v34 = vadd.f32 %v4667_v23, %v3659_v25  ;;  %v3207_v22 = vmul.f32 %v16688_v15, %v16728_v40  ;;  %v3386_v46 = vmul.f32 %v12137_v45, %v16730_v61  ;;  %16731 = vst [vmem:[#allocation251_spill] sm:$0xff] %v12142_v52  ;;  %v16733_v25 = vld [vmem:[#allocation160_spill] sm:$0xff]  ;;  %v16735_v23 = vld [vmem:[#allocation218_spill] sm:$0xff]  ;;  %v16737_v40 = vld [vmem:[#allocation211_spill] sm:$0xff] }
 0x278   : > { %v3387_v10 = vmul.f32 %v12142_v52, %v16730_v61  ;;  %v3566_v41 = vmul.f32 %v16733_v25, %v16732_v1  ;;  %v2126_v35 = vmul.f32 %v16736_v28, %v16735_v23  ;;  %v3567_v39 = vmul.f32 %v16733_v25, %v16737_v40  ;;  %v16738_v59 = vld [vmem:[#allocation220_spill] sm:$0xff]  ;;  %v16740_v28 = vld [vmem:[#allocation179_spill] sm:$0xff] }
 0x279   : > { %v4990_v3 = vadd.f32 %v16734_v51, %v4810_v6  ;;  %v4991_v11 = vadd.f32 %v16734_v51, %v4811_v34  ;;  %v16739_v14 = vld [vmem:[#allocation36_spill] sm:$0xff]  ;;  %v3890_v21 = vadd.f32 %v2486_v31, %v2306_v24  ;;  %v3891_v0 = vadd.f32 %v2487_v58, %v2307_v42  ;;  %v16742_v58 = vld [vmem:[#allocation9_spill] sm:$0xff] }
 0x27a   : > { %v2127_v44 = vmul.f32 %v16739_v14, %v16738_v59  ;;  %v4034_v26 = vadd.f32 %v2846_v7, %v2666_v13  ;;  %v4035_v60 = vadd.f32 %v2847_v55, %v2667_v48  ;;  %v4178_v36 = vadd.f32 %v3206_v30, %v3026_v33  ;;  %v16741_v15 = vld [vmem:[#allocation180_spill] sm:$0xff]  ;;  %v16743_v48 = vld [vmem:[#allocation10_spill] sm:$0xff] }
 0x27b   : > { %v5134_v2 = vmax.f32 %v4990_v3, 0.0  ;;  %v5135_v54 = vmax.f32 %v4991_v11, 0.0  ;;  %v4179_v43 = vadd.f32 %v3207_v22, %v3027_v27  ;;  %v4322_v6 = vadd.f32 %v3566_v41, %v3386_v46  ;;  %v16748_v27 = vld [vmem:[#allocation97_spill] sm:$0xff]  ;;  %v16751_v3 = vld [vmem:[#allocation14_spill] sm:$0xff] }
 0x27c   : > { %v4323_v61 = vadd.f32 %v3567_v39, %v3387_v10  ;;  %v4466_v34 = vadd.f32 %v4034_v26, %v3890_v21  ;;  %v3746_v40 = vmul.f32 %v16499_v50, %v16740_v28  ;;  %v4467_v25 = vadd.f32 %v4035_v60, %v3891_v0  ;;  %v16744_v26 = vld [vmem:[#allocation106_spill] sm:$0xff]  ;;  %v16749_v10 = vld [vmem:[#allocation100_spill] sm:$0xff]  ;;  %v16750_v41 = vld [vmem:[#allocation13_spill] sm:$0xff] }
 0x27d   : > { %v5278_v51 = vmul.f32 %v5134_v2, %v12091_v9  ;;  %v5279_v23 = vmul.f32 %v5135_v54, %v2039_v16  ;;  %v3747_v24 = vmul.f32 %v16499_v50, %v16741_v15  ;;  %v4610_v42 = vadd.f32 %v4322_v6, %v4178_v36  ;;  %v16745_v54 = vld [vmem:[#allocation108_spill] sm:$0xff]  ;;  %v16746_v0 = vld [vmem:[#allocation110_spill] sm:$0xff]  ;;  %v16752_v6 = vld [vmem:[#allocation123_spill] sm:$0xff] }
 0x27e   : > { %v4611_v31 = vadd.f32 %v4323_v61, %v4179_v43  ;;  %v2220_v13 = vmul.f32 %v16742_v58, %v11673_v49  ;;  %v2221_v7 = vmul.f32 %v16743_v48, %v11673_v49  ;;  %v2400_v2 = vmul.f32 %v11677_v5, %v16744_v26  ;;  %v16747_v36 = vld [vmem:[#allocation120_spill] sm:$0xff]  ;;  %v16756_v48 = vld [vmem:[#allocation133_spill] sm:$0xff] }
 0x27f   : > { %v5420_v59 = vpack.c.bf16 %v5279_v23, %v5278_v51  ;;  %v2401_v16 = vmul.f32 %v11677_v5, %v16745_v54  ;;  %v4754_v9 = vadd.f32 %v4610_v42, %v4466_v34  ;;  %v2580_v21 = vmul.f32 %v11683_v17, %v16746_v0  ;;  %v16753_v23 = vld [vmem:[#allocation124_spill] sm:$0xff] }
 0x280   : > { %v4755_v60 = vadd.f32 %v4611_v31, %v4467_v25  ;;  %v2581_v43 = vmul.f32 %v11683_v17, %v16747_v36  ;;  %v2760_v55 = vmul.f32 %v12079_v18, %v11687_v12  ;;  %v2761_v33 = vmul.f32 %v12084_v63, %v11687_v12  ;;  %v16754_v31 = vld [vmem:[#allocation89_spill] sm:$0xff]  ;;  %v16755_v58 = vld [vmem:[#allocation152_spill] sm:$0xff]  ;;  %v16758_v63 = vld [vmem:[#allocation130_spill] sm:$0xff] }
 0x281   : > { %7128 = vmatprep.mubr.msk.bf16.mxu1 %vm1041_vm3, %v5420_v59  ;;  %v2940_v39 = vmul.f32 %v11782_v57, %v16715_v8  ;;  %v2941_v30 = vmul.f32 %v11782_v57, %v16748_v27  ;;  %v4898_v22 = vadd.f32 %v4754_v9, %v3746_v40  ;;  %v3120_v46 = vmul.f32 %v11786_v32, %v16719_v4  ;;  %v16757_v9 = vld [vmem:[#allocation153_spill] sm:$0xff] }
 0x282   : > { %v4899_v61 = vadd.f32 %v4755_v60, %v3747_v24  ;;  %v3121_v25 = vmul.f32 %v11786_v32, %v16749_v10  ;;  %v3300_v51 = vmul.f32 %v16750_v41, %v11795_v20  ;;  %v3301_v11 = vmul.f32 %v16751_v3, %v11795_v20 }
 0x283   : > { %v3480_v34 = vmul.f32 %v16672_v62, %v16752_v6  ;;  %v3481_v42 = vmul.f32 %v16672_v62, %v16753_v23  ;;  %v5078_v40 = vadd.f32 %v16669_v29, %v4898_v22  ;;  %v12198_v59 = vmul.f32 %v16755_v58, %v16754_v31 }
 0x284   : > { %v5079_v24 = vadd.f32 %v16669_v29, %v4899_v61  ;;  %v12202_v60 = vmul.f32 %v16757_v9, %v16756_v48  ;;  %v3804_v41 = vadd.f32 %v2400_v2, %v2220_v13  ;;  %v3805_v10 = vadd.f32 %v2401_v16, %v2221_v7  ;;  %v16759_v9 = vld [vmem:[#allocation131_spill] sm:$0xff]  ;;  %v5493_v7 = vld [vmem:[%s14914_s2 + $0x6] sm:$0x3] }
 0x285   : > { %v3948_v27 = vadd.f32 %v2760_v55, %v2580_v21  ;;  %v3949_v36 = vadd.f32 %v2761_v33, %v2581_v43  ;;  %v5222_v0 = vmax.f32 %v5078_v40, 0.0  ;;  %v4092_v23 = vadd.f32 %v3120_v46, %v2940_v39  ;;  %v12212_v21 = vld [vmem:[%s8087_s12 + $0xa8] sm:$0xff]  ;;  %7399 = vmatprep.subr.msk.bf16.mxu1 %vm5523_vm0, %v5493_v7  ;;  %v16763_v55 = vld [vmem:[#allocation221_spill] sm:$0xff]  ;;  %v16764_v33 = vld [vmem:[#allocation226_spill] sm:$0xff] }
 0x286   : > { %v5223_v54 = vmax.f32 %v5079_v24, 0.0  ;;  %v4093_v22 = vadd.f32 %v3121_v25, %v2941_v30  ;;  %v4236_v26 = vadd.f32 %v3480_v34, %v3300_v51  ;;  %v4237_v61 = vadd.f32 %v3481_v42, %v3301_v11  ;;  %16760 = vst [vmem:[#allocation218_spill] sm:$0xff] %v12212_v21  ;;  %v16765_v46 = vld [vmem:[#allocation228_spill] sm:$0xff]  ;;  %v12244_v40 = vld [vmem:[%s8087_s12 + $0xd8] sm:$0xff]  ;;  %v16770_v24 = vld [vmem:[#allocation159_spill] sm:$0xff] }
 0x287   : > { %v4380_v4 = vadd.f32 %v3948_v27, %v3804_v41  ;;  %v4381_v8 = vadd.f32 %v3949_v36, %v3805_v10  ;;  %v5366_v31 = vmul.f32 %v5222_v0, %v2126_v35  ;;  %v3660_v48 = vmul.f32 %v11845_v47, %v16758_v63  ;;  %v12217_v36 = vld [vmem:[%s8087_s12 + $0xb0] sm:$0xff]  ;;  %16769 = vst [vmem:[#allocation9_spill] sm:$0xff] %v12244_v40  ;;  %v16772_v41 = vld [vmem:[#allocation246_spill] sm:$0xff]  ;;  %v16776_v7 = vld [vmem:[#allocation231_spill] sm:$0xff] }
 0x288   : > { %v5367_v58 = vmul.f32 %v5223_v54, %v2127_v44  ;;  %v3661_v13 = vmul.f32 %v11845_v47, %v16759_v9  ;;  %v4524_v2 = vadd.f32 %v4236_v26, %v4092_v23  ;;  %v4525_v16 = vadd.f32 %v4237_v61, %v4093_v22  ;;  %16761 = vst [vmem:[#allocation220_spill] sm:$0xff] %v12217_v36  ;;  %v16762_v54 = vld [vmem:[#allocation219_spill] sm:$0xff]  ;;  %v16766_v51 = vld [vmem:[#allocation204_spill] sm:$0xff]  ;;  %v12253_v61 = vld [vmem:[%s8087_s12 + $0xe0] sm:$0xff] }
 0x289   : > { %v2308_v43 = vmul.f32 %v12212_v21, %v10237_v56  ;;  %v2309_v35 = vmul.f32 %v12217_v36, %v10237_v56  ;;  %v2488_v0 = vmul.f32 %v16397_v19, %v16762_v54  ;;  %v2489_v26 = vmul.f32 %v16397_v19, %v16763_v55  ;;  %16773 = vst [vmem:[#allocation10_spill] sm:$0xff] %v12253_v61  ;;  %v16828_v54 = vld [vmem:[#allocation34_spill] sm:$0xff]  ;;  %v16831_v36 = vld [vmem:[#allocation65_spill] sm:$0xff]  ;;  %v16832_v21 = vld [vmem:[#allocation80_spill] sm:$0xff] }
 0x28a   : > { %v5464_v44 = vpack.c.bf16 %v5367_v58, %v5366_v31  ;;  %v2668_v39 = vmul.f32 %v16399_v53, %v16764_v33  ;;  %v4668_v27 = vadd.f32 %v4524_v2, %v4380_v4  ;;  %v4669_v30 = vadd.f32 %v4525_v16, %v4381_v8  ;;  %v16767_v4 = vld [vmem:[#allocation158_spill] sm:$0xff]  ;;  %v16777_v16 = vld [vmem:[#allocation56_spill] sm:$0xff] }
 0x28b   : > { %v2669_v10 = vmul.f32 %v16399_v53, %v16765_v46  ;;  %v2848_v56 = vmul.f32 %v12137_v45, %v16401_v37  ;;  %v2849_v25 = vmul.f32 %v12142_v52, %v16401_v37  ;;  %v3028_v19 = vmul.f32 %v16486_v38, %v16732_v1  ;;  %v16768_v53 = vld [vmem:[#allocation209_spill] sm:$0xff]  ;;  %v16771_v37 = vld [vmem:[#allocation7_spill] sm:$0xff]  ;;  %v16774_v31 = vld [vmem:[#allocation230_spill] sm:$0xff] }
 0x28c   : > { %7208 = vmatprep.mubr.msk.bf16.mxu0 %vm1041_vm3, %v5464_v44  ;;  %v3029_v11 = vmul.f32 %v16486_v38, %v16766_v51  ;;  %v3208_v8 = vmul.f32 %v16767_v4, %v16740_v28  ;;  %v4812_v34 = vadd.f32 %v4668_v27, %v3660_v48  ;;  %v4813_v23 = vadd.f32 %v4669_v30, %v3661_v13  ;;  %v16775_v48 = vld [vmem:[#allocation160_spill] sm:$0xff]  ;;  %v16778_v30 = vld [vmem:[#allocation233_spill] sm:$0xff] }
 0x28d   : > { %v3209_v42 = vmul.f32 %v16767_v4, %v16768_v53  ;;  %v3388_v58 = vmul.f32 %v12244_v40, %v16770_v24  ;;  %v12250_v22 = vmul.f32 %v16772_v41, %v16771_v37  ;;  %v3389_v38 = vmul.f32 %v12253_v61, %v16770_v24  ;;  %v16779_v4 = vld [vmem:[#allocation247_spill] sm:$0xff]  ;;  %v16833_v52 = vld [vmem:[#allocation37_spill] sm:$0xff] }
 0x28e   : > { %v3568_v13 = vmul.f32 %v16775_v48, %v16774_v31  ;;  %v3569_v2 = vmul.f32 %v16775_v48, %v16776_v7  ;;  %v4992_v44 = vadd.f32 %v16777_v16, %v4812_v34  ;;  %v4993_v27 = vadd.f32 %v16777_v16, %v4813_v23  ;;  %v16780_v31 = vld [vmem:[#allocation196_spill] sm:$0xff] }
 0x28f   : > { %v2129_v9 = vmul.f32 %v16779_v4, %v16778_v30  ;;  %v3892_v37 = vadd.f32 %v2488_v0, %v2308_v43  ;;  %v3893_v41 = vadd.f32 %v2489_v26, %v2309_v35  ;;  %v4036_v40 = vadd.f32 %v2848_v56, %v2668_v39  ;;  %v16781_v43 = vld [vmem:[#allocation198_spill] sm:$0xff]  ;;  %v16782_v39 = vld [vmem:[#allocation17_spill] sm:$0xff]  ;;  %v16783_v56 = vld [vmem:[#allocation172_spill] sm:$0xff] }
 0x290   : > { %v4037_v53 = vadd.f32 %v2849_v25, %v2669_v10  ;;  %v4180_v51 = vadd.f32 %v3208_v8, %v3028_v19  ;;  %v5136_v46 = vmax.f32 %v4992_v44, 0.0  ;;  %v5137_v24 = vmax.f32 %v4993_v27, 0.0  ;;  %v16784_v19 = vld [vmem:[#allocation139_spill] sm:$0xff]  ;;  %v16790_v27 = vld [vmem:[#allocation126_spill] sm:$0xff]  ;;  %v16827_v4 = vld [vmem:[#allocation33_spill] sm:$0xff] }
 0x291   : > { %v4181_v61 = vadd.f32 %v3209_v42, %v3029_v11  ;;  %v4324_v33 = vadd.f32 %v3568_v13, %v3388_v58  ;;  %v3748_v55 = vmul.f32 %v16499_v50, %v16780_v31  ;;  %v4325_v48 = vadd.f32 %v3569_v2, %v3389_v38  ;;  %v16785_v42 = vld [vmem:[#allocation141_spill] sm:$0xff]  ;;  %v16789_v13 = vld [vmem:[#allocation118_spill] sm:$0xff] }
 0x292   : > { %v4468_v7 = vadd.f32 %v4036_v40, %v3892_v37  ;;  %v4469_v34 = vadd.f32 %v4037_v53, %v3893_v41  ;;  %v5280_v23 = vmul.f32 %v5136_v46, %v12198_v59  ;;  %v5281_v30 = vmul.f32 %v5137_v24, %v12202_v60  ;;  %v16786_v60 = vld [vmem:[#allocation144_spill] sm:$0xff]  ;;  %v12284_v40 = vld [vmem:[%s8087_s12 + $0x78] sm:$0xff] }
 0x293   : > { %v3749_v35 = vmul.f32 %v16499_v50, %v16781_v43  ;;  %v4612_v0 = vadd.f32 %v4324_v33, %v4180_v51  ;;  %v4613_v26 = vadd.f32 %v4325_v48, %v4181_v61  ;;  %v2222_v10 = vmul.f32 %v16782_v39, %v11673_v49  ;;  %v16787_v33 = vld [vmem:[#allocation146_spill] sm:$0xff]  ;;  %16788 = vst [vmem:[#allocation13_spill] sm:$0xff] %v12284_v40  ;;  %v16791_v24 = vld [vmem:[#allocation244_spill] sm:$0xff] }
 0x294   : > { %v2223_v25 = vmul.f32 %v16783_v56, %v11673_v49  ;;  %v2402_v11 = vmul.f32 %v11677_v5, %v16784_v19  ;;  %v5421_v8 = vpack.c.bf16 %v5281_v30, %v5280_v23  ;;  %v2403_v59 = vmul.f32 %v11677_v5, %v16785_v42  ;;  %v16793_v23 = vld [vmem:[#allocation162_spill] sm:$0xff]  ;;  %v16794_v30 = vld [vmem:[#allocation193_spill] sm:$0xff] }
 0x295   : > { %v4756_v53 = vadd.f32 %v4612_v0, %v4468_v7  ;;  %v2582_v46 = vmul.f32 %v11683_v17, %v16786_v60  ;;  %v4757_v50 = vadd.f32 %v4613_v26, %v4469_v34  ;;  %v2583_v51 = vmul.f32 %v11683_v17, %v16787_v33  ;;  %v16795_v26 = vld [vmem:[#allocation148_spill] sm:$0xff]  ;;  %v16796_v56 = vld [vmem:[#allocation149_spill] sm:$0xff]  ;;  %v16826_v43 = vld [vmem:[#allocation242_spill] sm:$0xff] }
 0x296   : > { %v2762_v58 = vmul.f32 %v12284_v40, %v11687_v12  ;;  %v2763_v41 = vmul.f32 %v16751_v3, %v11687_v12  ;;  %7129 = vmatmul.mubr.msk.bf16.gmra.mrb[4].mxu1 %vm1041_vm3, %v5421_v8  ;;  %v2942_v38 = vmul.f32 %v11782_v57, %v16752_v6  ;;  %v2943_v7 = vmul.f32 %v11782_v57, %v16789_v13  ;;  %v16792_v3 = vld [vmem:[#allocation245_spill] sm:$0xff]  ;;  %v727_v40 = vld [vmem:[%s14913_s1 + $0x60] sm:$0xff] }
 0x297   : > { %v4900_v61 = vadd.f32 %v4756_v53, %v3748_v55  ;;  %v3122_v2 = vmul.f32 %v11786_v32, %v16758_v63  ;;  %v4901_v44 = vadd.f32 %v4757_v50, %v3749_v35  ;;  %v3123_v37 = vmul.f32 %v11786_v32, %v16790_v27  ;;  %v16797_v53 = vld [vmem:[#allocation163_spill] sm:$0xff]  ;;  %v16798_v50 = vld [vmem:[#allocation194_spill] sm:$0xff] }
 0x298   : > { %v3302_v48 = vmul.f32 %v16791_v24, %v11795_v20  ;;  %v3303_v34 = vmul.f32 %v16792_v3, %v11795_v20  ;;  %v2042_v0 = vmul.f32 %v16794_v30, %v16793_v23  ;;  %v3482_v39 = vmul.f32 %v16672_v62, %v16795_v26 }
 0x299   : > { %v5080_v55 = vadd.f32 %v16669_v29, %v4900_v61  ;;  %v3483_v35 = vmul.f32 %v16672_v62, %v16796_v56  ;;  %v5081_v8 = vadd.f32 %v16669_v29, %v4901_v44  ;;  %v2043_v27 = vmul.f32 %v16798_v50, %v16797_v53  ;;  %v16799_v29 = vld [vmem:[#allocation150_spill] sm:$0xff]  ;;  %v16816_v50 = vld [vmem:[#allocation28_spill] sm:$0xff] }
 0x29a   : > { %v3806_v13 = vadd.f32 %v2402_v11, %v2222_v10  ;;  %v3807_v33 = vadd.f32 %v2403_v59, %v2223_v25  ;;  %v3950_v42 = vadd.f32 %v2762_v58, %v2582_v46  ;;  %v3951_v19 = vadd.f32 %v2763_v41, %v2583_v51  ;;  %v16800_v11 = vld [vmem:[#allocation151_spill] sm:$0xff]  ;;  %v16801_v58 = vld [vmem:[#allocation5_spill] sm:$0xff] }
 0x29b   : > { %v5224_v60 = vmax.f32 %v5080_v55, 0.0  ;;  %v4094_v61 = vadd.f32 %v3122_v2, %v2942_v38  ;;  %v5225_v63 = vmax.f32 %v5081_v8, 0.0  ;;  %v4095_v6 = vadd.f32 %v3123_v37, %v2943_v7  ;;  %v16802_v38 = vld [vmem:[#allocation4_spill] sm:$0xff]  ;;  %v16803_v2 = vld [vmem:[#allocation35_spill] sm:$0xff] }
 0x29c   : > { %v4238_v23 = vadd.f32 %v3482_v39, %v3302_v48  ;;  %v4239_v30 = vadd.f32 %v3483_v35, %v3303_v34  ;;  %v3662_v44 = vmul.f32 %v11845_v47, %v16799_v29  ;;  %v4382_v53 = vadd.f32 %v3950_v42, %v3806_v13  ;;  %v16808_v48 = vld [vmem:[#allocation48_spill] sm:$0xff]  ;;  %v16810_v39 = vld [vmem:[#allocation21_spill] sm:$0xff] }
 0x29d   : > { %v5368_v56 = vmul.f32 %v5224_v60, %v12250_v22  ;;  %v4383_v10 = vadd.f32 %v3951_v19, %v3807_v33  ;;  %v5369_v25 = vmul.f32 %v5225_v63, %v2129_v9  ;;  %v3663_v59 = vmul.f32 %v11845_v47, %v16800_v11  ;;  %v16804_v22 = vld [vmem:[#allocation40_spill] sm:$0xff]  ;;  %v16805_v9 = vld [vmem:[#allocation41_spill] sm:$0xff] }
 0x29e   : > { %v4526_v46 = vadd.f32 %v4238_v23, %v4094_v61  ;;  %v4527_v51 = vadd.f32 %v4239_v30, %v4095_v6  ;;  %v12322_v41 = vrot.slane %v727_v40, %v16801_v58  ;;  %v12325_v7 = vrot.slane %v727_v40, %v16802_v38  ;;  %v16807_v6 = vld [vmem:[#allocation116_spill] sm:$0xff] }
 0x29f   : > { %v12328_v37 = vrot.slane %v727_v40, %v16803_v2  ;;  %v12331_v60 = vrot.slane %v727_v40, %v16804_v22  ;;  %v5465_v42 = vpack.c.bf16 %v5369_v25, %v5368_v56  ;;  %v12334_v33 = vrot.slane %v727_v40, %v16805_v9  ;;  %v16809_v55 = vld [vmem:[#allocation20_spill] sm:$0xff]  ;;  %v16823_v22 = vld [vmem:[#allocation30_spill] sm:$0xff] }
 0x2a0   : > { %v4670_v19 = vadd.f32 %v4526_v46, %v4382_v53  ;;  %v4671_v63 = vadd.f32 %v4527_v51, %v4383_v10  ;;  %v2310_v13 = vmul.f32 %v16807_v6, %v12322_v41  ;;  %v2311_v34 = vmul.f32 %v16808_v48, %v12322_v41  ;;  %v16811_v61 = vld [vmem:[#allocation24_spill] sm:$0xff]  ;;  %v16812_v53 = vld [vmem:[#allocation25_spill] sm:$0xff]  ;;  %v16814_v51 = vld [vmem:[#allocation234_spill] sm:$0xff] }
 0x2a1   : > { %16806 = vst [vmem:[#allocation14_spill] sm:$0xff] %v12334_v33  ;;  %v2490_v30 = vmul.f32 %v12325_v7, %v16809_v55  ;;  %v2491_v35 = vmul.f32 %v12325_v7, %v16810_v39  ;;  %7209 = vmatmul.mubr.msk.bf16.gmra.mrb[12].mxu0 %vm1041_vm3, %v5465_v42  ;;  %v2670_v23 = vmul.f32 %v12328_v37, %v16811_v61  ;;  %v16813_v25 = vld [vmem:[#allocation232_spill] sm:$0xff]  ;;  %v16815_v48 = vld [vmem:[#allocation26_spill] sm:$0xff] }
 0x2a2   : > { %v4814_v56 = vadd.f32 %v4670_v19, %v3662_v44  ;;  %v4815_v8 = vadd.f32 %v4671_v63, %v3663_v59  ;;  %v2671_v10 = vmul.f32 %v12328_v37, %v16812_v53  ;;  %v2850_v46 = vmul.f32 %v16813_v25, %v12331_v60  ;;  %v16817_v19 = vld [vmem:[#allocation42_spill] sm:$0xff]  ;;  %v16819_v53 = vld [vmem:[#allocation43_spill] sm:$0xff]  ;;  %v16821_v25 = vld [vmem:[#allocation44_spill] sm:$0xff] }
 0x2a3   : > { %v2851_v6 = vmul.f32 %v16814_v51, %v12331_v60  ;;  %v3030_v11 = vmul.f32 %v12334_v33, %v16815_v48  ;;  %v3031_v42 = vmul.f32 %v12334_v33, %v16816_v50  ;;  %v12360_v63 = vrot.slane %v727_v40, %v16817_v19  ;;  %v7817_v51 = vld [vmem:[%s14913_s1 + $0x68] sm:$0x7]  ;;  %v16824_v38 = vld [vmem:[#allocation32_spill] sm:$0xff] }
 0x2a4   : > { %v4994_v44 = vadd.f32 %v16777_v16, %v4814_v56  ;;  %v4995_v59 = vadd.f32 %v16777_v16, %v4815_v8  ;;  %v12363_v61 = vrot.slane %v727_v40, %v16819_v53  ;;  %v12366_v39 = vrot.slane %v727_v40, %v16821_v25  ;;  %v16825_v40 = vld [vmem:[#allocation241_spill] sm:$0xff] }
 0x2a5   : > { %16818 = vst [vmem:[#allocation89_spill] sm:$0xff] %v12360_v63  ;;  %v12372_v55 = vrot.slane %v7817_v51, %v16801_v58  ;;  %v3894_v50 = vadd.f32 %v2490_v30, %v2310_v13  ;;  %v3895_v56 = vadd.f32 %v2491_v35, %v2311_v34  ;;  %v3210_v19 = vmul.f32 %v12360_v63, %v16823_v22  ;;  %v16829_v35 = vld [vmem:[#allocation64_spill] sm:$0xff] }
 0x2a6   : > { %16820 = vst [vmem:[#allocation133_spill] sm:$0xff] %v12363_v61  ;;  %16822 = vst [vmem:[#allocation158_spill] sm:$0xff] %v12366_v39  ;;  %v5138_v9 = vmax.f32 %v4994_v44, 0.0  ;;  %v5139_v8 = vmax.f32 %v4995_v59, 0.0  ;;  %v3211_v53 = vmul.f32 %v12360_v63, %v16824_v38  ;;  %v3390_v25 = vmul.f32 %v16825_v40, %v12363_v61  ;;  %v16830_v44 = vld [vmem:[#allocation79_spill] sm:$0xff]  ;;  %v16834_v63 = vld [vmem:[#allocation38_spill] sm:$0xff] }
 0x2a7   : > { %v3391_v31 = vmul.f32 %v16826_v43, %v12363_v61  ;;  %v3570_v58 = vmul.f32 %v12366_v39, %v16827_v4  ;;  %v3571_v13 = vmul.f32 %v12366_v39, %v16828_v54  ;;  %v2130_v59 = vmul.f32 %v16830_v44, %v16829_v35  ;;  %v16852_v44 = vld [vmem:[#allocation191_spill] sm:$0xff] }
 0x2a8   : > { %v5282_v34 = vmul.f32 %v5138_v9, %v2042_v0  ;;  %v5283_v30 = vmul.f32 %v5139_v8, %v2043_v27  ;;  %v2131_v38 = vmul.f32 %v16832_v21, %v16831_v36  ;;  %v4038_v18 = vadd.f32 %v2850_v46, %v2670_v23 }
 0x2a9   : > { %v4039_v15 = vadd.f32 %v2851_v6, %v2671_v10  ;;  %v4182_v28 = vadd.f32 %v3210_v19, %v3030_v11  ;;  %v4183_v14 = vadd.f32 %v3211_v53, %v3031_v42  ;;  %v3750_v45 = vmul.f32 %v12372_v55, %v16833_v52  ;;  %v16836_v11 = vld [vmem:[#allocation173_spill] sm:$0xff]  ;;  %v16837_v10 = vld [vmem:[#allocation164_spill] sm:$0xff]  ;;  %v16839_v6 = vld [vmem:[#allocation174_spill] sm:$0xff] }
 0x2aa   : > { %v5422_v1 = vpack.c.bf16 %v5283_v30, %v5282_v34  ;;  %v4326_v16 = vadd.f32 %v3570_v58, %v3390_v25  ;;  %v4327_v61 = vadd.f32 %v3571_v13, %v3391_v31  ;;  %v3751_v0 = vmul.f32 %v12372_v55, %v16834_v63  ;;  %v16838_v58 = vld [vmem:[#allocation170_spill] sm:$0xff]  ;;  %v16842_v25 = vld [vmem:[#allocation184_spill] sm:$0xff]  ;;  %v16843_v13 = vld [vmem:[#allocation187_spill] sm:$0xff] }
 0x2ab   : > { %v4470_v27 = vadd.f32 %v4038_v18, %v3894_v50  ;;  %v4471_v9 = vadd.f32 %v4039_v15, %v3895_v56  ;;  %v12395_v8 = vrot.slane %v7817_v51, %v16803_v2  ;;  %v2224_v53 = vmul.f32 %v16836_v11, %v11673_v49  ;;  %v16840_v15 = vld [vmem:[#allocation178_spill] sm:$0xff] }
 0x2ac   : > { %7132 = vmatprep.mubr.msk.bf16.mxu1 %vm1041_vm3, %v5422_v1  ;;  %v4614_v36 = vadd.f32 %v4326_v16, %v4182_v28  ;;  %v4615_v23 = vadd.f32 %v4327_v61, %v4183_v14  ;;  %v2225_v46 = vmul.f32 %v16837_v10, %v11673_v49  ;;  %v2404_v31 = vmul.f32 %v11677_v5, %v16838_v58  ;;  %v16841_v42 = vld [vmem:[#allocation182_spill] sm:$0xff]  ;;  %v16848_v10 = vld [vmem:[#allocation84_spill] sm:$0xff] }
 0x2ad   : > { %16835 = vst [vmem:[#allocation159_spill] sm:$0xff] %v12395_v8  ;;  %v2405_v18 = vmul.f32 %v11677_v5, %v16839_v6  ;;  %v2584_v50 = vmul.f32 %v11683_v17, %v16840_v15  ;;  %v2585_v1 = vmul.f32 %v11683_v17, %v16841_v42  ;;  %v2764_v16 = vmul.f32 %v16791_v24, %v11687_v12  ;;  %v16850_v15 = vld [vmem:[#allocation188_spill] sm:$0xff] }
 0x2ae   : > { %v4758_v28 = vadd.f32 %v4614_v36, %v4470_v27  ;;  %v4759_v14 = vadd.f32 %v4615_v23, %v4471_v9  ;;  %v2765_v61 = vmul.f32 %v16792_v3, %v11687_v12  ;;  %v2944_v19 = vmul.f32 %v11782_v57, %v16795_v26  ;;  %v16844_v27 = vld [vmem:[#allocation8_spill] sm:$0xff]  ;;  %v16845_v9 = vld [vmem:[#allocation81_spill] sm:$0xff]  ;;  %v16847_v23 = vld [vmem:[#allocation50_spill] sm:$0xff] }
 0x2af   : > { %v2945_v51 = vmul.f32 %v11782_v57, %v16842_v25  ;;  %v3124_v56 = vmul.f32 %v11786_v32, %v16799_v29  ;;  %v3125_v34 = vmul.f32 %v11786_v32, %v16843_v13  ;;  %v3304_v24 = vmul.f32 %v16844_v27, %v11795_v20  ;;  %v16846_v36 = vld [vmem:[#allocation88_spill] sm:$0xff]  ;;  %v16849_v25 = vld [vmem:[#allocation214_spill] sm:$0xff] }
 0x2b0   : > { %v4902_v30 = vadd.f32 %v4758_v28, %v3750_v45  ;;  %v4903_v35 = vadd.f32 %v4759_v14, %v3751_v0  ;;  %v3305_v3 = vmul.f32 %v16845_v9, %v11795_v20  ;;  %v12428_v11 = vmul.f32 %v16847_v23, %v16846_v36  ;;  %v16851_v13 = vld [vmem:[#allocation190_spill] sm:$0xff] }
 0x2b1   : > { %v12432_v42 = vmul.f32 %v16849_v25, %v16848_v10  ;;  %v3484_v6 = vmul.f32 %v16672_v62, %v16850_v15  ;;  %v3485_v45 = vmul.f32 %v16672_v62, %v16851_v13  ;;  %v3808_v14 = vadd.f32 %v2404_v31, %v2224_v53  ;;  %v16853_v13 = vld [vmem:[#allocation192_spill] sm:$0xff] }
 0x2b2   : > { %v5082_v0 = vadd.f32 %v12395_v8, %v4902_v30  ;;  %v5083_v28 = vadd.f32 %v12395_v8, %v4903_v35  ;;  %v3809_v58 = vadd.f32 %v2405_v18, %v2225_v46  ;;  %v3952_v29 = vadd.f32 %v2764_v16, %v2584_v50  ;;  %v12445_v50 = vld [vmem:[%s8087_s12 + $0x18] sm:$0xff]  ;;  %v12450_v16 = vld [vmem:[%s8087_s12 + $0x20] sm:$0xff] }
 0x2b3   : > { %v3953_v36 = vadd.f32 %v2765_v61, %v2585_v1  ;;  %v4096_v23 = vadd.f32 %v3124_v56, %v2944_v19  ;;  %v4097_v26 = vadd.f32 %v3125_v34, %v2945_v51  ;;  %v4240_v63 = vadd.f32 %v3484_v6, %v3304_v24  ;;  %16854 = vst [vmem:[#allocation7_spill] sm:$0xff] %v12445_v50  ;;  %v16856_v19 = vld [vmem:[#allocation19_spill] sm:$0xff]  ;;  %v16858_v24 = vld [vmem:[#allocation29_spill] sm:$0xff] }
 0x2b4   : > { %v5226_v10 = vmax.f32 %v5082_v0, 0.0  ;;  %v5227_v25 = vmax.f32 %v5083_v28, 0.0  ;;  %v4241_v21 = vadd.f32 %v3485_v45, %v3305_v3  ;;  %v3664_v54 = vmul.f32 %v11845_v47, %v16852_v44  ;;  %16855 = vst [vmem:[#allocation160_spill] sm:$0xff] %v12450_v16  ;;  %v16860_v0 = vld [vmem:[#allocation31_spill] sm:$0xff] }
 0x2b5   : > { %v3665_v30 = vmul.f32 %v11845_v47, %v16853_v13  ;;  %v4384_v2 = vadd.f32 %v3952_v29, %v3808_v14  ;;  %v4385_v35 = vadd.f32 %v3953_v36, %v3809_v58  ;;  %v4528_v31 = vadd.f32 %v4240_v63, %v4096_v23  ;;  %v16859_v23 = vld [vmem:[#allocation89_spill] sm:$0xff]  ;;  %v16862_v14 = vld [vmem:[#allocation11_spill] sm:$0xff] }
 0x2b6   : > { %v5370_v53 = vmul.f32 %v5226_v10, %v2130_v59  ;;  %v5371_v46 = vmul.f32 %v5227_v25, %v2131_v38  ;;  %v4529_v18 = vadd.f32 %v4241_v21, %v4097_v26  ;;  %v2312_v1 = vmul.f32 %v12445_v50, %v12322_v41  ;;  %v16857_v26 = vld [vmem:[#allocation27_spill] sm:$0xff] }
 0x2b7   : > { %v2313_v6 = vmul.f32 %v12450_v16, %v12322_v41  ;;  %v2492_v61 = vmul.f32 %v12325_v7, %v16815_v48  ;;  %v2493_v29 = vmul.f32 %v12325_v7, %v16856_v19  ;;  %v4672_v38 = vadd.f32 %v4528_v31, %v4384_v2  ;;  %v16866_v31 = vld [vmem:[#allocation90_spill] sm:$0xff]  ;;  %v16869_v13 = vld [vmem:[#allocation91_spill] sm:$0xff] }
 0x2b8   : > { %v5466_v59 = vpack.c.bf16 %v5371_v46, %v5370_v53  ;;  %v4673_v63 = vadd.f32 %v4529_v18, %v4385_v35  ;;  %v2672_v21 = vmul.f32 %v12328_v37, %v16823_v22  ;;  %v2673_v58 = vmul.f32 %v12328_v37, %v16857_v26  ;;  %v16864_v35 = vld [vmem:[#allocation75_spill] sm:$0xff]  ;;  %v16867_v18 = vld [vmem:[#allocation104_spill] sm:$0xff] }
 0x2b9   : > { %v2852_v25 = vmul.f32 %v16825_v40, %v12331_v60  ;;  %v2853_v51 = vmul.f32 %v16826_v43, %v12331_v60  ;;  %v3032_v56 = vmul.f32 %v12334_v33, %v16827_v4  ;;  %v4816_v34 = vadd.f32 %v4672_v38, %v3664_v54  ;;  %v16861_v40 = vld [vmem:[#allocation133_spill] sm:$0xff]  ;;  %v16863_v43 = vld [vmem:[#allocation12_spill] sm:$0xff] }
 0x2ba   : > { %7214 = vmatprep.mubr.msk.bf16.mxu0 %vm1041_vm3, %v5466_v59  ;;  %v4817_v2 = vadd.f32 %v4673_v63, %v3665_v30  ;;  %v3033_v3 = vmul.f32 %v12334_v33, %v16858_v24  ;;  %v3212_v45 = vmul.f32 %v16859_v23, %v16833_v52  ;;  %v3213_v28 = vmul.f32 %v16859_v23, %v16860_v0  ;;  %v16865_v54 = vld [vmem:[#allocation56_spill] sm:$0xff]  ;;  %v16870_v0 = vld [vmem:[#allocation105_spill] sm:$0xff] }
 0x2bb   : > { %v3392_v36 = vmul.f32 %v16862_v14, %v16861_v40  ;;  %v3393_v10 = vmul.f32 %v16863_v43, %v16861_v40  ;;  %v3572_v53 = vmul.f32 %v12366_v39, %v16864_v35  ;;  %v4996_v30 = vadd.f32 %v16865_v54, %v4816_v34  ;;  %v16868_v38 = vld [vmem:[#allocation76_spill] sm:$0xff] }
 0x2bc   : > { %v4997_v46 = vadd.f32 %v16865_v54, %v4817_v2  ;;  %v2132_v59 = vmul.f32 %v16867_v18, %v16866_v31  ;;  %v3573_v63 = vmul.f32 %v12366_v39, %v16868_v38  ;;  %v2133_v24 = vmul.f32 %v16870_v0, %v16869_v13  ;;  %v16871_v18 = vld [vmem:[#allocation77_spill] sm:$0xff]  ;;  %v16872_v13 = vld [vmem:[#allocation78_spill] sm:$0xff] }
 0x2bd   : > { %v3896_v26 = vadd.f32 %v2492_v61, %v2312_v1  ;;  %v3897_v19 = vadd.f32 %v2493_v29, %v2313_v6  ;;  %v4040_v52 = vadd.f32 %v2852_v25, %v2672_v21  ;;  %v5140_v4 = vmax.f32 %v4996_v30, 0.0  ;;  %v7820_v29 = vld [vmem:[%s14914_s2 + $0xe] sm:$0x3]  ;;  %v16877_v25 = vld [vmem:[#allocation200_spill] sm:$0xff]  ;;  %v16880_v30 = vld [vmem:[#allocation189_spill] sm:$0xff] }
 0x2be   : > { %v5141_v22 = vmax.f32 %v4997_v46, 0.0  ;;  %v4041_v48 = vadd.f32 %v2853_v51, %v2673_v58  ;;  %v4184_v16 = vadd.f32 %v3212_v45, %v3032_v56  ;;  %v4185_v50 = vadd.f32 %v3213_v28, %v3033_v3  ;;  %v16878_v56 = vld [vmem:[#allocation203_spill] sm:$0xff] }
 0x2bf   : > { %v4328_v34 = vadd.f32 %v3572_v53, %v3392_v36  ;;  %v4329_v40 = vadd.f32 %v3573_v63, %v3393_v10  ;;  %v4472_v2 = vadd.f32 %v4040_v52, %v3896_v26  ;;  %v5284_v54 = vmul.f32 %v5140_v4, %v12428_v11  ;;  %v16873_v4 = vld [vmem:[#allocation107_spill] sm:$0xff]  ;;  %v16879_v10 = vld [vmem:[#allocation186_spill] sm:$0xff] }
 0x2c0   : > { %v5285_v31 = vmul.f32 %v5141_v22, %v12432_v42  ;;  %v3752_v38 = vmul.f32 %v12372_v55, %v16871_v18  ;;  %v4473_v39 = vadd.f32 %v4041_v48, %v3897_v19  ;;  %v3753_v1 = vmul.f32 %v12372_v55, %v16872_v13  ;;  %v16874_v22 = vld [vmem:[#allocation109_spill] sm:$0xff]  ;;  %v16875_v26 = vld [vmem:[#allocation155_spill] sm:$0xff]  ;;  %v16881_v63 = vld [vmem:[#allocation250_spill] sm:$0xff] }
 0x2c1   : > { %v4616_v6 = vadd.f32 %v4328_v34, %v4184_v16  ;;  %v4617_v61 = vadd.f32 %v4329_v40, %v4185_v50  ;;  %v6473_v21 = vsel %vm5523_vm0, %v7820_v29, 0  ;;  %v2226_v11 = vmul.f32 %v16873_v4, %v11673_v49  ;;  %v16876_v16 = vld [vmem:[#allocation156_spill] sm:$0xff]  ;;  %v16882_v34 = vld [vmem:[#allocation251_spill] sm:$0xff] }
 0x2c2   : > { %v5423_v52 = vpack.c.bf16 %v5285_v31, %v5284_v54  ;;  %v2227_v42 = vmul.f32 %v16874_v22, %v11673_v49  ;;  %v2406_v48 = vmul.f32 %v11677_v5, %v16875_v26  ;;  %v2407_v50 = vmul.f32 %v11677_v5, %v16876_v16  ;;  %v16887_v22 = vld [vmem:[#allocation119_spill] sm:$0xff] }
 0x2c3   : > { %v4760_v19 = vadd.f32 %v4616_v6, %v4472_v2  ;;  %v4761_v58 = vadd.f32 %v4617_v61, %v4473_v39  ;;  %v2586_v51 = vmul.f32 %v11683_v17, %v16877_v25  ;;  %v2587_v3 = vmul.f32 %v11683_v17, %v16878_v56  ;;  %v16883_v2 = vld [vmem:[#allocation208_spill] sm:$0xff]  ;;  %v16884_v6 = vld [vmem:[#allocation117_spill] sm:$0xff] }
 0x2c4   : > { %7133 = vmatmul.mubr.msk.bf16.gmra.mrb[8].mxu1 %vm1041_vm3, %v5423_v52  ;;  %v2766_v45 = vmul.f32 %v16844_v27, %v11687_v12  ;;  %v2767_v28 = vmul.f32 %v16845_v9, %v11687_v12  ;;  %v2946_v39 = vmul.f32 %v11782_v57, %v16850_v15  ;;  %v2947_v53 = vmul.f32 %v11782_v57, %v16879_v10  ;;  %v16885_v61 = vld [vmem:[#allocation16_spill] sm:$0xff]  ;;  %v16886_v52 = vld [vmem:[#allocation211_spill] sm:$0xff] }
 0x2c5   : > { %v4904_v40 = vadd.f32 %v4760_v19, %v3752_v38  ;;  %v4905_v36 = vadd.f32 %v4761_v58, %v3753_v1  ;;  %v3126_v54 = vmul.f32 %v11786_v32, %v16852_v44  ;;  %v3127_v46 = vmul.f32 %v11786_v32, %v16880_v30  ;;  %v16888_v19 = vld [vmem:[#allocation36_spill] sm:$0xff] }
 0x2c6   : > { %v3306_v27 = vmul.f32 %v16881_v63, %v11795_v20  ;;  %v3307_v9 = vmul.f32 %v16882_v34, %v11795_v20  ;;  %v3486_v31 = vmul.f32 %v16672_v62, %v16883_v2  ;;  %v2046_v29 = vmul.f32 %v16885_v61, %v16884_v6  ;;  %v16889_v6 = vld [vmem:[#allocation179_spill] sm:$0xff] }
 0x2c7   : > { %v5084_v38 = vadd.f32 %v12395_v8, %v4904_v40  ;;  %v5085_v1 = vadd.f32 %v12395_v8, %v4905_v36  ;;  %v3487_v4 = vmul.f32 %v16672_v62, %v16886_v52  ;;  %v2047_v58 = vmul.f32 %v16888_v19, %v16887_v22  ;;  %v16890_v62 = vld [vmem:[#allocation180_spill] sm:$0xff] }
 0x2c8   : > { %v3810_v30 = vadd.f32 %v2406_v48, %v2226_v11  ;;  %v3811_v10 = vadd.f32 %v2407_v50, %v2227_v42  ;;  %v3954_v56 = vadd.f32 %v2766_v45, %v2586_v51  ;;  %v3955_v26 = vadd.f32 %v2767_v28, %v2587_v3  ;;  %v16891_v48 = vld [vmem:[#allocation199_spill] sm:$0xff]  ;;  %v16892_v3 = vld [vmem:[#allocation201_spill] sm:$0xff] }
 0x2c9   : > { %v5228_v25 = vmax.f32 %v5084_v38, 0.0  ;;  %v5229_v16 = vmax.f32 %v5085_v1, 0.0  ;;  %v4098_v44 = vadd.f32 %v3126_v54, %v2946_v39  ;;  %v4099_v15 = vadd.f32 %v3127_v46, %v2947_v53  ;;  %v16893_v28 = vld [vmem:[#allocation83_spill] sm:$0xff] }
 0x2ca   : > { %v4242_v40 = vadd.f32 %v3486_v31, %v3306_v27  ;;  %v4243_v13 = vadd.f32 %v3487_v4, %v3307_v9  ;;  %v4386_v36 = vadd.f32 %v3954_v56, %v3810_v30  ;;  %v3666_v61 = vmul.f32 %v11845_v47, %v16889_v6  ;;  %v16895_v56 = vld [vmem:[#allocation93_spill] sm:$0xff]  ;;  %v16898_v27 = vld [vmem:[#allocation74_spill] sm:$0xff] }
 0x2cb   : > { %v5372_v0 = vmul.f32 %v5228_v25, %v2132_v59  ;;  %v5373_v8 = vmul.f32 %v5229_v16, %v2133_v24  ;;  %v4387_v52 = vadd.f32 %v3955_v26, %v3811_v10  ;;  %v3667_v22 = vmul.f32 %v11845_v47, %v16890_v62  ;;  %v16894_v24 = vld [vmem:[#allocation85_spill] sm:$0xff]  ;;  %v16903_v4 = vld [vmem:[#allocation158_spill] sm:$0xff] }
 0x2cc   : > { %v4530_v11 = vadd.f32 %v4242_v40, %v4098_v44  ;;  %v4531_v42 = vadd.f32 %v4243_v13, %v4099_v15  ;;  %v2314_v50 = vmul.f32 %v16891_v48, %v12322_v41  ;;  %v2315_v45 = vmul.f32 %v16892_v3, %v12322_v41  ;;  %v16896_v44 = vld [vmem:[#allocation94_spill] sm:$0xff]  ;;  %v16897_v10 = vld [vmem:[#allocation73_spill] sm:$0xff]  ;;  %v16907_v48 = vld [vmem:[#allocation136_spill] sm:$0xff] }
 0x2cd   : > { %v5467_v51 = vpack.c.bf16 %v5373_v8, %v5372_v0  ;;  %v2494_v59 = vmul.f32 %v12325_v7, %v16893_v28  ;;  %v2495_v16 = vmul.f32 %v12325_v7, %v16894_v24  ;;  %v2674_v39 = vmul.f32 %v12328_v37, %v16895_v56  ;;  %v16899_v31 = vld [vmem:[#allocation133_spill] sm:$0xff]  ;;  %v16908_v3 = vld [vmem:[#allocation122_spill] sm:$0xff] }
 0x2ce   : > { %v4674_v25 = vadd.f32 %v4530_v11, %v4386_v36  ;;  %v4675_v26 = vadd.f32 %v4531_v42, %v4387_v52  ;;  %v2675_v15 = vmul.f32 %v12328_v37, %v16896_v44  ;;  %v2854_v8 = vmul.f32 %v16862_v14, %v12331_v60  ;;  %v16900_v14 = vld [vmem:[#allocation248_spill] sm:$0xff]  ;;  %v16902_v52 = vld [vmem:[#allocation99_spill] sm:$0xff]  ;;  %v16904_v36 = vld [vmem:[#allocation101_spill] sm:$0xff] }
 0x2cf   : > { %7215 = vmatmul.mubr.msk.bf16.vlgmr.msra.gmra.mrb[0].mxu0 %vm1041_vm3, %v5467_v51  ;;  %v2855_v0 = vmul.f32 %v16863_v43, %v12331_v60  ;;  %v3034_v13 = vmul.f32 %v12334_v33, %v16864_v35  ;;  %v3035_v53 = vmul.f32 %v12334_v33, %v16897_v10  ;;  %v3214_v46 = vmul.f32 %v16859_v23, %v16871_v18  ;;  %v16901_v43 = vld [vmem:[#allocation249_spill] sm:$0xff] }
 0x2d0   : > { %7231 = vmatpush3.bf16.msra.mxu0 %v6473_v21  ;;  %v4818_v54 = vadd.f32 %v4674_v25, %v3666_v61  ;;  %v4819_v30 = vadd.f32 %v4675_v26, %v3667_v22  ;;  %v3215_v9 = vmul.f32 %v16859_v23, %v16898_v27  ;;  %v3394_v38 = vmul.f32 %v16900_v14, %v16899_v31  ;;  %v16905_v61 = vld [vmem:[#allocation56_spill] sm:$0xff]  ;;  %v16906_v42 = vld [vmem:[#allocation121_spill] sm:$0xff] }
 0x2d1   : > { %v3395_v1 = vmul.f32 %v16901_v43, %v16899_v31  ;;  %v3574_v40 = vmul.f32 %v16903_v4, %v16902_v52  ;;  %v3575_v21 = vmul.f32 %v16903_v4, %v16904_v36  ;;  %v2134_v51 = vmul.f32 %v16907_v48, %v16906_v42  ;;  %v16909_v25 = vld [vmem:[#allocation137_spill] sm:$0xff]  ;;  %v16911_v48 = vld [vmem:[#allocation103_spill] sm:$0xff] }
 0x2d2   : > { %v4998_v22 = vadd.f32 %v16905_v61, %v4818_v54  ;;  %v4999_v11 = vadd.f32 %v16905_v61, %v4819_v30  ;;  %v2135_v26 = vmul.f32 %v16909_v25, %v16908_v3  ;;  %v3898_v62 = vadd.f32 %v2494_v59, %v2314_v50  ;;  %v16910_v61 = vld [vmem:[#allocation102_spill] sm:$0xff] }
 0x2d3   : > { %v3899_v19 = vadd.f32 %v2495_v16, %v2315_v45  ;;  %v4042_v27 = vadd.f32 %v2854_v8, %v2674_v39  ;;  %v4043_v10 = vadd.f32 %v2855_v0, %v2675_v15  ;;  %v4186_v24 = vadd.f32 %v3214_v46, %v3034_v13  ;;  %v16912_v59 = vld [vmem:[#allocation218_spill] sm:$0xff]  ;;  %v16913_v39 = vld [vmem:[#allocation220_spill] sm:$0xff]  ;;  %v16914_v0 = vld [vmem:[#allocation219_spill] sm:$0xff] }
 0x2d4   : > { %v5142_v44 = vmax.f32 %v4998_v22, 0.0  ;;  %v5143_v56 = vmax.f32 %v4999_v11, 0.0  ;;  %v4187_v28 = vadd.f32 %v3215_v9, %v3035_v53  ;;  %v4330_v18 = vadd.f32 %v3574_v40, %v3394_v38  ;;  %v16926_v22 = vld [vmem:[#allocation231_spill] sm:$0xff] }
 0x2d5   : > { %v4331_v36 = vadd.f32 %v3575_v21, %v3395_v1  ;;  %v4474_v35 = vadd.f32 %v4042_v27, %v3898_v62  ;;  %v4475_v54 = vadd.f32 %v4043_v10, %v3899_v19  ;;  %v3754_v42 = vmul.f32 %v12372_v55, %v16910_v61  ;;  %v16921_v1 = vld [vmem:[#allocation15_spill] sm:$0xff] }
 0x2d6   : > { %v5286_v4 = vmul.f32 %v5142_v44, %v2046_v29  ;;  %v5287_v30 = vmul.f32 %v5143_v56, %v2047_v58  ;;  %v3755_v3 = vmul.f32 %v12372_v55, %v16911_v48  ;;  %v4618_v50 = vadd.f32 %v4330_v18, %v4186_v24  ;;  %v16915_v29 = vld [vmem:[#allocation221_spill] sm:$0xff]  ;;  %v16916_v58 = vld [vmem:[#allocation226_spill] sm:$0xff]  ;;  %v16917_v18 = vld [vmem:[#allocation228_spill] sm:$0xff] }
 0x2d7   : > { %v4619_v45 = vadd.f32 %v4331_v36, %v4187_v28  ;;  %v2228_v16 = vmul.f32 %v16912_v59, %v11673_v49  ;;  %v2229_v15 = vmul.f32 %v16913_v39, %v11673_v49  ;;  %v2408_v62 = vmul.f32 %v11677_v5, %v16914_v0  ;;  %v16924_v36 = vld [vmem:[#allocation230_spill] sm:$0xff] }
 0x2d8   : > { %v5424_v8 = vpack.c.bf16 %v5287_v30, %v5286_v4  ;;  %v2409_v19 = vmul.f32 %v11677_v5, %v16915_v29  ;;  %v2588_v56 = vmul.f32 %v11683_v17, %v16916_v58  ;;  %v4762_v44 = vadd.f32 %v4618_v50, %v4474_v35  ;;  %v16918_v5 = vld [vmem:[#allocation204_spill] sm:$0xff]  ;;  %v16922_v4 = vld [vmem:[#allocation246_spill] sm:$0xff] }
 0x2d9   : > { %v4763_v13 = vadd.f32 %v4619_v45, %v4475_v54  ;;  %v2589_v28 = vmul.f32 %v11683_v17, %v16917_v18  ;;  %v2768_v24 = vmul.f32 %v16881_v63, %v11687_v12  ;;  %v2769_v49 = vmul.f32 %v16882_v34, %v11687_v12  ;;  %v16919_v17 = vld [vmem:[#allocation209_spill] sm:$0xff]  ;;  %v16923_v34 = vld [vmem:[#allocation10_spill] sm:$0xff]  ;;  %v16927_v54 = vld [vmem:[#allocation159_spill] sm:$0xff] }
 0x2da   : > { %7136 = vmatprep.mubr.msk.bf16.mxu1 %vm1041_vm3, %v5424_v8  ;;  %v2948_v10 = vmul.f32 %v11782_v57, %v16883_v2  ;;  %v2949_v53 = vmul.f32 %v11782_v57, %v16918_v5  ;;  %v3128_v35 = vmul.f32 %v11786_v32, %v16889_v6  ;;  %v4906_v46 = vadd.f32 %v4762_v44, %v3754_v42  ;;  %v16920_v63 = vld [vmem:[#allocation9_spill] sm:$0xff]  ;;  %v16928_v42 = vld [vmem:[#allocation114_spill] sm:$0xff] }
 0x2db   : > { %v4907_v27 = vadd.f32 %v4763_v13, %v3755_v3  ;;  %v3129_v9 = vmul.f32 %v11786_v32, %v16919_v17  ;;  %v3308_v38 = vmul.f32 %v16920_v63, %v11795_v20  ;;  %v12614_v12 = vmul.f32 %v16922_v4, %v16921_v1  ;;  %v16925_v57 = vld [vmem:[#allocation237_spill] sm:$0xff]  ;;  %v16929_v3 = vld [vmem:[#allocation247_spill] sm:$0xff] }
 0x2dc   : > { %v3309_v40 = vmul.f32 %v16923_v34, %v11795_v20  ;;  %v3488_v21 = vmul.f32 %v16925_v57, %v16924_v36  ;;  %v3489_v11 = vmul.f32 %v16925_v57, %v16926_v22  ;;  %v5086_v30 = vadd.f32 %v16927_v54, %v4906_v46  ;;  %v16930_v34 = vld [vmem:[#allocation196_spill] sm:$0xff] }
 0x2dd   : > { %v5087_v32 = vadd.f32 %v16927_v54, %v4907_v27  ;;  %v12626_v50 = vmul.f32 %v16929_v3, %v16928_v42  ;;  %v3812_v45 = vadd.f32 %v2408_v62, %v2228_v16  ;;  %v3813_v59 = vadd.f32 %v2409_v19, %v2229_v15  ;;  %v16931_v3 = vld [vmem:[#allocation198_spill] sm:$0xff]  ;;  %v12633_v19 = vld [vmem:[%s8087_s12 + $0x48] sm:$0xff] }
 0x2de   : > { %v3956_v39 = vadd.f32 %v2768_v24, %v2588_v56  ;;  %v3957_v8 = vadd.f32 %v2769_v49, %v2589_v28  ;;  %v4100_v20 = vadd.f32 %v3128_v35, %v2948_v10  ;;  %v5230_v44 = vmax.f32 %v5086_v30, 0.0  ;;  %16932 = vst [vmem:[#allocation233_spill] sm:$0xff] %v12633_v19  ;;  %v12638_v28 = vld [vmem:[%s8087_s12 + $0x50] sm:$0xff]  ;;  %v16934_v49 = vld [vmem:[#allocation106_spill] sm:$0xff] }
 0x2df   : > { %v5231_v13 = vmax.f32 %v5087_v32, 0.0  ;;  %v4101_v63 = vadd.f32 %v3129_v9, %v2949_v53  ;;  %v4244_v1 = vadd.f32 %v3488_v21, %v3308_v38  ;;  %v3668_v46 = vmul.f32 %v11845_v47, %v16930_v34  ;;  %16933 = vst [vmem:[#allocation17_spill] sm:$0xff] %v12638_v28  ;;  %v16935_v53 = vld [vmem:[#allocation108_spill] sm:$0xff]  ;;  %v16936_v35 = vld [vmem:[#allocation110_spill] sm:$0xff] }
 0x2e0   : > { %v4245_v57 = vadd.f32 %v3489_v11, %v3309_v40  ;;  %v4388_v27 = vadd.f32 %v3956_v39, %v3812_v45  ;;  %v4389_v22 = vadd.f32 %v3957_v8, %v3813_v59  ;;  %v5374_v4 = vmul.f32 %v5230_v44, %v2134_v51  ;;  %v16937_v40 = vld [vmem:[#allocation120_spill] sm:$0xff]  ;;  %v16938_v45 = vld [vmem:[#allocation97_spill] sm:$0xff] }
 0x2e1   : > { %v5375_v42 = vmul.f32 %v5231_v13, %v2135_v26  ;;  %v3669_v16 = vmul.f32 %v11845_v47, %v16931_v3  ;;  %v4532_v15 = vadd.f32 %v4244_v1, %v4100_v20  ;;  %v2316_v56 = vmul.f32 %v12633_v19, %v12322_v41  ;;  %v16939_v8 = vld [vmem:[#allocation100_spill] sm:$0xff]  ;;  %v16949_v3 = vld [vmem:[#allocation153_spill] sm:$0xff] }
 0x2e2   : > { %v4533_v62 = vadd.f32 %v4245_v57, %v4101_v63  ;;  %v2317_v24 = vmul.f32 %v12638_v28, %v12322_v41  ;;  %v2496_v10 = vmul.f32 %v12325_v7, %v16934_v49  ;;  %v2497_v47 = vmul.f32 %v12325_v7, %v16935_v53  ;;  %v16942_v63 = vld [vmem:[#allocation56_spill] sm:$0xff]  ;;  %v16978_v53 = vld [vmem:[#allocation79_spill] sm:$0xff] }
 0x2e3   : > { %v5468_v51 = vpack.c.bf16 %v5375_v42, %v5374_v4  ;;  %v4676_v26 = vadd.f32 %v4532_v15, %v4388_v27  ;;  %v2676_v9 = vmul.f32 %v12328_v37, %v16936_v35  ;;  %v2677_v21 = vmul.f32 %v12328_v37, %v16937_v40  ;;  %v16944_v57 = vld [vmem:[#allocation152_spill] sm:$0xff]  ;;  %v16945_v42 = vld [vmem:[#allocation123_spill] sm:$0xff]  ;;  %v16946_v15 = vld [vmem:[#allocation158_spill] sm:$0xff] }
 0x2e4   : > { %v4677_v38 = vadd.f32 %v4533_v62, %v4389_v22  ;;  %v2856_v11 = vmul.f32 %v16900_v14, %v12331_v60  ;;  %v2857_v30 = vmul.f32 %v16901_v43, %v12331_v60  ;;  %v3036_v32 = vmul.f32 %v12334_v33, %v16902_v52  ;;  %v16940_v14 = vld [vmem:[#allocation13_spill] sm:$0xff]  ;;  %v12666_v43 = vld [vmem:[%s8087_s12 + $0x80] sm:$0xff]  ;;  %v16947_v62 = vld [vmem:[#allocation124_spill] sm:$0xff] }
 0x2e5   : > { %7218 = vmatprep.mubr.msk.bf16.mxu0 %vm1041_vm3, %v5468_v51  ;;  %v4820_v4 = vadd.f32 %v4676_v26, %v3668_v46  ;;  %v3037_v59 = vmul.f32 %v12334_v33, %v16938_v45  ;;  %v3216_v22 = vmul.f32 %v16859_v23, %v16910_v61  ;;  %v3217_v20 = vmul.f32 %v16859_v23, %v16939_v8  ;;  %v16943_v46 = vld [vmem:[#allocation138_spill] sm:$0xff]  ;;  %v16972_v40 = vld [vmem:[#allocation32_spill] sm:$0xff]  ;;  %v16979_v28 = vld [vmem:[#allocation23_spill] sm:$0xff] }
 0x2e6   : > { %v4821_v39 = vadd.f32 %v4677_v38, %v3669_v16  ;;  %v3396_v44 = vmul.f32 %v16940_v14, %v16899_v31  ;;  %16941 = vst [vmem:[#allocation172_spill] sm:$0xff] %v12666_v43  ;;  %v3397_v13 = vmul.f32 %v12666_v43, %v16899_v31  ;;  %v12673_v27 = vmul.f32 %v16944_v57, %v16943_v46  ;;  %v16948_v38 = vld [vmem:[#allocation140_spill] sm:$0xff]  ;;  %v16971_v45 = vld [vmem:[#allocation30_spill] sm:$0xff] }
 0x2e7   : > { %v5000_v1 = vadd.f32 %v16942_v63, %v4820_v4  ;;  %v3576_v16 = vmul.f32 %v16946_v15, %v16945_v42  ;;  %v3577_v51 = vmul.f32 %v16946_v15, %v16947_v62  ;;  %v12682_v34 = vmul.f32 %v16949_v3, %v16948_v38  ;;  %v719_v62 = vld [vmem:[%s14913_s1 + $0x20] sm:$0xff]  ;;  %v12761_v35 = vld [vmem:[%s8087_s12 + $0x30] sm:$0xff] }
 0x2e8   : > { %v5001_v26 = vadd.f32 %v16942_v63, %v4821_v39  ;;  %v3900_v36 = vadd.f32 %v2496_v10, %v2316_v56  ;;  %v3901_v17 = vadd.f32 %v2497_v47, %v2317_v24  ;;  %v4044_v4 = vadd.f32 %v2856_v11, %v2676_v9  ;;  %v16950_v63 = vld [vmem:[#allocation130_spill] sm:$0xff]  ;;  %v5498_v24 = vld [vmem:[%s14914_s2 + $0x10] sm:$0x3]  ;;  %v16951_v47 = vld [vmem:[#allocation131_spill] sm:$0xff]  ;;  %16973 = vst [vmem:[#allocation163_spill] sm:$0xff] %v12761_v35 }
 0x2e9   : > { %v5144_v5 = vmax.f32 %v5000_v1, 0.0  ;;  %v4045_v18 = vadd.f32 %v2857_v30, %v2677_v21  ;;  %v4188_v58 = vadd.f32 %v3216_v22, %v3036_v32  ;;  %v4189_v29 = vadd.f32 %v3217_v20, %v3037_v59  ;;  %7405 = vmatprep.subr.msk.bf16.mxu0 %vm5523_vm0, %v5498_v24  ;;  %v16955_v32 = vld [vmem:[#allocation40_spill] sm:$0xff] }
 0x2ea   : > { %v5145_v46 = vmax.f32 %v5001_v26, 0.0  ;;  %v4332_v0 = vadd.f32 %v3576_v16, %v3396_v44  ;;  %v4333_v57 = vadd.f32 %v3577_v51, %v3397_v13  ;;  %v3756_v38 = vmul.f32 %v12372_v55, %v16950_v63  ;;  %v16956_v44 = vld [vmem:[#allocation41_spill] sm:$0xff]  ;;  %v12718_v13 = vld [vmem:[%s8087_s12 + $0x8] sm:$0xff]  ;;  %v16980_v19 = vld [vmem:[#allocation80_spill] sm:$0xff] }
 0x2eb   : > { %v5288_v39 = vmul.f32 %v5144_v5, %v12614_v12  ;;  %v4476_v3 = vadd.f32 %v4044_v4, %v3900_v36  ;;  %v4477_v56 = vadd.f32 %v4045_v18, %v3901_v17  ;;  %v3757_v9 = vmul.f32 %v12372_v55, %v16951_v47  ;;  %v16952_v5 = vld [vmem:[#allocation5_spill] sm:$0xff]  ;;  %v16953_v36 = vld [vmem:[#allocation4_spill] sm:$0xff]  ;;  %v16954_v18 = vld [vmem:[#allocation35_spill] sm:$0xff]  ;;  %16958 = vst [vmem:[#allocation245_spill] sm:$0xff] %v12718_v13 }
 0x2ec   : > { %v5289_v10 = vmul.f32 %v5145_v46, %v12626_v50  ;;  %v4620_v21 = vadd.f32 %v4332_v0, %v4188_v58  ;;  %v4621_v11 = vadd.f32 %v4333_v57, %v4189_v29  ;;  %v12698_v12 = vrot.slane %v719_v62, %v16952_v5  ;;  %v12713_v29 = vld [vmem:[%s8087_s12] sm:$0xff]  ;;  %v16959_v57 = vld [vmem:[#allocation20_spill] sm:$0xff]  ;;  %v16960_v51 = vld [vmem:[#allocation21_spill] sm:$0xff] }
 0x2ed   : > { %v12701_v30 = vrot.slane %v719_v62, %v16953_v36  ;;  %v12704_v17 = vrot.slane %v719_v62, %v16954_v18  ;;  %v12707_v59 = vrot.slane %v719_v62, %v16955_v32  ;;  %v12710_v0 = vrot.slane %v719_v62, %v16956_v44  ;;  %16957 = vst [vmem:[#allocation244_spill] sm:$0xff] %v12713_v29  ;;  %v16961_v46 = vld [vmem:[#allocation24_spill] sm:$0xff]  ;;  %v7826_v36 = vld [vmem:[%s14913_s1 + $0x28] sm:$0x7] }
 0x2ee   : > { %v5425_v50 = vpack.c.bf16 %v5289_v10, %v5288_v39  ;;  %v4764_v22 = vadd.f32 %v4620_v21, %v4476_v3  ;;  %v4765_v20 = vadd.f32 %v4621_v11, %v4477_v56  ;;  %v2246_v58 = vmul.f32 %v12713_v29, %v12698_v12  ;;  %v16962_v56 = vld [vmem:[#allocation25_spill] sm:$0xff]  ;;  %v16963_v10 = vld [vmem:[#allocation7_spill] sm:$0xff]  ;;  %v16964_v11 = vld [vmem:[#allocation160_spill] sm:$0xff] }
 0x2ef   : > { %v2247_v1 = vmul.f32 %v12718_v13, %v12698_v12  ;;  %v2426_v16 = vmul.f32 %v12701_v30, %v16959_v57  ;;  %v2427_v3 = vmul.f32 %v12701_v30, %v16960_v51  ;;  %v2606_v39 = vmul.f32 %v12704_v17, %v16961_v46  ;;  %v16965_v57 = vld [vmem:[#allocation26_spill] sm:$0xff]  ;;  %v16966_v29 = vld [vmem:[#allocation28_spill] sm:$0xff] }
 0x2f0   : > { %7137 = vmatmul.mubr.msk.bf16.gmra.mrb[12].mxu1 %vm1041_vm3, %v5425_v50  ;;  %v4908_v26 = vadd.f32 %v4764_v22, %v3756_v38  ;;  %v4909_v4 = vadd.f32 %v4765_v20, %v3757_v9  ;;  %v2607_v24 = vmul.f32 %v12704_v17, %v16962_v56  ;;  %v2786_v21 = vmul.f32 %v16963_v10, %v12707_v59  ;;  %v16967_v22 = vld [vmem:[#allocation42_spill] sm:$0xff]  ;;  %v16968_v56 = vld [vmem:[#allocation43_spill] sm:$0xff]  ;;  %v16969_v44 = vld [vmem:[#allocation44_spill] sm:$0xff] }
 0x2f1   : > { %v2787_v13 = vmul.f32 %v16964_v11, %v12707_v59  ;;  %v2966_v51 = vmul.f32 %v12710_v0, %v16965_v57  ;;  %v2967_v38 = vmul.f32 %v12710_v0, %v16966_v29  ;;  %v12742_v20 = vrot.slane %v719_v62, %v16967_v22 }
 0x2f2   : > { %v5088_v9 = vadd.f32 %v16927_v54, %v4908_v26  ;;  %v5089_v50 = vadd.f32 %v16927_v54, %v4909_v4  ;;  %v12745_v46 = vrot.slane %v719_v62, %v16968_v56  ;;  %v12748_v32 = vrot.slane %v719_v62, %v16969_v44  ;;  %v12766_v44 = vld [vmem:[%s8087_s12 + $0x38] sm:$0xff] }
 0x2f3   : > { %v12754_v29 = vrot.slane %v7826_v36, %v16952_v5  ;;  %v3830_v47 = vadd.f32 %v2426_v16, %v2246_v58  ;;  %v3831_v26 = vadd.f32 %v2427_v3, %v2247_v1  ;;  %v3146_v22 = vmul.f32 %v12742_v20, %v16971_v45  ;;  %16974 = vst [vmem:[#allocation116_spill] sm:$0xff] %v12766_v44  ;;  %v16975_v58 = vld [vmem:[#allocation33_spill] sm:$0xff]  ;;  %v16976_v16 = vld [vmem:[#allocation34_spill] sm:$0xff] }
 0x2f4   : > { %16970 = vst [vmem:[#allocation162_spill] sm:$0xff] %v12748_v32  ;;  %v5232_v8 = vmax.f32 %v5088_v9, 0.0  ;;  %v5233_v4 = vmax.f32 %v5089_v50, 0.0  ;;  %v3147_v56 = vmul.f32 %v12742_v20, %v16972_v40  ;;  %v3326_v62 = vmul.f32 %v12761_v35, %v12745_v46  ;;  %v16977_v40 = vld [vmem:[#allocation22_spill] sm:$0xff]  ;;  %v16981_v54 = vld [vmem:[#allocation37_spill] sm:$0xff] }
 0x2f5   : > { %v3327_v5 = vmul.f32 %v12766_v44, %v12745_v46  ;;  %v3506_v1 = vmul.f32 %v12748_v32, %v16975_v58  ;;  %v3507_v3 = vmul.f32 %v12748_v32, %v16976_v16  ;;  %v2066_v49 = vmul.f32 %v16978_v53, %v16977_v40 }
 0x2f6   : > { %v5376_v9 = vmul.f32 %v5232_v8, %v12673_v27  ;;  %v5377_v50 = vmul.f32 %v5233_v4, %v12682_v34  ;;  %v2067_v6 = vmul.f32 %v16980_v19, %v16979_v28  ;;  %v3974_v2 = vadd.f32 %v2786_v21, %v2606_v39  ;;  %v16982_v27 = vld [vmem:[#allocation38_spill] sm:$0xff]  ;;  %v16995_v19 = vld [vmem:[#allocation193_spill] sm:$0xff] }
 0x2f7   : > { %v3975_v48 = vadd.f32 %v2787_v13, %v2607_v24  ;;  %v4118_v61 = vadd.f32 %v3146_v22, %v2966_v51  ;;  %v4119_v25 = vadd.f32 %v3147_v56, %v2967_v38  ;;  %v3686_v16 = vmul.f32 %v12754_v29, %v16981_v54  ;;  %v12789_v51 = vld [vmem:[%s8087_s12 + $0x60] sm:$0xff]  ;;  %v12794_v56 = vld [vmem:[%s8087_s12 + $0x68] sm:$0xff] }
 0x2f8   : > { %v5469_v52 = vpack.c.bf16 %v5377_v50, %v5376_v9  ;;  %v4262_v32 = vadd.f32 %v3506_v1, %v3326_v62  ;;  %v4263_v8 = vadd.f32 %v3507_v3, %v3327_v5  ;;  %v3687_v34 = vmul.f32 %v12754_v29, %v16982_v27  ;;  %16984 = vst [vmem:[#allocation232_spill] sm:$0xff] %v12789_v51  ;;  %v16990_v62 = vld [vmem:[#allocation118_spill] sm:$0xff]  ;;  %v16994_v27 = vld [vmem:[#allocation175_spill] sm:$0xff] }
 0x2f9   : > { %v4406_v4 = vadd.f32 %v3974_v2, %v3830_v47  ;;  %v4407_v40 = vadd.f32 %v3975_v48, %v3831_v26  ;;  %v12785_v53 = vrot.slane %v7826_v36, %v16954_v18  ;;  %v2318_v39 = vmul.f32 %v12789_v51, %v12322_v41  ;;  %16985 = vst [vmem:[#allocation234_spill] sm:$0xff] %v12794_v56  ;;  %v16986_v2 = vld [vmem:[#allocation139_spill] sm:$0xff]  ;;  %v16987_v47 = vld [vmem:[#allocation141_spill] sm:$0xff]  ;;  %v16989_v36 = vld [vmem:[#allocation146_spill] sm:$0xff] }
 0x2fa   : > { %7219 = vmatmul.mubr.msk.bf16.gmra.mrb[4].mxu0 %vm1041_vm3, %v5469_v52  ;;  %v4550_v28 = vadd.f32 %v4262_v32, %v4118_v61  ;;  %v4551_v13 = vadd.f32 %v4263_v8, %v4119_v25  ;;  %v2319_v5 = vmul.f32 %v12794_v56, %v12322_v41  ;;  %v2498_v48 = vmul.f32 %v12325_v7, %v16986_v2  ;;  %v16988_v61 = vld [vmem:[#allocation144_spill] sm:$0xff]  ;;  %v16991_v9 = vld [vmem:[#allocation126_spill] sm:$0xff] }
 0x2fb   : > { %16983 = vst [vmem:[#allocation48_spill] sm:$0xff] %v12785_v53  ;;  %v2499_v52 = vmul.f32 %v12325_v7, %v16987_v47  ;;  %v2678_v25 = vmul.f32 %v12328_v37, %v16988_v61  ;;  %v2679_v32 = vmul.f32 %v12328_v37, %v16989_v36  ;;  %v2858_v38 = vmul.f32 %v16940_v14, %v12331_v60  ;;  %v16997_v36 = vld [vmem:[#allocation194_spill] sm:$0xff] }
 0x2fc   : > { %v4694_v24 = vadd.f32 %v4550_v28, %v4406_v4  ;;  %v4695_v21 = vadd.f32 %v4551_v13, %v4407_v40  ;;  %v2859_v22 = vmul.f32 %v12666_v43, %v12331_v60  ;;  %v3038_v26 = vmul.f32 %v12334_v33, %v16945_v42  ;;  %v12819_v40 = vld [vmem:[%s8087_s12 + $0x90] sm:$0xff]  ;;  %v12824_v28 = vld [vmem:[%s8087_s12 + $0x98] sm:$0xff] }
 0x2fd   : > { %v3039_v1 = vmul.f32 %v12334_v33, %v16990_v62  ;;  %v3218_v3 = vmul.f32 %v16859_v23, %v16950_v63  ;;  %v3219_v50 = vmul.f32 %v16859_v23, %v16991_v9  ;;  %16992 = vst [vmem:[#allocation241_spill] sm:$0xff] %v12819_v40  ;;  %v3398_v14 = vmul.f32 %v12819_v40, %v16899_v31  ;;  %v16996_v62 = vld [vmem:[#allocation176_spill] sm:$0xff]  ;;  %v17001_v33 = vld [vmem:[#allocation151_spill] sm:$0xff] }
 0x2fe   : > { %v4838_v8 = vadd.f32 %v4694_v24, %v3686_v16  ;;  %v4839_v4 = vadd.f32 %v4695_v21, %v3687_v34  ;;  %16993 = vst [vmem:[#allocation242_spill] sm:$0xff] %v12824_v28  ;;  %v3399_v13 = vmul.f32 %v12824_v28, %v16899_v31  ;;  %v12830_v18 = vmul.f32 %v16995_v19, %v16994_v27  ;;  %v16998_v16 = vld [vmem:[#allocation148_spill] sm:$0xff]  ;;  %v16999_v24 = vld [vmem:[#allocation149_spill] sm:$0xff]  ;;  %v17000_v31 = vld [vmem:[#allocation150_spill] sm:$0xff] }
 0x2ff   : > { %v12834_v61 = vmul.f32 %v16997_v36, %v16996_v62  ;;  %v3578_v34 = vmul.f32 %v16946_v15, %v16998_v16  ;;  %v3579_v21 = vmul.f32 %v16946_v15, %v16999_v24  ;;  %v3902_v2 = vadd.f32 %v2498_v48, %v2318_v39 }
 0x300   : > { %v5018_v9 = vadd.f32 %v12785_v53, %v4838_v8  ;;  %v5019_v47 = vadd.f32 %v12785_v53, %v4839_v4  ;;  %v3903_v56 = vadd.f32 %v2499_v52, %v2319_v5  ;;  %v4046_v51 = vadd.f32 %v2858_v38, %v2678_v25  ;;  %v17002_v25 = vld [vmem:[#allocation19_spill] sm:$0xff] }
 0x301   : > { %v4047_v63 = vadd.f32 %v2859_v22, %v2679_v32  ;;  %v4190_v27 = vadd.f32 %v3218_v3, %v3038_v26  ;;  %v4191_v19 = vadd.f32 %v3219_v50, %v3039_v1  ;;  %v4334_v62 = vadd.f32 %v3578_v34, %v3398_v14  ;;  %v17005_v22 = vld [vmem:[#allocation31_spill] sm:$0xff]  ;;  %v17009_v14 = vld [vmem:[#allocation162_spill] sm:$0xff] }
 0x302   : > { %v5162_v42 = vmax.f32 %v5018_v9, 0.0  ;;  %v5163_v43 = vmax.f32 %v5019_v47, 0.0  ;;  %v4335_v36 = vadd.f32 %v3579_v21, %v3399_v13  ;;  %v3758_v23 = vmul.f32 %v12372_v55, %v17000_v31  ;;  %v12872_v1 = vld [vmem:[%s8087_s12 + $0x48] sm:$0xff]  ;;  %v12877_v9 = vld [vmem:[%s8087_s12 + $0x50] sm:$0xff]  ;;  %v17011_v21 = vld [vmem:[#allocation82_spill] sm:$0xff] }
 0x303   : > { %v3759_v24 = vmul.f32 %v12372_v55, %v17001_v33  ;;  %v4478_v15 = vadd.f32 %v4046_v51, %v3902_v2  ;;  %v4479_v8 = vadd.f32 %v4047_v63, %v3903_v56  ;;  %v4622_v39 = vadd.f32 %v4334_v62, %v4190_v27  ;;  %v17004_v56 = vld [vmem:[#allocation29_spill] sm:$0xff]  ;;  %17006 = vst [vmem:[#allocation64_spill] sm:$0xff] %v12872_v1  ;;  %v17008_v50 = vld [vmem:[#allocation75_spill] sm:$0xff]  ;;  %v17012_v27 = vld [vmem:[#allocation104_spill] sm:$0xff] }
 0x304   : > { %v5306_v16 = vmul.f32 %v5162_v42, %v2066_v49  ;;  %v5307_v4 = vmul.f32 %v5163_v43, %v2067_v6  ;;  %v4623_v5 = vadd.f32 %v4335_v36, %v4191_v19  ;;  %v2248_v48 = vmul.f32 %v16963_v10, %v12698_v12  ;;  %v17003_v19 = vld [vmem:[#allocation27_spill] sm:$0xff]  ;;  %17007 = vst [vmem:[#allocation65_spill] sm:$0xff] %v12877_v9 }
 0x305   : > { %v2249_v47 = vmul.f32 %v16964_v11, %v12698_v12  ;;  %v2428_v52 = vmul.f32 %v12701_v30, %v16965_v57  ;;  %v2429_v32 = vmul.f32 %v12701_v30, %v17002_v25  ;;  %v4766_v63 = vadd.f32 %v4622_v39, %v4478_v15  ;;  %v17014_v39 = vld [vmem:[#allocation70_spill] sm:$0xff] }
 0x306   : > { %v5434_v38 = vpack.c.bf16 %v5307_v4, %v5306_v16  ;;  %v4767_v49 = vadd.f32 %v4623_v5, %v4479_v8  ;;  %v2608_v6 = vmul.f32 %v12704_v17, %v16971_v45  ;;  %v2609_v43 = vmul.f32 %v12704_v17, %v17003_v19  ;;  %v17010_v16 = vld [vmem:[#allocation159_spill] sm:$0xff]  ;;  %v17013_v8 = vld [vmem:[#allocation76_spill] sm:$0xff]  ;;  %v17015_v5 = vld [vmem:[#allocation105_spill] sm:$0xff] }
 0x307   : > { %v2788_v42 = vmul.f32 %v12761_v35, %v12707_v59  ;;  %v2789_v10 = vmul.f32 %v12766_v44, %v12707_v59  ;;  %v2968_v11 = vmul.f32 %v12710_v0, %v16975_v58  ;;  %v4910_v51 = vadd.f32 %v4766_v63, %v3758_v23  ;;  %v17016_v44 = vld [vmem:[#allocation77_spill] sm:$0xff] }
 0x308   : > { %7142 = vmatprep.mubr.msk.bf16.mxu1 %vm1041_vm3, %v5434_v38  ;;  %v4911_v15 = vadd.f32 %v4767_v49, %v3759_v24  ;;  %v2969_v2 = vmul.f32 %v12710_v0, %v17004_v56  ;;  %v3148_v36 = vmul.f32 %v12742_v20, %v16981_v54  ;;  %v3149_v26 = vmul.f32 %v12742_v20, %v17005_v22 }
 0x309   : > { %v3328_v3 = vmul.f32 %v12872_v1, %v12745_v46  ;;  %v3329_v23 = vmul.f32 %v12877_v9, %v12745_v46  ;;  %v3508_v13 = vmul.f32 %v17009_v14, %v17008_v50  ;;  %v5090_v34 = vadd.f32 %v17010_v16, %v4910_v51 }
 0x30a   : > { %v5091_v24 = vadd.f32 %v17010_v16, %v4911_v15  ;;  %v12887_v62 = vmul.f32 %v17012_v27, %v17011_v21  ;;  %v3509_v4 = vmul.f32 %v17009_v14, %v17013_v8  ;;  %v12893_v38 = vmul.f32 %v17015_v5, %v17014_v39 }
 0x30b   : > { %v3832_v63 = vadd.f32 %v2428_v52, %v2248_v48  ;;  %v3833_v49 = vadd.f32 %v2429_v32, %v2249_v47  ;;  %v3976_v22 = vadd.f32 %v2788_v42, %v2608_v6  ;;  %v5234_v56 = vmax.f32 %v5090_v34, 0.0  ;;  %v17017_v47 = vld [vmem:[#allocation78_spill] sm:$0xff] }
 0x30c   : > { %v5235_v19 = vmax.f32 %v5091_v24, 0.0  ;;  %v3977_v25 = vadd.f32 %v2789_v10, %v2609_v43  ;;  %v4120_v51 = vadd.f32 %v3148_v36, %v2968_v11  ;;  %v4121_v15 = vadd.f32 %v3149_v26, %v2969_v2  ;;  %v7835_v43 = vld [vmem:[%s14914_s2 + $0x6] sm:$0x3]  ;;  %v17024_v24 = vld [vmem:[#allocation148_spill] sm:$0xff] }
 0x30d   : > { %v4264_v54 = vadd.f32 %v3508_v13, %v3328_v3  ;;  %v4265_v21 = vadd.f32 %v3509_v4, %v3329_v23  ;;  %v4408_v27 = vadd.f32 %v3976_v22, %v3832_v63  ;;  %v5378_v58 = vmul.f32 %v5234_v56, %v12830_v18  ;;  %v12908_v18 = vld [vmem:[%s8087_s12 + $0x78] sm:$0xff]  ;;  %v17021_v36 = vld [vmem:[#allocation174_spill] sm:$0xff] }
 0x30e   : > { %v5379_v8 = vmul.f32 %v5235_v19, %v12834_v61  ;;  %v3688_v39 = vmul.f32 %v12754_v29, %v17016_v44  ;;  %v4409_v48 = vadd.f32 %v3977_v25, %v3833_v49  ;;  %v3689_v52 = vmul.f32 %v12754_v29, %v17017_v47  ;;  %17018 = vst [vmem:[#allocation173_spill] sm:$0xff] %v12908_v18  ;;  %v12913_v19 = vld [vmem:[%s8087_s12 + $0x80] sm:$0xff]  ;;  %v17026_v49 = vld [vmem:[#allocation184_spill] sm:$0xff] }
 0x30f   : > { %v4552_v32 = vadd.f32 %v4264_v54, %v4120_v51  ;;  %v4553_v6 = vadd.f32 %v4265_v21, %v4121_v15  ;;  %v12905_v42 = vsel %vm5523_vm0, %v7835_v43, 0  ;;  %v2320_v61 = vmul.f32 %v12908_v18, %v12322_v41  ;;  %17019 = vst [vmem:[#allocation164_spill] sm:$0xff] %v12913_v19  ;;  %v17020_v54 = vld [vmem:[#allocation170_spill] sm:$0xff]  ;;  %v17027_v15 = vld [vmem:[#allocation89_spill] sm:$0xff]  ;;  %v12944_v47 = vld [vmem:[%s8087_s12 + $0xb0] sm:$0xff] }
 0x310   : > { %v5470_v10 = vpack.c.bf16 %v5379_v8, %v5378_v58  ;;  %v2321_v25 = vmul.f32 %v12913_v19, %v12322_v41  ;;  %v2500_v11 = vmul.f32 %v12325_v7, %v17020_v54  ;;  %v2501_v58 = vmul.f32 %v12325_v7, %v17021_v36  ;;  %v17022_v22 = vld [vmem:[#allocation178_spill] sm:$0xff]  ;;  %v17030_v43 = vld [vmem:[#allocation133_spill] sm:$0xff]  ;;  %17031 = vst [vmem:[#allocation81_spill] sm:$0xff] %v12944_v47 }
 0x311   : > { %v4696_v56 = vadd.f32 %v4552_v32, %v4408_v27  ;;  %v4697_v2 = vadd.f32 %v4553_v6, %v4409_v48  ;;  %v2680_v26 = vmul.f32 %v12328_v37, %v17022_v22  ;;  %v17023_v3 = vld [vmem:[#allocation182_spill] sm:$0xff]  ;;  %v2860_v13 = vmul.f32 %v12819_v40, %v12331_v60  ;;  %v17028_v48 = vld [vmem:[#allocation187_spill] sm:$0xff]  ;;  %v17037_v19 = vld [vmem:[#allocation205_spill] sm:$0xff] }
 0x312   : > { %7222 = vmatprep.mubr.msk.bf16.mxu0 %vm1041_vm3, %v5470_v10  ;;  %v2681_v23 = vmul.f32 %v12328_v37, %v17023_v3  ;;  %v2861_v34 = vmul.f32 %v12824_v28, %v12331_v60  ;;  %v17025_v27 = vld [vmem:[#allocation14_spill] sm:$0xff]  ;;  %v3220_v21 = vmul.f32 %v17027_v15, %v17000_v31  ;;  %v3221_v32 = vmul.f32 %v17027_v15, %v17028_v48  ;;  %v12939_v6 = vld [vmem:[%s8087_s12 + $0xa8] sm:$0xff] }
 0x313   : > { %v3040_v8 = vmul.f32 %v17025_v27, %v17024_v24  ;;  %v4840_v4 = vadd.f32 %v4696_v56, %v3688_v39  ;;  %v4841_v63 = vadd.f32 %v4697_v2, %v3689_v52  ;;  %v3041_v51 = vmul.f32 %v17025_v27, %v17026_v49  ;;  %17029 = vst [vmem:[#allocation8_spill] sm:$0xff] %v12939_v6  ;;  %v17032_v52 = vld [vmem:[#allocation188_spill] sm:$0xff]  ;;  %v17033_v56 = vld [vmem:[#allocation158_spill] sm:$0xff] }
 0x314   : > { %v3400_v10 = vmul.f32 %v12939_v6, %v17030_v43  ;;  %v3401_v39 = vmul.f32 %v12944_v47, %v17030_v43  ;;  %v3580_v2 = vmul.f32 %v17033_v56, %v17032_v52  ;;  %v17034_v3 = vld [vmem:[#allocation202_spill] sm:$0xff]  ;;  %v3904_v45 = vadd.f32 %v2500_v11, %v2320_v61 }
 0x315   : > { %v5020_v5 = vadd.f32 %v12785_v53, %v4840_v4  ;;  %v5021_v49 = vadd.f32 %v12785_v53, %v4841_v63  ;;  %v17035_v22 = vld [vmem:[#allocation50_spill] sm:$0xff]  ;;  %v3905_v57 = vadd.f32 %v2501_v58, %v2321_v25  ;;  %v4048_v33 = vadd.f32 %v2860_v13, %v2680_v26  ;;  %v17040_v25 = vld [vmem:[#allocation192_spill] sm:$0xff]  ;;  %v17045_v13 = vld [vmem:[#allocation93_spill] sm:$0xff] }
 0x316   : > { %v12954_v48 = vmul.f32 %v17035_v22, %v17034_v3  ;;  %v17036_v36 = vld [vmem:[#allocation190_spill] sm:$0xff]  ;;  %v4049_v4 = vadd.f32 %v2861_v34, %v2681_v23  ;;  %v4192_v63 = vadd.f32 %v3220_v21, %v3040_v8  ;;  %v4193_v28 = vadd.f32 %v3221_v32, %v3041_v51  ;;  %v12969_v26 = vld [vmem:[%s8087_s12 + $0x30] sm:$0xff] }
 0x317   : > { %v3581_v54 = vmul.f32 %v17033_v56, %v17036_v36  ;;  %v17038_v18 = vld [vmem:[#allocation214_spill] sm:$0xff]  ;;  %v5164_v31 = vmax.f32 %v5020_v5, 0.0  ;;  %v5165_v24 = vmax.f32 %v5021_v49, 0.0  ;;  %v4336_v40 = vadd.f32 %v3580_v2, %v3400_v10  ;;  %v17039_v56 = vld [vmem:[#allocation191_spill] sm:$0xff]  ;;  %17041 = vst [vmem:[#allocation88_spill] sm:$0xff] %v12969_v26 }
 0x318   : > { %v12960_v35 = vmul.f32 %v17038_v18, %v17037_v19  ;;  %v4480_v22 = vadd.f32 %v4048_v33, %v3904_v45  ;;  %v3760_v19 = vmul.f32 %v12372_v55, %v17039_v56  ;;  %v4481_v61 = vadd.f32 %v4049_v4, %v3905_v57  ;;  %v12974_v33 = vld [vmem:[%s8087_s12 + $0x38] sm:$0xff]  ;;  %v17043_v45 = vld [vmem:[#allocation83_spill] sm:$0xff]  ;;  %v13001_v4 = vld [vmem:[%s8087_s12 + $0x60] sm:$0xff] }
 0x319   : > { %v4337_v3 = vadd.f32 %v3581_v54, %v3401_v39  ;;  %v5308_v53 = vmul.f32 %v5164_v31, %v12887_v62  ;;  %v5309_v36 = vmul.f32 %v5165_v24, %v12893_v38  ;;  %v3761_v11 = vmul.f32 %v12372_v55, %v17040_v25  ;;  %17042 = vst [vmem:[#allocation84_spill] sm:$0xff] %v12974_v33  ;;  %v17044_v57 = vld [vmem:[#allocation85_spill] sm:$0xff]  ;;  %v17046_v24 = vld [vmem:[#allocation94_spill] sm:$0xff] }
 0x31a   : > { %v4624_v5 = vadd.f32 %v4336_v40, %v4192_v63  ;;  %v2250_v23 = vmul.f32 %v12969_v26, %v12698_v12  ;;  %v2251_v31 = vmul.f32 %v12974_v33, %v12698_v12  ;;  %v2430_v62 = vmul.f32 %v12701_v30, %v17043_v45  ;;  %v17048_v39 = vld [vmem:[#allocation74_spill] sm:$0xff]  ;;  %17049 = vst [vmem:[#allocation11_spill] sm:$0xff] %v13001_v4 }
 0x31b   : > { %v4625_v58 = vadd.f32 %v4337_v3, %v4193_v28  ;;  %v5435_v54 = vpack.c.bf16 %v5309_v36, %v5308_v53  ;;  %v2431_v38 = vmul.f32 %v12701_v30, %v17044_v57  ;;  %v2610_v34 = vmul.f32 %v12704_v17, %v17045_v13  ;;  %v13006_v3 = vld [vmem:[%s8087_s12 + $0x68] sm:$0xff]  ;;  %v17056_v13 = vld [vmem:[#allocation137_spill] sm:$0xff] }
 0x31c   : > { %v4768_v40 = vadd.f32 %v4624_v5, %v4480_v22  ;;  %v2611_v53 = vmul.f32 %v12704_v17, %v17046_v24  ;;  %v2790_v36 = vmul.f32 %v12872_v1, %v12707_v59  ;;  %v2791_v8 = vmul.f32 %v12877_v9, %v12707_v59  ;;  %v17047_v22 = vld [vmem:[#allocation73_spill] sm:$0xff]  ;;  %17050 = vst [vmem:[#allocation12_spill] sm:$0xff] %v13006_v3  ;;  %v17051_v5 = vld [vmem:[#allocation99_spill] sm:$0xff]  ;;  %v17055_v24 = vld [vmem:[#allocation112_spill] sm:$0xff] }
 0x31d   : > { %v4769_v28 = vadd.f32 %v4625_v58, %v4481_v61  ;;  %7143 = vmatmul.mubr.msk.bf16.vlgmr.msra.gmra.mrb[0].mxu1 %vm1041_vm3, %v5435_v54  ;;  %v2970_v49 = vmul.f32 %v12710_v0, %v17008_v50  ;;  %v2971_v51 = vmul.f32 %v12710_v0, %v17047_v22  ;;  %v3150_v10 = vmul.f32 %v12742_v20, %v17016_v44  ;;  %v7844_v58 = vld [vmem:[%s14914_s2 + $0x8] sm:$0x3] }
 0x31e   : > { %7159 = vmatpush3.bf16.msra.mxu1 %v12905_v42  ;;  %v4912_v21 = vadd.f32 %v4768_v40, %v3760_v19  ;;  %v3151_v2 = vmul.f32 %v12742_v20, %v17048_v39  ;;  %v3330_v63 = vmul.f32 %v13001_v4, %v12745_v46  ;;  %v3331_v61 = vmul.f32 %v13006_v3, %v12745_v46  ;;  %v17052_v19 = vld [vmem:[#allocation101_spill] sm:$0xff]  ;;  %v17054_v39 = vld [vmem:[#allocation136_spill] sm:$0xff] }
 0x31f   : > { %v4913_v32 = vadd.f32 %v4769_v28, %v3761_v11  ;;  %v3510_v42 = vmul.f32 %v17009_v14, %v17051_v5  ;;  %v3511_v11 = vmul.f32 %v17009_v14, %v17052_v19  ;;  %7401 = vmatprep.subr.msk.bf16.mxu1 %vm5523_vm0, %v7844_v58  ;;  %v17053_v28 = vld [vmem:[#allocation111_spill] sm:$0xff]  ;;  %v13026_v57 = vmul.f32 %v17056_v13, %v17055_v24  ;;  %v17057_v24 = vld [vmem:[#allocation102_spill] sm:$0xff]  ;;  %v17074_v13 = vld [vmem:[#allocation48_spill] sm:$0xff] }
 0x320   : > { %v5092_v54 = vadd.f32 %v17010_v16, %v4912_v21  ;;  %v13022_v22 = vmul.f32 %v17054_v39, %v17053_v28  ;;  %v3834_v45 = vadd.f32 %v2430_v62, %v2250_v23  ;;  %v3835_v19 = vadd.f32 %v2431_v38, %v2251_v31  ;;  %v17058_v31 = vld [vmem:[#allocation103_spill] sm:$0xff] }
 0x321   : > { %v5093_v40 = vadd.f32 %v17010_v16, %v4913_v32  ;;  %v3978_v33 = vadd.f32 %v2790_v36, %v2610_v34  ;;  %v3979_v26 = vadd.f32 %v2791_v8, %v2611_v53  ;;  %v4122_v50 = vadd.f32 %v3150_v10, %v2970_v49  ;;  %v13035_v53 = vld [vmem:[%s8087_s12 + $0x90] sm:$0xff]  ;;  %v13040_v8 = vld [vmem:[%s8087_s12 + $0x98] sm:$0xff]  ;;  %v17064_v10 = vld [vmem:[#allocation203_spill] sm:$0xff] }
 0x322   : > { %v5236_v44 = vmax.f32 %v5092_v54, 0.0  ;;  %v4123_v21 = vadd.f32 %v3151_v2, %v2971_v51  ;;  %v4266_v9 = vadd.f32 %v3510_v42, %v3330_v63  ;;  %v4267_v32 = vadd.f32 %v3511_v11, %v3331_v61  ;;  %17059 = vst [vmem:[#allocation90_spill] sm:$0xff] %v13035_v53  ;;  %17060 = vst [vmem:[#allocation91_spill] sm:$0xff] %v13040_v8  ;;  %v17065_v42 = vld [vmem:[#allocation186_spill] sm:$0xff]  ;;  %v17066_v54 = vld [vmem:[#allocation189_spill] sm:$0xff] }
 0x323   : > { %v5237_v58 = vmax.f32 %v5093_v40, 0.0  ;;  %v4410_v1 = vadd.f32 %v3978_v33, %v3834_v45  ;;  %v4411_v25 = vadd.f32 %v3979_v26, %v3835_v19  ;;  %v3690_v23 = vmul.f32 %v12754_v29, %v17057_v24  ;;  %v17062_v33 = vld [vmem:[#allocation156_spill] sm:$0xff] }
 0x324   : > { %v5380_v28 = vmul.f32 %v5236_v44, %v12954_v48  ;;  %v3691_v62 = vmul.f32 %v12754_v29, %v17058_v31  ;;  %v4554_v38 = vadd.f32 %v4266_v9, %v4122_v50  ;;  %v4555_v34 = vadd.f32 %v4267_v32, %v4123_v21  ;;  %v17063_v9 = vld [vmem:[#allocation200_spill] sm:$0xff]  ;;  %v17068_v32 = vld [vmem:[#allocation222_spill] sm:$0xff] }
 0x325   : > { %v5381_v39 = vmul.f32 %v5237_v58, %v12960_v35  ;;  %v2322_v36 = vmul.f32 %v13035_v53, %v12322_v41  ;;  %v2323_v44 = vmul.f32 %v13040_v8, %v12322_v41  ;;  %v17061_v35 = vld [vmem:[#allocation155_spill] sm:$0xff]  ;;  %v2503_v45 = vmul.f32 %v12325_v7, %v17062_v33  ;;  %v13066_v58 = vld [vmem:[%s8087_s12 + $0xc0] sm:$0xff]  ;;  %v17071_v31 = vld [vmem:[#allocation208_spill] sm:$0xff] }
 0x326   : > { %v2502_v26 = vmul.f32 %v12325_v7, %v17061_v35  ;;  %v2682_v50 = vmul.f32 %v12328_v37, %v17063_v9  ;;  %v4698_v49 = vadd.f32 %v4554_v38, %v4410_v1  ;;  %v4699_v51 = vadd.f32 %v4555_v34, %v4411_v25  ;;  %17067 = vst [vmem:[#allocation107_spill] sm:$0xff] %v13066_v58  ;;  %v13075_v34 = vld [vmem:[%s8087_s12 + $0xc8] sm:$0xff]  ;;  %v17076_v9 = vld [vmem:[#allocation36_spill] sm:$0xff] }
 0x327   : > { %v5471_v48 = vpack.c.bf16 %v5381_v39, %v5380_v28  ;;  %v2683_v2 = vmul.f32 %v12328_v37, %v17064_v10  ;;  %v2862_v63 = vmul.f32 %v12939_v6, %v12331_v60  ;;  %v2863_v39 = vmul.f32 %v12944_v47, %v12331_v60  ;;  %v17069_v28 = vld [vmem:[#allocation16_spill] sm:$0xff]  ;;  %17070 = vst [vmem:[#allocation109_spill] sm:$0xff] %v13075_v34  ;;  %v17075_v10 = vld [vmem:[#allocation223_spill] sm:$0xff] }
 0x328   : > { %v3042_v61 = vmul.f32 %v17025_v27, %v17032_v52  ;;  %v3043_v19 = vmul.f32 %v17025_v27, %v17065_v42  ;;  %v3222_v1 = vmul.f32 %v17027_v15, %v17039_v56  ;;  %v4842_v25 = vadd.f32 %v4698_v49, %v3690_v23  ;;  %v17072_v23 = vld [vmem:[#allocation158_spill] sm:$0xff]  ;;  %v17073_v49 = vld [vmem:[#allocation211_spill] sm:$0xff] }
 0x329   : > { %7223 = vmatmul.mubr.msk.bf16.gmra.mrb[8].mxu0 %vm1041_vm3, %v5471_v48  ;;  %v4843_v11 = vadd.f32 %v4699_v51, %v3691_v62  ;;  %v3223_v40 = vmul.f32 %v17027_v15, %v17066_v54  ;;  %v3402_v21 = vmul.f32 %v13066_v58, %v17030_v43  ;;  %v13072_v38 = vmul.f32 %v17069_v28, %v17068_v32  ;;  %v17077_v6 = vld [vmem:[#allocation179_spill] sm:$0xff] }
 0x32a   : > { %v3403_v48 = vmul.f32 %v13075_v34, %v17030_v43  ;;  %v3582_v62 = vmul.f32 %v17072_v23, %v17071_v31  ;;  %v3583_v51 = vmul.f32 %v17072_v23, %v17073_v49  ;;  %v5022_v54 = vadd.f32 %v17074_v13, %v4842_v25 }
 0x32b   : > { %v5023_v42 = vadd.f32 %v17074_v13, %v4843_v11  ;;  %v2143_v33 = vmul.f32 %v17076_v9, %v17075_v10  ;;  %v3906_v32 = vadd.f32 %v2502_v26, %v2322_v36  ;;  %v3907_v28 = vadd.f32 %v2503_v45, %v2323_v44  ;;  %v17078_v10 = vld [vmem:[#allocation180_spill] sm:$0xff]  ;;  %v17079_v45 = vld [vmem:[#allocation233_spill] sm:$0xff] }
 0x32c   : > { %v4050_v35 = vadd.f32 %v2862_v63, %v2682_v50  ;;  %v4051_v8 = vadd.f32 %v2863_v39, %v2683_v2  ;;  %v4194_v53 = vadd.f32 %v3222_v1, %v3042_v61  ;;  %v5166_v56 = vmax.f32 %v5022_v54, 0.0  ;;  %v17080_v2 = vld [vmem:[#allocation17_spill] sm:$0xff]  ;;  %v17081_v39 = vld [vmem:[#allocation106_spill] sm:$0xff]  ;;  %v17167_v9 = vld [vmem:[#allocation80_spill] sm:$0xff] }
 0x32d   : > { %v5167_v18 = vmax.f32 %v5023_v42, 0.0  ;;  %v4195_v52 = vadd.f32 %v3223_v40, %v3043_v19  ;;  %v4338_v47 = vadd.f32 %v3582_v62, %v3402_v21  ;;  %v3762_v43 = vmul.f32 %v12372_v55, %v17077_v6  ;;  %v17085_v54 = vld [vmem:[#allocation97_spill] sm:$0xff] }
 0x32e   : > { %v4339_v49 = vadd.f32 %v3583_v51, %v3403_v48  ;;  %v4482_v23 = vadd.f32 %v4050_v35, %v3906_v32  ;;  %v4483_v25 = vadd.f32 %v4051_v8, %v3907_v28  ;;  %v5310_v11 = vmul.f32 %v5166_v56, %v13022_v22  ;;  %v17082_v56 = vld [vmem:[#allocation108_spill] sm:$0xff]  ;;  %v13119_v62 = vld [vmem:[%s8087_s12 + $0x78] sm:$0xff] }
 0x32f   : > { %v5311_v13 = vmul.f32 %v5167_v18, %v13026_v57  ;;  %v3763_v36 = vmul.f32 %v12372_v55, %v17078_v10  ;;  %v4626_v44 = vadd.f32 %v4338_v47, %v4194_v53  ;;  %v2252_v50 = vmul.f32 %v17079_v45, %v12698_v12  ;;  %v17083_v57 = vld [vmem:[#allocation110_spill] sm:$0xff]  ;;  %v17086_v48 = vld [vmem:[#allocation100_spill] sm:$0xff]  ;;  %17087 = vst [vmem:[#allocation250_spill] sm:$0xff] %v13119_v62 }
 0x330   : > { %v4627_v26 = vadd.f32 %v4339_v49, %v4195_v52  ;;  %v2253_v63 = vmul.f32 %v17080_v2, %v12698_v12  ;;  %v2432_v61 = vmul.f32 %v12701_v30, %v17081_v39  ;;  %v2433_v18 = vmul.f32 %v12701_v30, %v17082_v56  ;;  %v17084_v52 = vld [vmem:[#allocation120_spill] sm:$0xff] }
 0x331   : > { %v5436_v8 = vpack.c.bf16 %v5311_v13, %v5310_v11  ;;  %v4770_v35 = vadd.f32 %v4626_v44, %v4482_v23  ;;  %v2612_v22 = vmul.f32 %v12704_v17, %v17083_v57  ;;  %v2613_v53 = vmul.f32 %v12704_v17, %v17084_v52  ;;  %v17090_v11 = vld [vmem:[#allocation152_spill] sm:$0xff] }
 0x332   : > { %v4771_v47 = vadd.f32 %v4627_v26, %v4483_v25  ;;  %v2792_v42 = vmul.f32 %v13001_v4, %v12707_v59  ;;  %v2793_v19 = vmul.f32 %v13006_v3, %v12707_v59  ;;  %v2972_v1 = vmul.f32 %v12710_v0, %v17051_v5  ;;  %v17089_v25 = vld [vmem:[#allocation132_spill] sm:$0xff]  ;;  %v17091_v26 = vld [vmem:[#allocation123_spill] sm:$0xff] }
 0x333   : > { %7146 = vmatprep.mubr.msk.bf16.mxu1 %vm1041_vm3, %v5436_v8  ;;  %v4914_v13 = vadd.f32 %v4770_v35, %v3762_v43  ;;  %v2973_v40 = vmul.f32 %v12710_v0, %v17085_v54  ;;  %v3152_v21 = vmul.f32 %v12742_v20, %v17057_v24  ;;  %v3153_v23 = vmul.f32 %v12742_v20, %v17086_v48  ;;  %v17088_v43 = vld [vmem:[#allocation172_spill] sm:$0xff]  ;;  %v17093_v35 = vld [vmem:[#allocation135_spill] sm:$0xff] }
 0x334   : > { %v4915_v28 = vadd.f32 %v4771_v47, %v3763_v36  ;;  %v3332_v49 = vmul.f32 %v13119_v62, %v12745_v46  ;;  %v3333_v51 = vmul.f32 %v17088_v43, %v12745_v46  ;;  %v13128_v44 = vmul.f32 %v17090_v11, %v17089_v25  ;;  %v17092_v45 = vld [vmem:[#allocation124_spill] sm:$0xff]  ;;  %v17094_v47 = vld [vmem:[#allocation153_spill] sm:$0xff] }
 0x335   : > { %v5094_v32 = vadd.f32 %v17010_v16, %v4914_v13  ;;  %v3512_v36 = vmul.f32 %v17009_v14, %v17091_v26  ;;  %v3513_v2 = vmul.f32 %v17009_v14, %v17092_v45  ;;  %v2073_v48 = vmul.f32 %v17094_v47, %v17093_v35  ;;  %v17095_v45 = vld [vmem:[#allocation130_spill] sm:$0xff] }
 0x336   : > { %v5095_v8 = vadd.f32 %v17010_v16, %v4915_v28  ;;  %v3836_v54 = vadd.f32 %v2432_v61, %v2252_v50  ;;  %v3837_v52 = vadd.f32 %v2433_v18, %v2253_v63  ;;  %v3980_v13 = vadd.f32 %v2792_v42, %v2612_v22  ;;  %v17096_v50 = vld [vmem:[#allocation131_spill] sm:$0xff]  ;;  %v13148_v42 = vld [vmem:[%s8087_s12 + $0xb0] sm:$0xff] }
 0x337   : > { %v5238_v57 = vmax.f32 %v5094_v32, 0.0  ;;  %v3981_v56 = vadd.f32 %v2793_v19, %v2613_v53  ;;  %v4124_v25 = vadd.f32 %v3152_v21, %v2972_v1  ;;  %v4125_v39 = vadd.f32 %v3153_v23, %v2973_v40  ;;  %v13143_v22 = vld [vmem:[%s8087_s12 + $0xa8] sm:$0xff]  ;;  %17098 = vst [vmem:[#allocation117_spill] sm:$0xff] %v13148_v42  ;;  %v13174_v32 = vld [vmem:[%s8087_s12 + $0xd8] sm:$0xff] }
 0x338   : > { %v5239_v11 = vmax.f32 %v5095_v8, 0.0  ;;  %v4268_v24 = vadd.f32 %v3512_v36, %v3332_v49  ;;  %v4269_v5 = vadd.f32 %v3513_v2, %v3333_v51  ;;  %v3692_v28 = vmul.f32 %v12754_v29, %v17095_v45  ;;  %17097 = vst [vmem:[#allocation251_spill] sm:$0xff] %v13143_v22  ;;  %17105 = vst [vmem:[#allocation119_spill] sm:$0xff] %v13174_v32  ;;  %v13179_v36 = vld [vmem:[%s8087_s12 + $0xe0] sm:$0xff] }
 0x339   : > { %v5382_v3 = vmul.f32 %v5238_v57, %v13072_v38  ;;  %v4412_v4 = vadd.f32 %v3980_v13, %v3836_v54  ;;  %v4413_v10 = vadd.f32 %v3981_v56, %v3837_v52  ;;  %v3693_v63 = vmul.f32 %v12754_v29, %v17096_v50  ;;  %v17099_v57 = vld [vmem:[#allocation219_spill] sm:$0xff]  ;;  %v17100_v56 = vld [vmem:[#allocation221_spill] sm:$0xff]  ;;  %v17102_v54 = vld [vmem:[#allocation228_spill] sm:$0xff]  ;;  %17107 = vst [vmem:[#allocation199_spill] sm:$0xff] %v13179_v36 }
 0x33a   : > { %v5383_v35 = vmul.f32 %v5239_v11, %v2143_v33  ;;  %v4556_v61 = vadd.f32 %v4268_v24, %v4124_v25  ;;  %v4557_v18 = vadd.f32 %v4269_v5, %v4125_v39  ;;  %v2324_v53 = vmul.f32 %v13143_v22, %v12322_v41  ;;  %v17101_v39 = vld [vmem:[#allocation226_spill] sm:$0xff]  ;;  %v17106_v11 = vld [vmem:[#allocation133_spill] sm:$0xff] }
 0x33b   : > { %v2325_v38 = vmul.f32 %v13148_v42, %v12322_v41  ;;  %v2504_v19 = vmul.f32 %v12325_v7, %v17099_v57  ;;  %v2505_v33 = vmul.f32 %v12325_v7, %v17100_v56  ;;  %v2684_v1 = vmul.f32 %v12328_v37, %v17101_v39  ;;  %v17108_v8 = vld [vmem:[#allocation230_spill] sm:$0xff]  ;;  %v17165_v42 = vld [vmem:[#allocation79_spill] sm:$0xff] }
 0x33c   : > { %v5472_v52 = vpack.c.bf16 %v5383_v35, %v5382_v3  ;;  %v4700_v5 = vadd.f32 %v4556_v61, %v4412_v4  ;;  %v4701_v24 = vadd.f32 %v4557_v18, %v4413_v10  ;;  %v2685_v40 = vmul.f32 %v12328_v37, %v17102_v54  ;;  %v17103_v3 = vld [vmem:[#allocation204_spill] sm:$0xff]  ;;  %v17104_v37 = vld [vmem:[#allocation209_spill] sm:$0xff]  ;;  %v17109_v13 = vld [vmem:[#allocation158_spill] sm:$0xff] }
 0x33d   : > { %v2864_v41 = vmul.f32 %v13066_v58, %v12331_v60  ;;  %v2865_v21 = vmul.f32 %v13075_v34, %v12331_v60  ;;  %v3044_v23 = vmul.f32 %v17025_v27, %v17071_v31  ;;  %v3045_v10 = vmul.f32 %v17025_v27, %v17103_v3  ;;  %v17110_v27 = vld [vmem:[#allocation48_spill] sm:$0xff]  ;;  %v17112_v61 = vld [vmem:[#allocation246_spill] sm:$0xff]  ;;  %v17113_v18 = vld [vmem:[#allocation231_spill] sm:$0xff] }
 0x33e   : > { %7226 = vmatprep.mubr.msk.bf16.mxu0 %vm1041_vm3, %v5472_v52  ;;  %v4844_v7 = vadd.f32 %v4700_v5, %v3692_v28  ;;  %v4845_v4 = vadd.f32 %v4701_v24, %v3693_v63  ;;  %v3224_v49 = vmul.f32 %v17027_v15, %v17077_v6  ;;  %v3225_v51 = vmul.f32 %v17027_v15, %v17104_v37  ;;  %v17111_v63 = vld [vmem:[#allocation235_spill] sm:$0xff]  ;;  %v17114_v5 = vld [vmem:[#allocation236_spill] sm:$0xff]  ;;  %v17117_v57 = vld [vmem:[#allocation198_spill] sm:$0xff] }
 0x33f   : > { %v3404_v60 = vmul.f32 %v13174_v32, %v17106_v11  ;;  %v3405_v2 = vmul.f32 %v13179_v36, %v17106_v11  ;;  %v3584_v25 = vmul.f32 %v17109_v13, %v17108_v8  ;;  %v2144_v15 = vmul.f32 %v17112_v61, %v17111_v63  ;;  %v17115_v24 = vld [vmem:[#allocation247_spill] sm:$0xff]  ;;  %v17116_v61 = vld [vmem:[#allocation196_spill] sm:$0xff] }
 0x340   : > { %v5024_v28 = vadd.f32 %v17110_v27, %v4844_v7  ;;  %v5025_v35 = vadd.f32 %v17110_v27, %v4845_v4  ;;  %v3585_v52 = vmul.f32 %v17109_v13, %v17113_v18  ;;  %v2145_v50 = vmul.f32 %v17115_v24, %v17114_v5  ;;  %v17128_v5 = vld [vmem:[#allocation148_spill] sm:$0xff]  ;;  %v17164_v24 = vld [vmem:[#allocation66_spill] sm:$0xff]  ;;  %v17166_v6 = vld [vmem:[#allocation67_spill] sm:$0xff] }
 0x341   : > { %v3908_v47 = vadd.f32 %v2504_v19, %v2324_v53  ;;  %v3909_v32 = vadd.f32 %v2505_v33, %v2325_v38  ;;  %v4052_v37 = vadd.f32 %v2864_v41, %v2684_v1  ;;  %v4053_v3 = vadd.f32 %v2865_v21, %v2685_v40  ;;  %v17118_v33 = vld [vmem:[#allocation232_spill] sm:$0xff]  ;;  %v17119_v41 = vld [vmem:[#allocation234_spill] sm:$0xff] }
 0x342   : > { %v5168_v11 = vmax.f32 %v5024_v28, 0.0  ;;  %v5169_v36 = vmax.f32 %v5025_v35, 0.0  ;;  %v4196_v8 = vadd.f32 %v3224_v49, %v3044_v23  ;;  %v4197_v54 = vadd.f32 %v3225_v51, %v3045_v10  ;;  %v17122_v49 = vld [vmem:[#allocation144_spill] sm:$0xff]  ;;  %v17126_v35 = vld [vmem:[#allocation241_spill] sm:$0xff] }
 0x343   : > { %v4340_v7 = vadd.f32 %v3584_v25, %v3404_v60  ;;  %v4341_v39 = vadd.f32 %v3585_v52, %v3405_v2  ;;  %v4484_v4 = vadd.f32 %v4052_v37, %v3908_v47  ;;  %v3764_v13 = vmul.f32 %v12372_v55, %v17116_v61  ;;  %v17120_v47 = vld [vmem:[#allocation139_spill] sm:$0xff]  ;;  %v17123_v37 = vld [vmem:[#allocation146_spill] sm:$0xff] }
 0x344   : > { %v5312_v56 = vmul.f32 %v5168_v11, %v13128_v44  ;;  %v5313_v63 = vmul.f32 %v5169_v36, %v2073_v48  ;;  %v4485_v18 = vadd.f32 %v4053_v3, %v3909_v32  ;;  %v3765_v53 = vmul.f32 %v12372_v55, %v17117_v57  ;;  %v17121_v48 = vld [vmem:[#allocation141_spill] sm:$0xff]  ;;  %v17124_v32 = vld [vmem:[#allocation118_spill] sm:$0xff] }
 0x345   : > { %v4628_v38 = vadd.f32 %v4340_v7, %v4196_v8  ;;  %v4629_v19 = vadd.f32 %v4341_v39, %v4197_v54  ;;  %v2254_v1 = vmul.f32 %v17118_v33, %v12698_v12  ;;  %v2255_v21 = vmul.f32 %v17119_v41, %v12698_v12  ;;  %v17125_v25 = vld [vmem:[#allocation126_spill] sm:$0xff]  ;;  %v17129_v7 = vld [vmem:[#allocation149_spill] sm:$0xff] }
 0x346   : > { %v5437_v40 = vpack.c.bf16 %v5313_v63, %v5312_v56  ;;  %v2434_v44 = vmul.f32 %v12701_v30, %v17120_v47  ;;  %v2435_v23 = vmul.f32 %v12701_v30, %v17121_v48  ;;  %v2614_v55 = vmul.f32 %v12704_v17, %v17122_v49  ;;  %v17127_v52 = vld [vmem:[#allocation242_spill] sm:$0xff] }
 0x347   : > { %v4772_v10 = vadd.f32 %v4628_v38, %v4484_v4  ;;  %v4773_v3 = vadd.f32 %v4629_v19, %v4485_v18  ;;  %v2615_v39 = vmul.f32 %v12704_v17, %v17123_v37  ;;  %v2794_v56 = vmul.f32 %v13119_v62, %v12707_v59  ;;  %v17131_v38 = vld [vmem:[#allocation193_spill] sm:$0xff]  ;;  %v17132_v33 = vld [vmem:[#allocation166_spill] sm:$0xff] }
 0x348   : > { %7147 = vmatmul.mubr.msk.bf16.gmra.mrb[4].mxu1 %vm1041_vm3, %v5437_v40  ;;  %v2795_v54 = vmul.f32 %v17088_v43, %v12707_v59  ;;  %v2974_v51 = vmul.f32 %v12710_v0, %v17091_v26  ;;  %v2975_v60 = vmul.f32 %v12710_v0, %v17124_v32  ;;  %v3154_v8 = vmul.f32 %v12742_v20, %v17095_v45  ;;  %v17133_v40 = vld [vmem:[#allocation194_spill] sm:$0xff]  ;;  %v17162_v62 = vld [vmem:[#allocation33_spill] sm:$0xff] }
 0x349   : > { %v4916_v36 = vadd.f32 %v4772_v10, %v3764_v13  ;;  %v4917_v2 = vadd.f32 %v4773_v3, %v3765_v53  ;;  %v3155_v28 = vmul.f32 %v12742_v20, %v17125_v25  ;;  %v3334_v18 = vmul.f32 %v17126_v35, %v12745_v46  ;;  %v17130_v53 = vld [vmem:[#allocation165_spill] sm:$0xff]  ;;  %v17163_v61 = vld [vmem:[#allocation34_spill] sm:$0xff] }
 0x34a   : > { %v3335_v43 = vmul.f32 %v17127_v52, %v12745_v46  ;;  %v3514_v11 = vmul.f32 %v17009_v14, %v17128_v5  ;;  %v3515_v4 = vmul.f32 %v17009_v14, %v17129_v7  ;;  %v13235_v19 = vmul.f32 %v17131_v38, %v17130_v53 }
 0x34b   : > { %v5096_v63 = vadd.f32 %v17010_v16, %v4916_v36  ;;  %v5097_v13 = vadd.f32 %v17010_v16, %v4917_v2  ;;  %v13239_v41 = vmul.f32 %v17133_v40, %v17132_v33  ;;  %v3838_v10 = vadd.f32 %v2434_v44, %v2254_v1  ;;  %v729_v16 = vld [vmem:[%s14913_s1 + $0x70] sm:$0xff]  ;;  %v17134_v33 = vld [vmem:[#allocation150_spill] sm:$0xff] }
 0x34c   : > { %v3839_v3 = vadd.f32 %v2435_v23, %v2255_v21  ;;  %v3982_v25 = vadd.f32 %v2794_v56, %v2614_v55  ;;  %v3983_v32 = vadd.f32 %v2795_v54, %v2615_v39  ;;  %v4126_v48 = vadd.f32 %v3154_v8, %v2974_v51  ;;  %v17135_v21 = vld [vmem:[#allocation151_spill] sm:$0xff]  ;;  %v17136_v39 = vld [vmem:[#allocation5_spill] sm:$0xff]  ;;  %v17137_v54 = vld [vmem:[#allocation4_spill] sm:$0xff] }
 0x34d   : > { %v5240_v37 = vmax.f32 %v5096_v63, 0.0  ;;  %v5241_v49 = vmax.f32 %v5097_v13, 0.0  ;;  %v4127_v7 = vadd.f32 %v3155_v28, %v2975_v60  ;;  %v4270_v36 = vadd.f32 %v3514_v11, %v3334_v18  ;;  %v17138_v8 = vld [vmem:[#allocation35_spill] sm:$0xff]  ;;  %v17142_v28 = vld [vmem:[#allocation244_spill] sm:$0xff]  ;;  %v17152_v40 = vld [vmem:[#allocation42_spill] sm:$0xff] }
 0x34e   : > { %v4271_v2 = vadd.f32 %v3515_v4, %v3335_v43  ;;  %v4414_v53 = vadd.f32 %v3982_v25, %v3838_v10  ;;  %v4415_v38 = vadd.f32 %v3983_v32, %v3839_v3  ;;  %v3694_v1 = vmul.f32 %v12754_v29, %v17134_v33  ;;  %v17143_v43 = vld [vmem:[#allocation245_spill] sm:$0xff]  ;;  %v17146_v63 = vld [vmem:[#allocation24_spill] sm:$0xff] }
 0x34f   : > { %v5384_v47 = vmul.f32 %v5240_v37, %v2144_v15  ;;  %v5385_v45 = vmul.f32 %v5241_v49, %v2145_v50  ;;  %v3695_v44 = vmul.f32 %v12754_v29, %v17135_v21  ;;  %v4558_v23 = vadd.f32 %v4270_v36, %v4126_v48  ;;  %v17139_v50 = vld [vmem:[#allocation40_spill] sm:$0xff]  ;;  %v17140_v49 = vld [vmem:[#allocation41_spill] sm:$0xff] }
 0x350   : > { %v4559_v55 = vadd.f32 %v4271_v2, %v4127_v7  ;;  %v13249_v56 = vrot.slane %v729_v16, %v17136_v39  ;;  %v13252_v51 = vrot.slane %v729_v16, %v17137_v54  ;;  %v13255_v32 = vrot.slane %v729_v16, %v17138_v8  ;;  %v17145_v7 = vld [vmem:[#allocation21_spill] sm:$0xff] }
 0x351   : > { %v5473_v60 = vpack.c.bf16 %v5385_v45, %v5384_v47  ;;  %v13258_v15 = vrot.slane %v729_v16, %v17139_v50  ;;  %v13261_v37 = vrot.slane %v729_v16, %v17140_v49  ;;  %v4702_v48 = vadd.f32 %v4558_v23, %v4414_v53  ;;  %v17144_v45 = vld [vmem:[#allocation20_spill] sm:$0xff]  ;;  %v17147_v10 = vld [vmem:[#allocation25_spill] sm:$0xff]  ;;  %v13282_v23 = vld [vmem:[%s8087_s12 + $0x20] sm:$0xff] }
 0x352   : > { %v4703_v25 = vadd.f32 %v4559_v55, %v4415_v38  ;;  %v2326_v18 = vmul.f32 %v17142_v28, %v13249_v56  ;;  %v2327_v11 = vmul.f32 %v17143_v43, %v13249_v56  ;;  %v2506_v47 = vmul.f32 %v13252_v51, %v17144_v45  ;;  %v13277_v2 = vld [vmem:[%s8087_s12 + $0x18] sm:$0xff]  ;;  %17149 = vst [vmem:[#allocation249_spill] sm:$0xff] %v13282_v23  ;;  %v17151_v43 = vld [vmem:[#allocation28_spill] sm:$0xff] }
 0x353   : > { %17141 = vst [vmem:[#allocation201_spill] sm:$0xff] %v13261_v37  ;;  %7227 = vmatmul.mubr.msk.bf16.gmra.mrb[12].mxu0 %vm1041_vm3, %v5473_v60  ;;  %v2507_v4 = vmul.f32 %v13252_v51, %v17145_v7  ;;  %v2686_v13 = vmul.f32 %v13255_v32, %v17146_v63  ;;  %v2687_v38 = vmul.f32 %v13255_v32, %v17147_v10  ;;  %17148 = vst [vmem:[#allocation248_spill] sm:$0xff] %v13277_v2  ;;  %v17150_v60 = vld [vmem:[#allocation26_spill] sm:$0xff]  ;;  %v17156_v63 = vld [vmem:[#allocation44_spill] sm:$0xff] }
 0x354   : > { %v4846_v3 = vadd.f32 %v4702_v48, %v3694_v1  ;;  %v4847_v36 = vadd.f32 %v4703_v25, %v3695_v44  ;;  %v2866_v53 = vmul.f32 %v13277_v2, %v13258_v15  ;;  %v2867_v55 = vmul.f32 %v13282_v23, %v13258_v15  ;;  %v17154_v1 = vld [vmem:[#allocation43_spill] sm:$0xff]  ;;  %v7856_v45 = vld [vmem:[%s14913_s1 + $0x78] sm:$0x7]  ;;  %v17159_v50 = vld [vmem:[#allocation32_spill] sm:$0xff] }
 0x355   : > { %v3046_v28 = vmul.f32 %v13261_v37, %v17150_v60  ;;  %v3047_v21 = vmul.f32 %v13261_v37, %v17151_v43  ;;  %v13291_v10 = vrot.slane %v729_v16, %v17152_v40  ;;  %v13294_v44 = vrot.slane %v729_v16, %v17154_v1  ;;  %v17158_v43 = vld [vmem:[#allocation30_spill] sm:$0xff] }
 0x356   : > { %v5026_v48 = vadd.f32 %v17110_v27, %v4846_v3  ;;  %v5027_v25 = vadd.f32 %v17110_v27, %v4847_v36  ;;  %v13299_v7 = vrot.slane %v729_v16, %v17156_v63  ;;  %v13305_v49 = vrot.slane %v7856_v45, %v17136_v39  ;;  %v17160_v3 = vld [vmem:[#allocation163_spill] sm:$0xff]  ;;  %v17161_v36 = vld [vmem:[#allocation116_spill] sm:$0xff] }
 0x357   : > { %17153 = vst [vmem:[#allocation121_spill] sm:$0xff] %v13291_v10  ;;  %17155 = vst [vmem:[#allocation122_spill] sm:$0xff] %v13294_v44  ;;  %v3226_v40 = vmul.f32 %v13291_v10, %v17158_v43  ;;  %v3227_v1 = vmul.f32 %v13291_v10, %v17159_v50  ;;  %v3406_v54 = vmul.f32 %v17160_v3, %v13294_v44  ;;  %v17169_v3 = vld [vmem:[#allocation38_spill] sm:$0xff] }
 0x358   : > { %17157 = vst [vmem:[#allocation218_spill] sm:$0xff] %v13299_v7  ;;  %v3407_v16 = vmul.f32 %v17161_v36, %v13294_v44  ;;  %v5170_v63 = vmax.f32 %v5026_v48, 0.0  ;;  %v5171_v26 = vmax.f32 %v5027_v25, 0.0  ;;  %v3586_v57 = vmul.f32 %v13299_v7, %v17162_v62 }
 0x359   : > { %v3587_v39 = vmul.f32 %v13299_v7, %v17163_v61  ;;  %v2146_v22 = vmul.f32 %v17165_v42, %v17164_v24  ;;  %v2147_v50 = vmul.f32 %v17167_v9, %v17166_v6  ;;  %v3910_v31 = vadd.f32 %v2506_v47, %v2326_v18  ;;  %v17168_v61 = vld [vmem:[#allocation37_spill] sm:$0xff] }
 0x35a   : > { %v3911_v34 = vadd.f32 %v2507_v4, %v2327_v11  ;;  %v5314_v58 = vmul.f32 %v5170_v63, %v13235_v19  ;;  %v5315_v27 = vmul.f32 %v5171_v26, %v13239_v41  ;;  %v4054_v48 = vadd.f32 %v2866_v53, %v2686_v13  ;;  %v17171_v26 = vld [vmem:[#allocation173_spill] sm:$0xff]  ;;  %v17177_v13 = vld [vmem:[#allocation184_spill] sm:$0xff] }
 0x35b   : > { %v4055_v25 = vadd.f32 %v2867_v55, %v2687_v38  ;;  %v4198_v44 = vadd.f32 %v3226_v40, %v3046_v28  ;;  %v4199_v10 = vadd.f32 %v3227_v1, %v3047_v21  ;;  %v4342_v37 = vadd.f32 %v3586_v57, %v3406_v54  ;;  %v17173_v40 = vld [vmem:[#allocation170_spill] sm:$0xff]  ;;  %v17178_v55 = vld [vmem:[#allocation187_spill] sm:$0xff]  ;;  %v17179_v1 = vld [vmem:[#allocation8_spill] sm:$0xff] }
 0x35c   : > { %v4343_v62 = vadd.f32 %v3587_v39, %v3407_v16  ;;  %v5438_v36 = vpack.c.bf16 %v5315_v27, %v5314_v58  ;;  %v3766_v7 = vmul.f32 %v13305_v49, %v17168_v61  ;;  %v4486_v24 = vadd.f32 %v4054_v48, %v3910_v31  ;;  %v17172_v58 = vld [vmem:[#allocation164_spill] sm:$0xff]  ;;  %v17182_v48 = vld [vmem:[#allocation190_spill] sm:$0xff] }
 0x35d   : > { %v4487_v42 = vadd.f32 %v4055_v25, %v3911_v34  ;;  %v3767_v6 = vmul.f32 %v13305_v49, %v17169_v3  ;;  %v4630_v18 = vadd.f32 %v4342_v37, %v4198_v44  ;;  %v13330_v19 = vrot.slane %v7856_v45, %v17138_v8  ;;  %v17174_v34 = vld [vmem:[#allocation174_spill] sm:$0xff]  ;;  %v17180_v44 = vld [vmem:[#allocation81_spill] sm:$0xff]  ;;  %v17187_v8 = vld [vmem:[#allocation191_spill] sm:$0xff] }
 0x35e   : > { %v4631_v11 = vadd.f32 %v4343_v62, %v4199_v10  ;;  %7150 = vmatprep.mubr.msk.bf16.mxu1 %vm1041_vm3, %v5438_v36  ;;  %v2256_v57 = vmul.f32 %v17171_v26, %v12698_v12  ;;  %v2257_v27 = vmul.f32 %v17172_v58, %v12698_v12  ;;  %v2436_v31 = vmul.f32 %v12701_v30, %v17173_v40  ;;  %v17175_v62 = vld [vmem:[#allocation178_spill] sm:$0xff]  ;;  %v17181_v36 = vld [vmem:[#allocation188_spill] sm:$0xff] }
 0x35f   : > { %17170 = vst [vmem:[#allocation220_spill] sm:$0xff] %v13330_v19  ;;  %v2437_v41 = vmul.f32 %v12701_v30, %v17174_v34  ;;  %v4774_v21 = vadd.f32 %v4630_v18, %v4486_v24  ;;  %v2616_v54 = vmul.f32 %v12704_v17, %v17175_v62  ;;  %v17176_v37 = vld [vmem:[#allocation182_spill] sm:$0xff]  ;;  %v2796_v47 = vmul.f32 %v17126_v35, %v12707_v59 }
 0x360   : > { %v4775_v39 = vadd.f32 %v4631_v11, %v4487_v42  ;;  %v2617_v45 = vmul.f32 %v12704_v17, %v17176_v37  ;;  %v2797_v4 = vmul.f32 %v17127_v52, %v12707_v59  ;;  %v2976_v63 = vmul.f32 %v12710_v0, %v17128_v5  ;;  %v17184_v18 = vld [vmem:[#allocation50_spill] sm:$0xff] }
 0x361   : > { %v2977_v10 = vmul.f32 %v12710_v0, %v17177_v13  ;;  %v4918_v38 = vadd.f32 %v4774_v21, %v3766_v7  ;;  %v3156_v53 = vmul.f32 %v12742_v20, %v17134_v33  ;;  %v3157_v28 = vmul.f32 %v12742_v20, %v17178_v55  ;;  %v17185_v26 = vld [vmem:[#allocation62_spill] sm:$0xff] }
 0x362   : > { %v4919_v42 = vadd.f32 %v4775_v39, %v3767_v6  ;;  %v3336_v35 = vmul.f32 %v17179_v1, %v12745_v46  ;;  %v3337_v52 = vmul.f32 %v17180_v44, %v12745_v46  ;;  %v3516_v16 = vmul.f32 %v17009_v14, %v17181_v36  ;;  %v17183_v6 = vld [vmem:[#allocation154_spill] sm:$0xff] }
 0x363   : > { %v3517_v25 = vmul.f32 %v17009_v14, %v17182_v48  ;;  %v5098_v7 = vadd.f32 %v13330_v19, %v4918_v38  ;;  %v2076_v11 = vmul.f32 %v17184_v18, %v17183_v6  ;;  %v17186_v58 = vld [vmem:[#allocation214_spill] sm:$0xff]  ;;  %v3840_v39 = vadd.f32 %v2436_v31, %v2256_v57  ;;  %v17188_v18 = vld [vmem:[#allocation192_spill] sm:$0xff] }
 0x364   : > { %v5099_v24 = vadd.f32 %v13330_v19, %v4919_v42  ;;  %v2077_v21 = vmul.f32 %v17186_v58, %v17185_v26  ;;  %v3841_v55 = vadd.f32 %v2437_v41, %v2257_v27  ;;  %v3984_v13 = vadd.f32 %v2796_v47, %v2616_v54 }
 0x365   : > { %v3985_v37 = vadd.f32 %v2797_v4, %v2617_v45  ;;  %v5242_v62 = vmax.f32 %v5098_v7, 0.0  ;;  %v4128_v40 = vadd.f32 %v3156_v53, %v2976_v63  ;;  %v4129_v33 = vadd.f32 %v3157_v28, %v2977_v10  ;;  %v17193_v63 = vld [vmem:[#allocation33_spill] sm:$0xff]  ;;  %v17199_v7 = vld [vmem:[#allocation64_spill] sm:$0xff] }
 0x366   : > { %v5243_v34 = vmax.f32 %v5099_v24, 0.0  ;;  %v4272_v5 = vadd.f32 %v3516_v16, %v3336_v35  ;;  %v4273_v48 = vadd.f32 %v3517_v25, %v3337_v52  ;;  %v4416_v3 = vadd.f32 %v3984_v13, %v3840_v39  ;;  %v17194_v13 = vld [vmem:[#allocation201_spill] sm:$0xff]  ;;  %v17197_v16 = vld [vmem:[#allocation31_spill] sm:$0xff]  ;;  %v17198_v25 = vld [vmem:[#allocation122_spill] sm:$0xff] }
 0x367   : > { %v4417_v38 = vadd.f32 %v3985_v37, %v3841_v55  ;;  %v5386_v9 = vmul.f32 %v5242_v62, %v2146_v22  ;;  %v3696_v6 = vmul.f32 %v12754_v29, %v17187_v8  ;;  %v3697_v26 = vmul.f32 %v12754_v29, %v17188_v18  ;;  %v17189_v22 = vld [vmem:[#allocation19_spill] sm:$0xff]  ;;  %v17195_v53 = vld [vmem:[#allocation29_spill] sm:$0xff]  ;;  %v17200_v39 = vld [vmem:[#allocation72_spill] sm:$0xff] }
 0x368   : > { %v5387_v42 = vmul.f32 %v5243_v34, %v2147_v50  ;;  %v4560_v57 = vadd.f32 %v4272_v5, %v4128_v40  ;;  %v4561_v27 = vadd.f32 %v4273_v48, %v4129_v33  ;;  %v2328_v31 = vmul.f32 %v13277_v2, %v13249_v56  ;;  %v17190_v5 = vld [vmem:[#allocation27_spill] sm:$0xff]  ;;  %v17205_v18 = vld [vmem:[#allocation76_spill] sm:$0xff]  ;;  %v17209_v2 = vld [vmem:[#allocation77_spill] sm:$0xff] }
 0x369   : > { %v2329_v41 = vmul.f32 %v13282_v23, %v13249_v56  ;;  %v2508_v37 = vmul.f32 %v13252_v51, %v17150_v60  ;;  %v2509_v50 = vmul.f32 %v13252_v51, %v17189_v22  ;;  %v2688_v34 = vmul.f32 %v13255_v32, %v17158_v43  ;;  %v17191_v40 = vld [vmem:[#allocation163_spill] sm:$0xff] }
 0x36a   : > { %v5474_v54 = vpack.c.bf16 %v5387_v42, %v5386_v9  ;;  %v4704_v62 = vadd.f32 %v4560_v57, %v4416_v3  ;;  %v4705_v45 = vadd.f32 %v4561_v27, %v4417_v38  ;;  %v2689_v33 = vmul.f32 %v13255_v32, %v17190_v5  ;;  %v17192_v9 = vld [vmem:[#allocation116_spill] sm:$0xff]  ;;  %v17196_v3 = vld [vmem:[#allocation121_spill] sm:$0xff] }
 0x36b   : > { %v2868_v47 = vmul.f32 %v17191_v40, %v13258_v15  ;;  %v2869_v4 = vmul.f32 %v17192_v9, %v13258_v15  ;;  %v3048_v10 = vmul.f32 %v17194_v13, %v17193_v63  ;;  %v3049_v55 = vmul.f32 %v17194_v13, %v17195_v53  ;;  %v17201_v38 = vld [vmem:[#allocation104_spill] sm:$0xff]  ;;  %v17202_v57 = vld [vmem:[#allocation65_spill] sm:$0xff]  ;;  %v17204_v40 = vld [vmem:[#allocation218_spill] sm:$0xff] }
 0x36c   : > { %7232 = vmatprep.mubr.msk.bf16.mxu0 %vm1041_vm3, %v5474_v54  ;;  %v3228_v28 = vmul.f32 %v17196_v3, %v17168_v61  ;;  %v4848_v35 = vadd.f32 %v4704_v62, %v3696_v6  ;;  %v4849_v52 = vadd.f32 %v4705_v45, %v3697_v26  ;;  %v3229_v48 = vmul.f32 %v17196_v3, %v17197_v16  ;;  %v17203_v54 = vld [vmem:[#allocation75_spill] sm:$0xff]  ;;  %v17206_v6 = vld [vmem:[#allocation48_spill] sm:$0xff]  ;;  %v17208_v16 = vld [vmem:[#allocation105_spill] sm:$0xff] }
 0x36d   : > { %v3408_v24 = vmul.f32 %v17199_v7, %v17198_v25  ;;  %v2148_v42 = vmul.f32 %v17201_v38, %v17200_v39  ;;  %v3409_v27 = vmul.f32 %v17202_v57, %v17198_v25  ;;  %v3588_v9 = vmul.f32 %v17204_v40, %v17203_v54  ;;  %v17207_v45 = vld [vmem:[#allocation95_spill] sm:$0xff] }
 0x36e   : > { %v3589_v58 = vmul.f32 %v17204_v40, %v17205_v18  ;;  %v5028_v26 = vadd.f32 %v17206_v6, %v4848_v35  ;;  %v5029_v62 = vadd.f32 %v17206_v6, %v4849_v52  ;;  %v2149_v53 = vmul.f32 %v17208_v16, %v17207_v45  ;;  %v17210_v6 = vld [vmem:[#allocation78_spill] sm:$0xff] }
 0x36f   : > { %v3912_v5 = vadd.f32 %v2508_v37, %v2328_v31  ;;  %v3913_v22 = vadd.f32 %v2509_v50, %v2329_v41  ;;  %v4056_v61 = vadd.f32 %v2868_v47, %v2688_v34  ;;  %v4057_v39 = vadd.f32 %v2869_v4, %v2689_v33  ;;  %v7857_v37 = vld [vmem:[%s14914_s2 + $0x10] sm:$0x3]  ;;  %v17211_v34 = vld [vmem:[#allocation90_spill] sm:$0xff]  ;;  %v17216_v4 = vld [vmem:[#allocation203_spill] sm:$0xff] }
 0x370   : > { %v4200_v38 = vadd.f32 %v3228_v28, %v3048_v10  ;;  %v5172_v63 = vmax.f32 %v5028_v26, 0.0  ;;  %v5173_v43 = vmax.f32 %v5029_v62, 0.0  ;;  %v4201_v60 = vadd.f32 %v3229_v48, %v3049_v55  ;;  %v17217_v48 = vld [vmem:[#allocation186_spill] sm:$0xff] }
 0x371   : > { %v4344_v23 = vadd.f32 %v3588_v9, %v3408_v24  ;;  %v3768_v25 = vmul.f32 %v13305_v49, %v17209_v2  ;;  %v4345_v18 = vadd.f32 %v3589_v58, %v3409_v27  ;;  %v4488_v40 = vadd.f32 %v4056_v61, %v3912_v5  ;;  %v17212_v58 = vld [vmem:[#allocation91_spill] sm:$0xff]  ;;  %v17214_v5 = vld [vmem:[#allocation156_spill] sm:$0xff] }
 0x372   : > { %v4489_v35 = vadd.f32 %v4057_v39, %v3913_v22  ;;  %v5316_v3 = vmul.f32 %v5172_v63, %v2076_v11  ;;  %v5317_v52 = vmul.f32 %v5173_v43, %v2077_v21  ;;  %v3769_v45 = vmul.f32 %v13305_v49, %v17210_v6  ;;  %v17213_v43 = vld [vmem:[#allocation155_spill] sm:$0xff]  ;;  %v17221_v39 = vld [vmem:[#allocation208_spill] sm:$0xff] }
 0x373   : > { %v4632_v31 = vadd.f32 %v4344_v23, %v4200_v38  ;;  %v4633_v41 = vadd.f32 %v4345_v18, %v4201_v60  ;;  %v6613_v50 = vsel %vm5523_vm0, %v7857_v37, 0  ;;  %v2258_v33 = vmul.f32 %v17211_v34, %v12698_v12  ;;  %v17215_v18 = vld [vmem:[#allocation200_spill] sm:$0xff] }
 0x374   : > { %v2259_v61 = vmul.f32 %v17212_v58, %v12698_v12  ;;  %v5439_v22 = vpack.c.bf16 %v5317_v52, %v5316_v3  ;;  %v2438_v21 = vmul.f32 %v12701_v30, %v17213_v43  ;;  %v2439_v23 = vmul.f32 %v12701_v30, %v17214_v5  ;;  %v17222_v52 = vld [vmem:[#allocation211_spill] sm:$0xff]  ;;  %v17224_v37 = vld [vmem:[#allocation16_spill] sm:$0xff] }
 0x375   : > { %v4776_v11 = vadd.f32 %v4632_v31, %v4488_v40  ;;  %v4777_v60 = vadd.f32 %v4633_v41, %v4489_v35  ;;  %v2618_v47 = vmul.f32 %v12704_v17, %v17215_v18  ;;  %v2619_v63 = vmul.f32 %v12704_v17, %v17216_v4  ;;  %v17218_v40 = vld [vmem:[#allocation189_spill] sm:$0xff]  ;;  %v17225_v58 = vld [vmem:[#allocation216_spill] sm:$0xff] }
 0x376   : > { %v2798_v10 = vmul.f32 %v17179_v1, %v12707_v59  ;;  %7151 = vmatmul.mubr.msk.bf16.gmra.mrb[8].mxu1 %vm1041_vm3, %v5439_v22  ;;  %v2799_v3 = vmul.f32 %v17180_v44, %v12707_v59  ;;  %v2978_v28 = vmul.f32 %v12710_v0, %v17181_v36  ;;  %v2979_v24 = vmul.f32 %v12710_v0, %v17217_v48  ;;  %v17219_v1 = vld [vmem:[#allocation107_spill] sm:$0xff]  ;;  %v17220_v44 = vld [vmem:[#allocation109_spill] sm:$0xff]  ;;  %v17226_v22 = vld [vmem:[#allocation36_spill] sm:$0xff] }
 0x377   : > { %v4920_v55 = vadd.f32 %v4776_v11, %v3768_v25  ;;  %v4921_v38 = vadd.f32 %v4777_v60, %v3769_v45  ;;  %v3158_v27 = vmul.f32 %v12742_v20, %v17187_v8  ;;  %v3159_v9 = vmul.f32 %v12742_v20, %v17218_v40  ;;  %v17223_v41 = vld [vmem:[#allocation157_spill] sm:$0xff] }
 0x378   : > { %v3338_v26 = vmul.f32 %v17219_v1, %v12745_v46  ;;  %v3339_v62 = vmul.f32 %v17220_v44, %v12745_v46  ;;  %v3518_v35 = vmul.f32 %v17009_v14, %v17221_v39  ;;  %v3519_v45 = vmul.f32 %v17009_v14, %v17222_v52 }
 0x379   : > { %v5100_v25 = vadd.f32 %v13330_v19, %v4920_v55  ;;  %v5101_v31 = vadd.f32 %v13330_v19, %v4921_v38  ;;  %v2078_v34 = vmul.f32 %v17224_v37, %v17223_v41  ;;  %v2079_v11 = vmul.f32 %v17226_v22, %v17225_v58  ;;  %v17227_v19 = vld [vmem:[#allocation179_spill] sm:$0xff]  ;;  %v17228_v37 = vld [vmem:[#allocation180_spill] sm:$0xff] }
 0x37a   : > { %v3842_v60 = vadd.f32 %v2438_v21, %v2258_v33  ;;  %v3843_v55 = vadd.f32 %v2439_v23, %v2259_v61  ;;  %v3986_v48 = vadd.f32 %v2798_v10, %v2618_v47  ;;  %v3987_v4 = vadd.f32 %v2799_v3, %v2619_v63  ;;  %v17229_v61 = vld [vmem:[#allocation88_spill] sm:$0xff]  ;;  %v17231_v10 = vld [vmem:[#allocation83_spill] sm:$0xff] }
 0x37b   : > { %v5244_v40 = vmax.f32 %v5100_v25, 0.0  ;;  %v5245_v18 = vmax.f32 %v5101_v31, 0.0  ;;  %v4130_v5 = vadd.f32 %v3158_v27, %v2978_v28  ;;  %v4131_v43 = vadd.f32 %v3159_v9, %v2979_v24  ;;  %v17230_v47 = vld [vmem:[#allocation84_spill] sm:$0xff]  ;;  %v17233_v28 = vld [vmem:[#allocation93_spill] sm:$0xff] }
 0x37c   : > { %v4274_v8 = vadd.f32 %v3518_v35, %v3338_v26  ;;  %v4275_v6 = vadd.f32 %v3519_v45, %v3339_v62  ;;  %v4418_v52 = vadd.f32 %v3986_v48, %v3842_v60  ;;  %v4419_v16 = vadd.f32 %v3987_v4, %v3843_v55  ;;  %v17237_v62 = vld [vmem:[#allocation74_spill] sm:$0xff]  ;;  %v17240_v45 = vld [vmem:[#allocation12_spill] sm:$0xff] }
 0x37d   : > { %v5388_v36 = vmul.f32 %v5244_v40, %v2148_v42  ;;  %v5389_v38 = vmul.f32 %v5245_v18, %v2149_v53  ;;  %v3698_v41 = vmul.f32 %v12754_v29, %v17227_v19  ;;  %v3699_v58 = vmul.f32 %v12754_v29, %v17228_v37  ;;  %v17232_v53 = vld [vmem:[#allocation85_spill] sm:$0xff]  ;;  %v17238_v35 = vld [vmem:[#allocation122_spill] sm:$0xff]  ;;  %v17241_v60 = vld [vmem:[#allocation48_spill] sm:$0xff] }
 0x37e   : > { %v4562_v33 = vadd.f32 %v4274_v8, %v4130_v5  ;;  %v4563_v21 = vadd.f32 %v4275_v6, %v4131_v43  ;;  %v2330_v23 = vmul.f32 %v17229_v61, %v13249_v56  ;;  %v2331_v63 = vmul.f32 %v17230_v47, %v13249_v56  ;;  %v17234_v8 = vld [vmem:[#allocation94_spill] sm:$0xff]  ;;  %v17235_v40 = vld [vmem:[#allocation73_spill] sm:$0xff] }
 0x37f   : > { %v2510_v42 = vmul.f32 %v13252_v51, %v17231_v10  ;;  %v5475_v3 = vpack.c.bf16 %v5389_v38, %v5388_v36  ;;  %v2511_v18 = vmul.f32 %v13252_v51, %v17232_v53  ;;  %v2690_v48 = vmul.f32 %v13255_v32, %v17233_v28  ;;  %v17242_v38 = vld [vmem:[#allocation125_spill] sm:$0xff]  ;;  %v17245_v61 = vld [vmem:[#allocation218_spill] sm:$0xff] }
 0x380   : > { %v4706_v4 = vadd.f32 %v4562_v33, %v4418_v52  ;;  %v4707_v24 = vadd.f32 %v4563_v21, %v4419_v16  ;;  %v2691_v6 = vmul.f32 %v13255_v32, %v17234_v8  ;;  %v2870_v43 = vmul.f32 %v17199_v7, %v13258_v15  ;;  %v17236_v16 = vld [vmem:[#allocation121_spill] sm:$0xff]  ;;  %v17239_v52 = vld [vmem:[#allocation11_spill] sm:$0xff] }
 0x381   : > { %v2871_v5 = vmul.f32 %v17202_v57, %v13258_v15  ;;  %7233 = vmatmul.mubr.msk.bf16.vlgmr.msra.gmra.mrb[0].mxu0 %vm1041_vm3, %v5475_v3  ;;  %v3050_v27 = vmul.f32 %v17194_v13, %v17203_v54  ;;  %v3051_v9 = vmul.f32 %v17194_v13, %v17235_v40  ;;  %v3230_v26 = vmul.f32 %v17236_v16, %v17209_v2  ;;  %v17244_v21 = vld [vmem:[#allocation99_spill] sm:$0xff]  ;;  %v17246_v3 = vld [vmem:[#allocation101_spill] sm:$0xff]  ;;  %v17249_v54 = vld [vmem:[#allocation102_spill] sm:$0xff] }
 0x382   : > { %v4850_v36 = vadd.f32 %v4706_v4, %v3698_v41  ;;  %7249 = vmatpush3.bf16.msra.mxu0 %v6613_v50  ;;  %v4851_v25 = vadd.f32 %v4707_v24, %v3699_v58  ;;  %v3231_v7 = vmul.f32 %v17236_v16, %v17237_v62  ;;  %v3410_v57 = vmul.f32 %v17239_v52, %v17238_v35  ;;  %v17243_v41 = vld [vmem:[#allocation136_spill] sm:$0xff]  ;;  %v17247_v4 = vld [vmem:[#allocation127_spill] sm:$0xff]  ;;  %v17248_v24 = vld [vmem:[#allocation137_spill] sm:$0xff] }
 0x383   : > { %v3411_v31 = vmul.f32 %v17240_v45, %v17238_v35  ;;  %v2150_v33 = vmul.f32 %v17243_v41, %v17242_v38  ;;  %v3590_v47 = vmul.f32 %v17245_v61, %v17244_v21  ;;  %v3591_v50 = vmul.f32 %v17245_v61, %v17246_v3 }
 0x384   : > { %v5030_v55 = vadd.f32 %v17241_v60, %v4850_v36  ;;  %v5031_v58 = vadd.f32 %v17241_v60, %v4851_v25  ;;  %v2151_v37 = vmul.f32 %v17248_v24, %v17247_v4  ;;  %v3914_v22 = vadd.f32 %v2510_v42, %v2330_v23  ;;  %v17250_v60 = vld [vmem:[#allocation103_spill] sm:$0xff] }
 0x385   : > { %v3915_v62 = vadd.f32 %v2511_v18, %v2331_v63  ;;  %v4058_v8 = vadd.f32 %v2870_v43, %v2690_v48  ;;  %v4059_v28 = vadd.f32 %v2871_v5, %v2691_v6  ;;  %v4202_v36 = vadd.f32 %v3230_v26, %v3050_v27  ;;  %v17251_v42 = vld [vmem:[#allocation251_spill] sm:$0xff]  ;;  %v17252_v48 = vld [vmem:[#allocation117_spill] sm:$0xff] }
 0x386   : > { %v5174_v40 = vmax.f32 %v5030_v55, 0.0  ;;  %v5175_v53 = vmax.f32 %v5031_v58, 0.0  ;;  %v4203_v10 = vadd.f32 %v3231_v7, %v3051_v9  ;;  %v4346_v38 = vadd.f32 %v3590_v47, %v3410_v57  ;;  %v17253_v43 = vld [vmem:[#allocation219_spill] sm:$0xff]  ;;  %v17254_v5 = vld [vmem:[#allocation221_spill] sm:$0xff] }
 0x387   : > { %v4347_v41 = vadd.f32 %v3591_v50, %v3411_v31  ;;  %v3770_v35 = vmul.f32 %v13305_v49, %v17249_v54  ;;  %v4490_v3 = vadd.f32 %v4058_v8, %v3914_v22  ;;  %v4491_v61 = vadd.f32 %v4059_v28, %v3915_v62  ;;  %v17257_v62 = vld [vmem:[#allocation204_spill] sm:$0xff]  ;;  %v17264_v50 = vld [vmem:[#allocation246_spill] sm:$0xff] }
 0x388   : > { %v5318_v2 = vmul.f32 %v5174_v40, %v2078_v34  ;;  %v5319_v25 = vmul.f32 %v5175_v53, %v2079_v11  ;;  %v3771_v4 = vmul.f32 %v13305_v49, %v17250_v60  ;;  %v4634_v23 = vadd.f32 %v4346_v38, %v4202_v36  ;;  %v17255_v53 = vld [vmem:[#allocation226_spill] sm:$0xff]  ;;  %v17256_v40 = vld [vmem:[#allocation228_spill] sm:$0xff]  ;;  %v17265_v36 = vld [vmem:[#allocation231_spill] sm:$0xff] }
 0x389   : > { %v4635_v63 = vadd.f32 %v4347_v41, %v4203_v10  ;;  %v2260_v18 = vmul.f32 %v17251_v42, %v12698_v12  ;;  %v2261_v6 = vmul.f32 %v17252_v48, %v12698_v12  ;;  %v2440_v34 = vmul.f32 %v12701_v30, %v17253_v43  ;;  %v17261_v41 = vld [vmem:[#allocation230_spill] sm:$0xff]  ;;  %v17266_v38 = vld [vmem:[#allocation45_spill] sm:$0xff] }
 0x38a   : > { %v2441_v27 = vmul.f32 %v12701_v30, %v17254_v5  ;;  %v5440_v22 = vpack.c.bf16 %v5319_v25, %v5318_v2  ;;  %v4778_v28 = vadd.f32 %v4634_v23, %v4490_v3  ;;  %v2620_v8 = vmul.f32 %v12704_v17, %v17255_v53  ;;  %v17267_v25 = vld [vmem:[#allocation247_spill] sm:$0xff] }
 0x38b   : > { %v4779_v11 = vadd.f32 %v4635_v63, %v4491_v61  ;;  %v2621_v10 = vmul.f32 %v12704_v17, %v17256_v40  ;;  %v2800_v9 = vmul.f32 %v17219_v1, %v12707_v59  ;;  %v2801_v12 = vmul.f32 %v17220_v44, %v12707_v59  ;;  %v17258_v17 = vld [vmem:[#allocation209_spill] sm:$0xff]  ;;  %v17259_v1 = vld [vmem:[#allocation119_spill] sm:$0xff] }
 0x38c   : > { %v2980_v26 = vmul.f32 %v12710_v0, %v17221_v39  ;;  %7154 = vmatprep.mubr.msk.bf16.mxu1 %vm1041_vm3, %v5440_v22  ;;  %v4922_v30 = vadd.f32 %v4778_v28, %v3770_v35  ;;  %v2981_v7 = vmul.f32 %v12710_v0, %v17257_v62  ;;  %v3160_v57 = vmul.f32 %v12742_v20, %v17227_v19  ;;  %v17260_v59 = vld [vmem:[#allocation199_spill] sm:$0xff]  ;;  %v17262_v35 = vld [vmem:[#allocation220_spill] sm:$0xff]  ;;  %v17321_v19 = vld [vmem:[#allocation61_spill] sm:$0xff] }
 0x38d   : > { %v4923_v2 = vadd.f32 %v4779_v11, %v3771_v4  ;;  %v3161_v31 = vmul.f32 %v12742_v20, %v17258_v17  ;;  %v3340_v55 = vmul.f32 %v17259_v1, %v12745_v46  ;;  %v3341_v44 = vmul.f32 %v17260_v59, %v12745_v46  ;;  %v17263_v0 = vld [vmem:[#allocation39_spill] sm:$0xff]  ;;  %v17322_v39 = vld [vmem:[#allocation80_spill] sm:$0xff] }
 0x38e   : > { %v3520_v61 = vmul.f32 %v17009_v14, %v17261_v41  ;;  %v5102_v47 = vadd.f32 %v17262_v35, %v4922_v30  ;;  %v13543_v58 = vmul.f32 %v17264_v50, %v17263_v0  ;;  %v3521_v20 = vmul.f32 %v17009_v14, %v17265_v36  ;;  %v17268_v41 = vld [vmem:[#allocation196_spill] sm:$0xff] }
 0x38f   : > { %v5103_v3 = vadd.f32 %v17262_v35, %v4923_v2  ;;  %v2081_v4 = vmul.f32 %v17267_v25, %v17266_v38  ;;  %v3844_v23 = vadd.f32 %v2440_v34, %v2260_v18  ;;  %v3845_v63 = vadd.f32 %v2441_v27, %v2261_v6  ;;  %v17269_v38 = vld [vmem:[#allocation198_spill] sm:$0xff]  ;;  %v13554_v27 = vld [vmem:[%s8087_s12 + $0x48] sm:$0xff] }
 0x390   : > { %v3988_v46 = vadd.f32 %v2800_v9, %v2620_v8  ;;  %v5246_v42 = vmax.f32 %v5102_v47, 0.0  ;;  %v3989_v22 = vadd.f32 %v2801_v12, %v2621_v10  ;;  %v4132_v28 = vadd.f32 %v3160_v57, %v2980_v26  ;;  %17270 = vst [vmem:[#allocation9_spill] sm:$0xff] %v13554_v27  ;;  %v13559_v9 = vld [vmem:[%s8087_s12 + $0x50] sm:$0xff] }
 0x391   : > { %v5247_v48 = vmax.f32 %v5103_v3, 0.0  ;;  %v4133_v11 = vadd.f32 %v3161_v31, %v2981_v7  ;;  %v4276_v30 = vadd.f32 %v3520_v61, %v3340_v55  ;;  %v4277_v2 = vadd.f32 %v3521_v20, %v3341_v44  ;;  %17271 = vst [vmem:[#allocation15_spill] sm:$0xff] %v13559_v9  ;;  %v17273_v26 = vld [vmem:[#allocation108_spill] sm:$0xff]  ;;  %v17274_v31 = vld [vmem:[#allocation110_spill] sm:$0xff] }
 0x392   : > { %v4420_v1 = vadd.f32 %v3988_v46, %v3844_v23  ;;  %v5390_v59 = vmul.f32 %v5246_v42, %v2150_v33  ;;  %v3700_v14 = vmul.f32 %v12754_v29, %v17268_v41  ;;  %v4421_v36 = vadd.f32 %v3989_v22, %v3845_v63  ;;  %v17272_v33 = vld [vmem:[#allocation106_spill] sm:$0xff]  ;;  %v17275_v44 = vld [vmem:[#allocation120_spill] sm:$0xff]  ;;  %v17276_v23 = vld [vmem:[#allocation97_spill] sm:$0xff] }
 0x393   : > { %v5391_v0 = vmul.f32 %v5247_v48, %v2151_v37  ;;  %v3701_v18 = vmul.f32 %v12754_v29, %v17269_v38  ;;  %v4564_v6 = vadd.f32 %v4276_v30, %v4132_v28  ;;  %v4565_v34 = vadd.f32 %v4277_v2, %v4133_v11  ;;  %v17277_v48 = vld [vmem:[#allocation100_spill] sm:$0xff]  ;;  %v17278_v28 = vld [vmem:[#allocation122_spill] sm:$0xff]  ;;  %v17281_v2 = vld [vmem:[#allocation123_spill] sm:$0xff] }
 0x394   : > { %v2332_v8 = vmul.f32 %v13554_v27, %v13249_v56  ;;  %v2333_v37 = vmul.f32 %v13559_v9, %v13249_v56  ;;  %v2512_v12 = vmul.f32 %v13252_v51, %v17272_v33  ;;  %v2513_v29 = vmul.f32 %v13252_v51, %v17273_v26  ;;  %v17279_v11 = vld [vmem:[#allocation250_spill] sm:$0xff]  ;;  %v17287_v38 = vld [vmem:[#allocation143_spill] sm:$0xff]  ;;  %v17288_v41 = vld [vmem:[#allocation153_spill] sm:$0xff] }
 0x395   : > { %v5476_v10 = vpack.c.bf16 %v5391_v0, %v5390_v59  ;;  %v4708_v7 = vadd.f32 %v4564_v6, %v4420_v1  ;;  %v4709_v57 = vadd.f32 %v4565_v34, %v4421_v36  ;;  %v2692_v55 = vmul.f32 %v13255_v32, %v17274_v31  ;;  %v13587_v30 = vld [vmem:[%s8087_s12 + $0x80] sm:$0xff]  ;;  %v17283_v0 = vld [vmem:[#allocation124_spill] sm:$0xff]  ;;  %v17319_v9 = vld [vmem:[#allocation3_spill] sm:$0xff] }
 0x396   : > { %v2693_v61 = vmul.f32 %v13255_v32, %v17275_v44  ;;  %v2872_v47 = vmul.f32 %v17239_v52, %v13258_v15  ;;  %v2873_v3 = vmul.f32 %v17240_v45, %v13258_v15  ;;  %v3052_v20 = vmul.f32 %v17194_v13, %v17244_v21  ;;  %17280 = vst [vmem:[#allocation10_spill] sm:$0xff] %v13587_v30  ;;  %v17282_v1 = vld [vmem:[#allocation218_spill] sm:$0xff] }
 0x397   : > { %7236 = vmatprep.mubr.msk.bf16.mxu0 %vm1041_vm3, %v5476_v10  ;;  %v3053_v36 = vmul.f32 %v17194_v13, %v17276_v23  ;;  %v4852_v63 = vadd.f32 %v4708_v7, %v3700_v14  ;;  %v4853_v46 = vadd.f32 %v4709_v57, %v3701_v18  ;;  %v3232_v42 = vmul.f32 %v17236_v16, %v17249_v54  ;;  %v17284_v18 = vld [vmem:[#allocation48_spill] sm:$0xff]  ;;  %v17285_v10 = vld [vmem:[#allocation142_spill] sm:$0xff] }
 0x398   : > { %v3233_v22 = vmul.f32 %v17236_v16, %v17277_v48  ;;  %v3412_v52 = vmul.f32 %v17279_v11, %v17278_v28  ;;  %v3413_v45 = vmul.f32 %v13587_v30, %v17278_v28  ;;  %v3592_v59 = vmul.f32 %v17282_v1, %v17281_v2  ;;  %v17286_v7 = vld [vmem:[#allocation152_spill] sm:$0xff]  ;;  %v17318_v26 = vld [vmem:[#allocation34_spill] sm:$0xff] }
 0x399   : > { %v3593_v14 = vmul.f32 %v17282_v1, %v17283_v0  ;;  %v5032_v6 = vadd.f32 %v17284_v18, %v4852_v63  ;;  %v5033_v34 = vadd.f32 %v17284_v18, %v4853_v46  ;;  %v13599_v57 = vmul.f32 %v17286_v7, %v17285_v10  ;;  %v721_v63 = vld [vmem:[%s14913_s1 + $0x30] sm:$0xff] }
 0x39a   : > { %v13603_v25 = vmul.f32 %v17288_v41, %v17287_v38  ;;  %v3916_v50 = vadd.f32 %v2512_v12, %v2332_v8  ;;  %v3917_v17 = vadd.f32 %v2513_v29, %v2333_v37  ;;  %v4060_v62 = vadd.f32 %v2872_v47, %v2692_v55  ;;  %v17289_v37 = vld [vmem:[#allocation130_spill] sm:$0xff]  ;;  %v17290_v29 = vld [vmem:[#allocation131_spill] sm:$0xff]  ;;  %v17314_v48 = vld [vmem:[#allocation32_spill] sm:$0xff] }
 0x39b   : > { %v4061_v40 = vadd.f32 %v2873_v3, %v2693_v61  ;;  %v5176_v53 = vmax.f32 %v5032_v6, 0.0  ;;  %v5177_v5 = vmax.f32 %v5033_v34, 0.0  ;;  %v4204_v43 = vadd.f32 %v3232_v42, %v3052_v20  ;;  %v17291_v3 = vld [vmem:[#allocation5_spill] sm:$0xff]  ;;  %v13677_v23 = vld [vmem:[%s8087_s12 + $0x30] sm:$0xff] }
 0x39c   : > { %v4205_v0 = vadd.f32 %v3233_v22, %v3053_v36  ;;  %v4348_v46 = vadd.f32 %v3592_v59, %v3412_v52  ;;  %v4349_v18 = vadd.f32 %v3593_v14, %v3413_v45  ;;  %v4492_v10 = vadd.f32 %v4060_v62, %v3916_v50  ;;  %v17292_v36 = vld [vmem:[#allocation4_spill] sm:$0xff]  ;;  %v17295_v50 = vld [vmem:[#allocation41_spill] sm:$0xff]  ;;  %v13634_v45 = vld [vmem:[%s8087_s12 + $0x8] sm:$0xff]  ;;  %17315 = vst [vmem:[#allocation7_spill] sm:$0xff] %v13677_v23 }
 0x39d   : > { %v4493_v7 = vadd.f32 %v4061_v40, %v3917_v17  ;;  %v5320_v38 = vmul.f32 %v5176_v53, %v13543_v58  ;;  %v5321_v8 = vmul.f32 %v5177_v5, %v2081_v4  ;;  %v3772_v12 = vmul.f32 %v13305_v49, %v17289_v37  ;;  %v17293_v40 = vld [vmem:[#allocation35_spill] sm:$0xff]  ;;  %v17294_v53 = vld [vmem:[#allocation40_spill] sm:$0xff]  ;;  %17298 = vst [vmem:[#allocation13_spill] sm:$0xff] %v13634_v45  ;;  %v17300_v6 = vld [vmem:[#allocation21_spill] sm:$0xff] }
 0x39e   : > { %v3773_v55 = vmul.f32 %v13305_v49, %v17290_v29  ;;  %v4636_v61 = vadd.f32 %v4348_v46, %v4204_v43  ;;  %v4637_v47 = vadd.f32 %v4349_v18, %v4205_v0  ;;  %v13614_v20 = vrot.slane %v721_v63, %v17291_v3  ;;  %v13629_v43 = vld [vmem:[%s8087_s12] sm:$0xff]  ;;  %v17299_v0 = vld [vmem:[#allocation20_spill] sm:$0xff]  ;;  %v17302_v18 = vld [vmem:[#allocation25_spill] sm:$0xff] }
 0x39f   : > { %v13617_v42 = vrot.slane %v721_v63, %v17292_v36  ;;  %v5441_v62 = vpack.c.bf16 %v5321_v8, %v5320_v38  ;;  %v13620_v17 = vrot.slane %v721_v63, %v17293_v40  ;;  %v13623_v5 = vrot.slane %v721_v63, %v17294_v53  ;;  %17297 = vst [vmem:[#allocation114_spill] sm:$0xff] %v13629_v43  ;;  %v17301_v46 = vld [vmem:[#allocation24_spill] sm:$0xff]  ;;  %v7863_v29 = vld [vmem:[%s14913_s1 + $0x38] sm:$0x7] }
 0x3a0   : > { %v13626_v58 = vrot.slane %v721_v63, %v17295_v50  ;;  %v4780_v4 = vadd.f32 %v4636_v61, %v4492_v10  ;;  %v4781_v22 = vadd.f32 %v4637_v47, %v4493_v7  ;;  %v2262_v52 = vmul.f32 %v13629_v43, %v13614_v20  ;;  %v17303_v61 = vld [vmem:[#allocation248_spill] sm:$0xff] }
 0x3a1   : > { %v2263_v59 = vmul.f32 %v13634_v45, %v13614_v20  ;;  %7155 = vmatmul.mubr.msk.bf16.gmra.mrb[12].mxu1 %vm1041_vm3, %v5441_v62  ;;  %v2442_v14 = vmul.f32 %v13617_v42, %v17299_v0  ;;  %v2443_v34 = vmul.f32 %v13617_v42, %v17300_v6  ;;  %v2622_v7 = vmul.f32 %v13620_v17, %v17301_v46  ;;  %v17304_v62 = vld [vmem:[#allocation249_spill] sm:$0xff]  ;;  %v17305_v0 = vld [vmem:[#allocation26_spill] sm:$0xff]  ;;  %v17306_v6 = vld [vmem:[#allocation28_spill] sm:$0xff] }
 0x3a2   : > { %17296 = vst [vmem:[#allocation237_spill] sm:$0xff] %v13626_v58  ;;  %v2623_v10 = vmul.f32 %v13620_v17, %v17302_v18  ;;  %v4924_v38 = vadd.f32 %v4780_v4, %v3772_v12  ;;  %v4925_v8 = vadd.f32 %v4781_v22, %v3773_v55  ;;  %v2802_v47 = vmul.f32 %v17303_v61, %v13623_v5  ;;  %v17307_v46 = vld [vmem:[#allocation42_spill] sm:$0xff]  ;;  %v17309_v18 = vld [vmem:[#allocation43_spill] sm:$0xff]  ;;  %v17311_v4 = vld [vmem:[#allocation44_spill] sm:$0xff] }
 0x3a3   : > { %v2803_v50 = vmul.f32 %v17304_v62, %v13623_v5  ;;  %v2982_v45 = vmul.f32 %v13626_v58, %v17305_v0  ;;  %v2983_v43 = vmul.f32 %v13626_v58, %v17306_v6  ;;  %v13656_v53 = vrot.slane %v721_v63, %v17307_v46  ;;  %v17313_v6 = vld [vmem:[#allocation30_spill] sm:$0xff] }
 0x3a4   : > { %v13659_v36 = vrot.slane %v721_v63, %v17309_v18  ;;  %v5104_v12 = vadd.f32 %v17262_v35, %v4924_v38  ;;  %v5105_v55 = vadd.f32 %v17262_v35, %v4925_v8  ;;  %v13664_v22 = vrot.slane %v721_v63, %v17311_v4  ;;  %v13682_v63 = vld [vmem:[%s8087_s12 + $0x38] sm:$0xff] }
 0x3a5   : > { %17308 = vst [vmem:[#allocation56_spill] sm:$0xff] %v13656_v53  ;;  %v13670_v41 = vrot.slane %v7863_v29, %v17291_v3  ;;  %v3162_v46 = vmul.f32 %v13656_v53, %v17313_v6  ;;  %v3163_v18 = vmul.f32 %v13656_v53, %v17314_v48  ;;  %17316 = vst [vmem:[#allocation160_spill] sm:$0xff] %v13682_v63  ;;  %v17317_v3 = vld [vmem:[#allocation33_spill] sm:$0xff]  ;;  %v17320_v48 = vld [vmem:[#allocation79_spill] sm:$0xff] }
 0x3a6   : > { %17310 = vst [vmem:[#allocation138_spill] sm:$0xff] %v13659_v36  ;;  %17312 = vst [vmem:[#allocation140_spill] sm:$0xff] %v13664_v22  ;;  %v3342_v38 = vmul.f32 %v13677_v23, %v13659_v36  ;;  %v3343_v8 = vmul.f32 %v13682_v63, %v13659_v36  ;;  %v5248_v4 = vmax.f32 %v5104_v12, 0.0  ;;  %v5249_v44 = vmax.f32 %v5105_v55, 0.0 }
 0x3a7   : > { %v3522_v31 = vmul.f32 %v13664_v22, %v17317_v3  ;;  %v3523_v33 = vmul.f32 %v13664_v22, %v17318_v26  ;;  %v2082_v27 = vmul.f32 %v17320_v48, %v17319_v9  ;;  %v2083_v60 = vmul.f32 %v17322_v39, %v17321_v19  ;;  %v17323_v3 = vld [vmem:[#allocation37_spill] sm:$0xff] }
 0x3a8   : > { %v3846_v54 = vadd.f32 %v2442_v14, %v2262_v52  ;;  %v3847_v24 = vadd.f32 %v2443_v34, %v2263_v59  ;;  %v5392_v21 = vmul.f32 %v5248_v4, %v13599_v57  ;;  %v5393_v35 = vmul.f32 %v5249_v44, %v13603_v25  ;;  %v17324_v52 = vld [vmem:[#allocation38_spill] sm:$0xff] }
 0x3a9   : > { %v3990_v12 = vadd.f32 %v2802_v47, %v2622_v7  ;;  %v3991_v55 = vadd.f32 %v2803_v50, %v2623_v10  ;;  %v4134_v36 = vadd.f32 %v3162_v46, %v2982_v45  ;;  %v4135_v53 = vadd.f32 %v3163_v18, %v2983_v43  ;;  %v13705_v44 = vld [vmem:[%s8087_s12 + $0x60] sm:$0xff] }
 0x3aa   : > { %v4278_v58 = vadd.f32 %v3522_v31, %v3342_v38  ;;  %v4279_v26 = vadd.f32 %v3523_v33, %v3343_v8  ;;  %v5477_v22 = vpack.c.bf16 %v5393_v35, %v5392_v21  ;;  %v3702_v9 = vmul.f32 %v13670_v41, %v17323_v3  ;;  %17326 = vst [vmem:[#allocation23_spill] sm:$0xff] %v13705_v44  ;;  %v13710_v35 = vld [vmem:[%s8087_s12 + $0x68] sm:$0xff]  ;;  %v17332_v7 = vld [vmem:[#allocation118_spill] sm:$0xff]  ;;  %v13735_v38 = vld [vmem:[%s8087_s12 + $0x90] sm:$0xff] }
 0x3ab   : > { %v4422_v48 = vadd.f32 %v3990_v12, %v3846_v54  ;;  %v4423_v19 = vadd.f32 %v3991_v55, %v3847_v24  ;;  %v3703_v59 = vmul.f32 %v13670_v41, %v17324_v52  ;;  %v13701_v25 = vrot.slane %v7863_v29, %v17293_v40  ;;  %17327 = vst [vmem:[#allocation175_spill] sm:$0xff] %v13710_v35  ;;  %v17328_v24 = vld [vmem:[#allocation139_spill] sm:$0xff]  ;;  %v17333_v4 = vld [vmem:[#allocation126_spill] sm:$0xff]  ;;  %v13740_v8 = vld [vmem:[%s8087_s12 + $0x98] sm:$0xff] }
 0x3ac   : > { %v4566_v57 = vadd.f32 %v4278_v58, %v4134_v36  ;;  %v4567_v14 = vadd.f32 %v4279_v26, %v4135_v53  ;;  %7237 = vmatmul.mubr.msk.bf16.gmra.mrb[4].mxu0 %vm1041_vm3, %v5477_v22  ;;  %v2334_v21 = vmul.f32 %v13705_v44, %v13249_v56  ;;  %v2335_v54 = vmul.f32 %v13710_v35, %v13249_v56  ;;  %v17329_v26 = vld [vmem:[#allocation141_spill] sm:$0xff]  ;;  %v17330_v53 = vld [vmem:[#allocation144_spill] sm:$0xff]  ;;  %v17331_v58 = vld [vmem:[#allocation146_spill] sm:$0xff] }
 0x3ad   : > { %17325 = vst [vmem:[#allocation22_spill] sm:$0xff] %v13701_v25  ;;  %v2514_v33 = vmul.f32 %v13252_v51, %v17328_v24  ;;  %v2515_v31 = vmul.f32 %v13252_v51, %v17329_v26  ;;  %v2694_v50 = vmul.f32 %v13255_v32, %v17330_v53  ;;  %v2695_v43 = vmul.f32 %v13255_v32, %v17331_v58  ;;  %v17336_v55 = vld [vmem:[#allocation148_spill] sm:$0xff]  ;;  %v17340_v52 = vld [vmem:[#allocation181_spill] sm:$0xff]  ;;  %v17341_v40 = vld [vmem:[#allocation194_spill] sm:$0xff] }
 0x3ae   : > { %v4710_v29 = vadd.f32 %v4566_v57, %v4422_v48  ;;  %v4711_v36 = vadd.f32 %v4567_v14, %v4423_v19  ;;  %v2874_v45 = vmul.f32 %v17279_v11, %v13258_v15  ;;  %v2875_v34 = vmul.f32 %v13587_v30, %v13258_v15  ;;  %17334 = vst [vmem:[#allocation176_spill] sm:$0xff] %v13735_v38  ;;  %v17337_v19 = vld [vmem:[#allocation149_spill] sm:$0xff] }
 0x3af   : > { %v3054_v46 = vmul.f32 %v17194_v13, %v17281_v2  ;;  %v3055_v18 = vmul.f32 %v17194_v13, %v17332_v7  ;;  %v3234_v47 = vmul.f32 %v17236_v16, %v17289_v37  ;;  %v3235_v22 = vmul.f32 %v17236_v16, %v17333_v4  ;;  %17335 = vst [vmem:[#allocation162_spill] sm:$0xff] %v13740_v8 }
 0x3b0   : > { %v4854_v48 = vadd.f32 %v4710_v29, %v3702_v9  ;;  %v4855_v10 = vadd.f32 %v4711_v36, %v3703_v59  ;;  %v3414_v11 = vmul.f32 %v13735_v38, %v17278_v28  ;;  %v3415_v12 = vmul.f32 %v13740_v8, %v17278_v28  ;;  %v17338_v29 = vld [vmem:[#allocation177_spill] sm:$0xff] }
 0x3b1   : > { %v3594_v9 = vmul.f32 %v17282_v1, %v17336_v55  ;;  %v3595_v59 = vmul.f32 %v17282_v1, %v17337_v19  ;;  %v17339_v36 = vld [vmem:[#allocation193_spill] sm:$0xff]  ;;  %v2155_v4 = vmul.f32 %v17341_v40, %v17340_v52  ;;  %v3918_v7 = vadd.f32 %v2514_v33, %v2334_v21 }
 0x3b2   : > { %v5034_v57 = vadd.f32 %v13701_v25, %v4854_v48  ;;  %v5035_v14 = vadd.f32 %v13701_v25, %v4855_v10  ;;  %v2154_v39 = vmul.f32 %v17339_v36, %v17338_v29  ;;  %v3919_v58 = vadd.f32 %v2515_v31, %v2335_v54  ;;  %v17342_v25 = vld [vmem:[#allocation150_spill] sm:$0xff]  ;;  %v17343_v36 = vld [vmem:[#allocation151_spill] sm:$0xff] }
 0x3b3   : > { %v4062_v53 = vadd.f32 %v2874_v45, %v2694_v50  ;;  %v4063_v26 = vadd.f32 %v2875_v34, %v2695_v43  ;;  %v4206_v44 = vadd.f32 %v3234_v47, %v3054_v46  ;;  %v4207_v37 = vadd.f32 %v3235_v22, %v3055_v18  ;;  %v17348_v43 = vld [vmem:[#allocation29_spill] sm:$0xff]  ;;  %v17350_v18 = vld [vmem:[#allocation31_spill] sm:$0xff] }
 0x3b4   : > { %v5178_v24 = vmax.f32 %v5034_v57, 0.0  ;;  %v5179_v35 = vmax.f32 %v5035_v14, 0.0  ;;  %v4350_v2 = vadd.f32 %v3594_v9, %v3414_v11  ;;  %v4351_v19 = vadd.f32 %v3595_v59, %v3415_v12  ;;  %v13784_v22 = vld [vmem:[%s8087_s12 + $0x48] sm:$0xff]  ;;  %v17352_v11 = vld [vmem:[#allocation138_spill] sm:$0xff]  ;;  %v13793_v57 = vld [vmem:[%s8087_s12 + $0x50] sm:$0xff] }
 0x3b5   : > { %v4494_v30 = vadd.f32 %v4062_v53, %v3918_v7  ;;  %v4495_v48 = vadd.f32 %v4063_v26, %v3919_v58  ;;  %v3774_v29 = vmul.f32 %v13305_v49, %v17342_v25  ;;  %v3775_v52 = vmul.f32 %v13305_v49, %v17343_v36  ;;  %v17346_v26 = vld [vmem:[#allocation33_spill] sm:$0xff]  ;;  %17351 = vst [vmem:[#allocation159_spill] sm:$0xff] %v13784_v22  ;;  %v17353_v9 = vld [vmem:[#allocation86_spill] sm:$0xff] }
 0x3b6   : > { %v5322_v1 = vmul.f32 %v5178_v24, %v2082_v27  ;;  %v5323_v10 = vmul.f32 %v5179_v35, %v2083_v60  ;;  %v4638_v21 = vadd.f32 %v4350_v2, %v4206_v44  ;;  %v4639_v54 = vadd.f32 %v4351_v19, %v4207_v37  ;;  %v17344_v60 = vld [vmem:[#allocation19_spill] sm:$0xff]  ;;  %v17347_v53 = vld [vmem:[#allocation237_spill] sm:$0xff]  ;;  %v17354_v19 = vld [vmem:[#allocation104_spill] sm:$0xff]  ;;  %17355 = vst [vmem:[#allocation82_spill] sm:$0xff] %v13793_v57 }
 0x3b7   : > { %v2264_v33 = vmul.f32 %v17303_v61, %v13614_v20  ;;  %v2265_v31 = vmul.f32 %v17304_v62, %v13614_v20  ;;  %v2444_v27 = vmul.f32 %v13617_v42, %v17305_v0  ;;  %v2445_v35 = vmul.f32 %v13617_v42, %v17344_v60  ;;  %v17345_v44 = vld [vmem:[#allocation27_spill] sm:$0xff] }
 0x3b8   : > { %v5442_v50 = vpack.c.bf16 %v5323_v10, %v5322_v1  ;;  %v2624_v24 = vmul.f32 %v13620_v17, %v17313_v6  ;;  %v4782_v2 = vadd.f32 %v4638_v21, %v4494_v30  ;;  %v4783_v37 = vadd.f32 %v4639_v54, %v4495_v48  ;;  %v17349_v30 = vld [vmem:[#allocation56_spill] sm:$0xff]  ;;  %v17356_v48 = vld [vmem:[#allocation75_spill] sm:$0xff] }
 0x3b9   : > { %v2625_v61 = vmul.f32 %v13620_v17, %v17345_v44  ;;  %v2804_v62 = vmul.f32 %v13677_v23, %v13623_v5  ;;  %v2805_v1 = vmul.f32 %v13682_v63, %v13623_v5  ;;  %v2984_v58 = vmul.f32 %v17347_v53, %v17346_v26  ;;  %v17357_v10 = vld [vmem:[#allocation140_spill] sm:$0xff] }
 0x3ba   : > { %7160 = vmatprep.mubr.msk.bf16.mxu1 %vm1041_vm3, %v5442_v50  ;;  %v2985_v45 = vmul.f32 %v17347_v53, %v17348_v43  ;;  %v3164_v34 = vmul.f32 %v17349_v30, %v17323_v3  ;;  %v4926_v46 = vadd.f32 %v4782_v2, %v3774_v29  ;;  %v4927_v7 = vadd.f32 %v4783_v37, %v3775_v52  ;;  %v17358_v52 = vld [vmem:[#allocation76_spill] sm:$0xff]  ;;  %v17360_v37 = vld [vmem:[#allocation87_spill] sm:$0xff] }
 0x3bb   : > { %v3165_v47 = vmul.f32 %v17349_v30, %v17350_v18  ;;  %v3344_v12 = vmul.f32 %v13784_v22, %v17352_v11  ;;  %v13790_v59 = vmul.f32 %v17354_v19, %v17353_v9  ;;  %v3345_v14 = vmul.f32 %v13793_v57, %v17352_v11  ;;  %v17359_v54 = vld [vmem:[#allocation220_spill] sm:$0xff]  ;;  %v17361_v18 = vld [vmem:[#allocation105_spill] sm:$0xff] }
 0x3bc   : > { %v3524_v29 = vmul.f32 %v17357_v10, %v17356_v48  ;;  %v3525_v21 = vmul.f32 %v17357_v10, %v17358_v52  ;;  %v5106_v50 = vadd.f32 %v17359_v54, %v4926_v46  ;;  %v5107_v2 = vadd.f32 %v17359_v54, %v4927_v7  ;;  %v17362_v52 = vld [vmem:[#allocation77_spill] sm:$0xff] }
 0x3bd   : > { %v13805_v43 = vmul.f32 %v17361_v18, %v17360_v37  ;;  %v3848_v9 = vadd.f32 %v2444_v27, %v2264_v33  ;;  %v3849_v19 = vadd.f32 %v2445_v35, %v2265_v31  ;;  %v3992_v44 = vadd.f32 %v2804_v62, %v2624_v24  ;;  %v17363_v18 = vld [vmem:[#allocation78_spill] sm:$0xff]  ;;  %v13812_v35 = vld [vmem:[%s8087_s12 + $0x78] sm:$0xff] }
 0x3be   : > { %v3993_v60 = vadd.f32 %v2805_v1, %v2625_v61  ;;  %v4136_v3 = vadd.f32 %v3164_v34, %v2984_v58  ;;  %v5250_v26 = vmax.f32 %v5106_v50, 0.0  ;;  %v5251_v63 = vmax.f32 %v5107_v2, 0.0  ;;  %17364 = vst [vmem:[#allocation70_spill] sm:$0xff] %v13812_v35  ;;  %v13817_v61 = vld [vmem:[%s8087_s12 + $0x80] sm:$0xff]  ;;  %v13848_v2 = vld [vmem:[%s8087_s12 + $0xb0] sm:$0xff] }
 0x3bf   : > { %v4137_v23 = vadd.f32 %v3165_v47, %v2985_v45  ;;  %v4280_v6 = vadd.f32 %v3524_v29, %v3344_v12  ;;  %v3704_v46 = vmul.f32 %v13670_v41, %v17362_v52  ;;  %v4281_v0 = vadd.f32 %v3525_v21, %v3345_v14  ;;  %17365 = vst [vmem:[#allocation14_spill] sm:$0xff] %v13817_v61  ;;  %v17366_v1 = vld [vmem:[#allocation170_spill] sm:$0xff]  ;;  %v17370_v47 = vld [vmem:[#allocation184_spill] sm:$0xff]  ;;  %v17371_v14 = vld [vmem:[#allocation187_spill] sm:$0xff] }
 0x3c0   : > { %v4424_v7 = vadd.f32 %v3992_v44, %v3848_v9  ;;  %v4425_v36 = vadd.f32 %v3993_v60, %v3849_v19  ;;  %v5394_v40 = vmul.f32 %v5250_v26, %v2154_v39  ;;  %v5395_v37 = vmul.f32 %v5251_v63, %v2155_v4  ;;  %v17367_v4 = vld [vmem:[#allocation174_spill] sm:$0xff]  ;;  %v13843_v21 = vld [vmem:[%s8087_s12 + $0xa8] sm:$0xff]  ;;  %17373 = vst [vmem:[#allocation202_spill] sm:$0xff] %v13848_v2 }
 0x3c1   : > { %v3705_v33 = vmul.f32 %v13670_v41, %v17363_v18  ;;  %v4568_v31 = vadd.f32 %v4280_v6, %v4136_v3  ;;  %v4569_v27 = vadd.f32 %v4281_v0, %v4137_v23  ;;  %v2336_v24 = vmul.f32 %v13812_v35, %v13249_v56  ;;  %v17368_v3 = vld [vmem:[#allocation178_spill] sm:$0xff]  ;;  %17372 = vst [vmem:[#allocation89_spill] sm:$0xff] %v13843_v21 }
 0x3c2   : > { %v2337_v62 = vmul.f32 %v13817_v61, %v13249_v56  ;;  %v2516_v60 = vmul.f32 %v13252_v51, %v17366_v1  ;;  %v5478_v39 = vpack.c.bf16 %v5395_v37, %v5394_v40  ;;  %v2517_v23 = vmul.f32 %v13252_v51, %v17367_v4  ;;  %v17369_v44 = vld [vmem:[#allocation182_spill] sm:$0xff] }
 0x3c3   : > { %v4712_v63 = vadd.f32 %v4568_v31, %v4424_v7  ;;  %v2696_v0 = vmul.f32 %v13255_v32, %v17368_v3  ;;  %v4713_v6 = vadd.f32 %v4569_v27, %v4425_v36  ;;  %v2697_v26 = vmul.f32 %v13255_v32, %v17369_v44  ;;  %v17375_v37 = vld [vmem:[#allocation206_spill] sm:$0xff] }
 0x3c4   : > { %v2876_v58 = vmul.f32 %v13735_v38, %v13258_v15  ;;  %v2877_v45 = vmul.f32 %v13740_v8, %v13258_v15  ;;  %7240 = vmatprep.mubr.msk.bf16.mxu0 %vm1041_vm3, %v5478_v39  ;;  %v3056_v34 = vmul.f32 %v17194_v13, %v17336_v55  ;;  %v3057_v12 = vmul.f32 %v17194_v13, %v17370_v47  ;;  %v17376_v31 = vld [vmem:[#allocation50_spill] sm:$0xff]  ;;  %v17380_v47 = vld [vmem:[#allocation207_spill] sm:$0xff] }
 0x3c5   : > { %v4856_v40 = vadd.f32 %v4712_v63, %v3704_v46  ;;  %v3236_v36 = vmul.f32 %v17236_v16, %v17342_v25  ;;  %v4857_v19 = vadd.f32 %v4713_v6, %v3705_v33  ;;  %v3237_v29 = vmul.f32 %v17236_v16, %v17371_v14  ;;  %v17374_v46 = vld [vmem:[#allocation22_spill] sm:$0xff]  ;;  %v17377_v33 = vld [vmem:[#allocation188_spill] sm:$0xff] }
 0x3c6   : > { %v3416_v50 = vmul.f32 %v13843_v21, %v17278_v28  ;;  %v3417_v9 = vmul.f32 %v13848_v2, %v17278_v28  ;;  %v13855_v27 = vmul.f32 %v17376_v31, %v17375_v37  ;;  %v17378_v39 = vld [vmem:[#allocation218_spill] sm:$0xff]  ;;  %v3920_v4 = vadd.f32 %v2516_v60, %v2336_v24 }
 0x3c7   : > { %v5036_v7 = vadd.f32 %v17374_v46, %v4856_v40  ;;  %v3596_v63 = vmul.f32 %v17378_v39, %v17377_v33  ;;  %v17379_v6 = vld [vmem:[#allocation190_spill] sm:$0xff]  ;;  %v5037_v14 = vadd.f32 %v17374_v46, %v4857_v19  ;;  %v3921_v1 = vadd.f32 %v2517_v23, %v2337_v62  ;;  %v17383_v62 = vld [vmem:[#allocation192_spill] sm:$0xff] }
 0x3c8   : > { %v3597_v18 = vmul.f32 %v17378_v39, %v17379_v6  ;;  %v17381_v44 = vld [vmem:[#allocation214_spill] sm:$0xff]  ;;  %v4064_v40 = vadd.f32 %v2876_v58, %v2696_v0  ;;  %v4065_v35 = vadd.f32 %v2877_v45, %v2697_v26  ;;  %v4208_v37 = vadd.f32 %v3236_v36, %v3056_v34  ;;  %v17382_v6 = vld [vmem:[#allocation191_spill] sm:$0xff]  ;;  %v13871_v26 = vld [vmem:[%s8087_s12 + $0x30] sm:$0xff] }
 0x3c9   : > { %v2157_v3 = vmul.f32 %v17381_v44, %v17380_v47  ;;  %v5180_v61 = vmax.f32 %v5036_v7, 0.0  ;;  %v5181_v31 = vmax.f32 %v5037_v14, 0.0  ;;  %v4209_v25 = vadd.f32 %v3237_v29, %v3057_v12  ;;  %17384 = vst [vmem:[#allocation205_spill] sm:$0xff] %v13871_v26  ;;  %v17389_v34 = vld [vmem:[#allocation94_spill] sm:$0xff] }
 0x3ca   : > { %v4352_v55 = vadd.f32 %v3596_v63, %v3416_v50  ;;  %v4353_v8 = vadd.f32 %v3597_v18, %v3417_v9  ;;  %v3776_v19 = vmul.f32 %v13305_v49, %v17382_v6  ;;  %v4496_v46 = vadd.f32 %v4064_v40, %v3920_v4  ;;  %v13876_v18 = vld [vmem:[%s8087_s12 + $0x38] sm:$0xff]  ;;  %v17391_v7 = vld [vmem:[#allocation2_spill] sm:$0xff] }
 0x3cb   : > { %v5324_v38 = vmul.f32 %v5180_v61, %v13790_v59  ;;  %v4497_v39 = vadd.f32 %v4065_v35, %v3921_v1  ;;  %v5325_v24 = vmul.f32 %v5181_v31, %v13805_v43  ;;  %v3777_v60 = vmul.f32 %v13305_v49, %v17383_v62  ;;  %17385 = vst [vmem:[#allocation111_spill] sm:$0xff] %v13876_v18  ;;  %v17386_v61 = vld [vmem:[#allocation83_spill] sm:$0xff]  ;;  %v17387_v1 = vld [vmem:[#allocation85_spill] sm:$0xff]  ;;  %v17392_v31 = vld [vmem:[#allocation74_spill] sm:$0xff] }
 0x3cc   : > { %v4640_v23 = vadd.f32 %v4352_v55, %v4208_v37  ;;  %v4641_v0 = vadd.f32 %v4353_v8, %v4209_v25  ;;  %v2266_v58 = vmul.f32 %v13871_v26, %v13614_v20  ;;  %v2267_v59 = vmul.f32 %v13876_v18, %v13614_v20  ;;  %v17388_v8 = vld [vmem:[#allocation93_spill] sm:$0xff]  ;;  %v13903_v63 = vld [vmem:[%s8087_s12 + $0x60] sm:$0xff]  ;;  %v13908_v37 = vld [vmem:[%s8087_s12 + $0x68] sm:$0xff] }
 0x3cd   : > { %v2446_v35 = vmul.f32 %v13617_v42, %v17386_v61  ;;  %v2447_v43 = vmul.f32 %v13617_v42, %v17387_v1  ;;  %v5443_v4 = vpack.c.bf16 %v5325_v24, %v5324_v38  ;;  %v2626_v45 = vmul.f32 %v13620_v17, %v17388_v8  ;;  %v17390_v50 = vld [vmem:[#allocation73_spill] sm:$0xff]  ;;  %17393 = vst [vmem:[#allocation112_spill] sm:$0xff] %v13903_v63  ;;  %v17395_v24 = vld [vmem:[#allocation99_spill] sm:$0xff] }
 0x3ce   : > { %v4784_v55 = vadd.f32 %v4640_v23, %v4496_v46  ;;  %v4785_v25 = vadd.f32 %v4641_v0, %v4497_v39  ;;  %v2627_v47 = vmul.f32 %v13620_v17, %v17389_v34  ;;  %v2806_v12 = vmul.f32 %v13784_v22, %v13623_v5  ;;  %17394 = vst [vmem:[#allocation222_spill] sm:$0xff] %v13908_v37  ;;  %v17400_v34 = vld [vmem:[#allocation137_spill] sm:$0xff] }
 0x3cf   : > { %v2807_v36 = vmul.f32 %v13793_v57, %v13623_v5  ;;  %v2986_v14 = vmul.f32 %v17347_v53, %v17356_v48  ;;  %7161 = vmatmul.mubr.msk.bf16.vlgmr.msra.gmra.mrb[0].mxu1 %vm1041_vm3, %v5443_v4  ;;  %v2987_v9 = vmul.f32 %v17347_v53, %v17390_v50  ;;  %v3166_v46 = vmul.f32 %v17349_v30, %v17362_v52  ;;  %v17396_v4 = vld [vmem:[#allocation113_spill] sm:$0xff]  ;;  %v17399_v50 = vld [vmem:[#allocation115_spill] sm:$0xff] }
 0x3d0   : > { %v4928_v38 = vadd.f32 %v4784_v55, %v3776_v19  ;;  %v4929_v29 = vadd.f32 %v4785_v25, %v3777_v60  ;;  %7267 = vmatpush3.bf16.msra.mxu1 %v17391_v7  ;;  %v3167_v39 = vmul.f32 %v17349_v30, %v17392_v31  ;;  %v3346_v40 = vmul.f32 %v13903_v63, %v17352_v11  ;;  %v17397_v55 = vld [vmem:[#allocation136_spill] sm:$0xff]  ;;  %v17398_v7 = vld [vmem:[#allocation101_spill] sm:$0xff] }
 0x3d1   : > { %v3347_v19 = vmul.f32 %v13908_v37, %v17352_v11  ;;  %v3526_v60 = vmul.f32 %v17357_v10, %v17395_v24  ;;  %v13918_v25 = vmul.f32 %v17397_v55, %v17396_v4  ;;  %v3527_v31 = vmul.f32 %v17357_v10, %v17398_v7  ;;  %v17401_v7 = vld [vmem:[#allocation102_spill] sm:$0xff] }
 0x3d2   : > { %v5108_v23 = vadd.f32 %v17359_v54, %v4928_v38  ;;  %v5109_v0 = vadd.f32 %v17359_v54, %v4929_v29  ;;  %v2087_v8 = vmul.f32 %v17400_v34, %v17399_v50  ;;  %v3850_v1 = vadd.f32 %v2446_v35, %v2266_v58  ;;  %v17402_v58 = vld [vmem:[#allocation103_spill] sm:$0xff]  ;;  %v17417_v34 = vld [vmem:[#allocation224_spill] sm:$0xff] }
 0x3d3   : > { %v3851_v61 = vadd.f32 %v2447_v43, %v2267_v59  ;;  %v3994_v18 = vadd.f32 %v2806_v12, %v2626_v45  ;;  %v3995_v44 = vadd.f32 %v2807_v36, %v2627_v47  ;;  %v4138_v38 = vadd.f32 %v3166_v46, %v2986_v14  ;;  %v13930_v45 = vld [vmem:[%s8087_s12 + $0x90] sm:$0xff]  ;;  %v13935_v36 = vld [vmem:[%s8087_s12 + $0x98] sm:$0xff] }
 0x3d4   : > { %v5252_v26 = vmax.f32 %v5108_v23, 0.0  ;;  %v5253_v52 = vmax.f32 %v5109_v0, 0.0  ;;  %v4139_v29 = vadd.f32 %v3167_v39, %v2987_v9  ;;  %v4282_v48 = vadd.f32 %v3526_v60, %v3346_v40  ;;  %17403 = vst [vmem:[#allocation223_spill] sm:$0xff] %v13930_v45  ;;  %17404 = vst [vmem:[#allocation233_spill] sm:$0xff] %v13935_v36  ;;  %v17410_v23 = vld [vmem:[#allocation189_spill] sm:$0xff] }
 0x3d5   : > { %v4283_v57 = vadd.f32 %v3527_v31, %v3347_v19  ;;  %v4426_v4 = vadd.f32 %v3994_v18, %v3850_v1  ;;  %v3706_v62 = vmul.f32 %v13670_v41, %v17401_v7  ;;  %v4427_v50 = vadd.f32 %v3995_v44, %v3851_v61  ;;  %v17407_v18 = vld [vmem:[#allocation200_spill] sm:$0xff]  ;;  %v17408_v1 = vld [vmem:[#allocation203_spill] sm:$0xff]  ;;  %v17409_v31 = vld [vmem:[#allocation186_spill] sm:$0xff] }
 0x3d6   : > { %v5396_v55 = vmul.f32 %v5252_v26, %v13855_v27  ;;  %v5397_v22 = vmul.f32 %v5253_v52, %v2157_v3  ;;  %v3707_v59 = vmul.f32 %v13670_v41, %v17402_v58  ;;  %v4570_v35 = vadd.f32 %v4282_v48, %v4138_v38  ;;  %v17405_v3 = vld [vmem:[#allocation155_spill] sm:$0xff]  ;;  %v17406_v27 = vld [vmem:[#allocation156_spill] sm:$0xff] }
 0x3d7   : > { %v4571_v43 = vadd.f32 %v4283_v57, %v4139_v29  ;;  %v2338_v47 = vmul.f32 %v13930_v45, %v13249_v56  ;;  %v2339_v52 = vmul.f32 %v13935_v36, %v13249_v56  ;;  %v2518_v44 = vmul.f32 %v13252_v51, %v17405_v3  ;;  %v13966_v29 = vld [vmem:[%s8087_s12 + $0xc8] sm:$0xff]  ;;  %v17418_v58 = vld [vmem:[#allocation16_spill] sm:$0xff] }
 0x3d8   : > { %v5479_v12 = vpack.c.bf16 %v5397_v22, %v5396_v55  ;;  %v2519_v26 = vmul.f32 %v13252_v51, %v17406_v27  ;;  %v4714_v57 = vadd.f32 %v4570_v35, %v4426_v4  ;;  %v2698_v61 = vmul.f32 %v13255_v32, %v17407_v18  ;;  %v13961_v55 = vld [vmem:[%s8087_s12 + $0xc0] sm:$0xff]  ;;  %17412 = vst [vmem:[#allocation172_spill] sm:$0xff] %v13966_v29 }
 0x3d9   : > { %v4715_v48 = vadd.f32 %v4571_v43, %v4427_v50  ;;  %v2699_v22 = vmul.f32 %v13255_v32, %v17408_v1  ;;  %v2878_v14 = vmul.f32 %v13843_v21, %v13258_v15  ;;  %v2879_v9 = vmul.f32 %v13848_v2, %v13258_v15  ;;  %17411 = vst [vmem:[#allocation17_spill] sm:$0xff] %v13961_v55  ;;  %v17413_v50 = vld [vmem:[#allocation208_spill] sm:$0xff]  ;;  %v17414_v35 = vld [vmem:[#allocation218_spill] sm:$0xff] }
 0x3da   : > { %7241 = vmatmul.mubr.msk.bf16.gmra.mrb[8].mxu0 %vm1041_vm3, %v5479_v12  ;;  %v3058_v46 = vmul.f32 %v17194_v13, %v17377_v33  ;;  %v3059_v39 = vmul.f32 %v17194_v13, %v17409_v31  ;;  %v4858_v40 = vadd.f32 %v4714_v57, %v3706_v62  ;;  %v3238_v60 = vmul.f32 %v17236_v16, %v17382_v6  ;;  %v17416_v12 = vld [vmem:[#allocation22_spill] sm:$0xff]  ;;  %v17419_v31 = vld [vmem:[#allocation225_spill] sm:$0xff]  ;;  %v17420_v1 = vld [vmem:[#allocation36_spill] sm:$0xff] }
 0x3db   : > { %v4859_v19 = vadd.f32 %v4715_v48, %v3707_v59  ;;  %v3239_v0 = vmul.f32 %v17236_v16, %v17410_v23  ;;  %v3418_v38 = vmul.f32 %v13961_v55, %v17278_v28  ;;  %v3419_v4 = vmul.f32 %v13966_v29, %v17278_v28  ;;  %v17415_v59 = vld [vmem:[#allocation211_spill] sm:$0xff] }
 0x3dc   : > { %v3598_v62 = vmul.f32 %v17414_v35, %v17413_v50  ;;  %v3599_v43 = vmul.f32 %v17414_v35, %v17415_v59  ;;  %v5038_v57 = vadd.f32 %v17416_v12, %v4858_v40  ;;  %v2158_v23 = vmul.f32 %v17418_v58, %v17417_v34  ;;  %v17421_v16 = vld [vmem:[#allocation179_spill] sm:$0xff]  ;;  %v17422_v58 = vld [vmem:[#allocation180_spill] sm:$0xff] }
 0x3dd   : > { %v5039_v48 = vadd.f32 %v17416_v12, %v4859_v19  ;;  %v2159_v18 = vmul.f32 %v17420_v1, %v17419_v31  ;;  %v3922_v27 = vadd.f32 %v2518_v44, %v2338_v47  ;;  %v3923_v3 = vadd.f32 %v2519_v26, %v2339_v52  ;;  %v17423_v26 = vld [vmem:[#allocation9_spill] sm:$0xff] }
 0x3de   : > { %v4066_v36 = vadd.f32 %v2878_v14, %v2698_v61  ;;  %v4067_v45 = vadd.f32 %v2879_v9, %v2699_v22  ;;  %v5182_v6 = vmax.f32 %v5038_v57, 0.0  ;;  %v4210_v2 = vadd.f32 %v3238_v60, %v3058_v46  ;;  %v17424_v22 = vld [vmem:[#allocation15_spill] sm:$0xff]  ;;  %v17433_v57 = vld [vmem:[#allocation152_spill] sm:$0xff] }
 0x3df   : > { %v5183_v33 = vmax.f32 %v5039_v48, 0.0  ;;  %v4211_v21 = vadd.f32 %v3239_v0, %v3059_v39  ;;  %v4354_v28 = vadd.f32 %v3598_v62, %v3418_v38  ;;  %v4355_v59 = vadd.f32 %v3599_v43, %v3419_v4  ;;  %v17429_v39 = vld [vmem:[#allocation97_spill] sm:$0xff] }
 0x3e0   : > { %v4498_v35 = vadd.f32 %v4066_v36, %v3922_v27  ;;  %v4499_v40 = vadd.f32 %v4067_v45, %v3923_v3  ;;  %v5326_v19 = vmul.f32 %v5182_v6, %v13918_v25  ;;  %v3778_v34 = vmul.f32 %v13305_v49, %v17421_v16  ;;  %v17425_v36 = vld [vmem:[#allocation106_spill] sm:$0xff] }
 0x3e1   : > { %v5327_v12 = vmul.f32 %v5183_v33, %v2087_v8  ;;  %v3779_v47 = vmul.f32 %v13305_v49, %v17422_v58  ;;  %v4642_v52 = vadd.f32 %v4354_v28, %v4210_v2  ;;  %v4643_v44 = vadd.f32 %v4355_v59, %v4211_v21  ;;  %v17426_v33 = vld [vmem:[#allocation108_spill] sm:$0xff]  ;;  %v17427_v25 = vld [vmem:[#allocation110_spill] sm:$0xff]  ;;  %v14011_v59 = vld [vmem:[%s8087_s12 + $0x78] sm:$0xff] }
 0x3e2   : > { %v2268_v61 = vmul.f32 %v17423_v26, %v13614_v20  ;;  %v2269_v14 = vmul.f32 %v17424_v22, %v13614_v20  ;;  %v2448_v6 = vmul.f32 %v13617_v42, %v17425_v36  ;;  %v2449_v8 = vmul.f32 %v13617_v42, %v17426_v33  ;;  %v17428_v21 = vld [vmem:[#allocation120_spill] sm:$0xff]  ;;  %17431 = vst [vmem:[#allocation132_spill] sm:$0xff] %v14011_v59 }
 0x3e3   : > { %v5444_v9 = vpack.c.bf16 %v5327_v12, %v5326_v19  ;;  %v2628_v45 = vmul.f32 %v13620_v17, %v17427_v25  ;;  %v4786_v3 = vadd.f32 %v4642_v52, %v4498_v35  ;;  %v4787_v28 = vadd.f32 %v4643_v44, %v4499_v40  ;;  %v17430_v35 = vld [vmem:[#allocation100_spill] sm:$0xff]  ;;  %v17434_v40 = vld [vmem:[#allocation10_spill] sm:$0xff]  ;;  %v17435_v52 = vld [vmem:[#allocation123_spill] sm:$0xff] }
 0x3e4   : > { %v2629_v2 = vmul.f32 %v13620_v17, %v17428_v21  ;;  %v2808_v27 = vmul.f32 %v13903_v63, %v13623_v5  ;;  %v2809_v46 = vmul.f32 %v13908_v37, %v13623_v5  ;;  %v2988_v31 = vmul.f32 %v17347_v53, %v17395_v24  ;;  %v17432_v12 = vld [vmem:[#allocation92_spill] sm:$0xff] }
 0x3e5   : > { %7164 = vmatprep.mubr.msk.bf16.mxu1 %vm1041_vm3, %v5444_v9  ;;  %v2989_v60 = vmul.f32 %v17347_v53, %v17429_v39  ;;  %v3168_v0 = vmul.f32 %v17349_v30, %v17401_v7  ;;  %v4930_v38 = vadd.f32 %v4786_v3, %v3778_v34  ;;  %v4931_v4 = vadd.f32 %v4787_v28, %v3779_v47  ;;  %v17436_v34 = vld [vmem:[#allocation124_spill] sm:$0xff]  ;;  %v17437_v9 = vld [vmem:[#allocation134_spill] sm:$0xff]  ;;  %v17438_v3 = vld [vmem:[#allocation153_spill] sm:$0xff] }
 0x3e6   : > { %v3169_v62 = vmul.f32 %v17349_v30, %v17430_v35  ;;  %v3348_v43 = vmul.f32 %v14011_v59, %v17352_v11  ;;  %v14017_v48 = vmul.f32 %v17433_v57, %v17432_v12  ;;  %v3349_v19 = vmul.f32 %v17434_v40, %v17352_v11 }
 0x3e7   : > { %v3528_v44 = vmul.f32 %v17357_v10, %v17435_v52  ;;  %v3529_v47 = vmul.f32 %v17357_v10, %v17436_v34  ;;  %v5110_v26 = vadd.f32 %v17359_v54, %v4930_v38  ;;  %v5111_v22 = vadd.f32 %v17359_v54, %v4931_v4  ;;  %v17439_v34 = vld [vmem:[#allocation130_spill] sm:$0xff] }
 0x3e8   : > { %v14029_v28 = vmul.f32 %v17438_v3, %v17437_v9  ;;  %v3852_v35 = vadd.f32 %v2448_v6, %v2268_v61  ;;  %v3853_v12 = vadd.f32 %v2449_v8, %v2269_v14  ;;  %v3996_v57 = vadd.f32 %v2808_v27, %v2628_v45  ;;  %v17440_v3 = vld [vmem:[#allocation131_spill] sm:$0xff] }
 0x3e9   : > { %v3997_v39 = vadd.f32 %v2809_v46, %v2629_v2  ;;  %v4140_v21 = vadd.f32 %v3168_v0, %v2988_v31  ;;  %v5254_v25 = vmax.f32 %v5110_v26, 0.0  ;;  %v5255_v33 = vmax.f32 %v5111_v22, 0.0  ;;  %v14036_v8 = vld [vmem:[%s8087_s12 + $0xa8] sm:$0xff]  ;;  %v14041_v2 = vld [vmem:[%s8087_s12 + $0xb0] sm:$0xff]  ;;  %v17453_v22 = vld [vmem:[#allocation22_spill] sm:$0xff] }
 0x3ea   : > { %v4141_v36 = vadd.f32 %v3169_v62, %v2989_v60  ;;  %v4284_v7 = vadd.f32 %v3528_v44, %v3348_v43  ;;  %v3708_v38 = vmul.f32 %v13670_v41, %v17439_v34  ;;  %v4285_v24 = vadd.f32 %v3529_v47, %v3349_v19  ;;  %17441 = vst [vmem:[#allocation135_spill] sm:$0xff] %v14036_v8  ;;  %v17443_v46 = vld [vmem:[#allocation219_spill] sm:$0xff]  ;;  %v14067_v19 = vld [vmem:[%s8087_s12 + $0xd8] sm:$0xff]  ;;  %v17451_v44 = vld [vmem:[#allocation122_spill] sm:$0xff] }
 0x3eb   : > { %v4428_v4 = vadd.f32 %v3996_v57, %v3852_v35  ;;  %v4429_v1 = vadd.f32 %v3997_v39, %v3853_v12  ;;  %v5398_v37 = vmul.f32 %v5254_v25, %v2158_v23  ;;  %v5399_v9 = vmul.f32 %v5255_v33, %v2159_v18  ;;  %17442 = vst [vmem:[#allocation133_spill] sm:$0xff] %v14041_v2  ;;  %v17444_v33 = vld [vmem:[#allocation221_spill] sm:$0xff]  ;;  %v14072_v47 = vld [vmem:[%s8087_s12 + $0xe0] sm:$0xff] }
 0x3ec   : > { %v3709_v61 = vmul.f32 %v13670_v41, %v17440_v3  ;;  %v4572_v14 = vadd.f32 %v4284_v7, %v4140_v21  ;;  %v4573_v6 = vadd.f32 %v4285_v24, %v4141_v36  ;;  %v2340_v45 = vmul.f32 %v14036_v8, %v13249_v56  ;;  %v17445_v7 = vld [vmem:[#allocation226_spill] sm:$0xff]  ;;  %v17446_v21 = vld [vmem:[#allocation228_spill] sm:$0xff]  ;;  %17450 = vst [vmem:[#allocation158_spill] sm:$0xff] %v14067_v19 }
 0x3ed   : > { %v2341_v27 = vmul.f32 %v14041_v2, %v13249_v56  ;;  %v2520_v31 = vmul.f32 %v13252_v51, %v17443_v46  ;;  %v5480_v18 = vpack.c.bf16 %v5399_v9, %v5398_v37  ;;  %v2521_v24 = vmul.f32 %v13252_v51, %v17444_v33  ;;  %v17447_v51 = vld [vmem:[#allocation204_spill] sm:$0xff]  ;;  %17452 = vst [vmem:[#allocation235_spill] sm:$0xff] %v14072_v47  ;;  %v17456_v9 = vld [vmem:[#allocation230_spill] sm:$0xff] }
 0x3ee   : > { %v4716_v23 = vadd.f32 %v4572_v14, %v4428_v4  ;;  %v2700_v36 = vmul.f32 %v13255_v32, %v17445_v7  ;;  %v4717_v25 = vadd.f32 %v4573_v6, %v4429_v1  ;;  %v2701_v39 = vmul.f32 %v13255_v32, %v17446_v21  ;;  %v17448_v1 = vld [vmem:[#allocation121_spill] sm:$0xff]  ;;  %v17458_v6 = vld [vmem:[#allocation231_spill] sm:$0xff]  ;;  %v17461_v33 = vld [vmem:[#allocation196_spill] sm:$0xff] }
 0x3ef   : > { %v2880_v56 = vmul.f32 %v13961_v55, %v13258_v15  ;;  %v2881_v60 = vmul.f32 %v13966_v29, %v13258_v15  ;;  %7244 = vmatprep.mubr.msk.bf16.mxu0 %vm1041_vm3, %v5480_v18  ;;  %v3060_v0 = vmul.f32 %v17194_v13, %v17413_v50  ;;  %v3061_v35 = vmul.f32 %v17194_v13, %v17447_v51  ;;  %v17449_v32 = vld [vmem:[#allocation209_spill] sm:$0xff]  ;;  %v17454_v13 = vld [vmem:[#allocation238_spill] sm:$0xff] }
 0x3f0   : > { %v4860_v37 = vadd.f32 %v4716_v23, %v3708_v38  ;;  %v3240_v62 = vmul.f32 %v17448_v1, %v17421_v16  ;;  %v4861_v43 = vadd.f32 %v4717_v25, %v3709_v61  ;;  %v3241_v57 = vmul.f32 %v17448_v1, %v17449_v32  ;;  %v17455_v38 = vld [vmem:[#allocation246_spill] sm:$0xff]  ;;  %v17459_v25 = vld [vmem:[#allocation239_spill] sm:$0xff] }
 0x3f1   : > { %v3420_v15 = vmul.f32 %v14067_v19, %v17451_v44  ;;  %v3421_v26 = vmul.f32 %v14072_v47, %v17451_v44  ;;  %v2160_v4 = vmul.f32 %v17455_v38, %v17454_v13  ;;  %v17457_v61 = vld [vmem:[#allocation218_spill] sm:$0xff]  ;;  %v17460_v1 = vld [vmem:[#allocation247_spill] sm:$0xff]  ;;  %v3924_v19 = vadd.f32 %v2520_v31, %v2340_v45 }
 0x3f2   : > { %v5040_v12 = vadd.f32 %v17453_v22, %v4860_v37  ;;  %v3600_v14 = vmul.f32 %v17457_v61, %v17456_v9  ;;  %v3601_v18 = vmul.f32 %v17457_v61, %v17458_v6  ;;  %v5041_v23 = vadd.f32 %v17453_v22, %v4861_v43  ;;  %v17509_v2 = vld [vmem:[#allocation34_spill] sm:$0xff] }
 0x3f3   : > { %v2161_v3 = vmul.f32 %v17460_v1, %v17459_v25  ;;  %v3925_v32 = vadd.f32 %v2521_v24, %v2341_v27  ;;  %v4068_v44 = vadd.f32 %v2880_v56, %v2700_v36  ;;  %v4069_v47 = vadd.f32 %v2881_v60, %v2701_v39  ;;  %v17462_v25 = vld [vmem:[#allocation198_spill] sm:$0xff]  ;;  %v17463_v24 = vld [vmem:[#allocation23_spill] sm:$0xff] }
 0x3f4   : > { %v5184_v51 = vmax.f32 %v5040_v12, 0.0  ;;  %v4212_v37 = vadd.f32 %v3240_v62, %v3060_v0  ;;  %v5185_v21 = vmax.f32 %v5041_v23, 0.0  ;;  %v4213_v7 = vadd.f32 %v3241_v57, %v3061_v35  ;;  %v17464_v39 = vld [vmem:[#allocation175_spill] sm:$0xff]  ;;  %v17466_v0 = vld [vmem:[#allocation141_spill] sm:$0xff]  ;;  %v17479_v1 = vld [vmem:[#allocation150_spill] sm:$0xff] }
 0x3f5   : > { %v4356_v13 = vadd.f32 %v3600_v14, %v3420_v15  ;;  %v4357_v38 = vadd.f32 %v3601_v18, %v3421_v26  ;;  %v3780_v61 = vmul.f32 %v13305_v49, %v17461_v33  ;;  %v4500_v6 = vadd.f32 %v4068_v44, %v3924_v19  ;;  %v17465_v60 = vld [vmem:[#allocation139_spill] sm:$0xff]  ;;  %v17469_v26 = vld [vmem:[#allocation118_spill] sm:$0xff]  ;;  %v17473_v44 = vld [vmem:[#allocation148_spill] sm:$0xff] }
 0x3f6   : > { %v5328_v9 = vmul.f32 %v5184_v51, %v14017_v48  ;;  %v4501_v43 = vadd.f32 %v4069_v47, %v3925_v32  ;;  %v5329_v46 = vmul.f32 %v5185_v21, %v14029_v28  ;;  %v3781_v45 = vmul.f32 %v13305_v49, %v17462_v25  ;;  %v17467_v21 = vld [vmem:[#allocation144_spill] sm:$0xff]  ;;  %v17468_v32 = vld [vmem:[#allocation146_spill] sm:$0xff]  ;;  %v17508_v33 = vld [vmem:[#allocation33_spill] sm:$0xff] }
 0x3f7   : > { %v4644_v27 = vadd.f32 %v4356_v13, %v4212_v37  ;;  %v4645_v31 = vadd.f32 %v4357_v38, %v4213_v7  ;;  %v2270_v36 = vmul.f32 %v17463_v24, %v13614_v20  ;;  %v2271_v56 = vmul.f32 %v17464_v39, %v13614_v20  ;;  %v17477_v39 = vld [vmem:[#allocation168_spill] sm:$0xff] }
 0x3f8   : > { %v2450_v48 = vmul.f32 %v13617_v42, %v17465_v60  ;;  %v2451_v51 = vmul.f32 %v13617_v42, %v17466_v0  ;;  %v5445_v35 = vpack.c.bf16 %v5329_v46, %v5328_v9  ;;  %v2630_v49 = vmul.f32 %v13620_v17, %v17467_v21  ;;  %v17470_v9 = vld [vmem:[#allocation126_spill] sm:$0xff] }
 0x3f9   : > { %v4788_v62 = vadd.f32 %v4644_v27, %v4500_v6  ;;  %v4789_v28 = vadd.f32 %v4645_v31, %v4501_v43  ;;  %v2631_v7 = vmul.f32 %v13620_v17, %v17468_v32  ;;  %v2810_v57 = vmul.f32 %v14011_v59, %v13623_v5  ;;  %v17471_v6 = vld [vmem:[#allocation176_spill] sm:$0xff]  ;;  %v17474_v43 = vld [vmem:[#allocation167_spill] sm:$0xff]  ;;  %v17476_v31 = vld [vmem:[#allocation149_spill] sm:$0xff] }
 0x3fa   : > { %v2811_v19 = vmul.f32 %v17434_v40, %v13623_v5  ;;  %v2990_v15 = vmul.f32 %v17347_v53, %v17435_v52  ;;  %7165 = vmatmul.mubr.msk.bf16.gmra.mrb[4].mxu1 %vm1041_vm3, %v5445_v35  ;;  %v2991_v12 = vmul.f32 %v17347_v53, %v17469_v26  ;;  %v3170_v38 = vmul.f32 %v17349_v30, %v17439_v34  ;;  %v17472_v40 = vld [vmem:[#allocation162_spill] sm:$0xff]  ;;  %v17507_v59 = vld [vmem:[#allocation79_spill] sm:$0xff] }
 0x3fb   : > { %v4932_v46 = vadd.f32 %v4788_v62, %v3780_v61  ;;  %v4933_v47 = vadd.f32 %v4789_v28, %v3781_v45  ;;  %v3171_v14 = vmul.f32 %v17349_v30, %v17470_v9  ;;  %v3350_v18 = vmul.f32 %v17471_v6, %v17352_v11  ;;  %v17475_v45 = vld [vmem:[#allocation193_spill] sm:$0xff]  ;;  %v17478_v35 = vld [vmem:[#allocation194_spill] sm:$0xff] }
 0x3fc   : > { %v3351_v23 = vmul.f32 %v17472_v40, %v17352_v11  ;;  %v3530_v37 = vmul.f32 %v17357_v10, %v17473_v44  ;;  %v2090_v27 = vmul.f32 %v17475_v45, %v17474_v43  ;;  %v3531_v24 = vmul.f32 %v17357_v10, %v17476_v31 }
 0x3fd   : > { %v5112_v13 = vadd.f32 %v17359_v54, %v4932_v46  ;;  %v5113_v61 = vadd.f32 %v17359_v54, %v4933_v47  ;;  %v2091_v62 = vmul.f32 %v17478_v35, %v17477_v39  ;;  %v3854_v28 = vadd.f32 %v2450_v48, %v2270_v36  ;;  %v731_v54 = vld [vmem:[%s14913_s1 + $0x80] sm:$0xff] }
 0x3fe   : > { %v3855_v9 = vadd.f32 %v2451_v51, %v2271_v56  ;;  %v3998_v26 = vadd.f32 %v2810_v57, %v2630_v49  ;;  %v3999_v0 = vadd.f32 %v2811_v19, %v2631_v7  ;;  %v4142_v60 = vadd.f32 %v3170_v38, %v2990_v15  ;;  %v17480_v56 = vld [vmem:[#allocation151_spill] sm:$0xff]  ;;  %v17481_v7 = vld [vmem:[#allocation5_spill] sm:$0xff]  ;;  %v17482_v15 = vld [vmem:[#allocation4_spill] sm:$0xff] }
 0x3ff   : > { %v5256_v32 = vmax.f32 %v5112_v13, 0.0  ;;  %v5257_v21 = vmax.f32 %v5113_v61, 0.0  ;;  %v4143_v46 = vadd.f32 %v3171_v14, %v2991_v12  ;;  %v4286_v47 = vadd.f32 %v3530_v37, %v3350_v18  ;;  %v17489_v13 = vld [vmem:[#allocation24_spill] sm:$0xff] }
 0x400   : > { %v4287_v43 = vadd.f32 %v3531_v24, %v3351_v23  ;;  %v4430_v45 = vadd.f32 %v3998_v26, %v3854_v28  ;;  %v3710_v39 = vmul.f32 %v13670_v41, %v17479_v1  ;;  %v4431_v36 = vadd.f32 %v3999_v0, %v3855_v9  ;;  %v17483_v26 = vld [vmem:[#allocation35_spill] sm:$0xff]  ;;  %v17486_v9 = vld [vmem:[#allocation13_spill] sm:$0xff] }
 0x401   : > { %v5400_v34 = vmul.f32 %v5256_v32, %v2160_v4  ;;  %v5401_v31 = vmul.f32 %v5257_v21, %v2161_v3  ;;  %v3711_v48 = vmul.f32 %v13670_v41, %v17480_v56  ;;  %v4574_v51 = vadd.f32 %v4286_v47, %v4142_v60  ;;  %v17484_v4 = vld [vmem:[#allocation40_spill] sm:$0xff]  ;;  %v17485_v60 = vld [vmem:[#allocation114_spill] sm:$0xff]  ;;  %v17488_v23 = vld [vmem:[#allocation21_spill] sm:$0xff] }
 0x402   : > { %v4575_v49 = vadd.f32 %v4287_v43, %v4143_v46  ;;  %v14139_v57 = vrot.slane %v731_v54, %v17481_v7  ;;  %v14142_v12 = vrot.slane %v731_v54, %v17482_v15  ;;  %v14145_v3 = vrot.slane %v731_v54, %v17483_v26  ;;  %v14164_v46 = vld [vmem:[%s8087_s12 + $0x18] sm:$0xff]  ;;  %v14169_v43 = vld [vmem:[%s8087_s12 + $0x20] sm:$0xff]  ;;  %v17504_v56 = vld [vmem:[#allocation7_spill] sm:$0xff] }
 0x403   : > { %v5481_v19 = vpack.c.bf16 %v5401_v31, %v5400_v34  ;;  %v14148_v21 = vrot.slane %v731_v54, %v17484_v4  ;;  %v4718_v0 = vadd.f32 %v4574_v51, %v4430_v45  ;;  %v17487_v34 = vld [vmem:[#allocation20_spill] sm:$0xff]  ;;  %v17490_v31 = vld [vmem:[#allocation25_spill] sm:$0xff]  ;;  %v17495_v4 = vld [vmem:[#allocation43_spill] sm:$0xff] }
 0x404   : > { %v4719_v32 = vadd.f32 %v4575_v49, %v4431_v36  ;;  %v2342_v38 = vmul.f32 %v17485_v60, %v14139_v57  ;;  %v2343_v14 = vmul.f32 %v17486_v9, %v14139_v57  ;;  %v2522_v18 = vmul.f32 %v14142_v12, %v17487_v34  ;;  %v17491_v51 = vld [vmem:[#allocation41_spill] sm:$0xff]  ;;  %v7891_v9 = vld [vmem:[%s14913_s1 + $0x88] sm:$0x7] }
 0x405   : > { %7245 = vmatmul.mubr.msk.bf16.gmra.mrb[12].mxu0 %vm1041_vm3, %v5481_v19  ;;  %v2523_v37 = vmul.f32 %v14142_v12, %v17488_v23  ;;  %v2702_v61 = vmul.f32 %v14145_v3, %v17489_v13  ;;  %v2703_v45 = vmul.f32 %v14145_v3, %v17490_v31  ;;  %v4862_v24 = vadd.f32 %v4718_v0, %v3710_v39  ;;  %v17493_v19 = vld [vmem:[#allocation42_spill] sm:$0xff]  ;;  %v17497_v39 = vld [vmem:[#allocation44_spill] sm:$0xff] }
 0x406   : > { %v4863_v28 = vadd.f32 %v4719_v32, %v3711_v48  ;;  %v2882_v47 = vmul.f32 %v14164_v46, %v14148_v21  ;;  %v2883_v36 = vmul.f32 %v14169_v43, %v14148_v21  ;;  %v14174_v49 = vrot.slane %v731_v54, %v17491_v51  ;;  %v17500_v13 = vld [vmem:[#allocation26_spill] sm:$0xff]  ;;  %v17501_v51 = vld [vmem:[#allocation28_spill] sm:$0xff] }
 0x407   : > { %v14177_v15 = vrot.slane %v731_v54, %v17493_v19  ;;  %v14180_v60 = vrot.slane %v731_v54, %v17495_v4  ;;  %v14183_v48 = vrot.slane %v731_v54, %v17497_v39  ;;  %v5042_v0 = vadd.f32 %v17453_v22, %v4862_v24  ;;  %v17502_v54 = vld [vmem:[#allocation30_spill] sm:$0xff]  ;;  %v17503_v24 = vld [vmem:[#allocation32_spill] sm:$0xff] }
 0x408   : > { %17492 = vst [vmem:[#allocation236_spill] sm:$0xff] %v14174_v49  ;;  %v5043_v32 = vadd.f32 %v17453_v22, %v4863_v28  ;;  %v14191_v34 = vrot.slane %v7891_v9, %v17481_v7  ;;  %v3926_v23 = vadd.f32 %v2522_v18, %v2342_v38  ;;  %v3062_v31 = vmul.f32 %v14174_v49, %v17500_v13  ;;  %v17505_v7 = vld [vmem:[#allocation160_spill] sm:$0xff]  ;;  %v17506_v18 = vld [vmem:[#allocation69_spill] sm:$0xff] }
 0x409   : > { %17494 = vst [vmem:[#allocation232_spill] sm:$0xff] %v14177_v15  ;;  %17496 = vst [vmem:[#allocation234_spill] sm:$0xff] %v14180_v60  ;;  %v3063_v19 = vmul.f32 %v14174_v49, %v17501_v51  ;;  %v3242_v4 = vmul.f32 %v14177_v15, %v17502_v54  ;;  %v3243_v28 = vmul.f32 %v14177_v15, %v17503_v24  ;;  %v5186_v39 = vmax.f32 %v5042_v0, 0.0  ;;  %v17510_v22 = vld [vmem:[#allocation37_spill] sm:$0xff] }
 0x40a   : > { %17498 = vst [vmem:[#allocation241_spill] sm:$0xff] %v14183_v48  ;;  %17499 = vst [vmem:[#allocation242_spill] sm:$0xff] %v14191_v34  ;;  %v5187_v35 = vmax.f32 %v5043_v32, 0.0  ;;  %v3422_v52 = vmul.f32 %v17504_v56, %v14180_v60  ;;  %v3423_v38 = vmul.f32 %v17505_v7, %v14180_v60  ;;  %v2162_v25 = vmul.f32 %v17507_v59, %v17506_v18  ;;  %v17511_v18 = vld [vmem:[#allocation38_spill] sm:$0xff] }
 0x40b   : > { %v3602_v51 = vmul.f32 %v14183_v48, %v17508_v33  ;;  %v3603_v8 = vmul.f32 %v14183_v48, %v17509_v2  ;;  %v5330_v63 = vmul.f32 %v5186_v39, %v2090_v27  ;;  %v3927_v24 = vadd.f32 %v2523_v37, %v2343_v14  ;;  %v17516_v37 = vld [vmem:[#allocation174_spill] sm:$0xff] }
 0x40c   : > { %v5331_v58 = vmul.f32 %v5187_v35, %v2091_v62  ;;  %v4070_v0 = vadd.f32 %v2882_v47, %v2702_v61  ;;  %v4071_v32 = vadd.f32 %v2883_v36, %v2703_v45  ;;  %v4214_v16 = vadd.f32 %v3242_v4, %v3062_v31  ;;  %v17513_v35 = vld [vmem:[#allocation70_spill] sm:$0xff] }
 0x40d   : > { %v4215_v50 = vadd.f32 %v3243_v28, %v3063_v19  ;;  %v4358_v29 = vadd.f32 %v3602_v51, %v3422_v52  ;;  %v3782_v60 = vmul.f32 %v14191_v34, %v17510_v22  ;;  %v4359_v15 = vadd.f32 %v3603_v8, %v3423_v38  ;;  %v17515_v62 = vld [vmem:[#allocation170_spill] sm:$0xff]  ;;  %v17520_v19 = vld [vmem:[#allocation187_spill] sm:$0xff]  ;;  %v17521_v28 = vld [vmem:[#allocation89_spill] sm:$0xff] }
 0x40e   : > { %v5446_v55 = vpack.c.bf16 %v5331_v58, %v5330_v63  ;;  %v4502_v59 = vadd.f32 %v4070_v0, %v3926_v23  ;;  %v3783_v49 = vmul.f32 %v14191_v34, %v17511_v18  ;;  %v4503_v33 = vadd.f32 %v4071_v32, %v3927_v24  ;;  %v17514_v63 = vld [vmem:[#allocation14_spill] sm:$0xff]  ;;  %v17525_v51 = vld [vmem:[#allocation80_spill] sm:$0xff]  ;;  %v17526_v32 = vld [vmem:[#allocation63_spill] sm:$0xff] }
 0x40f   : > { %v4646_v7 = vadd.f32 %v4358_v29, %v4214_v16  ;;  %v14216_v2 = vrot.slane %v7891_v9, %v17483_v26  ;;  %v4647_v27 = vadd.f32 %v4359_v15, %v4215_v50  ;;  %v2272_v52 = vmul.f32 %v17513_v35, %v13614_v20  ;;  %v17517_v16 = vld [vmem:[#allocation178_spill] sm:$0xff]  ;;  %v17519_v9 = vld [vmem:[#allocation184_spill] sm:$0xff] }
 0x410   : > { %7168 = vmatprep.mubr.msk.bf16.mxu1 %vm1041_vm3, %v5446_v55  ;;  %v2273_v58 = vmul.f32 %v17514_v63, %v13614_v20  ;;  %v2452_v8 = vmul.f32 %v13617_v42, %v17515_v62  ;;  %v2453_v61 = vmul.f32 %v13617_v42, %v17516_v37  ;;  %v2632_v29 = vmul.f32 %v13620_v17, %v17517_v16  ;;  %v17518_v26 = vld [vmem:[#allocation182_spill] sm:$0xff] }
 0x411   : > { %17512 = vst [vmem:[#allocation165_spill] sm:$0xff] %v14216_v2  ;;  %v4790_v14 = vadd.f32 %v4646_v7, %v4502_v59  ;;  %v2633_v55 = vmul.f32 %v13620_v17, %v17518_v26  ;;  %v4791_v50 = vadd.f32 %v4647_v27, %v4503_v33  ;;  %v2812_v45 = vmul.f32 %v17471_v6, %v13623_v5  ;;  %v17522_v39 = vld [vmem:[#allocation202_spill] sm:$0xff]  ;;  %v17523_v7 = vld [vmem:[#allocation188_spill] sm:$0xff] }
 0x412   : > { %v2813_v47 = vmul.f32 %v17472_v40, %v13623_v5  ;;  %v2992_v36 = vmul.f32 %v17347_v53, %v17473_v44  ;;  %v2993_v23 = vmul.f32 %v17347_v53, %v17519_v9  ;;  %v3172_v31 = vmul.f32 %v17349_v30, %v17479_v1  ;;  %v17527_v59 = vld [vmem:[#allocation50_spill] sm:$0xff]  ;;  %v17529_v1 = vld [vmem:[#allocation191_spill] sm:$0xff] }
 0x413   : > { %v4934_v15 = vadd.f32 %v4790_v14, %v3782_v60  ;;  %v3173_v4 = vmul.f32 %v17349_v30, %v17520_v19  ;;  %v4935_v33 = vadd.f32 %v4791_v50, %v3783_v49  ;;  %v3352_v6 = vmul.f32 %v17521_v28, %v17352_v11  ;;  %v17524_v60 = vld [vmem:[#allocation71_spill] sm:$0xff]  ;;  %v17528_v27 = vld [vmem:[#allocation190_spill] sm:$0xff] }
 0x414   : > { %v3353_v40 = vmul.f32 %v17522_v39, %v17352_v11  ;;  %v3532_v38 = vmul.f32 %v17357_v10, %v17523_v7  ;;  %v2163_v24 = vmul.f32 %v17525_v51, %v17524_v60  ;;  %v2092_v18 = vmul.f32 %v17527_v59, %v17526_v32  ;;  %v17530_v59 = vld [vmem:[#allocation192_spill] sm:$0xff] }
 0x415   : > { %v5114_v0 = vadd.f32 %v14216_v2, %v4934_v15  ;;  %v3533_v49 = vmul.f32 %v17357_v10, %v17528_v27  ;;  %v5115_v35 = vadd.f32 %v14216_v2, %v4935_v33  ;;  %v3856_v63 = vadd.f32 %v2452_v8, %v2272_v52 }
 0x416   : > { %v3857_v14 = vadd.f32 %v2453_v61, %v2273_v58  ;;  %v4000_v50 = vadd.f32 %v2812_v45, %v2632_v29  ;;  %v4001_v9 = vadd.f32 %v2813_v47, %v2633_v55  ;;  %v4144_v26 = vadd.f32 %v3172_v31, %v2992_v36  ;;  %v17536_v31 = vld [vmem:[#allocation29_spill] sm:$0xff] }
 0x417   : > { %v5258_v19 = vmax.f32 %v5114_v0, 0.0  ;;  %v4145_v16 = vadd.f32 %v3173_v4, %v2993_v23  ;;  %v5259_v37 = vmax.f32 %v5115_v35, 0.0  ;;  %v4288_v62 = vadd.f32 %v3532_v38, %v3352_v6 }
 0x418   : > { %v4289_v60 = vadd.f32 %v3533_v49, %v3353_v40  ;;  %v4432_v51 = vadd.f32 %v4000_v50, %v3856_v63  ;;  %v3712_v32 = vmul.f32 %v13670_v41, %v17529_v1  ;;  %v3713_v27 = vmul.f32 %v13670_v41, %v17530_v59  ;;  %v17538_v40 = vld [vmem:[#allocation31_spill] sm:$0xff]  ;;  %v17541_v49 = vld [vmem:[#allocation82_spill] sm:$0xff]  ;;  %v17543_v50 = vld [vmem:[#allocation76_spill] sm:$0xff] }
 0x419   : > { %v5402_v15 = vmul.f32 %v5258_v19, %v2162_v25  ;;  %v4433_v44 = vadd.f32 %v4001_v9, %v3857_v14  ;;  %v5403_v33 = vmul.f32 %v5259_v37, %v2163_v24  ;;  %v4576_v52 = vadd.f32 %v4288_v62, %v4144_v26  ;;  %v17531_v25 = vld [vmem:[#allocation19_spill] sm:$0xff]  ;;  %v17534_v9 = vld [vmem:[#allocation33_spill] sm:$0xff] }
 0x41a   : > { %v4577_v58 = vadd.f32 %v4289_v60, %v4145_v16  ;;  %v2344_v8 = vmul.f32 %v14164_v46, %v14139_v57  ;;  %v2345_v61 = vmul.f32 %v14169_v43, %v14139_v57  ;;  %v2524_v29 = vmul.f32 %v14142_v12, %v17500_v13  ;;  %v17532_v62 = vld [vmem:[#allocation27_spill] sm:$0xff]  ;;  %v17533_v43 = vld [vmem:[#allocation160_spill] sm:$0xff] }
 0x41b   : > { %v2525_v55 = vmul.f32 %v14142_v12, %v17531_v25  ;;  %v2704_v45 = vmul.f32 %v14145_v3, %v17502_v54  ;;  %v5482_v47 = vpack.c.bf16 %v5403_v33, %v5402_v15  ;;  %v4720_v36 = vadd.f32 %v4576_v52, %v4432_v51  ;;  %v17535_v13 = vld [vmem:[#allocation236_spill] sm:$0xff]  ;;  %v17540_v24 = vld [vmem:[#allocation159_spill] sm:$0xff] }
 0x41c   : > { %v4721_v37 = vadd.f32 %v4577_v58, %v4433_v44  ;;  %v2705_v16 = vmul.f32 %v14145_v3, %v17532_v62  ;;  %v2884_v46 = vmul.f32 %v17504_v56, %v14148_v21  ;;  %v2885_v26 = vmul.f32 %v17533_v43, %v14148_v21  ;;  %v17537_v44 = vld [vmem:[#allocation232_spill] sm:$0xff]  ;;  %v17539_v56 = vld [vmem:[#allocation234_spill] sm:$0xff]  ;;  %v17542_v63 = vld [vmem:[#allocation75_spill] sm:$0xff] }
 0x41d   : > { %v3064_v23 = vmul.f32 %v17535_v13, %v17534_v9  ;;  %v3065_v19 = vmul.f32 %v17535_v13, %v17536_v31  ;;  %7250 = vmatprep.mubr.msk.bf16.mxu0 %vm1041_vm3, %v5482_v47  ;;  %v4864_v54 = vadd.f32 %v4720_v36, %v3712_v32  ;;  %v3244_v6 = vmul.f32 %v17537_v44, %v17510_v22  ;;  %v17544_v51 = vld [vmem:[#allocation60_spill] sm:$0xff]  ;;  %v17546_v32 = vld [vmem:[#allocation22_spill] sm:$0xff] }
 0x41e   : > { %v4865_v4 = vadd.f32 %v4721_v37, %v3713_v27  ;;  %v3245_v38 = vmul.f32 %v17537_v44, %v17538_v40  ;;  %v3424_v0 = vmul.f32 %v17540_v24, %v17539_v56  ;;  %v3425_v35 = vmul.f32 %v17541_v49, %v17539_v56  ;;  %v17545_v27 = vld [vmem:[#allocation214_spill] sm:$0xff]  ;;  %v17547_v52 = vld [vmem:[#allocation96_spill] sm:$0xff] }
 0x41f   : > { %v3604_v14 = vmul.f32 %v14183_v48, %v17542_v63  ;;  %v3605_v60 = vmul.f32 %v14183_v48, %v17543_v50  ;;  %v2093_v15 = vmul.f32 %v17545_v27, %v17544_v51  ;;  %v5044_v22 = vadd.f32 %v17546_v32, %v4864_v54  ;;  %v17548_v58 = vld [vmem:[#allocation104_spill] sm:$0xff]  ;;  %v17549_v54 = vld [vmem:[#allocation77_spill] sm:$0xff] }
 0x420   : > { %v5045_v33 = vadd.f32 %v17546_v32, %v4865_v4  ;;  %v2164_v25 = vmul.f32 %v17548_v58, %v17547_v52  ;;  %v3928_v47 = vadd.f32 %v2524_v29, %v2344_v8  ;;  %v3929_v36 = vadd.f32 %v2525_v55, %v2345_v61  ;;  %v17550_v32 = vld [vmem:[#allocation78_spill] sm:$0xff]  ;;  %v17551_v29 = vld [vmem:[#allocation223_spill] sm:$0xff]  ;;  %v17558_v58 = vld [vmem:[#allocation189_spill] sm:$0xff] }
 0x421   : > { %v4072_v37 = vadd.f32 %v2884_v46, %v2704_v45  ;;  %v4073_v62 = vadd.f32 %v2885_v26, %v2705_v16  ;;  %v5188_v43 = vmax.f32 %v5044_v22, 0.0  ;;  %v4216_v31 = vadd.f32 %v3244_v6, %v3064_v23  ;;  %v17552_v45 = vld [vmem:[#allocation233_spill] sm:$0xff]  ;;  %v17553_v26 = vld [vmem:[#allocation155_spill] sm:$0xff]  ;;  %v17555_v6 = vld [vmem:[#allocation200_spill] sm:$0xff] }
 0x422   : > { %v5189_v9 = vmax.f32 %v5045_v33, 0.0  ;;  %v4217_v40 = vadd.f32 %v3245_v38, %v3065_v19  ;;  %v4360_v59 = vadd.f32 %v3604_v14, %v3424_v0  ;;  %v4361_v50 = vadd.f32 %v3605_v60, %v3425_v35 }
 0x423   : > { %v4504_v48 = vadd.f32 %v4072_v37, %v3928_v47  ;;  %v4505_v56 = vadd.f32 %v4073_v62, %v3929_v36  ;;  %v5332_v51 = vmul.f32 %v5188_v43, %v2092_v18  ;;  %v3784_v4 = vmul.f32 %v14191_v34, %v17549_v54  ;;  %v17554_v18 = vld [vmem:[#allocation156_spill] sm:$0xff]  ;;  %v17560_v37 = vld [vmem:[#allocation98_spill] sm:$0xff]  ;;  %v17561_v62 = vld [vmem:[#allocation105_spill] sm:$0xff] }
 0x424   : > { %v5333_v27 = vmul.f32 %v5189_v9, %v2093_v15  ;;  %v3785_v52 = vmul.f32 %v14191_v34, %v17550_v32  ;;  %v4648_v8 = vadd.f32 %v4360_v59, %v4216_v31  ;;  %v4649_v61 = vadd.f32 %v4361_v50, %v4217_v40  ;;  %v17556_v59 = vld [vmem:[#allocation203_spill] sm:$0xff]  ;;  %v17557_v32 = vld [vmem:[#allocation186_spill] sm:$0xff]  ;;  %v17562_v43 = vld [vmem:[#allocation172_spill] sm:$0xff] }
 0x425   : > { %v2274_v55 = vmul.f32 %v17551_v29, %v13614_v20  ;;  %v2275_v16 = vmul.f32 %v17552_v45, %v13614_v20  ;;  %v2454_v23 = vmul.f32 %v13617_v42, %v17553_v26  ;;  %v2455_v19 = vmul.f32 %v13617_v42, %v17554_v18  ;;  %v17563_v31 = vld [vmem:[#allocation208_spill] sm:$0xff]  ;;  %v17564_v50 = vld [vmem:[#allocation211_spill] sm:$0xff] }
 0x426   : > { %v5447_v46 = vpack.c.bf16 %v5333_v27, %v5332_v51  ;;  %v2634_v38 = vmul.f32 %v13620_v17, %v17555_v6  ;;  %v4792_v0 = vadd.f32 %v4648_v8, %v4504_v48  ;;  %v4793_v35 = vadd.f32 %v4649_v61, %v4505_v56  ;;  %v17565_v8 = vld [vmem:[#allocation213_spill] sm:$0xff]  ;;  %v17566_v61 = vld [vmem:[#allocation16_spill] sm:$0xff]  ;;  %v17567_v6 = vld [vmem:[#allocation179_spill] sm:$0xff] }
 0x427   : > { %v2635_v14 = vmul.f32 %v13620_v17, %v17556_v59  ;;  %v2814_v60 = vmul.f32 %v17521_v28, %v13623_v5  ;;  %v2815_v27 = vmul.f32 %v17522_v39, %v13623_v5  ;;  %v2994_v15 = vmul.f32 %v17347_v53, %v17523_v7  ;;  %v17559_v28 = vld [vmem:[#allocation17_spill] sm:$0xff]  ;;  %v17568_v7 = vld [vmem:[#allocation180_spill] sm:$0xff] }
 0x428   : > { %7169 = vmatmul.mubr.msk.bf16.gmra.mrb[8].mxu1 %vm1041_vm3, %v5447_v46  ;;  %v2995_v22 = vmul.f32 %v17347_v53, %v17557_v32  ;;  %v3174_v48 = vmul.f32 %v17349_v30, %v17529_v1  ;;  %v4936_v56 = vadd.f32 %v4792_v0, %v3784_v4  ;;  %v4937_v33 = vadd.f32 %v4793_v35, %v3785_v52 }
 0x429   : > { %v3175_v47 = vmul.f32 %v17349_v30, %v17558_v58  ;;  %v3354_v36 = vmul.f32 %v17559_v28, %v17352_v11  ;;  %v2165_v39 = vmul.f32 %v17561_v62, %v17560_v37  ;;  %v3355_v9 = vmul.f32 %v17562_v43, %v17352_v11 }
 0x42a   : > { %v3534_v40 = vmul.f32 %v17357_v10, %v17563_v31  ;;  %v3535_v51 = vmul.f32 %v17357_v10, %v17564_v50  ;;  %v5116_v4 = vadd.f32 %v14216_v2, %v4936_v56  ;;  %v5117_v52 = vadd.f32 %v14216_v2, %v4937_v33 }
 0x42b   : > { %v2094_v29 = vmul.f32 %v17566_v61, %v17565_v8  ;;  %v3858_v45 = vadd.f32 %v2454_v23, %v2274_v55  ;;  %v3859_v46 = vadd.f32 %v2455_v19, %v2275_v16  ;;  %v4002_v0 = vadd.f32 %v2814_v60, %v2634_v38  ;;  %v17569_v23 = vld [vmem:[#allocation205_spill] sm:$0xff]  ;;  %v17570_v38 = vld [vmem:[#allocation111_spill] sm:$0xff]  ;;  %v17588_v61 = vld [vmem:[#allocation102_spill] sm:$0xff] }
 0x42c   : > { %v4003_v35 = vadd.f32 %v2815_v27, %v2635_v14  ;;  %v4146_v37 = vadd.f32 %v3174_v48, %v2994_v15  ;;  %v5260_v62 = vmax.f32 %v5116_v4, 0.0  ;;  %v5261_v58 = vmax.f32 %v5117_v52, 0.0  ;;  %v17571_v60 = vld [vmem:[#allocation83_spill] sm:$0xff]  ;;  %v17572_v48 = vld [vmem:[#allocation85_spill] sm:$0xff]  ;;  %v17576_v52 = vld [vmem:[#allocation74_spill] sm:$0xff] }
 0x42d   : > { %v4147_v32 = vadd.f32 %v3175_v47, %v2995_v22  ;;  %v4290_v59 = vadd.f32 %v3534_v40, %v3354_v36  ;;  %v3714_v18 = vmul.f32 %v13670_v41, %v17567_v6  ;;  %v4291_v50 = vadd.f32 %v3535_v51, %v3355_v9  ;;  %v17575_v40 = vld [vmem:[#allocation73_spill] sm:$0xff] }
 0x42e   : > { %v4434_v26 = vadd.f32 %v4002_v0, %v3858_v45  ;;  %v4435_v56 = vadd.f32 %v4003_v35, %v3859_v46  ;;  %v5404_v1 = vmul.f32 %v5260_v62, %v2164_v25  ;;  %v5405_v33 = vmul.f32 %v5261_v58, %v2165_v39  ;;  %v17573_v58 = vld [vmem:[#allocation93_spill] sm:$0xff]  ;;  %v17578_v46 = vld [vmem:[#allocation112_spill] sm:$0xff] }
 0x42f   : > { %v3715_v8 = vmul.f32 %v13670_v41, %v17568_v7  ;;  %v4578_v55 = vadd.f32 %v4290_v59, %v4146_v37  ;;  %v4579_v16 = vadd.f32 %v4291_v50, %v4147_v32  ;;  %v2346_v19 = vmul.f32 %v17569_v23, %v14139_v57  ;;  %v17574_v59 = vld [vmem:[#allocation94_spill] sm:$0xff]  ;;  %v17581_v37 = vld [vmem:[#allocation36_spill] sm:$0xff]  ;;  %v17585_v23 = vld [vmem:[#allocation101_spill] sm:$0xff] }
 0x430   : > { %v2347_v14 = vmul.f32 %v17570_v38, %v14139_v57  ;;  %v2526_v27 = vmul.f32 %v14142_v12, %v17571_v60  ;;  %v5483_v15 = vpack.c.bf16 %v5405_v33, %v5404_v1  ;;  %v2527_v25 = vmul.f32 %v14142_v12, %v17572_v48  ;;  %v17583_v33 = vld [vmem:[#allocation99_spill] sm:$0xff]  ;;  %v17586_v38 = vld [vmem:[#allocation128_spill] sm:$0xff] }
 0x431   : > { %v4722_v22 = vadd.f32 %v4578_v55, %v4434_v26  ;;  %v2706_v47 = vmul.f32 %v14145_v3, %v17573_v58  ;;  %v4723_v36 = vadd.f32 %v4579_v16, %v4435_v56  ;;  %v2707_v32 = vmul.f32 %v14145_v3, %v17574_v59  ;;  %v17584_v55 = vld [vmem:[#allocation241_spill] sm:$0xff]  ;;  %v17587_v60 = vld [vmem:[#allocation136_spill] sm:$0xff] }
 0x432   : > { %v2886_v39 = vmul.f32 %v17540_v24, %v14148_v21  ;;  %v2887_v9 = vmul.f32 %v17541_v49, %v14148_v21  ;;  %7251 = vmatmul.mubr.msk.bf16.vlgmr.msra.gmra.mrb[0].mxu0 %vm1041_vm3, %v5483_v15  ;;  %v3066_v26 = vmul.f32 %v17535_v13, %v17542_v63  ;;  %v3067_v50 = vmul.f32 %v17535_v13, %v17575_v40  ;;  %v17577_v24 = vld [vmem:[#allocation234_spill] sm:$0xff] }
 0x433   : > { %v4866_v1 = vadd.f32 %v4722_v22, %v3714_v18  ;;  %v3246_v51 = vmul.f32 %v17537_v44, %v17549_v54  ;;  %v4867_v4 = vadd.f32 %v4723_v36, %v3715_v8  ;;  %v3247_v45 = vmul.f32 %v17537_v44, %v17576_v52  ;;  %v17579_v49 = vld [vmem:[#allocation222_spill] sm:$0xff]  ;;  %v17580_v18 = vld [vmem:[#allocation215_spill] sm:$0xff] }
 0x434   : > { %v3426_v0 = vmul.f32 %v17578_v46, %v17577_v24  ;;  %v3427_v35 = vmul.f32 %v17579_v49, %v17577_v24  ;;  %v2095_v62 = vmul.f32 %v17581_v37, %v17580_v18  ;;  %v17582_v63 = vld [vmem:[#allocation22_spill] sm:$0xff]  ;;  %v3606_v16 = vmul.f32 %v17584_v55, %v17583_v33 }
 0x435   : > { %v5046_v56 = vadd.f32 %v17582_v63, %v4866_v1  ;;  %v3607_v54 = vmul.f32 %v17584_v55, %v17585_v23  ;;  %v5047_v8 = vadd.f32 %v17582_v63, %v4867_v4  ;;  %v2166_v15 = vmul.f32 %v17587_v60, %v17586_v38  ;;  %v17589_v63 = vld [vmem:[#allocation103_spill] sm:$0xff] }
 0x436   : > { %v3930_v22 = vadd.f32 %v2526_v27, %v2346_v19  ;;  %v3931_v48 = vadd.f32 %v2527_v25, %v2347_v14  ;;  %v4074_v36 = vadd.f32 %v2886_v39, %v2706_v47  ;;  %v4075_v59 = vadd.f32 %v2887_v9, %v2707_v32  ;;  %v17590_v27 = vld [vmem:[#allocation135_spill] sm:$0xff]  ;;  %v17591_v47 = vld [vmem:[#allocation133_spill] sm:$0xff] }
 0x437   : > { %v5190_v58 = vmax.f32 %v5046_v56, 0.0  ;;  %v4218_v40 = vadd.f32 %v3246_v51, %v3066_v26  ;;  %v5191_v52 = vmax.f32 %v5047_v8, 0.0  ;;  %v4219_v18 = vadd.f32 %v3247_v45, %v3067_v50  ;;  %v17592_v39 = vld [vmem:[#allocation219_spill] sm:$0xff]  ;;  %v17593_v9 = vld [vmem:[#allocation221_spill] sm:$0xff] }
 0x438   : > { %v4362_v1 = vadd.f32 %v3606_v16, %v3426_v0  ;;  %v4363_v37 = vadd.f32 %v3607_v54, %v3427_v35  ;;  %v3786_v24 = vmul.f32 %v14191_v34, %v17588_v61  ;;  %v4506_v23 = vadd.f32 %v4074_v36, %v3930_v22  ;;  %v17594_v0 = vld [vmem:[#allocation226_spill] sm:$0xff] }
 0x439   : > { %v5334_v7 = vmul.f32 %v5190_v58, %v2094_v29  ;;  %v4507_v55 = vadd.f32 %v4075_v59, %v3931_v48  ;;  %v5335_v4 = vmul.f32 %v5191_v52, %v2095_v62  ;;  %v3787_v38 = vmul.f32 %v14191_v34, %v17589_v63  ;;  %v17595_v62 = vld [vmem:[#allocation228_spill] sm:$0xff]  ;;  %v17600_v22 = vld [vmem:[#allocation230_spill] sm:$0xff]  ;;  %v17602_v58 = vld [vmem:[#allocation137_spill] sm:$0xff] }
 0x43a   : > { %v4650_v19 = vadd.f32 %v4362_v1, %v4218_v40  ;;  %v4651_v14 = vadd.f32 %v4363_v37, %v4219_v18  ;;  %v2276_v25 = vmul.f32 %v17590_v27, %v13614_v20  ;;  %v2277_v32 = vmul.f32 %v17591_v47, %v13614_v20  ;;  %v17603_v40 = vld [vmem:[#allocation231_spill] sm:$0xff]  ;;  %v17605_v18 = vld [vmem:[#allocation246_spill] sm:$0xff] }
 0x43b   : > { %v2456_v29 = vmul.f32 %v13617_v42, %v17592_v39  ;;  %v2457_v26 = vmul.f32 %v13617_v42, %v17593_v9  ;;  %v5448_v50 = vpack.c.bf16 %v5335_v4, %v5334_v7  ;;  %v2636_v35 = vmul.f32 %v13620_v17, %v17594_v0  ;;  %v17645_v0 = vld [vmem:[#allocation193_spill] sm:$0xff] }
 0x43c   : > { %v4794_v51 = vadd.f32 %v4650_v19, %v4506_v23  ;;  %v4795_v45 = vadd.f32 %v4651_v14, %v4507_v55  ;;  %v2637_v37 = vmul.f32 %v13620_v17, %v17595_v62  ;;  %v2816_v63 = vmul.f32 %v17559_v28, %v13623_v5  ;;  %v17596_v55 = vld [vmem:[#allocation204_spill] sm:$0xff]  ;;  %v17597_v17 = vld [vmem:[#allocation209_spill] sm:$0xff]  ;;  %v17598_v28 = vld [vmem:[#allocation158_spill] sm:$0xff] }
 0x43d   : > { %v2817_v20 = vmul.f32 %v17562_v43, %v13623_v5  ;;  %v2996_v56 = vmul.f32 %v17347_v53, %v17563_v31  ;;  %7172 = vmatprep.mubr.msk.bf16.mxu1 %vm1041_vm3, %v5448_v50  ;;  %v2997_v16 = vmul.f32 %v17347_v53, %v17596_v55  ;;  %v3176_v54 = vmul.f32 %v17349_v30, %v17567_v6  ;;  %v17599_v5 = vld [vmem:[#allocation235_spill] sm:$0xff]  ;;  %v17644_v62 = vld [vmem:[#allocation169_spill] sm:$0xff] }
 0x43e   : > { %v4938_v42 = vadd.f32 %v4794_v51, %v3786_v24  ;;  %v4939_v7 = vadd.f32 %v4795_v45, %v3787_v38  ;;  %v3177_v8 = vmul.f32 %v17349_v30, %v17597_v17  ;;  %v3356_v60 = vmul.f32 %v17598_v28, %v17352_v11  ;;  %v17601_v24 = vld [vmem:[#allocation129_spill] sm:$0xff]  ;;  %v17604_v30 = vld [vmem:[#allocation46_spill] sm:$0xff]  ;;  %v17606_v28 = vld [vmem:[#allocation196_spill] sm:$0xff] }
 0x43f   : > { %v3357_v43 = vmul.f32 %v17599_v5, %v17352_v11  ;;  %v3536_v48 = vmul.f32 %v17357_v10, %v17600_v22  ;;  %v2167_v36 = vmul.f32 %v17602_v58, %v17601_v24  ;;  %v3537_v52 = vmul.f32 %v17357_v10, %v17603_v40  ;;  %v17607_v24 = vld [vmem:[#allocation198_spill] sm:$0xff]  ;;  %v17641_v22 = vld [vmem:[#allocation148_spill] sm:$0xff] }
 0x440   : > { %v5118_v53 = vadd.f32 %v14216_v2, %v4938_v42  ;;  %v5119_v59 = vadd.f32 %v14216_v2, %v4939_v7  ;;  %v2096_v1 = vmul.f32 %v17605_v18, %v17604_v30  ;;  %v3860_v23 = vadd.f32 %v2456_v29, %v2276_v25  ;;  %v17642_v17 = vld [vmem:[#allocation54_spill] sm:$0xff] }
 0x441   : > { %v3861_v4 = vadd.f32 %v2457_v26, %v2277_v32  ;;  %v4004_v38 = vadd.f32 %v2816_v63, %v2636_v35  ;;  %v4005_v14 = vadd.f32 %v2817_v20, %v2637_v37  ;;  %v4148_v27 = vadd.f32 %v3176_v54, %v2996_v56  ;;  %v7892_v26 = vld [vmem:[%s8087_s12 + $0x48] sm:$0xff]  ;;  %v7893_v63 = vld [vmem:[%s8087_s12 + $0x50] sm:$0xff]  ;;  %v17608_v56 = vld [vmem:[#allocation106_spill] sm:$0xff] }
 0x442   : > { %v5262_v11 = vmax.f32 %v5118_v53, 0.0  ;;  %v5263_v19 = vmax.f32 %v5119_v59, 0.0  ;;  %v4149_v47 = vadd.f32 %v3177_v8, %v2997_v16  ;;  %v4292_v50 = vadd.f32 %v3536_v48, %v3356_v60  ;;  %v17609_v16 = vld [vmem:[#allocation108_spill] sm:$0xff] }
 0x443   : > { %v4293_v51 = vadd.f32 %v3537_v52, %v3357_v43  ;;  %v4436_v45 = vadd.f32 %v4004_v38, %v3860_v23  ;;  %v3716_v10 = vmul.f32 %v13670_v41, %v17606_v28  ;;  %v4437_v5 = vadd.f32 %v4005_v14, %v3861_v4  ;;  %v17610_v43 = vld [vmem:[#allocation110_spill] sm:$0xff]  ;;  %v17611_v48 = vld [vmem:[#allocation120_spill] sm:$0xff]  ;;  %v17612_v52 = vld [vmem:[#allocation97_spill] sm:$0xff] }
 0x444   : > { %v5406_v42 = vmul.f32 %v5262_v11, %v2166_v15  ;;  %v5407_v7 = vmul.f32 %v5263_v19, %v2167_v36  ;;  %v3717_v25 = vmul.f32 %v13670_v41, %v17607_v24  ;;  %v4580_v32 = vadd.f32 %v4292_v50, %v4148_v27  ;;  %v17613_v11 = vld [vmem:[#allocation100_spill] sm:$0xff]  ;;  %v17614_v14 = vld [vmem:[#allocation234_spill] sm:$0xff]  ;;  %v17617_v50 = vld [vmem:[#allocation241_spill] sm:$0xff] }
 0x445   : > { %v4581_v29 = vadd.f32 %v4293_v51, %v4149_v47  ;;  %v2348_v35 = vmul.f32 %v7892_v26, %v14139_v57  ;;  %v2349_v20 = vmul.f32 %v7893_v63, %v14139_v57  ;;  %v2528_v15 = vmul.f32 %v14142_v12, %v17608_v56  ;;  %v17615_v27 = vld [vmem:[#allocation132_spill] sm:$0xff]  ;;  %v14461_v47 = vld [vmem:[%s8087_s12 + $0x80] sm:$0xff]  ;;  %v14512_v28 = vld [vmem:[%s8087_s12 + $0x98] sm:$0xff] }
 0x446   : > { %v5484_v37 = vpack.c.bf16 %v5407_v7, %v5406_v42  ;;  %v2529_v54 = vmul.f32 %v14142_v12, %v17609_v16  ;;  %v4724_v8 = vadd.f32 %v4580_v32, %v4436_v45  ;;  %v2708_v41 = vmul.f32 %v14145_v3, %v17610_v43  ;;  %v17618_v45 = vld [vmem:[#allocation124_spill] sm:$0xff]  ;;  %v17619_v7 = vld [vmem:[#allocation47_spill] sm:$0xff] }
 0x447   : > { %v4725_v60 = vadd.f32 %v4581_v29, %v4437_v5  ;;  %v2709_v58 = vmul.f32 %v14145_v3, %v17611_v48  ;;  %v2888_v36 = vmul.f32 %v17578_v46, %v14148_v21  ;;  %v2889_v53 = vmul.f32 %v17579_v49, %v14148_v21  ;;  %v17621_v5 = vld [vmem:[#allocation22_spill] sm:$0xff]  ;;  %v17622_v29 = vld [vmem:[#allocation145_spill] sm:$0xff]  ;;  %v17623_v26 = vld [vmem:[#allocation152_spill] sm:$0xff] }
 0x448   : > { %7254 = vmatprep.mubr.msk.bf16.mxu0 %vm1041_vm3, %v5484_v37  ;;  %v3068_v59 = vmul.f32 %v17535_v13, %v17583_v33  ;;  %v3069_v30 = vmul.f32 %v17535_v13, %v17612_v52  ;;  %v4868_v23 = vadd.f32 %v4724_v8, %v3716_v10  ;;  %v3248_v38 = vmul.f32 %v17537_v44, %v17588_v61  ;;  %v17616_v33 = vld [vmem:[#allocation123_spill] sm:$0xff] }
 0x449   : > { %v4869_v4 = vadd.f32 %v4725_v60, %v3717_v25  ;;  %v3249_v19 = vmul.f32 %v17537_v44, %v17613_v11  ;;  %v3428_v46 = vmul.f32 %v17615_v27, %v17614_v14  ;;  %v3429_v49 = vmul.f32 %v14461_v47, %v17614_v14  ;;  %v17620_v10 = vld [vmem:[#allocation247_spill] sm:$0xff] }
 0x44a   : > { %v3608_v51 = vmul.f32 %v17617_v50, %v17616_v33  ;;  %v3609_v42 = vmul.f32 %v17617_v50, %v17618_v45  ;;  %v2097_v61 = vmul.f32 %v17620_v10, %v17619_v7  ;;  %v5048_v25 = vadd.f32 %v17621_v5, %v4868_v23 }
 0x44b   : > { %v5049_v32 = vadd.f32 %v17621_v5, %v4869_v4  ;;  %v2168_v37 = vmul.f32 %v17623_v26, %v17622_v29  ;;  %v3932_v63 = vadd.f32 %v2528_v15, %v2348_v35  ;;  %v3933_v56 = vadd.f32 %v2529_v54, %v2349_v20  ;;  %v17624_v4 = vld [vmem:[#allocation130_spill] sm:$0xff]  ;;  %v17625_v29 = vld [vmem:[#allocation131_spill] sm:$0xff] }
 0x44c   : > { %v4076_v16 = vadd.f32 %v2888_v36, %v2708_v41  ;;  %v4077_v8 = vadd.f32 %v2889_v53, %v2709_v58  ;;  %v5192_v60 = vmax.f32 %v5048_v25, 0.0  ;;  %v4220_v48 = vadd.f32 %v3248_v38, %v3068_v59  ;;  %v7895_v54 = vld [vmem:[%s8087_s12 + $0x60] sm:$0xff]  ;;  %v17626_v41 = vld [vmem:[#allocation57_spill] sm:$0xff]  ;;  %v7896_v36 = vld [vmem:[%s8087_s12 + $0x68] sm:$0xff] }
 0x44d   : > { %v5193_v43 = vmax.f32 %v5049_v32, 0.0  ;;  %v4221_v52 = vadd.f32 %v3249_v19, %v3069_v30  ;;  %v4364_v11 = vadd.f32 %v3608_v51, %v3428_v46  ;;  %v4365_v45 = vadd.f32 %v3609_v42, %v3429_v49  ;;  %v17627_v30 = vld [vmem:[#allocation139_spill] sm:$0xff]  ;;  %v17628_v38 = vld [vmem:[#allocation58_spill] sm:$0xff]  ;;  %v17629_v19 = vld [vmem:[#allocation141_spill] sm:$0xff] }
 0x44e   : > { %v4508_v7 = vadd.f32 %v4076_v16, %v3932_v63  ;;  %v4509_v10 = vadd.f32 %v4077_v8, %v3933_v56  ;;  %v5336_v23 = vmul.f32 %v5192_v60, %v2096_v1  ;;  %v3788_v5 = vmul.f32 %v14191_v34, %v17624_v4  ;;  %v17630_v49 = vld [vmem:[#allocation144_spill] sm:$0xff]  ;;  %v17631_v51 = vld [vmem:[#allocation59_spill] sm:$0xff]  ;;  %v17632_v32 = vld [vmem:[#allocation146_spill] sm:$0xff] }
 0x44f   : > { %v5337_v18 = vmul.f32 %v5193_v43, %v2097_v61  ;;  %v3789_v35 = vmul.f32 %v14191_v34, %v17625_v29  ;;  %v4652_v20 = vadd.f32 %v4364_v11, %v4220_v48  ;;  %v4653_v15 = vadd.f32 %v4365_v45, %v4221_v52  ;;  %v17633_v63 = vld [vmem:[#allocation51_spill] sm:$0xff]  ;;  %v17634_v16 = vld [vmem:[#allocation52_spill] sm:$0xff]  ;;  %v17635_v60 = vld [vmem:[#allocation118_spill] sm:$0xff] }
 0x450   : > { %v2286_v58 = vmul.f32 %v7895_v54, %v17626_v41  ;;  %v2287_v53 = vmul.f32 %v7896_v36, %v17626_v41  ;;  %v2466_v1 = vmul.f32 %v17628_v38, %v17627_v30  ;;  %v2467_v46 = vmul.f32 %v17628_v38, %v17629_v19  ;;  %v17636_v48 = vld [vmem:[#allocation53_spill] sm:$0xff]  ;;  %v17637_v45 = vld [vmem:[#allocation126_spill] sm:$0xff]  ;;  %v17638_v29 = vld [vmem:[#allocation55_spill] sm:$0xff] }
 0x451   : > { %v5449_v59 = vpack.c.bf16 %v5337_v18, %v5336_v23  ;;  %v2646_v42 = vmul.f32 %v17631_v51, %v17630_v49  ;;  %v4796_v61 = vadd.f32 %v4652_v20, %v4508_v7  ;;  %v4797_v25 = vadd.f32 %v4653_v15, %v4509_v10  ;;  %v14505_v23 = vld [vmem:[%s8087_s12 + $0x90] sm:$0xff]  ;;  %v17639_v15 = vld [vmem:[#allocation147_spill] sm:$0xff]  ;;  %v17647_v38 = vld [vmem:[#allocation18_spill] sm:$0xff] }
 0x452   : > { %v2647_v26 = vmul.f32 %v17631_v51, %v17632_v32  ;;  %v2826_v56 = vmul.f32 %v17615_v27, %v17633_v63  ;;  %v2827_v18 = vmul.f32 %v14461_v47, %v17633_v63  ;;  %v3006_v8 = vmul.f32 %v17634_v16, %v17616_v33  ;;  %v17646_v51 = vld [vmem:[#allocation150_spill] sm:$0xff] }
 0x453   : > { %7173 = vmatmul.mubr.msk.bf16.gmra.mrb[12].mxu1 %vm1041_vm3, %v5449_v59  ;;  %v3007_v43 = vmul.f32 %v17634_v16, %v17635_v60  ;;  %v3186_v10 = vmul.f32 %v17636_v48, %v17624_v4  ;;  %v4940_v52 = vadd.f32 %v4796_v61, %v3788_v5  ;;  %v4941_v11 = vadd.f32 %v4797_v25, %v3789_v35  ;;  %v17640_v59 = vld [vmem:[#allocation153_spill] sm:$0xff] }
 0x454   : > { %v3187_v7 = vmul.f32 %v17636_v48, %v17637_v45  ;;  %v3366_v20 = vmul.f32 %v14505_v23, %v17638_v29  ;;  %v2169_v24 = vmul.f32 %v17640_v59, %v17639_v15  ;;  %v3367_v40 = vmul.f32 %v14512_v28, %v17638_v29  ;;  %v17643_v35 = vld [vmem:[#allocation149_spill] sm:$0xff] }
 0x455   : > { %v3546_v5 = vmul.f32 %v17642_v17, %v17641_v22  ;;  %v3547_v61 = vmul.f32 %v17642_v17, %v17643_v35  ;;  %v5120_v25 = vadd.f32 %v14216_v2, %v4940_v52  ;;  %v5121_v55 = vadd.f32 %v14216_v2, %v4941_v11  ;;  %v17648_v2 = vld [vmem:[#allocation151_spill] sm:$0xff] }
 0x456   : > { %v2106_v9 = vmul.f32 %v17645_v0, %v17644_v62  ;;  %v3870_v39 = vadd.f32 %v2466_v1, %v2286_v58  ;;  %v3871_v15 = vadd.f32 %v2467_v46, %v2287_v53  ;;  %v4014_v59 = vadd.f32 %v2826_v56, %v2646_v42 }
 0x457   : > { %v4015_v6 = vadd.f32 %v2827_v18, %v2647_v26  ;;  %v4158_v31 = vadd.f32 %v3186_v10, %v3006_v8  ;;  %v5264_v48 = vmax.f32 %v5120_v25, 0.0  ;;  %v5265_v29 = vmax.f32 %v5121_v55, 0.0  ;;  %v17652_v18 = vld [vmem:[#allocation149_spill] sm:$0xff]  ;;  %v17653_v8 = vld [vmem:[#allocation183_spill] sm:$0xff] }
 0x458   : > { %v4159_v16 = vadd.f32 %v3187_v7, %v3007_v43  ;;  %v4302_v63 = vadd.f32 %v3546_v5, %v3366_v20  ;;  %v3726_v41 = vmul.f32 %v17647_v38, %v17646_v51  ;;  %v4303_v17 = vadd.f32 %v3547_v61, %v3367_v40 }
 0x459   : > { %v4446_v34 = vadd.f32 %v4014_v59, %v3870_v39  ;;  %v4447_v52 = vadd.f32 %v4015_v6, %v3871_v15  ;;  %v5408_v35 = vmul.f32 %v5264_v48, %v2168_v37  ;;  %v5409_v11 = vmul.f32 %v5265_v29, %v2169_v24  ;;  %v17654_v15 = vld [vmem:[#allocation242_spill] sm:$0xff] }
 0x45a   : > { %v3727_v62 = vmul.f32 %v17647_v38, %v17648_v2  ;;  %v4590_v58 = vadd.f32 %v4302_v63, %v4158_v31  ;;  %v4591_v53 = vadd.f32 %v4303_v17, %v4159_v16  ;;  %v2350_v1 = vmul.f32 %v7895_v54, %v14139_v57 }
 0x45b   : > { %v2351_v46 = vmul.f32 %v7896_v36, %v14139_v57  ;;  %v2530_v55 = vmul.f32 %v14142_v12, %v17627_v30  ;;  %v5485_v42 = vpack.c.bf16 %v5409_v11, %v5408_v35  ;;  %v2531_v39 = vmul.f32 %v14142_v12, %v17629_v19 }
 0x45c   : > { %v4734_v26 = vadd.f32 %v4590_v58, %v4446_v34  ;;  %v2710_v6 = vmul.f32 %v14145_v3, %v17630_v49  ;;  %v4735_v40 = vadd.f32 %v4591_v53, %v4447_v52  ;;  %v2711_v31 = vmul.f32 %v14145_v3, %v17632_v32  ;;  %v17650_v49 = vld [vmem:[#allocation194_spill] sm:$0xff] }
 0x45d   : > { %v2890_v17 = vmul.f32 %v17615_v27, %v14148_v21  ;;  %v2891_v24 = vmul.f32 %v14461_v47, %v14148_v21  ;;  %7255 = vmatmul.mubr.msk.bf16.gmra.mrb[4].mxu0 %vm1041_vm3, %v5485_v42  ;;  %v3070_v34 = vmul.f32 %v17535_v13, %v17616_v33  ;;  %v3071_v54 = vmul.f32 %v17535_v13, %v17635_v60  ;;  %v17651_v33 = vld [vmem:[#allocation68_spill] sm:$0xff]  ;;  %v7900_v42 = vld [vmem:[%s8087_s12 + $0x80] sm:$0xff] }
 0x45e   : > { %v4878_v37 = vadd.f32 %v4734_v26, %v3726_v41  ;;  %v3250_v36 = vmul.f32 %v17537_v44, %v17624_v4  ;;  %v4879_v30 = vadd.f32 %v4735_v40, %v3727_v62  ;;  %v3251_v19 = vmul.f32 %v17537_v44, %v17637_v45  ;;  %v17649_v41 = vld [vmem:[#allocation171_spill] sm:$0xff]  ;;  %v17658_v40 = vld [vmem:[#allocation174_spill] sm:$0xff] }
 0x45f   : > { %v3430_v27 = vmul.f32 %v14505_v23, %v17614_v14  ;;  %v3431_v47 = vmul.f32 %v14512_v28, %v17614_v14  ;;  %v2107_v32 = vmul.f32 %v17650_v49, %v17649_v41  ;;  %v3610_v56 = vmul.f32 %v17617_v50, %v17641_v22  ;;  %v17663_v41 = vld [vmem:[#allocation52_spill] sm:$0xff] }
 0x460   : > { %v5058_v63 = vadd.f32 %v17651_v33, %v4878_v37  ;;  %v3611_v4 = vmul.f32 %v17617_v50, %v17652_v18  ;;  %v5059_v16 = vadd.f32 %v17651_v33, %v4879_v30  ;;  %v2170_v60 = vmul.f32 %v17645_v0, %v17653_v8  ;;  %v17664_v18 = vld [vmem:[#allocation184_spill] sm:$0xff] }
 0x461   : > { %v3934_v43 = vadd.f32 %v2530_v55, %v2350_v1  ;;  %v3935_v48 = vadd.f32 %v2531_v39, %v2351_v46  ;;  %v4078_v45 = vadd.f32 %v2890_v17, %v2710_v6  ;;  %v4079_v7 = vadd.f32 %v2891_v24, %v2711_v31  ;;  %v7899_v1 = vld [vmem:[%s8087_s12 + $0x78] sm:$0xff]  ;;  %v17656_v39 = vld [vmem:[#allocation170_spill] sm:$0xff] }
 0x462   : > { %v5202_v10 = vmax.f32 %v5058_v63, 0.0  ;;  %v4222_v29 = vadd.f32 %v3250_v36, %v3070_v34  ;;  %v5203_v20 = vmax.f32 %v5059_v16, 0.0  ;;  %v4223_v5 = vadd.f32 %v3251_v19, %v3071_v54  ;;  %v17655_v46 = vld [vmem:[#allocation57_spill] sm:$0xff]  ;;  %v17657_v6 = vld [vmem:[#allocation58_spill] sm:$0xff]  ;;  %v17660_v34 = vld [vmem:[#allocation59_spill] sm:$0xff] }
 0x463   : > { %v4366_v35 = vadd.f32 %v3610_v56, %v3430_v27  ;;  %v4367_v61 = vadd.f32 %v3611_v4, %v3431_v47  ;;  %v3790_v59 = vmul.f32 %v17654_v15, %v17646_v51  ;;  %v4510_v52 = vadd.f32 %v4078_v45, %v3934_v43  ;;  %v17661_v36 = vld [vmem:[#allocation182_spill] sm:$0xff]  ;;  %v17662_v19 = vld [vmem:[#allocation51_spill] sm:$0xff]  ;;  %v17665_v16 = vld [vmem:[#allocation53_spill] sm:$0xff] }
 0x464   : > { %v5346_v25 = vmul.f32 %v5202_v10, %v2106_v9  ;;  %v4511_v11 = vadd.f32 %v4079_v7, %v3935_v48  ;;  %v5347_v62 = vmul.f32 %v5203_v20, %v2107_v32  ;;  %v3791_v0 = vmul.f32 %v17654_v15, %v17648_v2  ;;  %v17659_v2 = vld [vmem:[#allocation178_spill] sm:$0xff]  ;;  %v17666_v43 = vld [vmem:[#allocation187_spill] sm:$0xff] }
 0x465   : > { %v4654_v58 = vadd.f32 %v4366_v35, %v4222_v29  ;;  %v4655_v53 = vadd.f32 %v4367_v61, %v4223_v5  ;;  %v2288_v55 = vmul.f32 %v7899_v1, %v17655_v46  ;;  %v2289_v26 = vmul.f32 %v7900_v42, %v17655_v46  ;;  %v14595_v10 = vld [vmem:[%s8087_s12 + $0xa8] sm:$0xff]  ;;  %v14600_v29 = vld [vmem:[%s8087_s12 + $0xb0] sm:$0xff]  ;;  %v17669_v35 = vld [vmem:[#allocation54_spill] sm:$0xff] }
 0x466   : > { %v2468_v9 = vmul.f32 %v17657_v6, %v17656_v39  ;;  %v2469_v31 = vmul.f32 %v17657_v6, %v17658_v40  ;;  %v5454_v17 = vpack.c.bf16 %v5347_v62, %v5346_v25  ;;  %v2648_v54 = vmul.f32 %v17660_v34, %v17659_v2  ;;  %v17667_v45 = vld [vmem:[#allocation55_spill] sm:$0xff]  ;;  %v17668_v5 = vld [vmem:[#allocation188_spill] sm:$0xff]  ;;  %v17670_v25 = vld [vmem:[#allocation185_spill] sm:$0xff] }
 0x467   : > { %v4798_v24 = vadd.f32 %v4654_v58, %v4510_v52  ;;  %v4799_v37 = vadd.f32 %v4655_v53, %v4511_v11  ;;  %v2649_v30 = vmul.f32 %v17660_v34, %v17661_v36  ;;  %v2828_v27 = vmul.f32 %v14505_v23, %v17662_v19  ;;  %v17671_v52 = vld [vmem:[#allocation165_spill] sm:$0xff]  ;;  %v17673_v53 = vld [vmem:[#allocation195_spill] sm:$0xff] }
 0x468   : > { %v2829_v47 = vmul.f32 %v14512_v28, %v17662_v19  ;;  %v3008_v32 = vmul.f32 %v17663_v41, %v17641_v22  ;;  %7186 = vmatprep.mubr.msk.bf16.mxu1 %vm1041_vm3, %v5454_v17  ;;  %v3009_v4 = vmul.f32 %v17663_v41, %v17664_v18  ;;  %v3188_v8 = vmul.f32 %v17665_v16, %v17646_v51  ;;  %v17674_v17 = vld [vmem:[#allocation50_spill] sm:$0xff] }
 0x469   : > { %v4942_v63 = vadd.f32 %v4798_v24, %v3790_v59  ;;  %v4943_v56 = vadd.f32 %v4799_v37, %v3791_v0  ;;  %v3189_v48 = vmul.f32 %v17665_v16, %v17666_v43  ;;  %v3368_v7 = vmul.f32 %v14595_v10, %v17667_v45  ;;  %v17672_v0 = vld [vmem:[#allocation190_spill] sm:$0xff] }
 0x46a   : > { %v3369_v20 = vmul.f32 %v14600_v29, %v17667_v45  ;;  %v3548_v61 = vmul.f32 %v17669_v35, %v17668_v5  ;;  %v2171_v59 = vmul.f32 %v17650_v49, %v17670_v25  ;;  %v3549_v58 = vmul.f32 %v17669_v35, %v17672_v0  ;;  %v17676_v0 = vld [vmem:[#allocation192_spill] sm:$0xff] }
 0x46b   : > { %v5122_v11 = vadd.f32 %v17671_v52, %v4942_v63  ;;  %v5123_v62 = vadd.f32 %v17671_v52, %v4943_v56  ;;  %v2108_v24 = vmul.f32 %v17674_v17, %v17673_v53  ;;  %v3872_v37 = vadd.f32 %v2468_v9, %v2288_v55  ;;  %v17675_v56 = vld [vmem:[#allocation191_spill] sm:$0xff] }
 0x46c   : > { %v3873_v16 = vadd.f32 %v2469_v31, %v2289_v26  ;;  %v4016_v41 = vadd.f32 %v2828_v27, %v2648_v54  ;;  %v4017_v34 = vadd.f32 %v2829_v47, %v2649_v30  ;;  %v4160_v6 = vadd.f32 %v3188_v8, %v3008_v32  ;;  %v17679_v32 = vld [vmem:[#allocation214_spill] sm:$0xff] }
 0x46d   : > { %v5266_v45 = vmax.f32 %v5122_v11, 0.0  ;;  %v5267_v19 = vmax.f32 %v5123_v62, 0.0  ;;  %v4161_v46 = vadd.f32 %v3189_v48, %v3009_v4  ;;  %v4304_v15 = vadd.f32 %v3548_v61, %v3368_v7  ;;  %v17680_v4 = vld [vmem:[#allocation68_spill] sm:$0xff]  ;;  %v17681_v8 = vld [vmem:[#allocation210_spill] sm:$0xff] }
 0x46e   : > { %v4305_v49 = vadd.f32 %v3549_v58, %v3369_v20  ;;  %v4448_v25 = vadd.f32 %v4016_v41, %v3872_v37  ;;  %v3728_v52 = vmul.f32 %v17647_v38, %v17675_v56  ;;  %v4449_v35 = vadd.f32 %v4017_v34, %v3873_v16  ;;  %v17678_v41 = vld [vmem:[#allocation197_spill] sm:$0xff] }
 0x46f   : > { %v5410_v63 = vmul.f32 %v5266_v45, %v2170_v60  ;;  %v5411_v33 = vmul.f32 %v5267_v19, %v2171_v59  ;;  %v3729_v53 = vmul.f32 %v17647_v38, %v17676_v0  ;;  %v4592_v55 = vadd.f32 %v4304_v15, %v4160_v6 }
 0x470   : > { %v4593_v26 = vadd.f32 %v4305_v49, %v4161_v46  ;;  %v2352_v9 = vmul.f32 %v7899_v1, %v14139_v57  ;;  %v2353_v54 = vmul.f32 %v7900_v42, %v14139_v57  ;;  %v2532_v30 = vmul.f32 %v14142_v12, %v17656_v39 }
 0x471   : > { %v5486_v31 = vpack.c.bf16 %v5411_v33, %v5410_v63  ;;  %v2533_v60 = vmul.f32 %v14142_v12, %v17658_v40  ;;  %v4736_v19 = vadd.f32 %v4592_v55, %v4448_v25  ;;  %v2712_v34 = vmul.f32 %v14145_v3, %v17659_v2  ;;  %v17682_v63 = vld [vmem:[#allocation242_spill] sm:$0xff] }
 0x472   : > { %v4737_v27 = vadd.f32 %v4593_v26, %v4449_v35  ;;  %v2713_v15 = vmul.f32 %v14145_v3, %v17661_v36  ;;  %v2892_v33 = vmul.f32 %v14505_v23, %v14148_v21  ;;  %v2893_v1 = vmul.f32 %v14512_v28, %v14148_v21  ;;  %v17677_v36 = vld [vmem:[#allocation190_spill] sm:$0xff] }
 0x473   : > { %7258 = vmatprep.mubr.msk.bf16.mxu0 %vm1041_vm3, %v5486_v31  ;;  %v3072_v46 = vmul.f32 %v17535_v13, %v17641_v22  ;;  %v3073_v42 = vmul.f32 %v17535_v13, %v17664_v18  ;;  %v4880_v39 = vadd.f32 %v4736_v19, %v3728_v52  ;;  %v3252_v40 = vmul.f32 %v17537_v44, %v17646_v51  ;;  %v17683_v31 = vld [vmem:[#allocation57_spill] sm:$0xff] }
 0x474   : > { %v4881_v6 = vadd.f32 %v4737_v27, %v3729_v53  ;;  %v3253_v2 = vmul.f32 %v17537_v44, %v17666_v43  ;;  %v3432_v23 = vmul.f32 %v14595_v10, %v17614_v14  ;;  %v3433_v28 = vmul.f32 %v14600_v29, %v17614_v14  ;;  %v17684_v27 = vld [vmem:[#allocation155_spill] sm:$0xff] }
 0x475   : > { %v3612_v22 = vmul.f32 %v17617_v50, %v17668_v5  ;;  %v3613_v47 = vmul.f32 %v17617_v50, %v17677_v36  ;;  %v2109_v18 = vmul.f32 %v17679_v32, %v17678_v41  ;;  %v5060_v51 = vadd.f32 %v17680_v4, %v4880_v39 }
 0x476   : > { %v5061_v16 = vadd.f32 %v17680_v4, %v4881_v6  ;;  %v2172_v43 = vmul.f32 %v17674_v17, %v17681_v8  ;;  %v3936_v48 = vadd.f32 %v2532_v30, %v2352_v9  ;;  %v3937_v45 = vadd.f32 %v2533_v60, %v2353_v54  ;;  %v7903_v9 = vld [vmem:[%s8087_s12 + $0x90] sm:$0xff]  ;;  %v7904_v30 = vld [vmem:[%s8087_s12 + $0x98] sm:$0xff]  ;;  %v17689_v6 = vld [vmem:[#allocation203_spill] sm:$0xff] }
 0x477   : > { %v4080_v7 = vadd.f32 %v2892_v33, %v2712_v34  ;;  %v4081_v20 = vadd.f32 %v2893_v1, %v2713_v15  ;;  %v5204_v35 = vmax.f32 %v5060_v51, 0.0  ;;  %v4224_v59 = vadd.f32 %v3252_v40, %v3072_v46  ;;  %v17685_v34 = vld [vmem:[#allocation58_spill] sm:$0xff]  ;;  %v17686_v15 = vld [vmem:[#allocation156_spill] sm:$0xff]  ;;  %v17688_v46 = vld [vmem:[#allocation59_spill] sm:$0xff] }
 0x478   : > { %v5205_v61 = vmax.f32 %v5061_v16, 0.0  ;;  %v4225_v52 = vadd.f32 %v3253_v2, %v3073_v42  ;;  %v4368_v11 = vadd.f32 %v3612_v22, %v3432_v23  ;;  %v4369_v62 = vadd.f32 %v3613_v47, %v3433_v28  ;;  %v17687_v1 = vld [vmem:[#allocation200_spill] sm:$0xff]  ;;  %v17690_v2 = vld [vmem:[#allocation51_spill] sm:$0xff]  ;;  %v17692_v47 = vld [vmem:[#allocation186_spill] sm:$0xff] }
 0x479   : > { %v4512_v58 = vadd.f32 %v4080_v7, %v3936_v48  ;;  %v4513_v37 = vadd.f32 %v4081_v20, %v3937_v45  ;;  %v5348_v49 = vmul.f32 %v5204_v35, %v2108_v24  ;;  %v3792_v53 = vmul.f32 %v17682_v63, %v17675_v56  ;;  %v17691_v22 = vld [vmem:[#allocation52_spill] sm:$0xff]  ;;  %v17694_v48 = vld [vmem:[#allocation189_spill] sm:$0xff]  ;;  %v14685_v7 = vld [vmem:[%s8087_s12 + $0xc0] sm:$0xff] }
 0x47a   : > { %v5349_v25 = vmul.f32 %v5205_v61, %v2109_v18  ;;  %v3793_v17 = vmul.f32 %v17682_v63, %v17676_v0  ;;  %v4656_v55 = vadd.f32 %v4368_v11, %v4224_v59  ;;  %v4657_v26 = vadd.f32 %v4369_v62, %v4225_v52  ;;  %v17693_v18 = vld [vmem:[#allocation53_spill] sm:$0xff]  ;;  %v17695_v20 = vld [vmem:[#allocation55_spill] sm:$0xff]  ;;  %v17696_v61 = vld [vmem:[#allocation212_spill] sm:$0xff] }
 0x47b   : > { %v2290_v54 = vmul.f32 %v7903_v9, %v17683_v31  ;;  %v2291_v60 = vmul.f32 %v7904_v30, %v17683_v31  ;;  %v2470_v24 = vmul.f32 %v17685_v34, %v17684_v27  ;;  %v2471_v33 = vmul.f32 %v17685_v34, %v17686_v15  ;;  %v14692_v52 = vld [vmem:[%s8087_s12 + $0xc8] sm:$0xff]  ;;  %v17697_v62 = vld [vmem:[#allocation208_spill] sm:$0xff] }
 0x47c   : > { %v5455_v19 = vpack.c.bf16 %v5349_v25, %v5348_v49  ;;  %v2650_v42 = vmul.f32 %v17688_v46, %v17687_v1  ;;  %v4800_v0 = vadd.f32 %v4656_v55, %v4512_v58  ;;  %v4801_v39 = vadd.f32 %v4657_v26, %v4513_v37  ;;  %v17698_v58 = vld [vmem:[#allocation54_spill] sm:$0xff]  ;;  %v17699_v49 = vld [vmem:[#allocation211_spill] sm:$0xff]  ;;  %v17701_v26 = vld [vmem:[#allocation161_spill] sm:$0xff] }
 0x47d   : > { %v2651_v40 = vmul.f32 %v17688_v46, %v17689_v6  ;;  %v2830_v23 = vmul.f32 %v14595_v10, %v17690_v2  ;;  %v2831_v28 = vmul.f32 %v14600_v29, %v17690_v2  ;;  %v3010_v36 = vmul.f32 %v17691_v22, %v17668_v5  ;;  %v17703_v31 = vld [vmem:[#allocation179_spill] sm:$0xff] }
 0x47e   : > { %7187 = vmatmul.mubr.msk.bf16.vlgmr.msra.gmra.mrb[8].mxu1 %vm1041_vm3, %v5455_v19  ;;  %v3011_v41 = vmul.f32 %v17691_v22, %v17692_v47  ;;  %v3190_v51 = vmul.f32 %v17693_v18, %v17675_v56  ;;  %v4944_v16 = vadd.f32 %v4800_v0, %v3792_v53  ;;  %v4945_v8 = vadd.f32 %v4801_v39, %v3793_v17  ;;  %v17700_v53 = vld [vmem:[#allocation165_spill] sm:$0xff]  ;;  %v17702_v19 = vld [vmem:[#allocation16_spill] sm:$0xff] }
 0x47f   : > { %v3191_v45 = vmul.f32 %v17693_v18, %v17694_v48  ;;  %v3370_v35 = vmul.f32 %v14685_v7, %v17695_v20  ;;  %v2173_v59 = vmul.f32 %v17679_v32, %v17696_v61  ;;  %v3371_v11 = vmul.f32 %v14692_v52, %v17695_v20 }
 0x480   : > { %v3550_v37 = vmul.f32 %v17698_v58, %v17697_v62  ;;  %v3551_v25 = vmul.f32 %v17698_v58, %v17699_v49  ;;  %v5124_v17 = vadd.f32 %v17700_v53, %v4944_v16  ;;  %v5125_v55 = vadd.f32 %v17700_v53, %v4945_v8  ;;  %v17704_v53 = vld [vmem:[#allocation180_spill] sm:$0xff] }
 0x481   : > { %v2110_v0 = vmul.f32 %v17702_v19, %v17701_v26  ;;  %v3874_v39 = vadd.f32 %v2470_v24, %v2290_v54  ;;  %v3875_v32 = vadd.f32 %v2471_v33, %v2291_v60  ;;  %v4018_v61 = vadd.f32 %v2830_v23, %v2650_v42 }
 0x482   : > { %v4019_v18 = vadd.f32 %v2831_v28, %v2651_v40  ;;  %v4162_v22 = vadd.f32 %v3190_v51, %v3010_v36  ;;  %v5268_v2 = vmax.f32 %v5124_v17, 0.0  ;;  %v5269_v20 = vmax.f32 %v5125_v55, 0.0 }
 0x483   : > { %v4163_v46 = vadd.f32 %v3191_v45, %v3011_v41  ;;  %v4306_v34 = vadd.f32 %v3550_v37, %v3370_v35  ;;  %v3730_v63 = vmul.f32 %v17647_v38, %v17703_v31  ;;  %v4307_v58 = vadd.f32 %v3551_v25, %v3371_v11 }
 0x484   : > { %v4450_v49 = vadd.f32 %v4018_v61, %v3874_v39  ;;  %v4451_v16 = vadd.f32 %v4019_v18, %v3875_v32  ;;  %v5412_v50 = vmul.f32 %v5268_v2, %v2172_v43  ;;  %v5413_v8 = vmul.f32 %v5269_v20, %v2173_v59  ;;  %v17708_v18 = vld [vmem:[#allocation211_spill] sm:$0xff]  ;;  %v17710_v32 = vld [vmem:[#allocation242_spill] sm:$0xff] }
 0x485   : > { %v3731_v26 = vmul.f32 %v17647_v38, %v17704_v53  ;;  %v4594_v54 = vadd.f32 %v4306_v34, %v4162_v22  ;;  %v4595_v60 = vadd.f32 %v4307_v58, %v4163_v46  ;;  %v2354_v24 = vmul.f32 %v7903_v9, %v14139_v57  ;;  %v17706_v22 = vld [vmem:[#allocation36_spill] sm:$0xff] }
 0x486   : > { %v2355_v33 = vmul.f32 %v7904_v30, %v14139_v57  ;;  %v2534_v42 = vmul.f32 %v14142_v12, %v17684_v27  ;;  %v5487_v40 = vpack.c.bf16 %v5413_v8, %v5412_v50  ;;  %v2535_v28 = vmul.f32 %v14142_v12, %v17686_v15 }
 0x487   : > { %v4738_v23 = vadd.f32 %v4594_v54, %v4450_v49  ;;  %v2714_v43 = vmul.f32 %v14145_v3, %v17687_v1  ;;  %v4739_v2 = vadd.f32 %v4595_v60, %v4451_v16  ;;  %v2715_v34 = vmul.f32 %v14145_v3, %v17689_v6 }
 0x488   : > { %v2894_v9 = vmul.f32 %v14595_v10, %v14148_v21  ;;  %v2895_v30 = vmul.f32 %v14600_v29, %v14148_v21  ;;  %7259 = vmatmul.mubr.msk.bf16.gmra.mrb[8].mxu0 %vm1041_vm3, %v5487_v40  ;;  %v3074_v27 = vmul.f32 %v17535_v13, %v17668_v5  ;;  %v3075_v15 = vmul.f32 %v17535_v13, %v17692_v47  ;;  %v17707_v47 = vld [vmem:[#allocation241_spill] sm:$0xff]  ;;  %v7908_v40 = vld [vmem:[%s8087_s12 + $0xb0] sm:$0xff] }
 0x489   : > { %v4882_v50 = vadd.f32 %v4738_v23, %v3730_v63  ;;  %v3254_v1 = vmul.f32 %v17537_v44, %v17675_v56  ;;  %v4883_v46 = vadd.f32 %v4739_v2, %v3731_v26  ;;  %v3255_v6 = vmul.f32 %v17537_v44, %v17694_v48  ;;  %v17705_v63 = vld [vmem:[#allocation217_spill] sm:$0xff]  ;;  %v17709_v48 = vld [vmem:[#allocation227_spill] sm:$0xff] }
 0x48a   : > { %v3434_v10 = vmul.f32 %v14685_v7, %v17614_v14  ;;  %v3435_v29 = vmul.f32 %v14692_v52, %v17614_v14  ;;  %v2111_v36 = vmul.f32 %v17706_v22, %v17705_v63  ;;  %v3614_v41 = vmul.f32 %v17707_v47, %v17697_v62  ;;  %v17714_v2 = vld [vmem:[#allocation221_spill] sm:$0xff]  ;;  %v17719_v63 = vld [vmem:[#allocation52_spill] sm:$0xff] }
 0x48b   : > { %v5062_v5 = vadd.f32 %v17680_v4, %v4882_v50  ;;  %v3615_v56 = vmul.f32 %v17707_v47, %v17708_v18  ;;  %v5063_v51 = vadd.f32 %v17680_v4, %v4883_v46  ;;  %v2174_v45 = vmul.f32 %v17702_v19, %v17709_v48  ;;  %v17720_v18 = vld [vmem:[#allocation204_spill] sm:$0xff] }
 0x48c   : > { %v3938_v20 = vadd.f32 %v2534_v42, %v2354_v24  ;;  %v3939_v35 = vadd.f32 %v2535_v28, %v2355_v33  ;;  %v4082_v11 = vadd.f32 %v2894_v9, %v2714_v43  ;;  %v4083_v58 = vadd.f32 %v2895_v30, %v2715_v34  ;;  %v7907_v24 = vld [vmem:[%s8087_s12 + $0xa8] sm:$0xff]  ;;  %v17711_v33 = vld [vmem:[#allocation57_spill] sm:$0xff]  ;;  %v17713_v43 = vld [vmem:[#allocation58_spill] sm:$0xff] }
 0x48d   : > { %v5206_v59 = vmax.f32 %v5062_v5, 0.0  ;;  %v4226_v37 = vadd.f32 %v3254_v1, %v3074_v27  ;;  %v5207_v49 = vmax.f32 %v5063_v51, 0.0  ;;  %v4227_v25 = vadd.f32 %v3255_v6, %v3075_v15  ;;  %v17712_v28 = vld [vmem:[#allocation219_spill] sm:$0xff]  ;;  %v17717_v1 = vld [vmem:[#allocation228_spill] sm:$0xff]  ;;  %v17721_v51 = vld [vmem:[#allocation53_spill] sm:$0xff] }
 0x48e   : > { %v4370_v17 = vadd.f32 %v3614_v41, %v3434_v10  ;;  %v4371_v55 = vadd.f32 %v3615_v56, %v3435_v29  ;;  %v3794_v61 = vmul.f32 %v17710_v32, %v17703_v31  ;;  %v4514_v16 = vadd.f32 %v4082_v11, %v3938_v20  ;;  %v17716_v27 = vld [vmem:[#allocation59_spill] sm:$0xff]  ;;  %v17722_v20 = vld [vmem:[#allocation209_spill] sm:$0xff] }
 0x48f   : > { %v5350_v39 = vmul.f32 %v5206_v59, %v2110_v0  ;;  %v4515_v8 = vadd.f32 %v4083_v58, %v3939_v35  ;;  %v5351_v26 = vmul.f32 %v5207_v49, %v2111_v36  ;;  %v3795_v19 = vmul.f32 %v17710_v32, %v17704_v53  ;;  %v17715_v53 = vld [vmem:[#allocation226_spill] sm:$0xff]  ;;  %v17718_v6 = vld [vmem:[#allocation51_spill] sm:$0xff]  ;;  %v7909_v59 = vld [vmem:[%s8087_s12 + $0xd8] sm:$0xff] }
 0x490   : > { %v4658_v54 = vadd.f32 %v4370_v17, %v4226_v37  ;;  %v4659_v60 = vadd.f32 %v4371_v55, %v4227_v25  ;;  %v2292_v42 = vmul.f32 %v7907_v24, %v17711_v33  ;;  %v2293_v23 = vmul.f32 %v7908_v40, %v17711_v33  ;;  %v17723_v11 = vld [vmem:[#allocation55_spill] sm:$0xff]  ;;  %v7910_v37 = vld [vmem:[%s8087_s12 + $0xe0] sm:$0xff]  ;;  %s6890_s12 = sshll.u32 %s7933_s15, 3 }
 0x491   : > { %v2472_v0 = vmul.f32 %v17713_v43, %v17712_v28  ;;  %v2473_v34 = vmul.f32 %v17713_v43, %v17714_v2  ;;  %v5456_v9 = vpack.c.bf16 %v5351_v26, %v5350_v39  ;;  %v2652_v15 = vmul.f32 %v17716_v27, %v17715_v53  ;;  %v17724_v25 = vld [vmem:[#allocation230_spill] sm:$0xff]  ;;  %v17726_v39 = vld [vmem:[#allocation229_spill] sm:$0xff]  ;;  %p215_p6 = scmp.lt.s32.totalorder %s6890_s12, 15 }
 0x492   : > { %v4802_v30 = vadd.f32 %v4658_v54, %v4514_v16  ;;  %v4803_v50 = vadd.f32 %v4659_v60, %v4515_v8  ;;  %v2653_v46 = vmul.f32 %v17716_v27, %v17717_v1  ;;  %v2832_v10 = vmul.f32 %v14685_v7, %v17718_v6  ;;  %v17725_v17 = vld [vmem:[#allocation54_spill] sm:$0xff]  ;;  %v17727_v16 = vld [vmem:[#allocation165_spill] sm:$0xff] }
 0x493   : > { %v2833_v29 = vmul.f32 %v14692_v52, %v17718_v6  ;;  %v3012_v36 = vmul.f32 %v17719_v63, %v17697_v62  ;;  %7190 = vmatprep.mubr.msk.bf16.mxu1 %vm1041_vm3, %v5456_v9  ;;  %v3013_v56 = vmul.f32 %v17719_v63, %v17720_v18  ;;  %v3192_v48 = vmul.f32 %v17721_v51, %v17703_v31  ;;  %s17752_s12 = smov (!%p215_p6, %s6890_s12), 15 }
 0x494   : > { %v4946_v5 = vadd.f32 %v4802_v30, %v3794_v61  ;;  %v4947_v41 = vadd.f32 %v4803_v50, %v3795_v19  ;;  %v3193_v35 = vmul.f32 %v17721_v51, %v17722_v20  ;;  %v3372_v58 = vmul.f32 %v7909_v59, %v17723_v11  ;;  %v17728_v19 = vld [vmem:[#allocation231_spill] sm:$0xff]  ;;  %s6891_s26 = sshll.u32 %s17752_s12, 1 }
 0x495   : > { %v3373_v49 = vmul.f32 %v7910_v37, %v17723_v11  ;;  %v3552_v55 = vmul.f32 %v17725_v17, %v17724_v25  ;;  %v2175_v61 = vmul.f32 %v17706_v22, %v17726_v39  ;;  %v3553_v54 = vmul.f32 %v17725_v17, %v17728_v19  ;;  %v17729_v39 = vld [vmem:[#allocation196_spill] sm:$0xff]  ;;  %s219_s13 = sadd.s32 %s6892_s11, %s6891_s26 }
 0x496   : > { %v5126_v8 = vadd.f32 %v17727_v16, %v4946_v5  ;;  %v5127_v26 = vadd.f32 %v17727_v16, %v4947_v41  ;;  %v3876_v60 = vadd.f32 %v2472_v0, %v2292_v42  ;;  %v3877_v33 = vadd.f32 %v2473_v34, %v2293_v23  ;;  %v17730_v16 = vld [vmem:[#allocation198_spill] sm:$0xff]  ;;  %s6893_s23 = sshll.u32 %s219_s13, 3 }
 0x497   : > { %v4020_v43 = vadd.f32 %v2832_v10, %v2652_v15  ;;  %v4021_v50 = vadd.f32 %v2833_v29, %v2653_v46  ;;  %v4164_v27 = vadd.f32 %v3192_v48, %v3012_v36  ;;  %v4165_v6 = vadd.f32 %v3193_v35, %v3013_v56  ;;  %v17734_v56 = vld [vmem:[#allocation247_spill] sm:$0xff]  ;;  %s14848_s16 = scalar_lea.vmem %s14916_s4, %s6893_s23 }
 0x498   : > { %v5270_v9 = vmax.f32 %v5126_v8, 0.0  ;;  %v5271_v30 = vmax.f32 %v5127_v26, 0.0  ;;  %v4308_v63 = vadd.f32 %v3552_v55, %v3372_v58  ;;  %v4309_v51 = vadd.f32 %v3553_v54, %v3373_v49 }
 0x499   : > { %v4452_v11 = vadd.f32 %v4020_v43, %v3876_v60  ;;  %v3732_v5 = vmul.f32 %v17647_v38, %v17729_v39  ;;  %v4453_v41 = vadd.f32 %v4021_v50, %v3877_v33  ;;  %v3733_v17 = vmul.f32 %v17647_v38, %v17730_v16  ;;  %v17735_v43 = vld [vmem:[#allocation242_spill] sm:$0xff] }
 0x49a   : > { %v5414_v32 = vmul.f32 %v5270_v9, %v2174_v45  ;;  %v5415_v22 = vmul.f32 %v5271_v30, %v2175_v61  ;;  %v4596_v42 = vadd.f32 %v4308_v63, %v4164_v27  ;;  %v4597_v23 = vadd.f32 %v4309_v51, %v4165_v6 }
 0x49b   : > { %v2356_v0 = vmul.f32 %v7907_v24, %v14139_v57  ;;  %v2357_v15 = vmul.f32 %v7908_v40, %v14139_v57  ;;  %v2536_v46 = vmul.f32 %v14142_v12, %v17712_v28  ;;  %v2537_v45 = vmul.f32 %v14142_v12, %v17714_v2 }
 0x49c   : > { %v5488_v34 = vpack.c.bf16 %v5415_v22, %v5414_v32  ;;  %v4740_v10 = vadd.f32 %v4596_v42, %v4452_v11  ;;  %v4741_v29 = vadd.f32 %v4597_v23, %v4453_v41  ;;  %v2716_v36 = vmul.f32 %v14145_v3, %v17715_v53  ;;  %v17738_v42 = vld [vmem:[#allocation165_spill] sm:$0xff] }
 0x49d   : > { %v2717_v38 = vmul.f32 %v14145_v3, %v17717_v1  ;;  %v2896_v32 = vmul.f32 %v14685_v7, %v14148_v21  ;;  %v2897_v57 = vmul.f32 %v14692_v52, %v14148_v21  ;;  %v3076_v24 = vmul.f32 %v17535_v13, %v17697_v62  ;;  %v17731_v62 = vld [vmem:[#allocation49_spill] sm:$0xff] }
 0x49e   : > { %7262 = vmatprep.mubr.msk.bf16.mxu0 %vm1041_vm3, %v5488_v34  ;;  %v3077_v12 = vmul.f32 %v17535_v13, %v17720_v18  ;;  %v4884_v40 = vadd.f32 %v4740_v10, %v3732_v5  ;;  %v4885_v28 = vadd.f32 %v4741_v29, %v3733_v17  ;;  %v3256_v2 = vmul.f32 %v17537_v44, %v17703_v31  ;;  %v17732_v13 = vld [vmem:[#allocation246_spill] sm:$0xff]  ;;  %v17736_v5 = vld [vmem:[#allocation240_spill] sm:$0xff]  ;;  %v17737_v17 = vld [vmem:[#allocation243_spill] sm:$0xff] }
 0x49f   : > { %v3257_v3 = vmul.f32 %v17537_v44, %v17722_v20  ;;  %v3436_v53 = vmul.f32 %v7909_v59, %v17614_v14  ;;  %v3437_v7 = vmul.f32 %v7910_v37, %v17614_v14  ;;  %v3616_v21 = vmul.f32 %v17707_v47, %v17724_v25  ;;  %v17733_v18 = vld [vmem:[#allocation6_spill] sm:$0xff] }
 0x4a0   : > { %v3617_v52 = vmul.f32 %v17707_v47, %v17728_v19  ;;  %v2112_v1 = vmul.f32 %v17732_v13, %v17731_v62  ;;  %v2113_v48 = vmul.f32 %v17734_v56, %v17733_v18  ;;  %v5064_v31 = vadd.f32 %v17680_v4, %v4884_v40 }
 0x4a1   : > { %v5065_v44 = vadd.f32 %v17680_v4, %v4885_v28  ;;  %v3940_v20 = vadd.f32 %v2536_v46, %v2356_v0  ;;  %v3941_v35 = vadd.f32 %v2537_v45, %v2357_v15  ;;  %v4084_v59 = vadd.f32 %v2896_v32, %v2716_v36 }
 0x4a2   : > { %v4085_v14 = vadd.f32 %v2897_v57, %v2717_v38  ;;  %v5208_v58 = vmax.f32 %v5064_v31, 0.0  ;;  %v4228_v49 = vadd.f32 %v3256_v2, %v3076_v24  ;;  %v4229_v25 = vadd.f32 %v3257_v3, %v3077_v12  ;;  %v7162_v55 = vpop.f32.mrb[0].mxu1  ;;  %v14842_v57 = vld [vmem:[%s14915_s3] ss:$0 sm:$0xff] }
 0x4a3   : > { %v5209_v37 = vmax.f32 %v5065_v44, 0.0  ;;  %v4372_v47 = vadd.f32 %v3616_v21, %v3436_v53  ;;  %v4373_v61 = vadd.f32 %v3617_v52, %v3437_v7  ;;  %v4516_v8 = vadd.f32 %v4084_v59, %v3940_v20  ;;  %v5949_v19 = vpop.f32.mrb[1].mxu1 }
 0x4a4   : > { %v4517_v26 = vadd.f32 %v4085_v14, %v3941_v35  ;;  %v5352_v54 = vmul.f32 %v5208_v58, %v2112_v1  ;;  %v7163_v33 = vpop.f32.mrb[2].mxu1  ;;  %v3796_v4 = vmul.f32 %v17735_v43, %v17729_v39  ;;  %v3797_v9 = vmul.f32 %v17735_v43, %v17730_v16 }
 0x4a5   : > { %v5353_v60 = vmul.f32 %v5209_v37, %v2113_v48  ;;  %v4660_v30 = vadd.f32 %v4372_v47, %v4228_v49  ;;  %v4661_v50 = vadd.f32 %v4373_v61, %v4229_v25  ;;  %v5952_v27 = vpop.f32.mrb[3].mxu1  ;;  %v2176_v41 = vmul.f32 %v17732_v13, %v17736_v5 }
 0x4a6   : > { %v2177_v39 = vmul.f32 %v17734_v56, %v17737_v17 }
 0x4a7   : > { %v5457_v6 = vpack.c.bf16 %v5353_v60, %v5352_v54  ;;  %v4804_v63 = vadd.f32 %v4660_v30, %v4516_v8  ;;  %v4805_v51 = vadd.f32 %v4661_v50, %v4517_v26 }
 0x4a9   : > { %7191 = vmatmul.mubr.msk.bf16.gmra.mrb[12].mxu1 %vm1041_vm3, %v5457_v6  ;;  %v4948_v11 = vadd.f32 %v4804_v63, %v3796_v4  ;;  %v4949_v22 = vadd.f32 %v4805_v51, %v3797_v9 }
 0x4ab   : > { %v5128_v23 = vadd.f32 %v17738_v42, %v4948_v11  ;;  %v5129_v16 = vadd.f32 %v17738_v42, %v4949_v22 }
 0x4ad   : > { %v5272_v0 = vmax.f32 %v5128_v23, 0.0  ;;  %v5273_v34 = vmax.f32 %v5129_v16, 0.0 }
 0x4af   : > { %v5416_v15 = vmul.f32 %v5272_v0, %v2176_v41  ;;  %v5417_v46 = vmul.f32 %v5273_v34, %v2177_v39 }
 0x4b1   : > { %v5489_v45 = vpack.c.bf16 %v5417_v46, %v5416_v15 }
 0x4b3   : > { %7263 = vmatmul.mubr.msk.bf16.gmra.mrb[12].mxu0 %vm1041_vm3, %v5489_v45 }
 0x4cd   : > { %v7166_v10 = vpop.f32.mrb[4].mxu1 }
 0x4ce   : > { %v5965_v29 = vpop.f32.mrb[5].mxu1 }
 0x4cf   : > { %v7167_v36 = vpop.f32.mrb[6].mxu1 }
 0x4d0   : > { %v5968_v38 = vpop.f32.mrb[7].mxu1 }
 0x505   : > { %v7252_v32 = vpop.f32.mrb[0].mxu0 }
 0x506   : > { %v7268_v24 = vadd.f32 %v7252_v32, %v7162_v55  ;;  %v6649_v12 = vpop.f32.mrb[1].mxu0 }
 0x507   : > { %v7269_v40 = vadd.f32 %v6649_v12, %v5949_v19  ;;  %v7253_v28 = vpop.f32.mrb[2].mxu0 }
 0x508   : > { %v6737_v2 = vadd.f32 %v7268_v24, %v14842_v57  ;;  %v7270_v3 = vadd.f32 %v7253_v28, %v7163_v33  ;;  %v6652_v53 = vpop.f32.mrb[3].mxu0 }
 0x509   : > { %v6735_v7 = vadd.f32 %v7269_v40, %v14842_v57  ;;  %v7271_v21 = vadd.f32 %v6652_v53, %v5952_v27 }
 0x50a   : > { %v6753_v52 = vmax.f32 %v6737_v2, 0.0  ;;  %v6738_v62 = vadd.f32 %v7270_v3, %v14842_v57 }
 0x50b   : > { %v6751_v13 = vmax.f32 %v6735_v7, 0.0  ;;  %v6736_v1 = vadd.f32 %v7271_v21, %v14842_v57 }
 0x50c   : > { %6770 = vst.msk [vmem:[%s14848_s16 + $0x10] sm:$0xff] %vm6767_vm4, %v6753_v52  ;;  %v6754_v18 = vmax.f32 %v6738_v62, 0.0 }
 0x50d   : > { %6768 = vst.msk [vmem:[%s14848_s16] sm:$0xff] %vm6767_vm4, %v6751_v13  ;;  %v6752_v56 = vmax.f32 %v6736_v1, 0.0 }
 0x50e   : > { %6771 = vst.msk [vmem:[%s14848_s16 + $0x18] sm:$0xff] %vm6767_vm4, %v6754_v18 }
 0x50f   : > { %6769 = vst.msk [vmem:[%s14848_s16 + $0x8] sm:$0xff] %vm6767_vm4, %v6752_v56 }
 0x530   : > { %v7256_v48 = vpop.f32.mrb[4].mxu0 }
 0x531   : > { %v7272_v31 = vadd.f32 %v7256_v48, %v7166_v10  ;;  %v6665_v44 = vpop.f32.mrb[5].mxu0 }
 0x532   : > { %v7273_v20 = vadd.f32 %v6665_v44, %v5965_v29  ;;  %v7257_v35 = vpop.f32.mrb[6].mxu0 }
 0x533   : > { %v6741_v59 = vadd.f32 %v7272_v31, %v14842_v57  ;;  %v7274_v14 = vadd.f32 %v7257_v35, %v7167_v36  ;;  %v6668_v58 = vpop.f32.mrb[7].mxu0 }
 0x534   : > { %v6739_v37 = vadd.f32 %v7273_v20, %v14842_v57  ;;  %v7275_v49 = vadd.f32 %v6668_v58, %v5968_v38 }
 0x535   : > { %v6757_v25 = vmax.f32 %v6741_v59, 0.0  ;;  %v6742_v55 = vadd.f32 %v7274_v14, %v14842_v57 }
 0x536   : > { %v6755_v47 = vmax.f32 %v6739_v37, 0.0  ;;  %v6740_v61 = vadd.f32 %v7275_v49, %v14842_v57 }
 0x537   : > { %6774 = vst.msk [vmem:[%s14848_s16 + $0x30] sm:$0xff] %vm6767_vm4, %v6757_v25  ;;  %v6758_v8 = vmax.f32 %v6742_v55, 0.0 }
 0x538   : > { %6772 = vst.msk [vmem:[%s14848_s16 + $0x20] sm:$0xff] %vm6767_vm4, %v6755_v47  ;;  %v6756_v26 = vmax.f32 %v6740_v61, 0.0 }
 0x539   : > { %6775 = vst.msk [vmem:[%s14848_s16 + $0x38] sm:$0xff] %vm6767_vm4, %v6758_v8 }
 0x53a   : > { %6773 = vst.msk [vmem:[%s14848_s16 + $0x28] sm:$0xff] %vm6767_vm4, %v6756_v26 }
 0x551   : > { %v7188_v19 = vpop.f32.mrb[8].mxu1 }
 0x552   : > { %v6121_v54 = vpop.f32.mrb[9].mxu1 }
 0x553   : > { %v7189_v60 = vpop.f32.mrb[10].mxu1 }
 0x554   : > { %v6124_v33 = vpop.f32.mrb[11].mxu1 }
 0x55b   : > { %v7260_v43 = vpop.f32.mrb[8].mxu0 }
 0x55c   : > { %v7276_v4 = vadd.f32 %v7260_v43, %v7188_v19  ;;  %v6681_v9 = vpop.f32.mrb[9].mxu0 }
 0x55d   : > { %v7277_v30 = vadd.f32 %v6681_v9, %v6121_v54  ;;  %v7261_v50 = vpop.f32.mrb[10].mxu0 }
 0x55e   : > { %v6745_v27 = vadd.f32 %v7276_v4, %v14842_v57  ;;  %v7278_v6 = vadd.f32 %v7261_v50, %v7189_v60  ;;  %v6684_v63 = vpop.f32.mrb[11].mxu0 }
 0x55f   : > { %v6743_v51 = vadd.f32 %v7277_v30, %v14842_v57  ;;  %v7279_v11 = vadd.f32 %v6684_v63, %v6124_v33 }
 0x560   : > { %v6761_v22 = vmax.f32 %v6745_v27, 0.0  ;;  %v6746_v5 = vadd.f32 %v7278_v6, %v14842_v57 }
 0x561   : > { %v6759_v41 = vmax.f32 %v6743_v51, 0.0  ;;  %v6744_v17 = vadd.f32 %v7279_v11, %v14842_v57 }
 0x562   : > { %6778 = vst.msk [vmem:[%s14848_s16 + $0x50] sm:$0xff] %vm6767_vm4, %v6761_v22  ;;  %v6762_v39 = vmax.f32 %v6746_v5, 0.0 }
 0x563   : > { %6776 = vst.msk [vmem:[%s14848_s16 + $0x40] sm:$0xff] %vm6767_vm4, %v6759_v41  ;;  %v6760_v42 = vmax.f32 %v6744_v17, 0.0 }
 0x564   : > { %6779 = vst.msk [vmem:[%s14848_s16 + $0x58] sm:$0xff] %vm6767_vm4, %v6762_v39 }
 0x565   : > { %6777 = vst.msk [vmem:[%s14848_s16 + $0x48] sm:$0xff] %vm6767_vm4, %v6760_v42 }
 0x57c   : > { %v7192_v23 = vpop.f32.mrb[12].mxu1 }
 0x57d   : > { %v6137_v16 = vpop.f32.mrb[13].mxu1 }
 0x57e   : > { %v7193_v0 = vpop.f32.mrb[14].mxu1 }
 0x57f   : > { %v6140_v34 = vpop.f32.mrb[15].mxu1 }
 0x586   : > { %v7264_v15 = vpop.f32.mrb[12].mxu0 }
 0x587   : > { %v7280_v46 = vadd.f32 %v7264_v15, %v7192_v23  ;;  %v6697_v45 = vpop.f32.mrb[13].mxu0 }
 0x588   : > { %v7281_v10 = vadd.f32 %v6697_v45, %v6137_v16  ;;  %v7265_v29 = vpop.f32.mrb[14].mxu0 }
 0x589   : > { %v6749_v36 = vadd.f32 %v7280_v46, %v14842_v57  ;;  %v7282_v38 = vadd.f32 %v7265_v29, %v7193_v0  ;;  %v6700_v32 = vpop.f32.mrb[15].mxu0 }
 0x58a   : > { %v6747_v24 = vadd.f32 %v7281_v10, %v14842_v57  ;;  %v7283_v12 = vadd.f32 %v6700_v32, %v6140_v34 }
 0x58b   : > { %v6765_v40 = vmax.f32 %v6749_v36, 0.0  ;;  %v6750_v28 = vadd.f32 %v7282_v38, %v14842_v57 }
 0x58c   : > { %v6763_v2 = vmax.f32 %v6747_v24, 0.0  ;;  %v6748_v3 = vadd.f32 %v7283_v12, %v14842_v57 }
 0x58d   : > { %6782 = vst.msk [vmem:[%s14848_s16 + $0x70] sm:$0xff] %vm6767_vm4, %v6765_v40  ;;  %v6766_v53 = vmax.f32 %v6750_v28, 0.0 }
 0x58e   : > { %6780 = vst.msk [vmem:[%s14848_s16 + $0x60] sm:$0xff] %vm6767_vm4, %v6763_v2  ;;  %v6764_v7 = vmax.f32 %v6748_v3, 0.0 }
 0x58f   : > { %6783 = vst.msk [vmem:[%s14848_s16 + $0x78] sm:$0xff] %vm6767_vm4, %v6766_v53 }
 0x590   : > { %6781 = vst.msk [vmem:[%s14848_s16 + $0x68] sm:$0xff] %vm6767_vm4, %v6764_v7 }
 0x591 PF: > { %s14_s19 = sadd.s32 1, %s7949_s19   ;;  %s17739_s15 = smov %s7941_s17 }
 0x592   : > { %p11_p7 = scmp.ge.s32.totalorder %s14_s19, 6   ;;  %s17740_s16 = smov %s7945_s18 }
 0x593   : > { %s17741_s17 = smov %s17744_s20  ;;  %s17742_s18 = smov %s17748_s21 }
 0x594   :  { %13 = sbr.rel (!%p11_p7) target bundleno = 3 (0x3), region = 69 }

</bundles_post_ra>
